<compile_context>
chip_gen: v7x
topology: tpu7x:2x2x1
jax: 0.10.0
libtpu: 0.0.40
codegen_flags: <defaults>
</compile_context>

<pallas_src>
import jax
import jax.numpy as jnp
import numpy as np
from jax.experimental import pallas as pl
from jax.experimental.pallas import tpu as pltpu

EXPANSION = 4
NEG_SLOPE = 0.01      # nn.LeakyReLU() default
LN_EPS = 1e-5         # nn.LayerNorm default eps
K = 5                 # conv_2 kernel size
PAD = 2               # conv_2 padding
CP = 128              # padded channel width (lane-dense)


# --------------------------------- kernel -----------------------------------
def _make_kernel(nb, H, W, cnt1, cnt2, cnt3):
    """Build the fused bottleneck kernel for `nb` samples per grid step."""
    HW = H * W
    R = nb * HW

    def leaky(v):
        return jnp.where(v >= 0, v, NEG_SLOPE * v)

    def layer_norm_lrelu(v2d, g_ref, b_ref, cnt):
        # v2d: (R, CP).  LayerNorm([C,H,W]) == per-sample normalization.
        # Padded lanes of v2d are exactly zero, so summing the padded array
        # equals summing the real elements; divide by the real count.  Single
        # pass: sum and sum(x^2), var = E[x^2] - mu^2 (fused LN).
        v3 = v2d.reshape(nb, HW, CP)
        s = jnp.sum(v3, axis=2, keepdims=True)
        s = jnp.sum(s, axis=1, keepdims=True)                    # (nb,1,1)
        s2 = jnp.sum(v3 * v3, axis=2, keepdims=True)
        s2 = jnp.sum(s2, axis=1, keepdims=True)                  # (nb,1,1)
        inv_cnt = 1.0 / float(cnt)
        mu = s * inv_cnt
        var = jnp.maximum(s2 * inv_cnt - mu * mu, 0.0)
        inv = jax.lax.rsqrt(var + LN_EPS)
        g = g_ref[...][None]                                     # (1,HW,CP), zero-padded lanes
        b = b_ref[...][None]
        out = (v3 - mu) * inv * g + b                            # padded lanes stay 0
        return leaky(out).reshape(R, CP)

    def kernel(x_ref, w1_ref, b1_ref, g1_ref, be1_ref,
               w2c_ref, b2_ref, g2_ref, be2_ref,
               w3_ref, b3_ref, g3_ref, be3_ref,
               o_ref, pad_ref, col_ref):
        x = x_ref[...]                                           # (R, CP)

        # conv_1: 1x1 ConvTranspose2d (stride 1) == one dense channel matmul.
        h = jnp.dot(x, w1_ref[...], preferred_element_type=jnp.float32) + b1_ref[...]
        h = layer_norm_lrelu(h, g1_ref, be1_ref, cnt1)

        # conv_2: 5x5 ConvTranspose2d, stride=1, padding=2 == regular 5x5 conv
        # with the spatially flipped kernel.  Build an im2col tile once and do
        # a single (R, K*K*CP) x (K*K*CP, CP) MXU contraction.
        @pl.when(pl.program_id(0) == 0)
        def _():  # zero the halo once; the interior is rewritten every step.
            pad_ref[...] = jnp.zeros_like(pad_ref)
        pad_ref[:, PAD:PAD + H, PAD:PAD + W, :] = h.reshape(nb, H, W, CP)
        for kh in range(K):
            for kw in range(K):
                t = kh * K + kw
                tap = pad_ref[:, kh:kh + H, kw:kw + W, :].reshape(R, CP)
                col_ref[:, t * CP:(t + 1) * CP] = tap            # lane-aligned full store
        h = jnp.dot(col_ref[...], w2c_ref[...],
                    preferred_element_type=jnp.float32) + b2_ref[...]
        h = layer_norm_lrelu(h, g2_ref, be2_ref, cnt2)

        # conv_3: 1x1 ConvTranspose2d == one dense channel matmul.
        h = jnp.dot(h, w3_ref[...], preferred_element_type=jnp.float32) + b3_ref[...]
        h = layer_norm_lrelu(h, g3_ref, be3_ref, cnt3)

        # residual (upsample=None -> identity) + LeakyReLU; lane-dense store.
        o_ref[...] = leaky(h + x).astype(o_ref.dtype)

    return kernel


# -------------------------------- wrapper ------------------------------------
def decoder_bottleneck_block(x_nchw, kparams):
    # TODO(synk): stride>1 / output_padding ConvTranspose variant (upsample
    # branch) not implemented; this kernel covers the stride=1,
    # output_padding=0, upsample=None configuration (identity residual).
    N, Cin, H, W = x_nchw.shape
    tensors = kparams['tensors']
    P, Cout = kparams['planes'], kparams['cout']
    assert Cout == Cin, "upsample=None requires in_channels == planes*expansion"
    assert max(Cin, P, Cout) <= CP
    HW = H * W

    # samples per grid step: enough to make the matmul M dim >= 128.
    nb = max(1, min(N, -(-128 // HW)))
    while N % nb:
        nb -= 1
    R = nb * HW
    grid = (N // nb,)
    assert R % 8 == 0 or grid[0] == 1

    # NCHW -> (n*h*w, channels) rows, channels zero-padded to 128 lanes.
    x2d = jnp.transpose(x_nchw, (0, 2, 3, 1)).reshape(N * HW, Cin).astype(jnp.float32)
    x2d = jnp.pad(x2d, ((0, 0), (0, CP - Cin)))

    grid_spec = pltpu.PrefetchScalarGridSpec(
        num_scalar_prefetch=0,
        grid=grid,
        in_specs=[
            pl.BlockSpec((R, CP), lambda i: (i, 0)),             # x
            pl.BlockSpec((CP, CP), lambda i: (0, 0)),            # w1
            pl.BlockSpec((1, CP), lambda i: (0, 0)),             # b1
            pl.BlockSpec((HW, CP), lambda i: (0, 0)),            # gamma1
            pl.BlockSpec((HW, CP), lambda i: (0, 0)),            # beta1
            pl.BlockSpec((K * K * CP, CP), lambda i: (0, 0)),    # w2 (im2col matrix)
            pl.BlockSpec((1, CP), lambda i: (0, 0)),             # b2
            pl.BlockSpec((HW, CP), lambda i: (0, 0)),            # gamma2
            pl.BlockSpec((HW, CP), lambda i: (0, 0)),            # beta2
            pl.BlockSpec((CP, CP), lambda i: (0, 0)),            # w3
            pl.BlockSpec((1, CP), lambda i: (0, 0)),             # b3
            pl.BlockSpec((HW, CP), lambda i: (0, 0)),            # gamma3
            pl.BlockSpec((HW, CP), lambda i: (0, 0)),            # beta3
        ],
        out_specs=pl.BlockSpec((R, CP), lambda i: (i, 0)),
        scratch_shapes=[
            pltpu.VMEM((nb, H + 2 * PAD, W + 2 * PAD, CP), jnp.float32),  # padded image
            pltpu.VMEM((R, K * K * CP), jnp.float32),                     # im2col tile
        ],
    )
    kernel = _make_kernel(nb, H, W, P * HW, P * HW, Cout * HW)
    out2d = pl.pallas_call(
        kernel,
        out_shape=jax.ShapeDtypeStruct((N * HW, CP), jnp.float32),
        grid_spec=grid_spec,
        compiler_params=pltpu.CompilerParams(
            dimension_semantics=("parallel",)),
    )(x2d, *tensors)

    out = out2d[:, :Cout].reshape(N, H, W, Cout)
    return jnp.transpose(out, (0, 3, 1, 2))                      # back to NCHW


# ------------------------- parameters (deterministic) ------------------------
def init_torch_params(key, in_channels, planes, H, W):
    """Parameters in PyTorch layouts: ConvTranspose2d weight = (in, out, kh, kw),
    LayerNorm weight/bias = (C, H, W)."""
    ks = jax.random.split(key, 12)
    P, C3 = planes, planes * EXPANSION
    f = lambda k, shape, s=0.2: (s * jax.random.normal(k, shape)).astype(jnp.float32)
    return dict(
        w1=f(ks[0], (in_channels, P, 1, 1)), b1=f(ks[1], (P,), 0.1),
        g1=1.0 + f(ks[2], (P, H, W), 0.1), be1=f(ks[3], (P, H, W), 0.1),
        w2=f(ks[4], (P, P, K, K)), b2=f(ks[5], (P,), 0.1),
        g2=1.0 + f(ks[6], (P, H, W), 0.1), be2=f(ks[7], (P, H, W), 0.1),
        w3=f(ks[8], (P, C3, 1, 1)), b3=f(ks[9], (C3,), 0.1),
        g3=1.0 + f(ks[10], (C3, H, W), 0.1), be3=f(ks[11], (C3, H, W), 0.1),
    )


def prep_kernel_params(p):
    """Pad / reshape PyTorch-layout params to the lane-dense kernel layout."""
    Cin, P = p['w1'].shape[0], p['w1'].shape[1]
    C3 = p['w3'].shape[1]
    _, H, W = p['g1'].shape
    HW = H * W

    def pad_mat(m, r, c):
        out = jnp.zeros((r, c), jnp.float32)
        return out.at[:m.shape[0], :m.shape[1]].set(m.astype(jnp.float32))

    def ln_param(a):                       # (C,H,W) -> (H*W, CP), zero-padded lanes
        c = a.shape[0]
        v = jnp.transpose(a, (1, 2, 0)).reshape(HW, c)
        return pad_mat(v, HW, CP)

    # 1x1 transposed convs: weight (in, out, 1, 1) -> dense (CP, CP) matmul.
    w1p = pad_mat(p['w1'][:, :, 0, 0], CP, CP)
    w3p = pad_mat(p['w3'][:, :, 0, 0], CP, CP)
    b1p = pad_mat(p['b1'][None, :], 1, CP)
    b2p = pad_mat(p['b2'][None, :], 1, CP)
    b3p = pad_mat(p['b3'][None, :], 1, CP)

    # transposed conv (stride 1) == conv with spatially flipped kernel:
    # w2e[kh,kw,ci,co] = w2_torch[ci,co,K-1-kh,K-1-kw].  Lay it out as the
    # im2col contraction matrix (K*K*CP, CP) so conv_2 is a single matmul.
    w2e = jnp.transpose(jnp.flip(p['w2'], axis=(2, 3)), (2, 3, 0, 1))
    w2pad = jnp.zeros((K, K, CP, CP), jnp.float32).at[:, :, :P, :P].set(
        w2e.astype(jnp.float32))
    w2col = w2pad.reshape(K * K * CP, CP)

    tensors = (w1p, b1p, ln_param(p['g1']), ln_param(p['be1']),
               w2col, b2p, ln_param(p['g2']), ln_param(p['be2']),
               w3p, b3p, ln_param(p['g3']), ln_param(p['be3']))
    return dict(tensors=tensors, planes=P, cout=C3)


# ---------------------------- pure-JAX reference ----------------------------
def reference_forward(x, p):
    def ln(v, g, b):
        mu = jnp.mean(v, axis=(1, 2, 3), keepdims=True)
        var = jnp.mean((v - mu) ** 2, axis=(1, 2, 3), keepdims=True)
        return (v - mu) / jnp.sqrt(var + LN_EPS) * g[None] + b[None]
    lrelu = lambda v: jnp.where(v >= 0, v, NEG_SLOPE * v)
    h = jnp.einsum('nihw,io->nohw', x, p['w1'][:, :, 0, 0]) + p['b1'][None, :, None, None]
    h = lrelu(ln(h, p['g1'], p['be1']))
    w = jnp.transpose(jnp.flip(p['w2'], axis=(2, 3)), (1, 0, 2, 3))  # (O,I,kh,kw)
    h = jax.lax.conv_general_dilated(h, w, (1, 1), [(PAD, PAD), (PAD, PAD)],
                                     dimension_numbers=('NCHW', 'OIHW', 'NCHW'))
    h = h + p['b2'][None, :, None, None]
    h = lrelu(ln(h, p['g2'], p['be2']))
    h = jnp.einsum('nihw,io->nohw', h, p['w3'][:, :, 0, 0]) + p['b3'][None, :, None, None]
    h = lrelu(ln(h, p['g3'], p['be3']))
    return lrelu(h + x)


# ----------------------------------- main ------------------------------------
if __name__ == "__main__":
    N, planes, H, W = 2, 4, 8, 8
    in_channels = planes * EXPANSION   # identity residual needs in == planes*4
    key = jax.random.PRNGKey(0)
    kx, kp = jax.random.split(key)
    x = jax.random.normal(kx, (N, in_channels, H, W), jnp.float32)   # NCHW like PyTorch
    torch_params = init_torch_params(kp, in_channels, planes, H, W)
    kernel_params = prep_kernel_params(torch_params)

    out = decoder_bottleneck_block(x, kernel_params)
    out = jax.block_until_ready(out)

    ref = reference_forward(x, torch_params)
    np.testing.assert_allclose(np.asarray(out), np.asarray(ref), rtol=2e-2, atol=2e-2)
    print("KERNEL_OK")
</pallas_src>

<mosaic_0001>
module attributes {stable_mosaic.version = 11 : i64} {
  func.func @kernel(%arg0: i32, %arg1: memref<128x128xf32, #tpu.memory_space<vmem>>, %arg2: memref<128x128xf32, #tpu.memory_space<vmem>>, %arg3: memref<1x128xf32, #tpu.memory_space<vmem>>, %arg4: memref<64x128xf32, #tpu.memory_space<vmem>>, %arg5: memref<64x128xf32, #tpu.memory_space<vmem>>, %arg6: memref<3200x128xf32, #tpu.memory_space<vmem>>, %arg7: memref<1x128xf32, #tpu.memory_space<vmem>>, %arg8: memref<64x128xf32, #tpu.memory_space<vmem>>, %arg9: memref<64x128xf32, #tpu.memory_space<vmem>>, %arg10: memref<128x128xf32, #tpu.memory_space<vmem>>, %arg11: memref<1x128xf32, #tpu.memory_space<vmem>>, %arg12: memref<64x128xf32, #tpu.memory_space<vmem>>, %arg13: memref<64x128xf32, #tpu.memory_space<vmem>>, %arg14: memref<128x128xf32, #tpu.memory_space<vmem>>, %arg15: memref<2x12x12x128xf32, #tpu.memory_space<vmem>>, %arg16: memref<128x3200xf32, #tpu.memory_space<vmem>>) attributes {dimension_semantics = [#tpu.dimension_semantics<parallel>], iteration_bounds = array<i64: 1>, scalar_prefetch = 0 : i64, scratch_operands = 2 : i64, tpu.core_type = #tpu.core_type<tc>, window_params = [{transform_indices = @transform_0, window_bounds = array<i64: 128, 128>}, {pipeline_mode = #tpu.pipeline_mode<synchronous>, transform_indices = @transform_1, window_bounds = array<i64: 128, 128>}, {pipeline_mode = #tpu.pipeline_mode<synchronous>, transform_indices = @transform_2, window_bounds = array<i64: 1, 128>}, {pipeline_mode = #tpu.pipeline_mode<synchronous>, transform_indices = @transform_3, window_bounds = array<i64: 64, 128>}, {pipeline_mode = #tpu.pipeline_mode<synchronous>, transform_indices = @transform_4, window_bounds = array<i64: 64, 128>}, {pipeline_mode = #tpu.pipeline_mode<synchronous>, transform_indices = @transform_5, window_bounds = array<i64: 3200, 128>}, {pipeline_mode = #tpu.pipeline_mode<synchronous>, transform_indices = @transform_6, window_bounds = array<i64: 1, 128>}, {pipeline_mode = #tpu.pipeline_mode<synchronous>, transform_indices = @transform_7, window_bounds = array<i64: 64, 128>}, {pipeline_mode = #tpu.pipeline_mode<synchronous>, transform_indices = @transform_8, window_bounds = array<i64: 64, 128>}, {pipeline_mode = #tpu.pipeline_mode<synchronous>, transform_indices = @transform_9, window_bounds = array<i64: 128, 128>}, {pipeline_mode = #tpu.pipeline_mode<synchronous>, transform_indices = @transform_10, window_bounds = array<i64: 1, 128>}, {pipeline_mode = #tpu.pipeline_mode<synchronous>, transform_indices = @transform_11, window_bounds = array<i64: 64, 128>}, {pipeline_mode = #tpu.pipeline_mode<synchronous>, transform_indices = @transform_12, window_bounds = array<i64: 64, 128>}, {transform_indices = @transform_13, window_bounds = array<i64: 128, 128>}]} {
    %c0 = arith.constant 0 : index
    %c0_0 = arith.constant 0 : index
    %0 = vector.load %arg1[%c0, %c0_0] : memref<128x128xf32, #tpu.memory_space<vmem>>, vector<128x128xf32>
    %c0_1 = arith.constant 0 : index
    %c0_2 = arith.constant 0 : index
    %1 = vector.load %arg2[%c0_1, %c0_2] : memref<128x128xf32, #tpu.memory_space<vmem>>, vector<128x128xf32>
    %cst = arith.constant dense<0.000000e+00> : vector<128x128xf32>
    %2 = tpu.matmul %0, %1, %cst {dimension_numbers = #tpu.dot_dimension_numbers<[1], [0], [0], [1], [0, 0, 1, 1], [], []>} : vector<128x128xf32>, vector<128x128xf32>, vector<128x128xf32> -> vector<128x128xf32>
    %c0_3 = arith.constant 0 : index
    %c0_4 = arith.constant 0 : index
    %3 = vector.load %arg3[%c0_3, %c0_4] : memref<1x128xf32, #tpu.memory_space<vmem>>, vector<1x128xf32>
    %4 = vector.broadcast %3 : vector<1x128xf32> to vector<128x128xf32>
    %5 = arith.addf %2, %4 : vector<128x128xf32>
    %6 = vector.shape_cast %5 : vector<128x128xf32> to vector<2x64x128xf32>
    %cst_5 = arith.constant dense<0.000000e+00> : vector<2x64xf32>
    %7 = vector.multi_reduction <add>, %6, %cst_5 [2] : vector<2x64x128xf32> to vector<2x64xf32>
    %8 = vector.shape_cast %7 : vector<2x64xf32> to vector<2x64x1xf32>
    %cst_6 = arith.constant dense<0.000000e+00> : vector<2x1xf32>
    %9 = vector.multi_reduction <add>, %8, %cst_6 [1] : vector<2x64x1xf32> to vector<2x1xf32>
    %10 = vector.shape_cast %9 : vector<2x1xf32> to vector<2x1x1xf32>
    %11 = arith.mulf %6, %6 : vector<2x64x128xf32>
    %cst_7 = arith.constant dense<0.000000e+00> : vector<2x64xf32>
    %12 = vector.multi_reduction <add>, %11, %cst_7 [2] : vector<2x64x128xf32> to vector<2x64xf32>
    %13 = vector.shape_cast %12 : vector<2x64xf32> to vector<2x64x1xf32>
    %cst_8 = arith.constant dense<0.000000e+00> : vector<2x1xf32>
    %14 = vector.multi_reduction <add>, %13, %cst_8 [1] : vector<2x64x1xf32> to vector<2x1xf32>
    %15 = vector.shape_cast %14 : vector<2x1xf32> to vector<2x1x1xf32>
    %cst_9 = arith.constant 3.906250e-03 : f32
    %16 = vector.broadcast %cst_9 : f32 to vector<2x1x1xf32>
    %17 = arith.mulf %10, %16 : vector<2x1x1xf32>
    %cst_10 = arith.constant 3.906250e-03 : f32
    %18 = vector.broadcast %cst_10 : f32 to vector<2x1x1xf32>
    %19 = arith.mulf %15, %18 : vector<2x1x1xf32>
    %20 = arith.mulf %17, %17 : vector<2x1x1xf32>
    %21 = arith.subf %19, %20 : vector<2x1x1xf32>
    %cst_11 = arith.constant 0.000000e+00 : f32
    %22 = vector.broadcast %cst_11 : f32 to vector<2x1x1xf32>
    %23 = arith.maximumf %21, %22 : vector<2x1x1xf32>
    %cst_12 = arith.constant 9.99999974E-6 : f32
    %24 = vector.broadcast %cst_12 : f32 to vector<2x1x1xf32>
    %25 = arith.addf %23, %24 : vector<2x1x1xf32>
    %26 = math.rsqrt %25 : vector<2x1x1xf32>
    %c0_13 = arith.constant 0 : index
    %c0_14 = arith.constant 0 : index
    %27 = vector.load %arg4[%c0_13, %c0_14] : memref<64x128xf32, #tpu.memory_space<vmem>>, vector<64x128xf32>
    %28 = vector.shape_cast %27 : vector<64x128xf32> to vector<1x64x128xf32>
    %c0_15 = arith.constant 0 : index
    %c0_16 = arith.constant 0 : index
    %29 = vector.load %arg5[%c0_15, %c0_16] : memref<64x128xf32, #tpu.memory_space<vmem>>, vector<64x128xf32>
    %30 = vector.shape_cast %29 : vector<64x128xf32> to vector<1x64x128xf32>
    %31 = vector.broadcast %17 : vector<2x1x1xf32> to vector<2x64x128xf32>
    %32 = arith.subf %6, %31 : vector<2x64x128xf32>
    %33 = vector.broadcast %26 : vector<2x1x1xf32> to vector<2x64x128xf32>
    %34 = arith.mulf %32, %33 : vector<2x64x128xf32>
    %35 = vector.broadcast %28 : vector<1x64x128xf32> to vector<2x64x128xf32>
    %36 = arith.mulf %34, %35 : vector<2x64x128xf32>
    %37 = vector.broadcast %30 : vector<1x64x128xf32> to vector<2x64x128xf32>
    %38 = arith.addf %36, %37 : vector<2x64x128xf32>
    %cst_17 = arith.constant 0.000000e+00 : f32
    %39 = vector.broadcast %cst_17 : f32 to vector<2x64x128xf32>
    %40 = arith.cmpf oge, %38, %39 : vector<2x64x128xf32>
    %cst_18 = arith.constant 0.00999999977 : f32
    %41 = vector.broadcast %cst_18 : f32 to vector<2x64x128xf32>
    %42 = arith.mulf %41, %38 : vector<2x64x128xf32>
    %43 = arith.select %40, %38, %42 : vector<2x64x128xi1>, vector<2x64x128xf32>
    %44 = vector.shape_cast %43 : vector<2x64x128xf32> to vector<128x128xf32>
    %c0_i32 = arith.constant 0 : i32
    %45 = arith.cmpi eq, %arg0, %c0_i32 : i32
    %46 = arith.extui %45 : i1 to i32
    %c0_i32_19 = arith.constant 0 : i32
    %47 = arith.cmpi ne, %46, %c0_i32_19 : i32
    scf.if %47 {
      %cst_190 = arith.constant 0.000000e+00 : f32
      %221 = vector.broadcast %cst_190 : f32 to vector<2x12x12x128xf32>
      %c0_191 = arith.constant 0 : index
      %c0_192 = arith.constant 0 : index
      %c0_193 = arith.constant 0 : index
      %c0_194 = arith.constant 0 : index
      %222 = vector.load %arg15[%c0_191, %c0_192, %c0_193, %c0_194] : memref<2x12x12x128xf32, #tpu.memory_space<vmem>>, vector<2x12x12x128xf32>
      tpu.vector_store %arg15[%c0_191, %c0_192, %c0_193, %c0_194], %221 {strides = array<i32>} : memref<2x12x12x128xf32, #tpu.memory_space<vmem>>, vector<2x12x12x128xf32>,
    } else {
    }
    %48 = vector.shape_cast %44 : vector<128x128xf32> to vector<2x8x8x128xf32>
    %c0_20 = arith.constant 0 : index
    %c2 = arith.constant 2 : index
    %c2_21 = arith.constant 2 : index
    %c0_22 = arith.constant 0 : index
    %49 = vector.load %arg15[%c0_20, %c2, %c2_21, %c0_22] : memref<2x12x12x128xf32, #tpu.memory_space<vmem>>, vector<2x8x8x128xf32>
    tpu.vector_store %arg15[%c0_20, %c2, %c2_21, %c0_22], %48 {strides = array<i32>} : memref<2x12x12x128xf32, #tpu.memory_space<vmem>>, vector<2x8x8x128xf32>,
    %c0_23 = arith.constant 0 : index
    %c0_24 = arith.constant 0 : index
    %c0_25 = arith.constant 0 : index
    %c0_26 = arith.constant 0 : index
    %50 = vector.load %arg15[%c0_23, %c0_24, %c0_25, %c0_26] : memref<2x12x12x128xf32, #tpu.memory_space<vmem>>, vector<2x8x8x128xf32>
    %51 = vector.shape_cast %50 : vector<2x8x8x128xf32> to vector<128x128xf32>
    %c0_27 = arith.constant 0 : index
    %c0_28 = arith.constant 0 : index
    %52 = vector.load %arg16[%c0_27, %c0_28] : memref<128x3200xf32, #tpu.memory_space<vmem>>, vector<128x128xf32>
    tpu.vector_store %arg16[%c0_27, %c0_28], %51 {strides = array<i32>} : memref<128x3200xf32, #tpu.memory_space<vmem>>, vector<128x128xf32>,
    %c0_29 = arith.constant 0 : index
    %c0_30 = arith.constant 0 : index
    %c1 = arith.constant 1 : index
    %c0_31 = arith.constant 0 : index
    %53 = vector.load %arg15[%c0_29, %c0_30, %c1, %c0_31] : memref<2x12x12x128xf32, #tpu.memory_space<vmem>>, vector<2x8x8x128xf32>
    %54 = vector.shape_cast %53 : vector<2x8x8x128xf32> to vector<128x128xf32>
    %c0_32 = arith.constant 0 : index
    %c128 = arith.constant 128 : index
    %55 = vector.load %arg16[%c0_32, %c128] : memref<128x3200xf32, #tpu.memory_space<vmem>>, vector<128x128xf32>
    tpu.vector_store %arg16[%c0_32, %c128], %54 {strides = array<i32>} : memref<128x3200xf32, #tpu.memory_space<vmem>>, vector<128x128xf32>,
    %c0_33 = arith.constant 0 : index
    %c0_34 = arith.constant 0 : index
    %c2_35 = arith.constant 2 : index
    %c0_36 = arith.constant 0 : index
    %56 = vector.load %arg15[%c0_33, %c0_34, %c2_35, %c0_36] : memref<2x12x12x128xf32, #tpu.memory_space<vmem>>, vector<2x8x8x128xf32>
    %57 = vector.shape_cast %56 : vector<2x8x8x128xf32> to vector<128x128xf32>
    %c0_37 = arith.constant 0 : index
    %c256 = arith.constant 256 : index
    %58 = vector.load %arg16[%c0_37, %c256] : memref<128x3200xf32, #tpu.memory_space<vmem>>, vector<128x128xf32>
    tpu.vector_store %arg16[%c0_37, %c256], %57 {strides = array<i32>} : memref<128x3200xf32, #tpu.memory_space<vmem>>, vector<128x128xf32>,
    %c0_38 = arith.constant 0 : index
    %c0_39 = arith.constant 0 : index
    %c3 = arith.constant 3 : index
    %c0_40 = arith.constant 0 : index
    %59 = vector.load %arg15[%c0_38, %c0_39, %c3, %c0_40] : memref<2x12x12x128xf32, #tpu.memory_space<vmem>>, vector<2x8x8x128xf32>
    %60 = vector.shape_cast %59 : vector<2x8x8x128xf32> to vector<128x128xf32>
    %c0_41 = arith.constant 0 : index
    %c384 = arith.constant 384 : index
    %61 = vector.load %arg16[%c0_41, %c384] : memref<128x3200xf32, #tpu.memory_space<vmem>>, vector<128x128xf32>
    tpu.vector_store %arg16[%c0_41, %c384], %60 {strides = array<i32>} : memref<128x3200xf32, #tpu.memory_space<vmem>>, vector<128x128xf32>,
    %c0_42 = arith.constant 0 : index
    %c0_43 = arith.constant 0 : index
    %c4 = arith.constant 4 : index
    %c0_44 = arith.constant 0 : index
    %62 = vector.load %arg15[%c0_42, %c0_43, %c4, %c0_44] : memref<2x12x12x128xf32, #tpu.memory_space<vmem>>, vector<2x8x8x128xf32>
    %63 = vector.shape_cast %62 : vector<2x8x8x128xf32> to vector<128x128xf32>
    %c0_45 = arith.constant 0 : index
    %c512 = arith.constant 512 : index
    %64 = vector.load %arg16[%c0_45, %c512] : memref<128x3200xf32, #tpu.memory_space<vmem>>, vector<128x128xf32>
    tpu.vector_store %arg16[%c0_45, %c512], %63 {strides = array<i32>} : memref<128x3200xf32, #tpu.memory_space<vmem>>, vector<128x128xf32>,
    %c0_46 = arith.constant 0 : index
    %c1_47 = arith.constant 1 : index
    %c0_48 = arith.constant 0 : index
    %c0_49 = arith.constant 0 : index
    %65 = vector.load %arg15[%c0_46, %c1_47, %c0_48, %c0_49] : memref<2x12x12x128xf32, #tpu.memory_space<vmem>>, vector<2x8x8x128xf32>
    %66 = vector.shape_cast %65 : vector<2x8x8x128xf32> to vector<128x128xf32>
    %c0_50 = arith.constant 0 : index
    %c640 = arith.constant 640 : index
    %67 = vector.load %arg16[%c0_50, %c640] : memref<128x3200xf32, #tpu.memory_space<vmem>>, vector<128x128xf32>
    tpu.vector_store %arg16[%c0_50, %c640], %66 {strides = array<i32>} : memref<128x3200xf32, #tpu.memory_space<vmem>>, vector<128x128xf32>,
    %c0_51 = arith.constant 0 : index
    %c1_52 = arith.constant 1 : index
    %c1_53 = arith.constant 1 : index
    %c0_54 = arith.constant 0 : index
    %68 = vector.load %arg15[%c0_51, %c1_52, %c1_53, %c0_54] : memref<2x12x12x128xf32, #tpu.memory_space<vmem>>, vector<2x8x8x128xf32>
    %69 = vector.shape_cast %68 : vector<2x8x8x128xf32> to vector<128x128xf32>
    %c0_55 = arith.constant 0 : index
    %c768 = arith.constant 768 : index
    %70 = vector.load %arg16[%c0_55, %c768] : memref<128x3200xf32, #tpu.memory_space<vmem>>, vector<128x128xf32>
    tpu.vector_store %arg16[%c0_55, %c768], %69 {strides = array<i32>} : memref<128x3200xf32, #tpu.memory_space<vmem>>, vector<128x128xf32>,
    %c0_56 = arith.constant 0 : index
    %c1_57 = arith.constant 1 : index
    %c2_58 = arith.constant 2 : index
    %c0_59 = arith.constant 0 : index
    %71 = vector.load %arg15[%c0_56, %c1_57, %c2_58, %c0_59] : memref<2x12x12x128xf32, #tpu.memory_space<vmem>>, vector<2x8x8x128xf32>
    %72 = vector.shape_cast %71 : vector<2x8x8x128xf32> to vector<128x128xf32>
    %c0_60 = arith.constant 0 : index
    %c896 = arith.constant 896 : index
    %73 = vector.load %arg16[%c0_60, %c896] : memref<128x3200xf32, #tpu.memory_space<vmem>>, vector<128x128xf32>
    tpu.vector_store %arg16[%c0_60, %c896], %72 {strides = array<i32>} : memref<128x3200xf32, #tpu.memory_space<vmem>>, vector<128x128xf32>,
    %c0_61 = arith.constant 0 : index
    %c1_62 = arith.constant 1 : index
    %c3_63 = arith.constant 3 : index
    %c0_64 = arith.constant 0 : index
    %74 = vector.load %arg15[%c0_61, %c1_62, %c3_63, %c0_64] : memref<2x12x12x128xf32, #tpu.memory_space<vmem>>, vector<2x8x8x128xf32>
    %75 = vector.shape_cast %74 : vector<2x8x8x128xf32> to vector<128x128xf32>
    %c0_65 = arith.constant 0 : index
    %c1024 = arith.constant 1024 : index
    %76 = vector.load %arg16[%c0_65, %c1024] : memref<128x3200xf32, #tpu.memory_space<vmem>>, vector<128x128xf32>
    tpu.vector_store %arg16[%c0_65, %c1024], %75 {strides = array<i32>} : memref<128x3200xf32, #tpu.memory_space<vmem>>, vector<128x128xf32>,
    %c0_66 = arith.constant 0 : index
    %c1_67 = arith.constant 1 : index
    %c4_68 = arith.constant 4 : index
    %c0_69 = arith.constant 0 : index
    %77 = vector.load %arg15[%c0_66, %c1_67, %c4_68, %c0_69] : memref<2x12x12x128xf32, #tpu.memory_space<vmem>>, vector<2x8x8x128xf32>
    %78 = vector.shape_cast %77 : vector<2x8x8x128xf32> to vector<128x128xf32>
    %c0_70 = arith.constant 0 : index
    %c1152 = arith.constant 1152 : index
    %79 = vector.load %arg16[%c0_70, %c1152] : memref<128x3200xf32, #tpu.memory_space<vmem>>, vector<128x128xf32>
    tpu.vector_store %arg16[%c0_70, %c1152], %78 {strides = array<i32>} : memref<128x3200xf32, #tpu.memory_space<vmem>>, vector<128x128xf32>,
    %c0_71 = arith.constant 0 : index
    %c2_72 = arith.constant 2 : index
    %c0_73 = arith.constant 0 : index
    %c0_74 = arith.constant 0 : index
    %80 = vector.load %arg15[%c0_71, %c2_72, %c0_73, %c0_74] : memref<2x12x12x128xf32, #tpu.memory_space<vmem>>, vector<2x8x8x128xf32>
    %81 = vector.shape_cast %80 : vector<2x8x8x128xf32> to vector<128x128xf32>
    %c0_75 = arith.constant 0 : index
    %c1280 = arith.constant 1280 : index
    %82 = vector.load %arg16[%c0_75, %c1280] : memref<128x3200xf32, #tpu.memory_space<vmem>>, vector<128x128xf32>
    tpu.vector_store %arg16[%c0_75, %c1280], %81 {strides = array<i32>} : memref<128x3200xf32, #tpu.memory_space<vmem>>, vector<128x128xf32>,
    %c0_76 = arith.constant 0 : index
    %c2_77 = arith.constant 2 : index
    %c1_78 = arith.constant 1 : index
    %c0_79 = arith.constant 0 : index
    %83 = vector.load %arg15[%c0_76, %c2_77, %c1_78, %c0_79] : memref<2x12x12x128xf32, #tpu.memory_space<vmem>>, vector<2x8x8x128xf32>
    %84 = vector.shape_cast %83 : vector<2x8x8x128xf32> to vector<128x128xf32>
    %c0_80 = arith.constant 0 : index
    %c1408 = arith.constant 1408 : index
    %85 = vector.load %arg16[%c0_80, %c1408] : memref<128x3200xf32, #tpu.memory_space<vmem>>, vector<128x128xf32>
    tpu.vector_store %arg16[%c0_80, %c1408], %84 {strides = array<i32>} : memref<128x3200xf32, #tpu.memory_space<vmem>>, vector<128x128xf32>,
    %c0_81 = arith.constant 0 : index
    %c2_82 = arith.constant 2 : index
    %c2_83 = arith.constant 2 : index
    %c0_84 = arith.constant 0 : index
    %86 = vector.load %arg15[%c0_81, %c2_82, %c2_83, %c0_84] : memref<2x12x12x128xf32, #tpu.memory_space<vmem>>, vector<2x8x8x128xf32>
    %87 = vector.shape_cast %86 : vector<2x8x8x128xf32> to vector<128x128xf32>
    %c0_85 = arith.constant 0 : index
    %c1536 = arith.constant 1536 : index
    %88 = vector.load %arg16[%c0_85, %c1536] : memref<128x3200xf32, #tpu.memory_space<vmem>>, vector<128x128xf32>
    tpu.vector_store %arg16[%c0_85, %c1536], %87 {strides = array<i32>} : memref<128x3200xf32, #tpu.memory_space<vmem>>, vector<128x128xf32>,
    %c0_86 = arith.constant 0 : index
    %c2_87 = arith.constant 2 : index
    %c3_88 = arith.constant 3 : index
    %c0_89 = arith.constant 0 : index
    %89 = vector.load %arg15[%c0_86, %c2_87, %c3_88, %c0_89] : memref<2x12x12x128xf32, #tpu.memory_space<vmem>>, vector<2x8x8x128xf32>
    %90 = vector.shape_cast %89 : vector<2x8x8x128xf32> to vector<128x128xf32>
    %c0_90 = arith.constant 0 : index
    %c1664 = arith.constant 1664 : index
    %91 = vector.load %arg16[%c0_90, %c1664] : memref<128x3200xf32, #tpu.memory_space<vmem>>, vector<128x128xf32>
    tpu.vector_store %arg16[%c0_90, %c1664], %90 {strides = array<i32>} : memref<128x3200xf32, #tpu.memory_space<vmem>>, vector<128x128xf32>,
    %c0_91 = arith.constant 0 : index
    %c2_92 = arith.constant 2 : index
    %c4_93 = arith.constant 4 : index
    %c0_94 = arith.constant 0 : index
    %92 = vector.load %arg15[%c0_91, %c2_92, %c4_93, %c0_94] : memref<2x12x12x128xf32, #tpu.memory_space<vmem>>, vector<2x8x8x128xf32>
    %93 = vector.shape_cast %92 : vector<2x8x8x128xf32> to vector<128x128xf32>
    %c0_95 = arith.constant 0 : index
    %c1792 = arith.constant 1792 : index
    %94 = vector.load %arg16[%c0_95, %c1792] : memref<128x3200xf32, #tpu.memory_space<vmem>>, vector<128x128xf32>
    tpu.vector_store %arg16[%c0_95, %c1792], %93 {strides = array<i32>} : memref<128x3200xf32, #tpu.memory_space<vmem>>, vector<128x128xf32>,
    %c0_96 = arith.constant 0 : index
    %c3_97 = arith.constant 3 : index
    %c0_98 = arith.constant 0 : index
    %c0_99 = arith.constant 0 : index
    %95 = vector.load %arg15[%c0_96, %c3_97, %c0_98, %c0_99] : memref<2x12x12x128xf32, #tpu.memory_space<vmem>>, vector<2x8x8x128xf32>
    %96 = vector.shape_cast %95 : vector<2x8x8x128xf32> to vector<128x128xf32>
    %c0_100 = arith.constant 0 : index
    %c1920 = arith.constant 1920 : index
    %97 = vector.load %arg16[%c0_100, %c1920] : memref<128x3200xf32, #tpu.memory_space<vmem>>, vector<128x128xf32>
    tpu.vector_store %arg16[%c0_100, %c1920], %96 {strides = array<i32>} : memref<128x3200xf32, #tpu.memory_space<vmem>>, vector<128x128xf32>,
    %c0_101 = arith.constant 0 : index
    %c3_102 = arith.constant 3 : index
    %c1_103 = arith.constant 1 : index
    %c0_104 = arith.constant 0 : index
    %98 = vector.load %arg15[%c0_101, %c3_102, %c1_103, %c0_104] : memref<2x12x12x128xf32, #tpu.memory_space<vmem>>, vector<2x8x8x128xf32>
    %99 = vector.shape_cast %98 : vector<2x8x8x128xf32> to vector<128x128xf32>
    %c0_105 = arith.constant 0 : index
    %c2048 = arith.constant 2048 : index
    %100 = vector.load %arg16[%c0_105, %c2048] : memref<128x3200xf32, #tpu.memory_space<vmem>>, vector<128x128xf32>
    tpu.vector_store %arg16[%c0_105, %c2048], %99 {strides = array<i32>} : memref<128x3200xf32, #tpu.memory_space<vmem>>, vector<128x128xf32>,
    %c0_106 = arith.constant 0 : index
    %c3_107 = arith.constant 3 : index
    %c2_108 = arith.constant 2 : index
    %c0_109 = arith.constant 0 : index
    %101 = vector.load %arg15[%c0_106, %c3_107, %c2_108, %c0_109] : memref<2x12x12x128xf32, #tpu.memory_space<vmem>>, vector<2x8x8x128xf32>
    %102 = vector.shape_cast %101 : vector<2x8x8x128xf32> to vector<128x128xf32>
    %c0_110 = arith.constant 0 : index
    %c2176 = arith.constant 2176 : index
    %103 = vector.load %arg16[%c0_110, %c2176] : memref<128x3200xf32, #tpu.memory_space<vmem>>, vector<128x128xf32>
    tpu.vector_store %arg16[%c0_110, %c2176], %102 {strides = array<i32>} : memref<128x3200xf32, #tpu.memory_space<vmem>>, vector<128x128xf32>,
    %c0_111 = arith.constant 0 : index
    %c3_112 = arith.constant 3 : index
    %c3_113 = arith.constant 3 : index
    %c0_114 = arith.constant 0 : index
    %104 = vector.load %arg15[%c0_111, %c3_112, %c3_113, %c0_114] : memref<2x12x12x128xf32, #tpu.memory_space<vmem>>, vector<2x8x8x128xf32>
    %105 = vector.shape_cast %104 : vector<2x8x8x128xf32> to vector<128x128xf32>
    %c0_115 = arith.constant 0 : index
    %c2304 = arith.constant 2304 : index
    %106 = vector.load %arg16[%c0_115, %c2304] : memref<128x3200xf32, #tpu.memory_space<vmem>>, vector<128x128xf32>
    tpu.vector_store %arg16[%c0_115, %c2304], %105 {strides = array<i32>} : memref<128x3200xf32, #tpu.memory_space<vmem>>, vector<128x128xf32>,
    %c0_116 = arith.constant 0 : index
    %c3_117 = arith.constant 3 : index
    %c4_118 = arith.constant 4 : index
    %c0_119 = arith.constant 0 : index
    %107 = vector.load %arg15[%c0_116, %c3_117, %c4_118, %c0_119] : memref<2x12x12x128xf32, #tpu.memory_space<vmem>>, vector<2x8x8x128xf32>
    %108 = vector.shape_cast %107 : vector<2x8x8x128xf32> to vector<128x128xf32>
    %c0_120 = arith.constant 0 : index
    %c2432 = arith.constant 2432 : index
    %109 = vector.load %arg16[%c0_120, %c2432] : memref<128x3200xf32, #tpu.memory_space<vmem>>, vector<128x128xf32>
    tpu.vector_store %arg16[%c0_120, %c2432], %108 {strides = array<i32>} : memref<128x3200xf32, #tpu.memory_space<vmem>>, vector<128x128xf32>,
    %c0_121 = arith.constant 0 : index
    %c4_122 = arith.constant 4 : index
    %c0_123 = arith.constant 0 : index
    %c0_124 = arith.constant 0 : index
    %110 = vector.load %arg15[%c0_121, %c4_122, %c0_123, %c0_124] : memref<2x12x12x128xf32, #tpu.memory_space<vmem>>, vector<2x8x8x128xf32>
    %111 = vector.shape_cast %110 : vector<2x8x8x128xf32> to vector<128x128xf32>
    %c0_125 = arith.constant 0 : index
    %c2560 = arith.constant 2560 : index
    %112 = vector.load %arg16[%c0_125, %c2560] : memref<128x3200xf32, #tpu.memory_space<vmem>>, vector<128x128xf32>
    tpu.vector_store %arg16[%c0_125, %c2560], %111 {strides = array<i32>} : memref<128x3200xf32, #tpu.memory_space<vmem>>, vector<128x128xf32>,
    %c0_126 = arith.constant 0 : index
    %c4_127 = arith.constant 4 : index
    %c1_128 = arith.constant 1 : index
    %c0_129 = arith.constant 0 : index
    %113 = vector.load %arg15[%c0_126, %c4_127, %c1_128, %c0_129] : memref<2x12x12x128xf32, #tpu.memory_space<vmem>>, vector<2x8x8x128xf32>
    %114 = vector.shape_cast %113 : vector<2x8x8x128xf32> to vector<128x128xf32>
    %c0_130 = arith.constant 0 : index
    %c2688 = arith.constant 2688 : index
    %115 = vector.load %arg16[%c0_130, %c2688] : memref<128x3200xf32, #tpu.memory_space<vmem>>, vector<128x128xf32>
    tpu.vector_store %arg16[%c0_130, %c2688], %114 {strides = array<i32>} : memref<128x3200xf32, #tpu.memory_space<vmem>>, vector<128x128xf32>,
    %c0_131 = arith.constant 0 : index
    %c4_132 = arith.constant 4 : index
    %c2_133 = arith.constant 2 : index
    %c0_134 = arith.constant 0 : index
    %116 = vector.load %arg15[%c0_131, %c4_132, %c2_133, %c0_134] : memref<2x12x12x128xf32, #tpu.memory_space<vmem>>, vector<2x8x8x128xf32>
    %117 = vector.shape_cast %116 : vector<2x8x8x128xf32> to vector<128x128xf32>
    %c0_135 = arith.constant 0 : index
    %c2816 = arith.constant 2816 : index
    %118 = vector.load %arg16[%c0_135, %c2816] : memref<128x3200xf32, #tpu.memory_space<vmem>>, vector<128x128xf32>
    tpu.vector_store %arg16[%c0_135, %c2816], %117 {strides = array<i32>} : memref<128x3200xf32, #tpu.memory_space<vmem>>, vector<128x128xf32>,
    %c0_136 = arith.constant 0 : index
    %c4_137 = arith.constant 4 : index
    %c3_138 = arith.constant 3 : index
    %c0_139 = arith.constant 0 : index
    %119 = vector.load %arg15[%c0_136, %c4_137, %c3_138, %c0_139] : memref<2x12x12x128xf32, #tpu.memory_space<vmem>>, vector<2x8x8x128xf32>
    %120 = vector.shape_cast %119 : vector<2x8x8x128xf32> to vector<128x128xf32>
    %c0_140 = arith.constant 0 : index
    %c2944 = arith.constant 2944 : index
    %121 = vector.load %arg16[%c0_140, %c2944] : memref<128x3200xf32, #tpu.memory_space<vmem>>, vector<128x128xf32>
    tpu.vector_store %arg16[%c0_140, %c2944], %120 {strides = array<i32>} : memref<128x3200xf32, #tpu.memory_space<vmem>>, vector<128x128xf32>,
    %c0_141 = arith.constant 0 : index
    %c4_142 = arith.constant 4 : index
    %c4_143 = arith.constant 4 : index
    %c0_144 = arith.constant 0 : index
    %122 = vector.load %arg15[%c0_141, %c4_142, %c4_143, %c0_144] : memref<2x12x12x128xf32, #tpu.memory_space<vmem>>, vector<2x8x8x128xf32>
    %123 = vector.shape_cast %122 : vector<2x8x8x128xf32> to vector<128x128xf32>
    %c0_145 = arith.constant 0 : index
    %c3072 = arith.constant 3072 : index
    %124 = vector.load %arg16[%c0_145, %c3072] : memref<128x3200xf32, #tpu.memory_space<vmem>>, vector<128x128xf32>
    tpu.vector_store %arg16[%c0_145, %c3072], %123 {strides = array<i32>} : memref<128x3200xf32, #tpu.memory_space<vmem>>, vector<128x128xf32>,
    %c0_146 = arith.constant 0 : index
    %c0_147 = arith.constant 0 : index
    %125 = vector.load %arg16[%c0_146, %c0_147] : memref<128x3200xf32, #tpu.memory_space<vmem>>, vector<128x3200xf32>
    %c0_148 = arith.constant 0 : index
    %c0_149 = arith.constant 0 : index
    %126 = vector.load %arg6[%c0_148, %c0_149] : memref<3200x128xf32, #tpu.memory_space<vmem>>, vector<3200x128xf32>
    %cst_150 = arith.constant dense<0.000000e+00> : vector<128x128xf32>
    %127 = tpu.matmul %125, %126, %cst_150 {dimension_numbers = #tpu.dot_dimension_numbers<[1], [0], [0], [1], [0, 0, 1, 1], [], []>} : vector<128x3200xf32>, vector<3200x128xf32>, vector<128x128xf32> -> vector<128x128xf32>
    %c0_151 = arith.constant 0 : index
    %c0_152 = arith.constant 0 : index
    %128 = vector.load %arg7[%c0_151, %c0_152] : memref<1x128xf32, #tpu.memory_space<vmem>>, vector<1x128xf32>
    %129 = vector.broadcast %128 : vector<1x128xf32> to vector<128x128xf32>
    %130 = arith.addf %127, %129 : vector<128x128xf32>
    %131 = vector.shape_cast %130 : vector<128x128xf32> to vector<2x64x128xf32>
    %cst_153 = arith.constant dense<0.000000e+00> : vector<2x64xf32>
    %132 = vector.multi_reduction <add>, %131, %cst_153 [2] : vector<2x64x128xf32> to vector<2x64xf32>
    %133 = vector.shape_cast %132 : vector<2x64xf32> to vector<2x64x1xf32>
    %cst_154 = arith.constant dense<0.000000e+00> : vector<2x1xf32>
    %134 = vector.multi_reduction <add>, %133, %cst_154 [1] : vector<2x64x1xf32> to vector<2x1xf32>
    %135 = vector.shape_cast %134 : vector<2x1xf32> to vector<2x1x1xf32>
    %136 = arith.mulf %131, %131 : vector<2x64x128xf32>
    %cst_155 = arith.constant dense<0.000000e+00> : vector<2x64xf32>
    %137 = vector.multi_reduction <add>, %136, %cst_155 [2] : vector<2x64x128xf32> to vector<2x64xf32>
    %138 = vector.shape_cast %137 : vector<2x64xf32> to vector<2x64x1xf32>
    %cst_156 = arith.constant dense<0.000000e+00> : vector<2x1xf32>
    %139 = vector.multi_reduction <add>, %138, %cst_156 [1] : vector<2x64x1xf32> to vector<2x1xf32>
    %140 = vector.shape_cast %139 : vector<2x1xf32> to vector<2x1x1xf32>
    %cst_157 = arith.constant 3.906250e-03 : f32
    %141 = vector.broadcast %cst_157 : f32 to vector<2x1x1xf32>
    %142 = arith.mulf %135, %141 : vector<2x1x1xf32>
    %cst_158 = arith.constant 3.906250e-03 : f32
    %143 = vector.broadcast %cst_158 : f32 to vector<2x1x1xf32>
    %144 = arith.mulf %140, %143 : vector<2x1x1xf32>
    %145 = arith.mulf %142, %142 : vector<2x1x1xf32>
    %146 = arith.subf %144, %145 : vector<2x1x1xf32>
    %cst_159 = arith.constant 0.000000e+00 : f32
    %147 = vector.broadcast %cst_159 : f32 to vector<2x1x1xf32>
    %148 = arith.maximumf %146, %147 : vector<2x1x1xf32>
    %cst_160 = arith.constant 9.99999974E-6 : f32
    %149 = vector.broadcast %cst_160 : f32 to vector<2x1x1xf32>
    %150 = arith.addf %148, %149 : vector<2x1x1xf32>
    %151 = math.rsqrt %150 : vector<2x1x1xf32>
    %c0_161 = arith.constant 0 : index
    %c0_162 = arith.constant 0 : index
    %152 = vector.load %arg8[%c0_161, %c0_162] : memref<64x128xf32, #tpu.memory_space<vmem>>, vector<64x128xf32>
    %153 = vector.shape_cast %152 : vector<64x128xf32> to vector<1x64x128xf32>
    %c0_163 = arith.constant 0 : index
    %c0_164 = arith.constant 0 : index
    %154 = vector.load %arg9[%c0_163, %c0_164] : memref<64x128xf32, #tpu.memory_space<vmem>>, vector<64x128xf32>
    %155 = vector.shape_cast %154 : vector<64x128xf32> to vector<1x64x128xf32>
    %156 = vector.broadcast %142 : vector<2x1x1xf32> to vector<2x64x128xf32>
    %157 = arith.subf %131, %156 : vector<2x64x128xf32>
    %158 = vector.broadcast %151 : vector<2x1x1xf32> to vector<2x64x128xf32>
    %159 = arith.mulf %157, %158 : vector<2x64x128xf32>
    %160 = vector.broadcast %153 : vector<1x64x128xf32> to vector<2x64x128xf32>
    %161 = arith.mulf %159, %160 : vector<2x64x128xf32>
    %162 = vector.broadcast %155 : vector<1x64x128xf32> to vector<2x64x128xf32>
    %163 = arith.addf %161, %162 : vector<2x64x128xf32>
    %cst_165 = arith.constant 0.000000e+00 : f32
    %164 = vector.broadcast %cst_165 : f32 to vector<2x64x128xf32>
    %165 = arith.cmpf oge, %163, %164 : vector<2x64x128xf32>
    %cst_166 = arith.constant 0.00999999977 : f32
    %166 = vector.broadcast %cst_166 : f32 to vector<2x64x128xf32>
    %167 = arith.mulf %166, %163 : vector<2x64x128xf32>
    %168 = arith.select %165, %163, %167 : vector<2x64x128xi1>, vector<2x64x128xf32>
    %169 = vector.shape_cast %168 : vector<2x64x128xf32> to vector<128x128xf32>
    %c0_167 = arith.constant 0 : index
    %c0_168 = arith.constant 0 : index
    %170 = vector.load %arg10[%c0_167, %c0_168] : memref<128x128xf32, #tpu.memory_space<vmem>>, vector<128x128xf32>
    %cst_169 = arith.constant dense<0.000000e+00> : vector<128x128xf32>
    %171 = tpu.matmul %169, %170, %cst_169 {dimension_numbers = #tpu.dot_dimension_numbers<[1], [0], [0], [1], [0, 0, 1, 1], [], []>} : vector<128x128xf32>, vector<128x128xf32>, vector<128x128xf32> -> vector<128x128xf32>
    %c0_170 = arith.constant 0 : index
    %c0_171 = arith.constant 0 : index
    %172 = vector.load %arg11[%c0_170, %c0_171] : memref<1x128xf32, #tpu.memory_space<vmem>>, vector<1x128xf32>
    %173 = vector.broadcast %172 : vector<1x128xf32> to vector<128x128xf32>
    %174 = arith.addf %171, %173 : vector<128x128xf32>
    %175 = vector.shape_cast %174 : vector<128x128xf32> to vector<2x64x128xf32>
    %cst_172 = arith.constant dense<0.000000e+00> : vector<2x64xf32>
    %176 = vector.multi_reduction <add>, %175, %cst_172 [2] : vector<2x64x128xf32> to vector<2x64xf32>
    %177 = vector.shape_cast %176 : vector<2x64xf32> to vector<2x64x1xf32>
    %cst_173 = arith.constant dense<0.000000e+00> : vector<2x1xf32>
    %178 = vector.multi_reduction <add>, %177, %cst_173 [1] : vector<2x64x1xf32> to vector<2x1xf32>
    %179 = vector.shape_cast %178 : vector<2x1xf32> to vector<2x1x1xf32>
    %180 = arith.mulf %175, %175 : vector<2x64x128xf32>
    %cst_174 = arith.constant dense<0.000000e+00> : vector<2x64xf32>
    %181 = vector.multi_reduction <add>, %180, %cst_174 [2] : vector<2x64x128xf32> to vector<2x64xf32>
    %182 = vector.shape_cast %181 : vector<2x64xf32> to vector<2x64x1xf32>
    %cst_175 = arith.constant dense<0.000000e+00> : vector<2x1xf32>
    %183 = vector.multi_reduction <add>, %182, %cst_175 [1] : vector<2x64x1xf32> to vector<2x1xf32>
    %184 = vector.shape_cast %183 : vector<2x1xf32> to vector<2x1x1xf32>
    %cst_176 = arith.constant 9.765625E-4 : f32
    %185 = vector.broadcast %cst_176 : f32 to vector<2x1x1xf32>
    %186 = arith.mulf %179, %185 : vector<2x1x1xf32>
    %cst_177 = arith.constant 9.765625E-4 : f32
    %187 = vector.broadcast %cst_177 : f32 to vector<2x1x1xf32>
    %188 = arith.mulf %184, %187 : vector<2x1x1xf32>
    %189 = arith.mulf %186, %186 : vector<2x1x1xf32>
    %190 = arith.subf %188, %189 : vector<2x1x1xf32>
    %cst_178 = arith.constant 0.000000e+00 : f32
    %191 = vector.broadcast %cst_178 : f32 to vector<2x1x1xf32>
    %192 = arith.maximumf %190, %191 : vector<2x1x1xf32>
    %cst_179 = arith.constant 9.99999974E-6 : f32
    %193 = vector.broadcast %cst_179 : f32 to vector<2x1x1xf32>
    %194 = arith.addf %192, %193 : vector<2x1x1xf32>
    %195 = math.rsqrt %194 : vector<2x1x1xf32>
    %c0_180 = arith.constant 0 : index
    %c0_181 = arith.constant 0 : index
    %196 = vector.load %arg12[%c0_180, %c0_181] : memref<64x128xf32, #tpu.memory_space<vmem>>, vector<64x128xf32>
    %197 = vector.shape_cast %196 : vector<64x128xf32> to vector<1x64x128xf32>
    %c0_182 = arith.constant 0 : index
    %c0_183 = arith.constant 0 : index
    %198 = vector.load %arg13[%c0_182, %c0_183] : memref<64x128xf32, #tpu.memory_space<vmem>>, vector<64x128xf32>
    %199 = vector.shape_cast %198 : vector<64x128xf32> to vector<1x64x128xf32>
    %200 = vector.broadcast %186 : vector<2x1x1xf32> to vector<2x64x128xf32>
    %201 = arith.subf %175, %200 : vector<2x64x128xf32>
    %202 = vector.broadcast %195 : vector<2x1x1xf32> to vector<2x64x128xf32>
    %203 = arith.mulf %201, %202 : vector<2x64x128xf32>
    %204 = vector.broadcast %197 : vector<1x64x128xf32> to vector<2x64x128xf32>
    %205 = arith.mulf %203, %204 : vector<2x64x128xf32>
    %206 = vector.broadcast %199 : vector<1x64x128xf32> to vector<2x64x128xf32>
    %207 = arith.addf %205, %206 : vector<2x64x128xf32>
    %cst_184 = arith.constant 0.000000e+00 : f32
    %208 = vector.broadcast %cst_184 : f32 to vector<2x64x128xf32>
    %209 = arith.cmpf oge, %207, %208 : vector<2x64x128xf32>
    %cst_185 = arith.constant 0.00999999977 : f32
    %210 = vector.broadcast %cst_185 : f32 to vector<2x64x128xf32>
    %211 = arith.mulf %210, %207 : vector<2x64x128xf32>
    %212 = arith.select %209, %207, %211 : vector<2x64x128xi1>, vector<2x64x128xf32>
    %213 = vector.shape_cast %212 : vector<2x64x128xf32> to vector<128x128xf32>
    %214 = arith.addf %213, %0 : vector<128x128xf32>
    %cst_186 = arith.constant 0.000000e+00 : f32
    %215 = vector.broadcast %cst_186 : f32 to vector<128x128xf32>
    %216 = arith.cmpf oge, %214, %215 : vector<128x128xf32>
    %cst_187 = arith.constant 0.00999999977 : f32
    %217 = vector.broadcast %cst_187 : f32 to vector<128x128xf32>
    %218 = arith.mulf %217, %214 : vector<128x128xf32>
    %219 = arith.select %216, %214, %218 : vector<128x128xi1>, vector<128x128xf32>
    %c0_188 = arith.constant 0 : index
    %c0_189 = arith.constant 0 : index
    %220 = vector.load %arg14[%c0_188, %c0_189] : memref<128x128xf32, #tpu.memory_space<vmem>>, vector<128x128xf32>
    tpu.vector_store %arg14[%c0_188, %c0_189], %219 {strides = array<i32>} : memref<128x128xf32, #tpu.memory_space<vmem>>, vector<128x128xf32>,
    return
  }
  func.func @transform_0(%arg0: i32) -> (i32, i32) {
    %c0_i32 = arith.constant 0 : i32
    %c0_i32_0 = arith.constant 0 : i32
    return %arg0, %c0_i32 : i32, i32
  }
  func.func @transform_1(%arg0: i32) -> (i32, i32) {
    %c0_i32 = arith.constant 0 : i32
    %c0_i32_0 = arith.constant 0 : i32
    %c0_i32_1 = arith.constant 0 : i32
    return %c0_i32, %c0_i32_0 : i32, i32
  }
  func.func @transform_2(%arg0: i32) -> (i32, i32) {
    %c0_i32 = arith.constant 0 : i32
    %c0_i32_0 = arith.constant 0 : i32
    %c0_i32_1 = arith.constant 0 : i32
    return %c0_i32, %c0_i32_0 : i32, i32
  }
  func.func @transform_3(%arg0: i32) -> (i32, i32) {
    %c0_i32 = arith.constant 0 : i32
    %c0_i32_0 = arith.constant 0 : i32
    %c0_i32_1 = arith.constant 0 : i32
    return %c0_i32, %c0_i32_0 : i32, i32
  }
  func.func @transform_4(%arg0: i32) -> (i32, i32) {
    %c0_i32 = arith.constant 0 : i32
    %c0_i32_0 = arith.constant 0 : i32
    %c0_i32_1 = arith.constant 0 : i32
    return %c0_i32, %c0_i32_0 : i32, i32
  }
  func.func @transform_5(%arg0: i32) -> (i32, i32) {
    %c0_i32 = arith.constant 0 : i32
    %c0_i32_0 = arith.constant 0 : i32
    %c0_i32_1 = arith.constant 0 : i32
    return %c0_i32, %c0_i32_0 : i32, i32
  }
  func.func @transform_6(%arg0: i32) -> (i32, i32) {
    %c0_i32 = arith.constant 0 : i32
    %c0_i32_0 = arith.constant 0 : i32
    %c0_i32_1 = arith.constant 0 : i32
    return %c0_i32, %c0_i32_0 : i32, i32
  }
  func.func @transform_7(%arg0: i32) -> (i32, i32) {
    %c0_i32 = arith.constant 0 : i32
    %c0_i32_0 = arith.constant 0 : i32
    %c0_i32_1 = arith.constant 0 : i32
    return %c0_i32, %c0_i32_0 : i32, i32
  }
  func.func @transform_8(%arg0: i32) -> (i32, i32) {
    %c0_i32 = arith.constant 0 : i32
    %c0_i32_0 = arith.constant 0 : i32
    %c0_i32_1 = arith.constant 0 : i32
    return %c0_i32, %c0_i32_0 : i32, i32
  }
  func.func @transform_9(%arg0: i32) -> (i32, i32) {
    %c0_i32 = arith.constant 0 : i32
    %c0_i32_0 = arith.constant 0 : i32
    %c0_i32_1 = arith.constant 0 : i32
    return %c0_i32, %c0_i32_0 : i32, i32
  }
  func.func @transform_10(%arg0: i32) -> (i32, i32) {
    %c0_i32 = arith.constant 0 : i32
    %c0_i32_0 = arith.constant 0 : i32
    %c0_i32_1 = arith.constant 0 : i32
    return %c0_i32, %c0_i32_0 : i32, i32
  }
  func.func @transform_11(%arg0: i32) -> (i32, i32) {
    %c0_i32 = arith.constant 0 : i32
    %c0_i32_0 = arith.constant 0 : i32
    %c0_i32_1 = arith.constant 0 : i32
    return %c0_i32, %c0_i32_0 : i32, i32
  }
  func.func @transform_12(%arg0: i32) -> (i32, i32) {
    %c0_i32 = arith.constant 0 : i32
    %c0_i32_0 = arith.constant 0 : i32
    %c0_i32_1 = arith.constant 0 : i32
    return %c0_i32, %c0_i32_0 : i32, i32
  }
  func.func @transform_13(%arg0: i32) -> (i32, i32) {
    %c0_i32 = arith.constant 0 : i32
    %c0_i32_0 = arith.constant 0 : i32
    return %arg0, %c0_i32 : i32, i32
  }
}

</mosaic_0001>

<bundles_post_ra>
// kernel: tpu_custom_call.1
= control target key start
LH: loop header
LB: loop body
LE: loop exit
PB: predicated region body
PF: predicated region fallthrough
CT: control target
= control target key end

     0   :  { %18 = vsyncpa [#allocation5], 0  ;;  %s9018_s0 = inlined_call_operand.hbm [shape: f32[128,128], index: 0, kind: input, shape index: {}]   ;;  %s9019_s1 = inlined_call_operand.hbm [shape: f32[128,128], index: 1, kind: input, shape index: {}]   ;;  %s9020_s2 = inlined_call_operand.hbm [shape: f32[1,128], index: 2, kind: input, shape index: {}]   ;;  %s9021_s3 = inlined_call_operand.hbm [shape: f32[64,128], index: 3, kind: input, shape index: {}]   ;;  %s9022_s4 = inlined_call_operand.hbm [shape: f32[64,128], index: 4, kind: input, shape index: {}]   ;;  %s9023_s5 = inlined_call_operand.hbm [shape: f32[3200,128], index: 5, kind: input, shape index: {}]   ;;  %s9024_s6 = inlined_call_operand.hbm [shape: f32[1,128], index: 6, kind: input, shape index: {}]   ;;  %s9025_s7 = inlined_call_operand.hbm [shape: f32[64,128], index: 7, kind: input, shape index: {}]   ;;  %s9026_s8 = inlined_call_operand.hbm [shape: f32[64,128], index: 8, kind: input, shape index: {}]   ;;  %s9027_s9 = inlined_call_operand.hbm [shape: f32[128,128], index: 9, kind: input, shape index: {}]   ;;  %s9028_s10 = inlined_call_operand.hbm [shape: f32[1,128], index: 10, kind: input, shape index: {}]   ;;  %s9029_s11 = inlined_call_operand.hbm [shape: f32[64,128], index: 11, kind: input, shape index: {}]   ;;  %s9030_s12 = inlined_call_operand.hbm [shape: f32[64,128], index: 12, kind: input, shape index: {}]   ;;  %s9031_s13 = inlined_call_operand.hbm [shape: f32[128,128], index: 13, kind: output, shape index: {}]  }
   0x1   :  { %19 = vsyncpa [#allocation8], 0 }
   0x2   :  { %20 = vsyncpa [#allocation11], 0 }
   0x3   :  { %21 = vsyncpa [#allocation14], 0 }
   0x4   :  { %22 = vsyncpa [#allocation17], 0 }
   0x5   :  { %23 = vsyncpa [#allocation20], 0 }
   0x6   :  { %24 = vsyncpa [#allocation23], 0 }
   0x7   :  { %25 = vsyncpa [#allocation6], 0  ;;  %s7154_s25 = smov [#allocation7]   ;;  %s7155_s27 = smov [#allocation10]  }
   0x8   :  { %s43_s26 = sshll.u32 %s7154_s25, 4  ;;  %s65_s28 = sshll.u32 %s7155_s27, 4  ;;  %s44_s26 = int_to_ptr.vmem [resolvable:$true] %s43_s26  ;;  %s7241_s28 = int_to_ptr.vmem [resolvable:$true] %s65_s28 }
   0x9   :  { %s6830_s14 = scalar_lea.hbm %s9019_s1, 2048 }
   0xa   :  { %p6831_p0 = scmp.ne.s32.totalorder %s9019_s1, %s6830_s14  ;;  %p6834_p1 = scmp.lt.u32.totalorder %s6830_s14, %s9019_s1 }
   0xc   :  { %p6836_p2 = pnand %p6834_p1, %p6831_p0 }
   0xe   :  { %6839 = shalt.err (!%p6836_p2)
}
   0xf   :  { %s6840_s19 = scalar_lea.vmem %s44_s26, 2048  ;;  %p6845_p4 = scmp.lt.s32.totalorder %s44_s26, %s44_s26 }
  0x10   :  { %p6841_p3 = scmp.ne.s32.totalorder %s44_s26, %s6840_s19  ;;  %p6846_p5 = scmp.lt.s32.totalorder %s6840_s19, %s6840_s19 }
  0x12   :  { %p6847_p6 = por %p6846_p5, %p6845_p4 }
  0x14   :  { %p6848_p7 = pnand %p6847_p6, %p6841_p3 }
  0x16   :  { %6851 = shalt.err (!%p6848_p7)
}
  0x17   :  { %s7156_s20 = smov 128   ;;  %s7157_s21 = smov 8  }
  0x18   :  { %49 = dma.hbm_to_vmem [thread:$0]  %s9019_s1, 2048, %s44_s26, [#allocation8], %s7156_s20, %s7156_s20, %s7157_s21  }
  0x19   :  { %s6852_s27 = scalar_lea.hbm %s9021_s3, 1024 }
  0x1a   :  { %p6853_p8 = scmp.ne.s32.totalorder %s9021_s3, %s6852_s27  ;;  %p6856_p9 = scmp.lt.u32.totalorder %s6852_s27, %s9021_s3 }
  0x1c   :  { %p6858_p10 = pnand %p6856_p9, %p6853_p8 }
  0x1e   :  { %6861 = shalt.err (!%p6858_p10)
}
  0x1f   :  { %s6862_s16 = scalar_lea.vmem %s7241_s28, 1024  ;;  %p6867_p12 = scmp.lt.s32.totalorder %s7241_s28, %s7241_s28 }
  0x20   :  { %p6863_p11 = scmp.ne.s32.totalorder %s7241_s28, %s6862_s16  ;;  %p6868_p13 = scmp.lt.s32.totalorder %s6862_s16, %s6862_s16 }
  0x22   :  { %p6869_p0 = por %p6868_p13, %p6867_p12 }
  0x24   :  { %p6870_p1 = pnand %p6869_p0, %p6863_p11 }
  0x26   :  { %6873 = shalt.err (!%p6870_p1)
}
  0x27   :  { %71 = dma.hbm_to_vmem [thread:$0]  %s9021_s3, 1024, %s7241_s28, [#allocation11], %s7156_s20, %s7156_s20, %s7157_s21  }
  0x28   :  { %s7158_s17 = smov [#allocation13]   ;;  %s7159_s19 = smov [#allocation16]  }
  0x29   :  { %s89_s18 = sshll.u32 %s7158_s17, 4  ;;  %s111_s22 = sshll.u32 %s7159_s19, 4  ;;  %s90_s18 = int_to_ptr.vmem [resolvable:$true] %s89_s18  ;;  %s7278_s22 = int_to_ptr.vmem [resolvable:$true] %s111_s22 }
  0x2a   :  { %s6874_s25 = scalar_lea.hbm %s9023_s5, 51200 }
  0x2b   :  { %p6875_p2 = scmp.ne.s32.totalorder %s9023_s5, %s6874_s25  ;;  %p6878_p3 = scmp.lt.u32.totalorder %s6874_s25, %s9023_s5 }
  0x2d   :  { %p6880_p4 = pnand %p6878_p3, %p6875_p2 }
  0x2f   :  { %6883 = shalt.err (!%p6880_p4)
}
  0x30   :  { %s6884_s3 = scalar_lea.vmem %s90_s18, 51200  ;;  %p6889_p6 = scmp.lt.s32.totalorder %s90_s18, %s90_s18 }
  0x31   :  { %p6885_p5 = scmp.ne.s32.totalorder %s90_s18, %s6884_s3  ;;  %p6890_p7 = scmp.lt.s32.totalorder %s6884_s3, %s6884_s3 }
  0x33   :  { %p6891_p8 = por %p6890_p7, %p6889_p6 }
  0x35   :  { %p6892_p9 = pnand %p6891_p8, %p6885_p5 }
  0x37   :  { %6895 = shalt.err (!%p6892_p9)
}
  0x38   :  { %95 = dma.hbm_to_vmem [thread:$0]  %s9023_s5, 51200, %s90_s18, [#allocation14], %s7156_s20, %s7156_s20, %s7157_s21  }
  0x39   :  { %s6896_s26 = scalar_lea.hbm %s9025_s7, 1024 }
  0x3a   :  { %p6897_p10 = scmp.ne.s32.totalorder %s9025_s7, %s6896_s26  ;;  %p6900_p11 = scmp.lt.u32.totalorder %s6896_s26, %s9025_s7 }
  0x3c   :  { %p6902_p12 = pnand %p6900_p11, %p6897_p10 }
  0x3e   :  { %6905 = shalt.err (!%p6902_p12)
}
  0x3f   :  { %s6906_s25 = scalar_lea.vmem %s7278_s22, 1024  ;;  %p6911_p0 = scmp.lt.s32.totalorder %s7278_s22, %s7278_s22 }
  0x40   :  { %p6907_p13 = scmp.ne.s32.totalorder %s7278_s22, %s6906_s25  ;;  %p6912_p1 = scmp.lt.s32.totalorder %s6906_s25, %s6906_s25 }
  0x42   :  { %p6913_p2 = por %p6912_p1, %p6911_p0 }
  0x44   :  { %p6914_p3 = pnand %p6913_p2, %p6907_p13 }
  0x46   :  { %6917 = shalt.err (!%p6914_p3)
}
  0x47   :  { %117 = dma.hbm_to_vmem [thread:$0]  %s9025_s7, 1024, %s7278_s22, [#allocation17], %s7156_s20, %s7156_s20, %s7157_s21  }
  0x48   :  { %s7160_s27 = smov [#allocation19]   ;;  %s7161_s30 = smov [#allocation22]  }
  0x49   :  { %s135_s29 = sshll.u32 %s7160_s27, 4  ;;  %s157_s14 = sshll.u32 %s7161_s30, 4  ;;  %s136_s29 = int_to_ptr.vmem [resolvable:$true] %s135_s29  ;;  %s7315_s14 = int_to_ptr.vmem [resolvable:$true] %s157_s14 }
  0x4a   :  { %s6918_s15 = scalar_lea.hbm %s9027_s9, 2048 }
  0x4b   :  { %p6919_p4 = scmp.ne.s32.totalorder %s9027_s9, %s6918_s15  ;;  %p6922_p5 = scmp.lt.u32.totalorder %s6918_s15, %s9027_s9 }
  0x4d   :  { %p6924_p6 = pnand %p6922_p5, %p6919_p4 }
  0x4f   :  { %6927 = shalt.err (!%p6924_p6)
}
  0x50   :  { %s6928_s7 = scalar_lea.vmem %s136_s29, 2048  ;;  %p6933_p8 = scmp.lt.s32.totalorder %s136_s29, %s136_s29 }
  0x51   :  { %p6929_p7 = scmp.ne.s32.totalorder %s136_s29, %s6928_s7  ;;  %p6934_p9 = scmp.lt.s32.totalorder %s6928_s7, %s6928_s7 }
  0x53   :  { %p6935_p10 = por %p6934_p9, %p6933_p8 }
  0x55   :  { %p6936_p11 = pnand %p6935_p10, %p6929_p7 }
  0x57   :  { %6939 = shalt.err (!%p6936_p11)
}
  0x58   :  { %141 = dma.hbm_to_vmem [thread:$0]  %s9027_s9, 2048, %s136_s29, [#allocation20], %s7156_s20, %s7156_s20, %s7157_s21  }
  0x59   :  { %s6940_s25 = scalar_lea.hbm %s9029_s11, 1024 }
  0x5a   :  { %p6941_p12 = scmp.ne.s32.totalorder %s9029_s11, %s6940_s25  ;;  %p6944_p13 = scmp.lt.u32.totalorder %s6940_s25, %s9029_s11 }
  0x5c   :  { %p6946_p0 = pnand %p6944_p13, %p6941_p12 }
  0x5e   :  { %6949 = shalt.err (!%p6946_p0)
}
  0x5f   :  { %s6950_s3 = scalar_lea.vmem %s7315_s14, 1024  ;;  %p6955_p2 = scmp.lt.s32.totalorder %s7315_s14, %s7315_s14 }
  0x60   :  { %p6951_p1 = scmp.ne.s32.totalorder %s7315_s14, %s6950_s3  ;;  %p6956_p3 = scmp.lt.s32.totalorder %s6950_s3, %s6950_s3 }
  0x62   :  { %p6957_p4 = por %p6956_p3, %p6955_p2 }
  0x64   :  { %p6958_p5 = pnand %p6957_p4, %p6951_p1 }
  0x66   :  { %6961 = shalt.err (!%p6958_p5)
}
  0x67   :  { %163 = dma.hbm_to_vmem [thread:$0]  %s9029_s11, 1024, %s7315_s14, [#allocation23], %s7156_s20, %s7156_s20, %s7157_s21  }
  0x68   :  { %s7162_s28 = smov [#allocation4]   ;;  %s7163_s16 = smov [#allocation9]  }
  0x69   :  { %s31_s15 = sshll.u32 %s7162_s28, 4  ;;  %s56_s1 = sshll.u32 %s7163_s16, 4  ;;  %s32_s15 = int_to_ptr.vmem [resolvable:$true] %s31_s15  ;;  %s57_s1 = int_to_ptr.vmem [resolvable:$true] %s56_s1 }
  0x6a   :  { %s6962_s7 = scalar_lea.hbm %s9018_s0, 2048 }
  0x6b   :  { %p6963_p6 = scmp.ne.s32.totalorder %s9018_s0, %s6962_s7  ;;  %p6966_p7 = scmp.lt.u32.totalorder %s6962_s7, %s9018_s0 }
  0x6d   :  { %p6968_p8 = pnand %p6966_p7, %p6963_p6 }
  0x6f   :  { %6971 = shalt.err (!%p6968_p8)
}
  0x70   :  { %s6972_s11 = scalar_lea.vmem %s32_s15, 2048  ;;  %p6977_p10 = scmp.lt.s32.totalorder %s32_s15, %s32_s15 }
  0x71   :  { %p6973_p9 = scmp.ne.s32.totalorder %s32_s15, %s6972_s11  ;;  %p6978_p11 = scmp.lt.s32.totalorder %s6972_s11, %s6972_s11 }
  0x73   :  { %p6979_p12 = por %p6978_p11, %p6977_p10 }
  0x75   :  { %p6980_p13 = pnand %p6979_p12, %p6973_p9 }
  0x77   :  { %6983 = shalt.err (!%p6980_p13)
}
  0x78   :  { %37 = dma.hbm_to_vmem [thread:$0]  %s9018_s0, 2048, %s32_s15, [#allocation5], %s7156_s20, %s7156_s20, %s7157_s21  }
  0x79   :  { %s6984_s27 = scalar_lea.hbm %s9020_s2, 16 }
  0x7a   :  { %p6985_p0 = scmp.ne.s32.totalorder %s9020_s2, %s6984_s27  ;;  %p6988_p1 = scmp.lt.u32.totalorder %s6984_s27, %s9020_s2 }
  0x7c   :  { %p6990_p2 = pnand %p6988_p1, %p6985_p0 }
  0x7e   :  { %6993 = shalt.err (!%p6990_p2)
}
  0x7f   :  { %s6994_s28 = scalar_lea.vmem %s57_s1, 16  ;;  %s6998_s16 = scalar_lea.vmem %s57_s1, 32 }
  0x80   :  { %p6995_p3 = scmp.ne.s32.totalorder %s57_s1, %s6994_s28  ;;  %p6999_p4 = scmp.lt.s32.totalorder %s57_s1, %s57_s1 }
  0x81   :  { %p7000_p5 = scmp.lt.s32.totalorder %s6998_s16, %s6994_s28 }
  0x83   :  { %p7001_p6 = por %p7000_p5, %p6999_p4 }
  0x85   :  { %p7002_p7 = pnand %p7001_p6, %p6995_p3 }
  0x87   :  { %7005 = shalt.err (!%p7002_p7)
}
  0x88   :  { %59 = dma.hbm_to_vmem [thread:$0]  %s9020_s2, 16, %s57_s1, [#allocation8]  }
  0x89   :  { %s7164_s26 = smov [#allocation12]   ;;  %s7165_s7 = smov [#allocation15]  }
  0x8a   :  { %s77_s17 = sshll.u32 %s7164_s26, 4  ;;  %s102_s22 = sshll.u32 %s7165_s7, 4  ;;  %s78_s17 = int_to_ptr.vmem [resolvable:$true] %s77_s17  ;;  %s103_s22 = int_to_ptr.vmem [resolvable:$true] %s102_s22 }
  0x8b   :  { %s7006_s24 = scalar_lea.hbm %s9022_s4, 1024 }
  0x8c   :  { %p7007_p8 = scmp.ne.s32.totalorder %s9022_s4, %s7006_s24  ;;  %p7010_p9 = scmp.lt.u32.totalorder %s7006_s24, %s9022_s4 }
  0x8e   :  { %p7012_p10 = pnand %p7010_p9, %p7007_p8 }
  0x90   :  { %7015 = shalt.err (!%p7012_p10)
}
  0x91   :  { %s7016_s2 = scalar_lea.vmem %s78_s17, 1024  ;;  %p7021_p12 = scmp.lt.s32.totalorder %s78_s17, %s78_s17 }
  0x92   :  { %p7017_p11 = scmp.ne.s32.totalorder %s78_s17, %s7016_s2  ;;  %p7022_p13 = scmp.lt.s32.totalorder %s7016_s2, %s7016_s2 }
  0x94   :  { %p7023_p0 = por %p7022_p13, %p7021_p12 }
  0x96   :  { %p7024_p1 = pnand %p7023_p0, %p7017_p11 }
  0x98   :  { %7027 = shalt.err (!%p7024_p1)
}
  0x99   :  { %83 = dma.hbm_to_vmem [thread:$0]  %s9022_s4, 1024, %s78_s17, [#allocation11], %s7156_s20, %s7156_s20, %s7157_s21  }
  0x9a   :  { %s7028_s3 = scalar_lea.hbm %s9024_s6, 16 }
  0x9b   :  { %p7029_p2 = scmp.ne.s32.totalorder %s9024_s6, %s7028_s3  ;;  %p7032_p3 = scmp.lt.u32.totalorder %s7028_s3, %s9024_s6 }
  0x9d   :  { %p7034_p4 = pnand %p7032_p3, %p7029_p2 }
  0x9f   :  { %7037 = shalt.err (!%p7034_p4)
}
  0xa0   :  { %s7038_s0 = scalar_lea.vmem %s103_s22, 16  ;;  %s7042_s15 = scalar_lea.vmem %s103_s22, 32 }
  0xa1   :  { %p7039_p5 = scmp.ne.s32.totalorder %s103_s22, %s7038_s0  ;;  %p7043_p6 = scmp.lt.s32.totalorder %s103_s22, %s103_s22 }
  0xa2   :  { %p7044_p7 = scmp.lt.s32.totalorder %s7042_s15, %s7038_s0 }
  0xa4   :  { %p7045_p8 = por %p7044_p7, %p7043_p6 }
  0xa6   :  { %p7046_p9 = pnand %p7045_p8, %p7039_p5 }
  0xa8   :  { %7049 = shalt.err (!%p7046_p9)
}
  0xa9   :  { %105 = dma.hbm_to_vmem [thread:$0]  %s9024_s6, 16, %s103_s22, [#allocation14]  }
  0xaa   :  { %s7166_s17 = smov [#allocation18]   ;;  %s7167_s19 = smov [#allocation21]  }
  0xab   :  { %s123_s7 = sshll.u32 %s7166_s17, 4  ;;  %s148_s23 = sshll.u32 %s7167_s19, 4  ;;  %s124_s7 = int_to_ptr.vmem [resolvable:$true] %s123_s7  ;;  %s149_s23 = int_to_ptr.vmem [resolvable:$true] %s148_s23 }
  0xac   :  { %s7050_s14 = scalar_lea.hbm %s9026_s8, 1024 }
  0xad   :  { %p7051_p10 = scmp.ne.s32.totalorder %s9026_s8, %s7050_s14  ;;  %p7054_p11 = scmp.lt.u32.totalorder %s7050_s14, %s9026_s8 }
  0xaf   :  { %p7056_p12 = pnand %p7054_p11, %p7051_p10 }
  0xb1   :  { %7059 = shalt.err (!%p7056_p12)
}
  0xb2   :  { %s7060_s6 = scalar_lea.vmem %s124_s7, 1024  ;;  %p7065_p0 = scmp.lt.s32.totalorder %s124_s7, %s124_s7 }
  0xb3   :  { %p7061_p13 = scmp.ne.s32.totalorder %s124_s7, %s7060_s6  ;;  %p7066_p1 = scmp.lt.s32.totalorder %s7060_s6, %s7060_s6 }
  0xb5   :  { %p7067_p2 = por %p7066_p1, %p7065_p0 }
  0xb7   :  { %p7068_p3 = pnand %p7067_p2, %p7061_p13 }
  0xb9   :  { %7071 = shalt.err (!%p7068_p3)
}
  0xba   :  { %129 = dma.hbm_to_vmem [thread:$0]  %s9026_s8, 1024, %s124_s7, [#allocation17], %s7156_s20, %s7156_s20, %s7157_s21  }
  0xbb   :  { %s7072_s3 = scalar_lea.hbm %s9028_s10, 16 }
  0xbc   :  { %p7073_p4 = scmp.ne.s32.totalorder %s9028_s10, %s7072_s3  ;;  %p7076_p5 = scmp.lt.u32.totalorder %s7072_s3, %s9028_s10 }
  0xbe   :  { %p7078_p6 = pnand %p7076_p5, %p7073_p4 }
  0xc0   :  { %7081 = shalt.err (!%p7078_p6)
}
  0xc1   :  { %s7082_s0 = scalar_lea.vmem %s149_s23, 16  ;;  %s7086_s15 = scalar_lea.vmem %s149_s23, 32 }
  0xc2   :  { %p7083_p7 = scmp.ne.s32.totalorder %s149_s23, %s7082_s0  ;;  %p7087_p8 = scmp.lt.s32.totalorder %s149_s23, %s149_s23 }
  0xc3   :  { %p7088_p9 = scmp.lt.s32.totalorder %s7086_s15, %s7082_s0 }
  0xc5   :  { %p7089_p10 = por %p7088_p9, %p7087_p8 }
  0xc7   :  { %p7090_p11 = pnand %p7089_p10, %p7083_p7 }
  0xc9   :  { %7093 = shalt.err (!%p7090_p11)
}
  0xca   :  { %151 = dma.hbm_to_vmem [thread:$0]  %s9028_s10, 16, %s149_s23, [#allocation20]  }
  0xcb   :  { %s7168_s26 = smov [#allocation24]   ;;  %s7094_s24 = scalar_lea.hbm %s9030_s12, 1024 }
  0xcc   :  { %s169_s17 = sshll.u32 %s7168_s26, 4  ;;  %p7095_p12 = scmp.ne.s32.totalorder %s9030_s12, %s7094_s24  ;;  %s170_s17 = int_to_ptr.vmem [resolvable:$true] %s169_s17 }
  0xcd   :  { %p7098_p13 = scmp.lt.u32.totalorder %s7094_s24, %s9030_s12 }
  0xcf   :  { %p7100_p0 = pnand %p7098_p13, %p7095_p12 }
  0xd1   :  { %7103 = shalt.err (!%p7100_p0)
}
  0xd2   :  { %s7104_s2 = scalar_lea.vmem %s170_s17, 1024  ;;  %p7109_p2 = scmp.lt.s32.totalorder %s170_s17, %s170_s17 }
  0xd3   :  { %p7105_p1 = scmp.ne.s32.totalorder %s170_s17, %s7104_s2  ;;  %p7110_p3 = scmp.lt.s32.totalorder %s7104_s2, %s7104_s2 }
  0xd5   :  { %p7111_p4 = por %p7110_p3, %p7109_p2 }
  0xd7   :  { %p7112_p5 = pnand %p7111_p4, %p7105_p1 }
  0xd9   :  { %7115 = shalt.err (!%p7112_p5)
}
  0xda   :  { %175 = dma.hbm_to_vmem [thread:$0]  %s9030_s12, 1024, %s170_s17, [#allocation23], %s7156_s20, %s7156_s20, %s7157_s21  }
  0xdb   :  { %7138 = dma.done.wait [#allocation5], 2048  }
  0xdc   :  { %7139 = vsyncadd [#allocation5], 4294965248 }
  0xdd   :  { %7140 = dma.done.wait [#allocation8], 2064  }
  0xde   :  { %7141 = vsyncadd [#allocation8], 4294965232 }
  0xdf   :  { %7142 = dma.done.wait [#allocation11], 2048  }
  0xe0   :  { %7143 = vsyncadd [#allocation11], 4294965248 }
  0xe1   :  { %7144 = dma.done.wait [#allocation14], 51216  }
  0xe2   :  { %7145 = vsyncadd [#allocation14], 4294916080 }
  0xe3   :  { %7146 = dma.done.wait [#allocation17], 2048  }
  0xe4   :  { %7147 = vsyncadd [#allocation17], 4294965248 }
  0xe5   :  { %7148 = dma.done.wait [#allocation20], 2064  }
  0xe6   :  { %7149 = vsyncadd [#allocation20], 4294965232 }
  0xe7   :  { %7150 = dma.done.wait [#allocation23], 2048  }
  0xe8   :  { %7151 = vsyncadd [#allocation23], 4294965248  ;;  %v231_v0 = vld [vmem:[#allocation7] sm:$0xff]  ;;  %v232_v1 = vld [vmem:[#allocation7 + $0x8] sm:$0xff]  ;;  %s7170_s12 = smov [#allocation25]  }
  0xe9   :  { %v233_v2 = vld [vmem:[#allocation7 + $0x10] sm:$0xff]  ;;  %v6283_v3 = vpack.c.bf16 %v232_v1, %v231_v0  ;;  %v234_v4 = vld [vmem:[#allocation7 + $0x18] sm:$0xff]  ;;  %v235_v6 = vld [vmem:[#allocation7 + $0x20] sm:$0xff]  ;;  %s8966_s1 = sshll.u32 %s7170_s12, 4  ;;  %s5039_s1 = int_to_ptr.vmem [resolvable:$true] %s8966_s1 }
  0xea   :  { %v6287_v5 = vpack.c.bf16 %v234_v4, %v233_v2  ;;  %v236_v7 = vld [vmem:[#allocation7 + $0x28] sm:$0xff]  ;;  %v215_v9 = vld [vmem:[#allocation4] sm:$0xff]  ;;  %v237_v10 = vld [vmem:[#allocation7 + $0x30] sm:$0xff]  ;;  %s7116_s6 = scalar_lea.vmem %s5039_s1, 2048  ;;  %p7121_p7 = scmp.lt.s32.totalorder %s5039_s1, %s5039_s1 }
  0xeb   :  { %6284 = vmatprep.subr.bf16.mxu0 %v6283_v3  ;;  %v6291_v8 = vpack.c.bf16 %v236_v7, %v235_v6  ;;  %v238_v11 = vld [vmem:[#allocation7 + $0x38] sm:$0xff]  ;;  %6147 = vmatprep.mubr.f32.mxu0 %v215_v9  ;;  %v239_v13 = vld [vmem:[#allocation7 + $0x40] sm:$0xff]  ;;  %v240_v14 = vld [vmem:[#allocation7 + $0x48] sm:$0xff]  ;;  %p7117_p6 = scmp.ne.s32.totalorder %s5039_s1, %s7116_s6  ;;  %p7122_p8 = scmp.lt.s32.totalorder %s7116_s6, %s7116_s6 }
  0xec   :  { %6286 = vmatpush3.bf16.msra.mxu0 %v6283_v3  ;;  %v6295_v12 = vpack.c.bf16 %v238_v11, %v237_v10  ;;  %v6299_v15 = vpack.c.bf16 %v240_v14, %v239_v13  ;;  %v241_v16 = vld [vmem:[#allocation7 + $0x50] sm:$0xff]  ;;  %v242_v17 = vld [vmem:[#allocation7 + $0x58] sm:$0xff]  ;;  %v243_v19 = vld [vmem:[#allocation7 + $0x60] sm:$0xff] }
  0xed   :  { %6288 = vmatprep.subr.bf16.mxu0 %v6287_v5  ;;  %v6303_v18 = vpack.c.bf16 %v242_v17, %v241_v16  ;;  %v244_v20 = vld [vmem:[#allocation7 + $0x68] sm:$0xff]  ;;  %v245_v22 = vld [vmem:[#allocation7 + $0x70] sm:$0xff]  ;;  %v246_v23 = vld [vmem:[#allocation7 + $0x78] sm:$0xff]  ;;  %p7123_p9 = por %p7122_p8, %p7121_p7 }
  0xee   :  { %v6307_v21 = vpack.c.bf16 %v244_v20, %v243_v19  ;;  %v6311_v24 = vpack.c.bf16 %v246_v23, %v245_v22  ;;  %v216_v25 = vld [vmem:[#allocation4 + $0x8] sm:$0xff]  ;;  %v217_v26 = vld [vmem:[#allocation4 + $0x10] sm:$0xff]  ;;  %v218_v27 = vld [vmem:[#allocation4 + $0x18] sm:$0xff] }
  0xef   :  { %v219_v28 = vld [vmem:[#allocation4 + $0x20] sm:$0xff]  ;;  %v220_v29 = vld [vmem:[#allocation4 + $0x28] sm:$0xff]  ;;  %v221_v30 = vld [vmem:[#allocation4 + $0x30] sm:$0xff]  ;;  %p7124_p10 = pnand %p7123_p9, %p7117_p6 }
  0xf0   :  { %6290 = vmatpush3.bf16.msra.mxu0 %v6287_v5  ;;  %v222_v31 = vld [vmem:[#allocation4 + $0x38] sm:$0xff]  ;;  %v223_v32 = vld [vmem:[#allocation4 + $0x40] sm:$0xff]  ;;  %v224_v33 = vld [vmem:[#allocation4 + $0x48] sm:$0xff] }
  0xf1   :  { %6292 = vmatprep.subr.bf16.mxu0 %v6291_v8  ;;  %v225_v34 = vld [vmem:[#allocation4 + $0x50] sm:$0xff]  ;;  %v226_v35 = vld [vmem:[#allocation4 + $0x58] sm:$0xff]  ;;  %v227_v36 = vld [vmem:[#allocation4 + $0x60] sm:$0xff] }
  0xf2   :  { %v228_v37 = vld [vmem:[#allocation4 + $0x68] sm:$0xff]  ;;  %v229_v38 = vld [vmem:[#allocation4 + $0x70] sm:$0xff]  ;;  %v230_v39 = vld [vmem:[#allocation4 + $0x78] sm:$0xff] }
  0xf3   :  { %v7448_v40 = vld [vmem:[#allocation9] ss:$0 sm:$0xff]  ;;  %v1962_v22 = vld [vmem:[#allocation13 + $0x88] sm:$0xff] }
  0xf4   :  { %6294 = vmatpush3.bf16.msra.mxu0 %v6291_v8 }
  0xf5   :  { %6296 = vmatprep.subr.bf16.mxu0 %v6295_v12 }
  0xf8   :  { %6298 = vmatpush3.bf16.msra.mxu0 %v6295_v12 }
  0xf9   :  { %6300 = vmatprep.subr.bf16.mxu0 %v6299_v15 }
  0xfc   :  { %6302 = vmatpush3.bf16.msra.mxu0 %v6299_v15 }
  0xfd   :  { %6304 = vmatprep.subr.bf16.mxu0 %v6303_v18 }
 0x100   :  { %6306 = vmatpush3.bf16.msra.mxu0 %v6303_v18 }
 0x101   :  { %6308 = vmatprep.subr.bf16.mxu0 %v6307_v21 }
 0x104   :  { %6310 = vmatpush3.bf16.msra.mxu0 %v6307_v21  ;;  %v1961_v21 = vld [vmem:[#allocation13 + $0x80] sm:$0xff] }
 0x105   :  { %6312 = vmatprep.subr.bf16.mxu0 %v6311_v24  ;;  %v6315_v23 = vpack.c.bf16 %v1962_v22, %v1961_v21  ;;  %v1984_v21 = vld [vmem:[#allocation13 + $0x138] sm:$0xff] }
 0x107   :  { %6316 = vmatprep.subr.bf16.mxu1 %v6315_v23 }
 0x108   :  { %6314 = vmatpush3.bf16.msra.mxu0 %v6311_v24  ;;  %v1945_v24 = vld [vmem:[#allocation13] sm:$0xff] }
 0x10b   :  { %6148 = vmatmul.mubr.f32.vlgmr.msra.gmra.mrb[0].mxu0 %v216_v25  ;;  %v1946_v25 = vld [vmem:[#allocation13 + $0x8] sm:$0xff] }
 0x10c   :  { %6150 = vmatprep.mubr.f32.mxu0 %v217_v26  ;;  %v1993_v26 = vld [vmem:[#allocation13 + $0x180] sm:$0xff] }
 0x10f   :  { %6151 = vmatmul.mubr.f32.gmra.mrb[2].mxu0 %v218_v27 }
 0x110   :  { %6153 = vmatprep.mubr.f32.mxu0 %v219_v28 }
 0x113   :  { %6154 = vmatmul.mubr.f32.gmra.mrb[4].mxu0 %v220_v29  ;;  %v6317_v29 = vpack.c.bf16 %v1946_v25, %v1945_v24  ;;  %v1969_v24 = vld [vmem:[#allocation13 + $0xc0] sm:$0xff]  ;;  %v1970_v25 = vld [vmem:[#allocation13 + $0xc8] sm:$0xff] }
 0x114   :  { %6156 = vmatprep.mubr.f32.mxu0 %v221_v30  ;;  %v1994_v30 = vld [vmem:[#allocation13 + $0x188] sm:$0xff] }
 0x115   :  { %6318 = vmatpush3.bf16.msra.mxu1 %v6317_v29  ;;  %v1954_v29 = vld [vmem:[#allocation13 + $0x48] sm:$0xff] }
 0x117   :  { %6157 = vmatmul.mubr.f32.gmra.mrb[6].mxu0 %v222_v31  ;;  %v1977_v31 = vld [vmem:[#allocation13 + $0x100] sm:$0xff] }
 0x118   :  { %6159 = vmatprep.mubr.f32.mxu0 %v223_v32  ;;  %v1978_v32 = vld [vmem:[#allocation13 + $0x108] sm:$0xff] }
 0x11b   :  { %6160 = vmatmul.mubr.f32.gmra.mrb[8].mxu0 %v224_v33  ;;  %v6347_v33 = vpack.c.bf16 %v1994_v30, %v1993_v26  ;;  %v6331_v26 = vpack.c.bf16 %v1970_v25, %v1969_v24  ;;  %v2001_v30 = vld [vmem:[#allocation13 + $0x1c0] sm:$0xff] }
 0x11c   :  { %6162 = vmatprep.mubr.f32.mxu0 %v225_v34  ;;  %v6349_v34 = vpack.c.bf16 %v1978_v32, %v1977_v31  ;;  %v2002_v32 = vld [vmem:[#allocation13 + $0x1c8] sm:$0xff] }
 0x11d   :  { %6348 = vmatprep.subr.bf16.mxu0 %v6347_v33  ;;  %v1985_v33 = vld [vmem:[#allocation13 + $0x140] sm:$0xff] }
 0x11e   :  { %6350 = vmatpush3.bf16.msra.mxu0 %v6349_v34  ;;  %v1986_v34 = vld [vmem:[#allocation13 + $0x148] sm:$0xff] }
 0x11f   :  { %6163 = vmatmul.mubr.f32.gmra.mrb[10].mxu0 %v226_v35  ;;  %v1963_v35 = vld [vmem:[#allocation13 + $0x90] sm:$0xff] }
 0x120   :  { %6165 = vmatprep.mubr.f32.mxu0 %v227_v36  ;;  %v1964_v36 = vld [vmem:[#allocation13 + $0x98] sm:$0xff] }
 0x123   :  { %6166 = vmatmul.mubr.f32.gmra.mrb[12].mxu0 %v228_v37  ;;  %v6319_v37 = vpack.c.bf16 %v1964_v36, %v1963_v35  ;;  %v6363_v35 = vpack.c.bf16 %v2002_v32, %v2001_v30  ;;  %v6365_v36 = vpack.c.bf16 %v1986_v34, %v1985_v33  ;;  %v2025_v32 = vld [vmem:[#allocation13 + $0x280] sm:$0xff]  ;;  %v2026_v33 = vld [vmem:[#allocation13 + $0x288] sm:$0xff] }
 0x124   :  { %6168 = vmatprep.mubr.f32.mxu0 %v229_v38  ;;  %v1947_v38 = vld [vmem:[#allocation13 + $0x10] sm:$0xff]  ;;  %v2009_v34 = vld [vmem:[#allocation13 + $0x200] sm:$0xff] }
 0x125   :  { %6320 = vmatprep.subr.bf16.mxu1 %v6319_v37  ;;  %v1971_v37 = vld [vmem:[#allocation13 + $0xd0] sm:$0xff] }
 0x127   :  { %6169 = vmatmul.mubr.f32.gmra.mrb[14].mxu0 %v230_v39  ;;  %v1948_v39 = vld [vmem:[#allocation13 + $0x18] sm:$0xff] }
 0x1de   :  { %v6149_v41 = vpop.f32.mrb[0].mxu0 }
 0x1df   :  { %v7451_v42 = vadd.f32 %v6149_v41, %v7448_v40  ;;  %v320_v43 = vpop.f32.mrb[1].mxu0 }
 0x1e0   :  { %v7454_v44 = vadd.f32 %v7448_v40, %v320_v43  ;;  %v6321_v43 = vpack.c.bf16 %v1948_v39, %v1947_v38  ;;  %v1972_v38 = vld [vmem:[#allocation13 + $0xd8] sm:$0xff] }
 0x1e1   :  { %401 = vadd.xlane.f32.xlu0 %v7451_v42  ;;  %v458_v50 = vmul.f32 %v7451_v42, %v7451_v42  ;;  %v6335_v39 = vpack.c.bf16 %v1972_v38, %v1971_v37  ;;  %v2027_v37 = vld [vmem:[#allocation13 + $0x290] sm:$0xff]  ;;  %v2028_v38 = vld [vmem:[#allocation13 + $0x298] sm:$0xff] }
 0x1e2   :  { %v6152_v45 = vpop.f32.mrb[2].mxu0  ;;  %v457_v46 = vmul.f32 %v7454_v44, %v7454_v44  ;;  %6322 = vmatpush3.bf16.msra.mxu1 %v6321_v43  ;;  %v2003_v43 = vld [vmem:[#allocation13 + $0x1d0] sm:$0xff] }
 0x1e3   :  { %v330_v47 = vpop.f32.mrb[3].mxu0  ;;  %v7460_v48 = vadd.f32 %v6152_v45, %v7448_v40  ;;  %v1996_v45 = vld [vmem:[#allocation13 + $0x198] sm:$0xff] }
 0x1e4   :  { %473 = vadd.xlane.f32.xlu1 %v457_v46  ;;  %v7467_v52 = vadd.f32 %v7448_v40, %v330_v47  ;;  %v1979_v46 = vld [vmem:[#allocation13 + $0x110] sm:$0xff]  ;;  %v1980_v47 = vld [vmem:[#allocation13 + $0x118] sm:$0xff] }
 0x1e5   :  { %399 = vadd.xlane.f32.xlu0 %v7454_v44  ;;  %v460_v54 = vmul.f32 %v7460_v48, %v7460_v48 }
 0x1e6   :  { %v6155_v49 = vpop.f32.mrb[4].mxu0  ;;  %v459_v58 = vmul.f32 %v7467_v52, %v7467_v52 }
 0x1e7   :  { %v340_v51 = vpop.f32.mrb[5].mxu0  ;;  %v7472_v56 = vadd.f32 %v6155_v49, %v7448_v40 }
 0x1e8   :  { %405 = vadd.xlane.f32.xlu1 %v7460_v48  ;;  %v7479_v60 = vadd.f32 %v7448_v40, %v340_v51  ;;  %v1965_v51 = vld [vmem:[#allocation13 + $0xa0] sm:$0xff] }
 0x1e9   :  { %475 = vadd.xlane.f32.xlu0 %v458_v50  ;;  %v462_v62 = vmul.f32 %v7472_v56, %v7472_v56  ;;  %v6353_v50 = vpack.c.bf16 %v1980_v47, %v1979_v46  ;;  %v2004_v46 = vld [vmem:[#allocation13 + $0x1d8] sm:$0xff]  ;;  %v1987_v47 = vld [vmem:[#allocation13 + $0x150] sm:$0xff] }
 0x1ea   :  { %v6158_v53 = vpop.f32.mrb[6].mxu0  ;;  %v461_v3 = vmul.f32 %v7479_v60, %v7479_v60 }
 0x1eb   :  { %v350_v55 = vpop.f32.mrb[7].mxu0  ;;  %v7484_v0 = vadd.f32 %v6158_v53, %v7448_v40  ;;  %v1966_v53 = vld [vmem:[#allocation13 + $0xa8] sm:$0xff] }
 0x1ec   :  { %403 = vadd.xlane.f32.xlu1 %v7467_v52  ;;  %v7488_v2 = vadd.f32 %v7448_v40, %v350_v55  ;;  %v6323_v55 = vpack.c.bf16 %v1966_v53, %v1965_v51  ;;  %v1973_v53 = vld [vmem:[#allocation13 + $0xe0] sm:$0xff] }
 0x1ed   :  { %479 = vadd.xlane.f32.xlu0 %v460_v54  ;;  %v464_v9 = vmul.f32 %v7484_v0, %v7484_v0 }
 0x1ee   :  { %v6161_v57 = vpop.f32.mrb[8].mxu0  ;;  %v463_v6 = vmul.f32 %v7488_v2, %v7488_v2  ;;  %6324 = vmatprep.subr.bf16.mxu1 %v6323_v55 }
 0x1ef   :  { %v360_v59 = vpop.f32.mrb[9].mxu0  ;;  %v7502_v10 = vadd.f32 %v6161_v57, %v7448_v40  ;;  %v1949_v57 = vld [vmem:[#allocation13 + $0x20] sm:$0xff] }
 0x1f0   :  { %409 = vadd.xlane.f32.xlu1 %v7472_v56  ;;  %v7497_v8 = vadd.f32 %v7448_v40, %v360_v59  ;;  %v1997_v59 = vld [vmem:[#allocation13 + $0x1a0] sm:$0xff] }
 0x1f1   :  { %477 = vadd.xlane.f32.xlu0 %v459_v58  ;;  %v466_v11 = vmul.f32 %v7502_v10, %v7502_v10  ;;  %v1950_v58 = vld [vmem:[#allocation13 + $0x28] sm:$0xff] }
 0x1f2   :  { %v6164_v61 = vpop.f32.mrb[10].mxu0  ;;  %v465_v13 = vmul.f32 %v7497_v8, %v7497_v8 }
 0x1f3   :  { %v370_v63 = vpop.f32.mrb[11].mxu0  ;;  %v7514_v14 = vadd.f32 %v6164_v61, %v7448_v40  ;;  %v6325_v61 = vpack.c.bf16 %v1950_v58, %v1949_v57  ;;  %v1957_v57 = vld [vmem:[#allocation13 + $0x60] sm:$0xff]  ;;  %v1958_v58 = vld [vmem:[#allocation13 + $0x68] sm:$0xff] }
 0x1f4   :  { %407 = vadd.xlane.f32.xlu1 %v7479_v60  ;;  %v7509_v12 = vadd.f32 %v7448_v40, %v370_v63  ;;  %v1981_v63 = vld [vmem:[#allocation13 + $0x120] sm:$0xff] }
 0x1f5   :  { %483 = vadd.xlane.f32.xlu0 %v462_v62  ;;  %v468_v15 = vmul.f32 %v7514_v14, %v7514_v14  ;;  %v1998_v62 = vld [vmem:[#allocation13 + $0x1a8] sm:$0xff]  ;;  %6326 = vmatpush3.bf16.msra.mxu1 %v6325_v61  ;;  %v6341_v61 = vpack.c.bf16 %v1958_v58, %v1957_v57  ;;  %v2015_v58 = vld [vmem:[#allocation13 + $0x230] sm:$0xff] }
 0x1f6   :  { %v6167_v1 = vpop.f32.mrb[12].mxu0  ;;  %v467_v17 = vmul.f32 %v7509_v12, %v7509_v12 }
 0x1f7   :  { %v380_v4 = vpop.f32.mrb[13].mxu0  ;;  %v7520_v16 = vadd.f32 %v6167_v1, %v7448_v40  ;;  %v1982_v1 = vld [vmem:[#allocation13 + $0x128] sm:$0xff] }
 0x1f8   :  { %413 = vadd.xlane.f32.xlu1 %v7484_v0  ;;  %v7527_v18 = vadd.f32 %v7448_v40, %v380_v4  ;;  %v6357_v4 = vpack.c.bf16 %v1982_v1, %v1981_v63  ;;  %v1989_v63 = vld [vmem:[#allocation13 + $0x160] sm:$0xff]  ;;  %v1990_v1 = vld [vmem:[#allocation13 + $0x168] sm:$0xff] }
 0x1f9   :  { %481 = vadd.xlane.f32.xlu0 %v461_v3  ;;  %v470_v19 = vmul.f32 %v7520_v16, %v7520_v16  ;;  %v6355_v3 = vpack.c.bf16 %v1998_v62, %v1997_v59  ;;  %v2005_v59 = vld [vmem:[#allocation13 + $0x1e0] sm:$0xff]  ;;  %v2006_v62 = vld [vmem:[#allocation13 + $0x1e8] sm:$0xff] }
 0x1fa   :  { %v6170_v5 = vpop.f32.mrb[14].mxu0  ;;  %v469_v28 = vmul.f32 %v7527_v18, %v7527_v18 }
 0x1fb   :  { %v390_v7 = vpop.f32.mrb[15].mxu0  ;;  %v7532_v20 = vadd.f32 %v6170_v5, %v7448_v40  ;;  %v1967_v5 = vld [vmem:[#allocation13 + $0xb0] sm:$0xff] }
 0x1fc   :  { %411 = vadd.xlane.f32.xlu1 %v7488_v2  ;;  %v7536_v27 = vadd.f32 %v7448_v40, %v390_v7  ;;  %v1995_v40 = vld [vmem:[#allocation13 + $0x190] sm:$0xff] }
 0x1fd   :  { %485 = vadd.xlane.f32.xlu0 %v463_v6  ;;  %v6351_v49 = vpack.c.bf16 %v1996_v45, %v1995_v40  ;;  %v472_v54 = vmul.f32 %v7532_v20, %v7532_v20  ;;  %v1968_v6 = vld [vmem:[#allocation13 + $0xb8] sm:$0xff]  ;;  %v1955_v40 = vld [vmem:[#allocation13 + $0x50] sm:$0xff] }
 0x1fe   :  { %v471_v41 = vmul.f32 %v7536_v27, %v7536_v27  ;;  %v6327_v7 = vpack.c.bf16 %v1968_v6, %v1967_v5  ;;  %v6373_v5 = vpack.c.bf16 %v1990_v1, %v1989_v63  ;;  %v1975_v6 = vld [vmem:[#allocation13 + $0xf0] sm:$0xff]  ;;  %v2034_v63 = vld [vmem:[#allocation13 + $0x2c8] sm:$0xff] }
 0x1ff   :  { %6352 = vmatprep.subr.bf16.mxu0 %v6351_v49  ;;  %v1988_v49 = vld [vmem:[#allocation13 + $0x158] sm:$0xff] }
 0x200   :  { %487 = vadd.xlane.f32.xlu1 %v464_v9  ;;  %6354 = vmatpush3.bf16.msra.mxu0 %v6353_v50  ;;  %v1951_v9 = vld [vmem:[#allocation13 + $0x30] sm:$0xff]  ;;  %v6367_v50 = vpack.c.bf16 %v2004_v46, %v2003_v43  ;;  %v6369_v51 = vpack.c.bf16 %v1988_v49, %v1987_v47  ;;  %v2012_v43 = vld [vmem:[#allocation13 + $0x218] sm:$0xff]  ;;  %v2030_v46 = vld [vmem:[#allocation13 + $0x2a8] sm:$0xff] }
 0x201   :  { %415 = vadd.xlane.f32.xlu0 %v7497_v8  ;;  %6356 = vmatprep.subr.bf16.mxu0 %v6355_v3  ;;  %v7169_v3 = vmov 0.0  }
 0x202   :  { %6328 = vmatprep.subr.bf16.mxu1 %v6327_v7  ;;  %677 = vst [vmem:[#allocation2] sm:$0xff] %v7169_v3  ;;  %678 = vst [vmem:[#allocation2 + $0x8] sm:$0xf] %v7169_v3  ;;  %v1976_v7 = vld [vmem:[#allocation13 + $0xf8] sm:$0xff] }
 0x203   :  { %679 = vst [vmem:[#allocation2 + $0x10] sm:$0xff] %v7169_v3  ;;  %680 = vst [vmem:[#allocation2 + $0x18] sm:$0xf] %v7169_v3 }
 0x204   :  { %417 = vadd.xlane.f32.xlu1 %v7502_v10  ;;  %6358 = vmatpush3.bf16.msra.mxu0 %v6357_v4  ;;  %681 = vst [vmem:[#allocation2 + $0x20] sm:$0xff] %v7169_v3  ;;  %682 = vst [vmem:[#allocation2 + $0x28] sm:$0xf] %v7169_v3  ;;  %v6371_v4 = vpack.c.bf16 %v2006_v62, %v2005_v59  ;;  %v2016_v59 = vld [vmem:[#allocation13 + $0x238] sm:$0xff]  ;;  %v2033_v62 = vld [vmem:[#allocation13 + $0x2c0] sm:$0xff] }
 0x205   :  { %491 = vadd.xlane.f32.xlu0 %v466_v11  ;;  %v1952_v11 = vld [vmem:[#allocation13 + $0x38] sm:$0xff]  ;;  %683 = vst [vmem:[#allocation2 + $0x30] sm:$0xff] %v7169_v3  ;;  %684 = vst [vmem:[#allocation2 + $0x38] sm:$0xf] %v7169_v3  ;;  %v6395_v1 = vpack.c.bf16 %v2034_v63, %v2033_v62  ;;  %v2050_v62 = vld [vmem:[#allocation13 + $0x348] sm:$0xff] }
 0x206   :  { %685 = vst [vmem:[#allocation2 + $0x40] sm:$0xff] %v7169_v3  ;;  %686 = vst [vmem:[#allocation2 + $0x48] sm:$0xf] %v7169_v3 }
 0x207   :  { %687 = vst [vmem:[#allocation2 + $0x50] sm:$0xff] %v7169_v3  ;;  %688 = vst [vmem:[#allocation2 + $0x58] sm:$0xf] %v7169_v3 }
 0x208   :  { %489 = vadd.xlane.f32.xlu1 %v465_v13  ;;  %v1999_v13 = vld [vmem:[#allocation13 + $0x1b0] sm:$0xff]  ;;  %689 = vst [vmem:[#allocation2 + $0x60] sm:$0xff] %v7169_v3  ;;  %690 = vst [vmem:[#allocation2 + $0x68] sm:$0xf] %v7169_v3 }
 0x209   :  { %419 = vadd.xlane.f32.xlu0 %v7509_v12  ;;  %691 = vst [vmem:[#allocation2 + $0x70] sm:$0xff] %v7169_v3  ;;  %692 = vst [vmem:[#allocation2 + $0x78] sm:$0xf] %v7169_v3  ;;  %v774_v25 = vld [vmem:[#allocation2 + $0x1] sm:$0xff] }
 0x20a   :  { %693 = vst [vmem:[#allocation2 + $0x80] sm:$0xff] %v7169_v3  ;;  %694 = vst [vmem:[#allocation2 + $0x88] sm:$0xf] %v7169_v3  ;;  %2416 = vmatprep.mubr.f32.mxu1 %v774_v25  ;;  %v839_v30 = vld [vmem:[#allocation2 + $0x13] sm:$0xff] }
 0x20b   :  { %695 = vst [vmem:[#allocation2 + $0x90] sm:$0xff] %v7169_v3  ;;  %696 = vst [vmem:[#allocation2 + $0x98] sm:$0xf] %v7169_v3 }
 0x20c   :  { %421 = vadd.xlane.f32.xlu1 %v7514_v14  ;;  %697 = vst [vmem:[#allocation2 + $0xa0] sm:$0xff] %v7169_v3  ;;  %698 = vst [vmem:[#allocation2 + $0xa8] sm:$0xf] %v7169_v3 }
 0x20d   :  { %495 = vadd.xlane.f32.xlu0 %v468_v15  ;;  %v6329_v15 = vpack.c.bf16 %v1952_v11, %v1951_v9  ;;  %699 = vst [vmem:[#allocation2 + $0xb0] sm:$0xff] %v7169_v3  ;;  %700 = vst [vmem:[#allocation2 + $0xb8] sm:$0xf] %v7169_v3  ;;  %v6343_v9 = vpack.c.bf16 %v1976_v7, %v1975_v6  ;;  %v1959_v11 = vld [vmem:[#allocation13 + $0x70] sm:$0xff]  ;;  %v2057_v7 = vld [vmem:[#allocation13 + $0x380] sm:$0xff] }
 0x20e   :  { %701 = vst [vmem:[#allocation2 + $0xc0] sm:$0xff] %v7169_v3  ;;  %702 = vst [vmem:[#allocation2 + $0xc8] sm:$0xf] %v7169_v3 }
 0x20f   :  { %6330 = vmatpush3.bf16.msra.mxu1 %v6329_v15  ;;  %703 = vst [vmem:[#allocation2 + $0xd0] sm:$0xff] %v7169_v3  ;;  %704 = vst [vmem:[#allocation2 + $0xd8] sm:$0xf] %v7169_v3  ;;  %v2007_v15 = vld [vmem:[#allocation13 + $0x1f0] sm:$0xff] }
 0x210   :  { %425 = vadd.xlane.f32.xlu1 %v7520_v16  ;;  %6332 = vmatprep.subr.bf16.mxu1 %v6331_v26  ;;  %705 = vst [vmem:[#allocation2 + $0xe0] sm:$0xff] %v7169_v3  ;;  %706 = vst [vmem:[#allocation2 + $0xe8] sm:$0xf] %v7169_v3  ;;  %v838_v26 = vld [vmem:[#allocation2 + $0x3] sm:$0xff] }
 0x211   :  { %493 = vadd.xlane.f32.xlu0 %v467_v17  ;;  %v2000_v17 = vld [vmem:[#allocation13 + $0x1b8] sm:$0xff]  ;;  %707 = vst [vmem:[#allocation2 + $0xf0] sm:$0xff] %v7169_v3  ;;  %708 = vst [vmem:[#allocation2 + $0xf8] sm:$0xf] %v7169_v3  ;;  %2561 = vmatprep.mubr.f32.mxu0 %v838_v26  ;;  %v2035_v26 = vld [vmem:[#allocation13 + $0x2d0] sm:$0xff] }
 0x212   :  { %v6359_v22 = vpack.c.bf16 %v2000_v17, %v1999_v13  ;;  %709 = vst [vmem:[#allocation2 + $0x100] sm:$0xff] %v7169_v3  ;;  %710 = vst [vmem:[#allocation2 + $0x108] sm:$0xf] %v7169_v3  ;;  %v1960_v13 = vld [vmem:[#allocation13 + $0x78] sm:$0xff] }
 0x213   :  { %711 = vst [vmem:[#allocation2 + $0x110] sm:$0xff] %v7169_v3  ;;  %712 = vst [vmem:[#allocation2 + $0x118] sm:$0xf] %v7169_v3  ;;  %v6345_v17 = vpack.c.bf16 %v1960_v13, %v1959_v11  ;;  %v2041_v11 = vld [vmem:[#allocation13 + $0x300] sm:$0xff] }
 0x214   :  { %423 = vadd.xlane.f32.xlu1 %v7527_v18  ;;  %6360 = vmatprep.subr.bf16.mxu0 %v6359_v22  ;;  %713 = vst [vmem:[#allocation2 + $0x120] sm:$0xff] %v7169_v3  ;;  %714 = vst [vmem:[#allocation2 + $0x128] sm:$0xf] %v7169_v3  ;;  %v1992_v22 = vld [vmem:[#allocation13 + $0x178] sm:$0xff] }
 0x215   :  { %499 = vadd.xlane.f32.xlu0 %v470_v19  ;;  %v1983_v19 = vld [vmem:[#allocation13 + $0x130] sm:$0xff]  ;;  %715 = vst [vmem:[#allocation2 + $0x130] sm:$0xff] %v7169_v3  ;;  %716 = vst [vmem:[#allocation2 + $0x138] sm:$0xf] %v7169_v3 }
 0x216   :  { %v6361_v23 = vpack.c.bf16 %v1984_v21, %v1983_v19  ;;  %717 = vst [vmem:[#allocation2 + $0x140] sm:$0xff] %v7169_v3  ;;  %718 = vst [vmem:[#allocation2 + $0x148] sm:$0xf] %v7169_v3  ;;  %v2008_v19 = vld [vmem:[#allocation13 + $0x1f8] sm:$0xff]  ;;  %v1991_v21 = vld [vmem:[#allocation13 + $0x170] sm:$0xff] }
 0x217   :  { %719 = vst [vmem:[#allocation2 + $0x150] sm:$0xff] %v7169_v3  ;;  %720 = vst [vmem:[#allocation2 + $0x158] sm:$0xf] %v7169_v3  ;;  %v6377_v24 = vpack.c.bf16 %v1992_v22, %v1991_v21  ;;  %v2060_v21 = vld [vmem:[#allocation13 + $0x398] sm:$0xff] }
 0x218   :  { %429 = vadd.xlane.f32.xlu1 %v7532_v20  ;;  %6362 = vmatpush3.bf16.msra.mxu0 %v6361_v23  ;;  %721 = vst [vmem:[#allocation2 + $0x160] sm:$0xff] %v7169_v3  ;;  %722 = vst [vmem:[#allocation2 + $0x168] sm:$0xf] %v7169_v3  ;;  %v6375_v23 = vpack.c.bf16 %v2008_v19, %v2007_v15  ;;  %v2042_v15 = vld [vmem:[#allocation13 + $0x308] sm:$0xff]  ;;  %v2059_v19 = vld [vmem:[#allocation13 + $0x390] sm:$0xff] }
 0x219   :  { %497 = vadd.xlane.f32.xlu0 %v469_v28  ;;  %v1953_v28 = vld [vmem:[#allocation13 + $0x40] sm:$0xff]  ;;  %6364 = vmatprep.subr.bf16.mxu0 %v6363_v35  ;;  %723 = vst [vmem:[#allocation2 + $0x170] sm:$0xff] %v7169_v3  ;;  %724 = vst [vmem:[#allocation2 + $0x178] sm:$0xf] %v7169_v3  ;;  %v6379_v35 = vpack.c.bf16 %v2026_v33, %v2025_v32  ;;  %v6415_v22 = vpack.c.bf16 %v2060_v21, %v2059_v19  ;;  %v2019_v32 = vld [vmem:[#allocation13 + $0x250] sm:$0xff] }
 0x21a   :  { %v6333_v31 = vpack.c.bf16 %v1954_v29, %v1953_v28  ;;  %v806_v28 = vld [vmem:[#allocation2 + $0x2] sm:$0xff]  ;;  %v7595_v29 = vld [vmem:[#allocation2 + $0x11] sm:$0xff]  ;;  %v2020_v33 = vld [vmem:[#allocation13 + $0x258] sm:$0xff] }
 0x21c   :  { %427 = vadd.xlane.f32.xlu1 %v7536_v27  ;;  %6334 = vmatpush3.bf16.msra.mxu1 %v6333_v31  ;;  %v7599_v31 = vld [vmem:[#allocation2 + $0x12] sm:$0xff] }
 0x21d   :  { %501 = vadd.xlane.f32.xlu0 %v471_v41  ;;  %v1956_v41 = vld [vmem:[#allocation13 + $0x58] sm:$0xff]  ;;  %6366 = vmatpush3.bf16.msra.mxu0 %v6365_v36  ;;  %v2010_v36 = vld [vmem:[#allocation13 + $0x208] sm:$0xff] }
 0x21e   :  { %v6337_v45 = vpack.c.bf16 %v1956_v41, %v1955_v40  ;;  %6336 = vmatprep.subr.bf16.mxu1 %v6335_v39  ;;  %6368 = vmatprep.subr.bf16.mxu0 %v6367_v50  ;;  %v6381_v39 = vpack.c.bf16 %v2010_v36, %v2009_v34  ;;  %v6383_v40 = vpack.c.bf16 %v2028_v38, %v2027_v37  ;;  %v2011_v41 = vld [vmem:[#allocation13 + $0x210] sm:$0xff]  ;;  %v2013_v50 = vld [vmem:[#allocation13 + $0x220] sm:$0xff]  ;;  %v2062_v36 = vld [vmem:[#allocation13 + $0x3a8] sm:$0xff] }
 0x21f   :  { %v6385_v47 = vpack.c.bf16 %v2012_v43, %v2011_v41  ;;  %v2061_v34 = vld [vmem:[#allocation13 + $0x3a0] sm:$0xff]  ;;  %v2046_v38 = vld [vmem:[#allocation13 + $0x328] sm:$0xff]  ;;  %v2063_v41 = vld [vmem:[#allocation13 + $0x3b0] sm:$0xff] }
 0x220   :  { %503 = vadd.xlane.f32.xlu1 %v472_v54  ;;  %6338 = vmatpush3.bf16.msra.mxu1 %v6337_v45  ;;  %v1974_v54 = vld [vmem:[#allocation13 + $0xe8] sm:$0xff]  ;;  %v2029_v45 = vld [vmem:[#allocation13 + $0x2a0] sm:$0xff]  ;;  %v2064_v43 = vld [vmem:[#allocation13 + $0x3b8] sm:$0xff] }
 0x221   :  { %v6339_v55 = vpack.c.bf16 %v1974_v54, %v1973_v53  ;;  %6370 = vmatpush3.bf16.msra.mxu0 %v6369_v51  ;;  %v6387_v49 = vpack.c.bf16 %v2030_v46, %v2029_v45  ;;  %v2014_v51 = vld [vmem:[#allocation13 + $0x228] sm:$0xff]  ;;  %v2031_v54 = vld [vmem:[#allocation13 + $0x2b0] sm:$0xff]  ;;  %v2045_v37 = vld [vmem:[#allocation13 + $0x320] sm:$0xff]  ;;  %v6423_v45 = vpack.c.bf16 %v2064_v43, %v2063_v41 }
 0x222   :  { %6372 = vmatprep.subr.bf16.mxu0 %v6371_v4  ;;  %v6389_v53 = vpack.c.bf16 %v2014_v51, %v2013_v50  ;;  %v2017_v4 = vld [vmem:[#allocation13 + $0x240] sm:$0xff]  ;;  %v2047_v46 = vld [vmem:[#allocation13 + $0x330] sm:$0xff]  ;;  %v2038_v51 = vld [vmem:[#allocation13 + $0x2e8] sm:$0xff] }
 0x223   :  { %6340 = vmatprep.subr.bf16.mxu1 %v6339_v55  ;;  %v2032_v55 = vld [vmem:[#allocation13 + $0x2b8] sm:$0xff]  ;;  %v2089_v43 = vld [vmem:[#allocation13 + $0x480] sm:$0xff] }
 0x224   :  { %6342 = vmatpush3.bf16.msra.mxu1 %v6341_v61  ;;  %v6391_v57 = vpack.c.bf16 %v2032_v55, %v2031_v54  ;;  %v6393_v61 = vpack.c.bf16 %v2016_v59, %v2015_v58  ;;  %v2021_v54 = vld [vmem:[#allocation13 + $0x260] sm:$0xff]  ;;  %v2022_v55 = vld [vmem:[#allocation13 + $0x268] sm:$0xff]  ;;  %v2056_v41 = vld [vmem:[#allocation13 + $0x378] sm:$0xff] }
 0x225   :  { %6374 = vmatpush3.bf16.msra.mxu0 %v6373_v5  ;;  %6344 = vmatprep.subr.bf16.mxu1 %v6343_v9  ;;  %v2018_v5 = vld [vmem:[#allocation13 + $0x248] sm:$0xff]  ;;  %v6405_v58 = vpack.c.bf16 %v2022_v55, %v2021_v54 }
 0x226   :  { %6376 = vmatprep.subr.bf16.mxu0 %v6375_v23  ;;  %v6397_v6 = vpack.c.bf16 %v2018_v5, %v2017_v4  ;;  %v2058_v9 = vld [vmem:[#allocation13 + $0x388] sm:$0xff]  ;;  %v2043_v23 = vld [vmem:[#allocation13 + $0x310] sm:$0xff]  ;;  %v2068_v5 = vld [vmem:[#allocation13 + $0x3d8] sm:$0xff] }
 0x227   :  { %v6411_v13 = vpack.c.bf16 %v2058_v9, %v2057_v7  ;;  %v2066_v59 = vld [vmem:[#allocation13 + $0x3c8] sm:$0xff]  ;;  %v2067_v4 = vld [vmem:[#allocation13 + $0x3d0] sm:$0xff] }
 0x228   :  { %6346 = vmatpush3.bf16.msra.mxu1 %v6345_v17  ;;  %v6413_v17 = vpack.c.bf16 %v2042_v15, %v2041_v11  ;;  %v6431_v7 = vpack.c.bf16 %v2068_v5, %v2067_v4  ;;  %v2051_v9 = vld [vmem:[#allocation13 + $0x350] sm:$0xff]  ;;  %v2052_v11 = vld [vmem:[#allocation13 + $0x358] sm:$0xff] }
 0x229   :  { %6378 = vmatpush3.bf16.msra.mxu0 %v6377_v24  ;;  %6380 = vmatprep.subr.bf16.mxu1 %v6379_v35  ;;  %v2044_v24 = vld [vmem:[#allocation13 + $0x318] sm:$0xff]  ;;  %v6401_v35 = vpack.c.bf16 %v2020_v33, %v2019_v32  ;;  %v6433_v15 = vpack.c.bf16 %v2052_v11, %v2051_v9  ;;  %v2054_v32 = vld [vmem:[#allocation13 + $0x368] sm:$0xff] }
 0x22a   :  { %6412 = vmatprep.subr.bf16.mxu0 %v6411_v13  ;;  %v6417_v25 = vpack.c.bf16 %v2044_v24, %v2043_v23  ;;  %v2039_v13 = vld [vmem:[#allocation13 + $0x2f0] sm:$0xff]  ;;  %v2024_v23 = vld [vmem:[#allocation13 + $0x278] sm:$0xff]  ;;  %v2069_v24 = vld [vmem:[#allocation13 + $0x3e0] sm:$0xff] }
 0x22b   :  { %2417 = vmatmul.mubr.f32.vlgmr.msra.gmra.mrb[0].mxu1 %v7169_v3 }
 0x22c   :  { %2562 = vmatmul.mubr.f32.vlgmr.msra.gmra.mrb[16].mxu0 %v806_v28  ;;  %2421 = vmatprep.mubr.f32.mxu1 %v7595_v29  ;;  %v2036_v28 = vld [vmem:[#allocation13 + $0x2d8] sm:$0xff] }
 0x22d   :  { %2566 = vmatprep.mubr.f32.mxu0 %v839_v30  ;;  %6382 = vmatpush3.bf16.msra.mxu1 %v6381_v39  ;;  %v6399_v30 = vpack.c.bf16 %v2036_v28, %v2035_v26  ;;  %v6419_v39 = vpack.c.bf16 %v2062_v36, %v2061_v34  ;;  %v2070_v28 = vld [vmem:[#allocation13 + $0x3e8] sm:$0xff]  ;;  %v2071_v36 = vld [vmem:[#allocation13 + $0x3f0] sm:$0xff] }
 0x22e   :  { %6384 = vmatprep.subr.bf16.mxu1 %v6383_v40  ;;  %6414 = vmatpush3.bf16.msra.mxu0 %v6413_v17  ;;  %v6421_v40 = vpack.c.bf16 %v2046_v38, %v2045_v37  ;;  %v2040_v17 = vld [vmem:[#allocation13 + $0x2f8] sm:$0xff]  ;;  %v6435_v33 = vpack.c.bf16 %v2070_v28, %v2069_v24  ;;  %v2055_v38 = vld [vmem:[#allocation13 + $0x370] sm:$0xff] }
 0x22f   :  { %2422 = vmatmul.mubr.f32.gmra.mrb[2].mxu1 %v7169_v3  ;;  %6416 = vmatprep.subr.bf16.mxu0 %v6415_v22  ;;  %v6407_v19 = vpack.c.bf16 %v2040_v17, %v2039_v13  ;;  %v2023_v22 = vld [vmem:[#allocation13 + $0x270] sm:$0xff]  ;;  %v2072_v37 = vld [vmem:[#allocation13 + $0x3f8] sm:$0xff] }
 0x230   :  { %2567 = vmatmul.mubr.f32.gmra.mrb[18].mxu0 %v7599_v31  ;;  %v6409_v26 = vpack.c.bf16 %v2024_v23, %v2023_v22 }
 0x231   :  { %6386 = vmatpush3.bf16.msra.mxu1 %v6385_v47  ;;  %v2048_v47 = vld [vmem:[#allocation13 + $0x338] sm:$0xff] }
 0x232   :  { %6388 = vmatprep.subr.bf16.mxu1 %v6387_v49  ;;  %6418 = vmatpush3.bf16.msra.mxu0 %v6417_v25  ;;  %v2037_v49 = vld [vmem:[#allocation13 + $0x2e0] sm:$0xff]  ;;  %v6425_v50 = vpack.c.bf16 %v2048_v47, %v2047_v46  ;;  %v6441_v46 = vpack.c.bf16 %v2056_v41, %v2055_v38 }
 0x233   :  { %6420 = vmatprep.subr.bf16.mxu0 %v6419_v39 }
 0x235   :  { %6390 = vmatpush3.bf16.msra.mxu1 %v6389_v53  ;;  %v6403_v53 = vpack.c.bf16 %v2038_v51, %v2037_v49 }
 0x236   :  { %6392 = vmatprep.subr.bf16.mxu1 %v6391_v57  ;;  %6422 = vmatpush3.bf16.msra.mxu0 %v6421_v40  ;;  %v2065_v57 = vld [vmem:[#allocation13 + $0x3c0] sm:$0xff]  ;;  %v6439_v40 = vpack.c.bf16 %v2072_v37, %v2071_v36 }
 0x237   :  { %6424 = vmatprep.subr.bf16.mxu0 %v6423_v45  ;;  %v6427_v63 = vpack.c.bf16 %v2066_v59, %v2065_v57  ;;  %v2090_v45 = vld [vmem:[#allocation13 + $0x488] sm:$0xff] }
 0x238   :  { %v6443_v47 = vpack.c.bf16 %v2090_v45, %v2089_v43  ;;  %v2121_v45 = vld [vmem:[#allocation13 + $0x580] sm:$0xff] }
 0x239   :  { %6394 = vmatpush3.bf16.msra.mxu1 %v6393_v61  ;;  %v2049_v61 = vld [vmem:[#allocation13 + $0x340] sm:$0xff] }
 0x23a   :  { %6396 = vmatprep.subr.bf16.mxu1 %v6395_v1  ;;  %6426 = vmatpush3.bf16.msra.mxu0 %v6425_v50  ;;  %v6429_v1 = vpack.c.bf16 %v2050_v62, %v2049_v61 }
 0x23b   :  { %6428 = vmatprep.subr.bf16.mxu0 %v6427_v63 }
 0x23d   :  { %6398 = vmatpush3.bf16.msra.mxu1 %v6397_v6 }
 0x23e   :  { %6400 = vmatprep.subr.bf16.mxu1 %v6399_v30  ;;  %6430 = vmatpush3.bf16.msra.mxu0 %v6429_v1  ;;  %v2053_v30 = vld [vmem:[#allocation13 + $0x360] sm:$0xff] }
 0x23f   :  { %6432 = vmatprep.subr.bf16.mxu0 %v6431_v7  ;;  %v6437_v34 = vpack.c.bf16 %v2054_v32, %v2053_v30 }
 0x241   :  { %6402 = vmatpush3.bf16.msra.mxu1 %v6401_v35 }
 0x242   :  { %6404 = vmatprep.subr.bf16.mxu1 %v6403_v53  ;;  %6434 = vmatpush3.bf16.msra.mxu0 %v6433_v15 }
 0x243   :  { %6436 = vmatprep.subr.bf16.mxu0 %v6435_v33 }
 0x245   :  { %6406 = vmatpush3.bf16.msra.mxu1 %v6405_v58 }
 0x246   :  { %6408 = vmatprep.subr.bf16.mxu1 %v6407_v19  ;;  %6438 = vmatpush3.bf16.msra.mxu0 %v6437_v34 }
 0x247   :  { %6440 = vmatprep.subr.bf16.mxu0 %v6439_v40 }
 0x249   :  { %6410 = vmatpush3.bf16.msra.mxu1 %v6409_v26 }
 0x24a   :  { %6444 = vmatprep.subr.bf16.mxu1 %v6443_v47  ;;  %6442 = vmatpush3.bf16.msra.mxu0 %v6441_v46 }
 0x26e   :  { %v402_v6 = vpop.xlane.xlu0 %401 }
 0x271   :  { %v474_v21 = vpop.xlane.xlu1 %473 }
 0x272   :  { %v400_v25 = vpop.xlane.xlu0 %399 }
 0x273   :  { %v431_v51 = vadd.f32 %v402_v6, %v400_v25 }
 0x275   :  { %v406_v35 = vpop.xlane.xlu1 %405 }
 0x276   :  { %v476_v39 = vpop.xlane.xlu0 %475 }
 0x277   :  { %v505_v57 = vadd.f32 %v476_v39, %v474_v21 }
 0x279   :  { %v404_v49 = vpop.xlane.xlu1 %403 }
 0x27a   :  { %v480_v50 = vpop.xlane.xlu0 %479  ;;  %v432_v54 = vadd.f32 %v431_v51, %v404_v49 }
 0x27c   :  { %v433_v61 = vadd.f32 %v432_v54, %v406_v35 }
 0x27d   :  { %v410_v53 = vpop.xlane.xlu1 %409 }
 0x27e   :  { %v478_v55 = vpop.xlane.xlu0 %477 }
 0x27f   :  { %v506_v58 = vadd.f32 %v505_v57, %v478_v55 }
 0x281   :  { %v408_v59 = vpop.xlane.xlu1 %407  ;;  %v507_v4 = vadd.f32 %v506_v58, %v480_v50  ;;  %v2122_v50 = vld [vmem:[#allocation13 + $0x588] sm:$0xff] }
 0x282   :  { %v484_v62 = vpop.xlane.xlu0 %483  ;;  %v434_v63 = vadd.f32 %v433_v61, %v408_v59  ;;  %v6475_v51 = vpack.c.bf16 %v2122_v50, %v2121_v45  ;;  %v7638_v50 = vld [vmem:[#allocation10 + $0x28] sm:$0xff] }
 0x284   :  { %v435_v9 = vadd.f32 %v434_v63, %v410_v53  ;;  %6476 = vmatprep.subr.bf16.mxu0 %v6475_v51 }
 0x285   :  { %v414_v1 = vpop.xlane.xlu1 %413 }
 0x286   :  { %v482_v5 = vpop.xlane.xlu0 %481 }
 0x287   :  { %v508_v7 = vadd.f32 %v507_v4, %v482_v5 }
 0x289   :  { %v412_v11 = vpop.xlane.xlu1 %411  ;;  %v509_v13 = vadd.f32 %v508_v7, %v484_v62 }
 0x28a   :  { %v436_v15 = vadd.f32 %v435_v9, %v412_v11  ;;  %v486_v17 = vpop.xlane.xlu0 %485 }
 0x28b   :  { %v510_v19 = vadd.f32 %v509_v13, %v486_v17 }
 0x28c   :  { %v437_v6 = vadd.f32 %v436_v15, %v414_v1 }
 0x28d   :  { %v488_v22 = vpop.xlane.xlu1 %487 }
 0x28e   :  { %v438_v23 = vrot.slane %v437_v6, 4  ;;  %v511_v24 = vadd.f32 %v510_v19, %v488_v22  ;;  %v416_v21 = vpop.xlane.xlu0 %415 }
 0x290   :  { %v439_v25 = vadd.f32 %v438_v23, %v437_v6  ;;  %v512_v26 = vrot.slane %v511_v24, 4 }
 0x291   :  { %v418_v28 = vpop.xlane.xlu1 %417 }
 0x292   :  { %v440_v30 = vrot.slane %v439_v25, 2  ;;  %v513_v32 = vadd.f32 %v512_v26, %v511_v24  ;;  %v492_v33 = vpop.xlane.xlu0 %491  ;;  %v444_v55 = vadd.f32 %v418_v28, %v416_v21 }
 0x294   :  { %v441_v34 = vadd.f32 %v440_v30, %v439_v25  ;;  %v514_v35 = vrot.slane %v513_v32, 2 }
 0x295   :  { %v490_v36 = vpop.xlane.xlu1 %489 }
 0x296   :  { %v442_v37 = vrot.slane %v441_v34, 1  ;;  %v515_v38 = vadd.f32 %v514_v35, %v513_v32  ;;  %v420_v39 = vpop.xlane.xlu0 %419  ;;  %v518_v62 = vadd.f32 %v492_v33, %v490_v36  ;;  %v7608_v32 = vld [vmem:[#allocation10] sm:$0xff] }
 0x297   :  { %v445_v59 = vadd.f32 %v444_v55, %v420_v39 }
 0x298   :  { %v443_v40 = vadd.f32 %v442_v37, %v441_v34  ;;  %v516_v41 = vrot.slane %v515_v38, 1 }
 0x299   :  { %v422_v43 = vpop.xlane.xlu1 %421 }
 0x29a   :  { %v7602_v46 = vmul.f32 0.00390625, %v443_v40  ;;  %v517_v47 = vadd.f32 %v516_v41, %v515_v38  ;;  %v496_v49 = vpop.xlane.xlu0 %495  ;;  %v446_v7 = vadd.f32 %v445_v59, %v422_v43  ;;  %v7622_v40 = vld [vmem:[#allocation10 + $0x10] sm:$0xff]  ;;  %v7624_v41 = vld [vmem:[#allocation10 + $0x18] sm:$0xff] }
 0x29c   :  { %v535_v53 = vmul.f32 %v7602_v46, %v7602_v46  ;;  %v533_v54 = vmul.f32 0.00390625, %v517_v47  ;;  %v561_v28 = vsub.f32 %v7454_v44, %v7602_v46  ;;  %v562_v33 = vsub.f32 %v7451_v42, %v7602_v46  ;;  %v7620_v44 = vld [vmem:[#allocation10 + $0x8] sm:$0xff] }
 0x29d   :  { %v426_v57 = vpop.xlane.xlu1 %425  ;;  %v563_v34 = vsub.f32 %v7467_v52, %v7602_v46  ;;  %v564_v35 = vsub.f32 %v7460_v48, %v7602_v46  ;;  %v565_v36 = vsub.f32 %v7479_v60, %v7602_v46  ;;  %v566_v42 = vsub.f32 %v7472_v56, %v7602_v46  ;;  %v7630_v48 = vld [vmem:[#allocation12] sm:$0xff]  ;;  %v7640_v56 = vld [vmem:[#allocation12 + $0x8] sm:$0xff] }
 0x29e   :  { %v537_v58 = vsub.f32 %v533_v54, %v535_v53  ;;  %v494_v61 = vpop.xlane.xlu0 %493  ;;  %v567_v52 = vsub.f32 %v7488_v2, %v7602_v46  ;;  %v7642_v54 = vld [vmem:[#allocation12 + $0x10] sm:$0xff]  ;;  %v7644_v2 = vld [vmem:[#allocation12 + $0x18] sm:$0xff] }
 0x29f   :  { %v519_v1 = vadd.f32 %v518_v62, %v494_v61 }
 0x2a0   :  { %v539_v63 = vmax.f32 %v537_v58, 0.0 }
 0x2a1   :  { %v424_v4 = vpop.xlane.xlu1 %423  ;;  %v520_v15 = vadd.f32 %v519_v1, %v496_v49  ;;  %v7636_v49 = vld [vmem:[#allocation10 + $0x20] sm:$0xff]  ;;  %v7654_v1 = vld [vmem:[#allocation12 + $0x28] sm:$0xff] }
 0x2a2   :  { %v541_v5 = vadd.f32 1e-05, %v539_v63  ;;  %v500_v9 = vpop.xlane.xlu0 %499  ;;  %v447_v11 = vadd.f32 %v446_v7, %v424_v4  ;;  %v7652_v63 = vld [vmem:[#allocation12 + $0x20] sm:$0xff] }
 0x2a4   :  { %6796 = vrsqrt.f32 %v541_v5  ;;  %v448_v6 = vadd.f32 %v447_v11, %v426_v57 }
 0x2a5   :  { %v430_v13 = vpop.xlane.xlu1 %429 }
 0x2a6   :  { %v498_v17 = vpop.xlane.xlu0 %497 }
 0x2a7   :  { %v521_v19 = vadd.f32 %v520_v15, %v498_v17 }
 0x2a9   :  { %v428_v22 = vpop.xlane.xlu1 %427  ;;  %v522_v23 = vadd.f32 %v521_v19, %v500_v9 }
 0x2aa   :  { %v449_v24 = vadd.f32 %v448_v6, %v428_v22  ;;  %v502_v21 = vpop.xlane.xlu0 %501 }
 0x2ab   :  { %v523_v25 = vadd.f32 %v522_v23, %v502_v21 }
 0x2ac   :  { %v450_v26 = vadd.f32 %v449_v24, %v430_v13 }
 0x2ad   :  { %v504_v30 = vpop.xlane.xlu1 %503 }
 0x2ae   :  { %v7618_v37 = vpop.eup %6796  ;;  %v451_v38 = vrot.slane %v450_v26, 4  ;;  %v524_v39 = vadd.f32 %v523_v25, %v504_v30 }
 0x2af   :  { %v577_v60 = vmul.f32 %v7618_v37, %v561_v28  ;;  %v578_v43 = vmul.f32 %v7618_v37, %v562_v33  ;;  %v579_v45 = vmul.f32 %v7618_v37, %v563_v34  ;;  %v580_v47 = vmul.f32 %v7618_v37, %v564_v35 }
 0x2b0   :  { %v452_v51 = vadd.f32 %v451_v38, %v450_v26  ;;  %v525_v53 = vrot.slane %v524_v39, 4  ;;  %v581_v55 = vmul.f32 %v7618_v37, %v565_v36  ;;  %v582_v57 = vmul.f32 %v7618_v37, %v566_v42 }
 0x2b1   :  { %v593_v58 = vmul.f32 %v577_v60, %v7608_v32  ;;  %v594_v59 = vmul.f32 %v578_v43, %v7620_v44  ;;  %v595_v61 = vmul.f32 %v579_v45, %v7622_v40  ;;  %v596_v62 = vmul.f32 %v580_v47, %v7624_v41 }
 0x2b2   :  { %v453_v4 = vrot.slane %v452_v51, 2  ;;  %v526_v5 = vadd.f32 %v525_v53, %v524_v39  ;;  %v597_v7 = vmul.f32 %v581_v55, %v7636_v49  ;;  %v598_v9 = vmul.f32 %v582_v57, %v7638_v50  ;;  %v7683_v55 = vld [vmem:[#allocation10 + $0x30] sm:$0xff] }
 0x2b3   :  { %v609_v11 = vadd.f32 %v593_v58, %v7630_v48  ;;  %v610_v13 = vadd.f32 %v594_v59, %v7640_v56  ;;  %v611_v15 = vadd.f32 %v595_v61, %v7642_v54  ;;  %v612_v17 = vadd.f32 %v596_v62, %v7644_v2  ;;  %v7689_v59 = vld [vmem:[#allocation12 + $0x30] sm:$0xff] }
 0x2b4   :  { %v454_v19 = vadd.f32 %v453_v4, %v452_v51  ;;  %v527_v6 = vrot.slane %v526_v5, 2  ;;  %v613_v22 = vadd.f32 %v597_v7, %v7652_v63  ;;  %v614_v23 = vadd.f32 %v598_v9, %v7654_v1 }
 0x2b5   :  { %vm625_vm0 = vcmp.ge.f32.partialorder %v609_v11, 0.0  ;;  %v641_v24 = vmul.f32 0.01, %v609_v11  ;;  %vm626_vm1 = vcmp.ge.f32.partialorder %v610_v13, 0.0  ;;  %v642_v21 = vmul.f32 0.01, %v610_v13 }
 0x2b6   :  { %v455_v25 = vrot.slane %v454_v19, 1  ;;  %v528_v26 = vadd.f32 %v527_v6, %v526_v5  ;;  %vm627_vm2 = vcmp.ge.f32.partialorder %v611_v15, 0.0  ;;  %v643_v28 = vmul.f32 0.01, %v611_v15 }
 0x2b7   :  { %v7664_v30 = vsel %vm625_vm0, %v609_v11, %v641_v24  ;;  %v7666_v33 = vsel %vm626_vm1, %v610_v13, %v642_v21  ;;  %vm628_vm3 = vcmp.ge.f32.partialorder %v612_v17, 0.0  ;;  %v644_v34 = vmul.f32 0.01, %v612_v17  ;;  %v7700_v13 = vld [vmem:[#allocation10 + $0x38] sm:$0xff] }
 0x2b8   :  { %v456_v35 = vadd.f32 %v455_v25, %v454_v19  ;;  %v529_v36 = vrot.slane %v528_v26, 1  ;;  %726 = vst [vmem:[#allocation2 + $0x22] sm:$0xff] %v7664_v30  ;;  %727 = vst [vmem:[#allocation2 + $0x32] sm:$0xff] %v7666_v33  ;;  %v7670_v38 = vsel %vm627_vm2, %v611_v15, %v643_v28  ;;  %vm629_vm4 = vcmp.ge.f32.partialorder %v613_v22, 0.0 }
 0x2b9   :  { %728 = vst [vmem:[#allocation2 + $0x42] sm:$0xff] %v7670_v38  ;;  %v7673_v39 = vsel %vm628_vm3, %v612_v17, %v644_v34  ;;  %v645_v42 = vmul.f32 0.01, %v613_v22  ;;  %vm630_vm5 = vcmp.ge.f32.partialorder %v614_v23, 0.0  ;;  %v646_v60 = vmul.f32 0.01, %v614_v23 }
 0x2ba   :  { %v7675_v43 = vmul.f32 0.00390625, %v456_v35  ;;  %v530_v45 = vadd.f32 %v529_v36, %v528_v26  ;;  %729 = vst [vmem:[#allocation2 + $0x52] sm:$0xff] %v7673_v39  ;;  %v583_v47 = vmul.f32 %v7618_v37, %v567_v52  ;;  %v568_v7 = vsub.f32 %v7484_v0, %v7602_v46  ;;  %v7708_v0 = vld [vmem:[#allocation12 + $0x38] sm:$0xff] }
 0x2bb   :  { %v7679_v51 = vsel %vm629_vm4, %v613_v22, %v645_v42  ;;  %v7681_v53 = vsel %vm630_vm5, %v614_v23, %v646_v60 }
 0x2bc   :  { %v536_v57 = vmul.f32 %v7675_v43, %v7675_v43  ;;  %v534_v58 = vmul.f32 0.00390625, %v530_v45  ;;  %730 = vst [vmem:[#allocation2 + $0x62] sm:$0xff] %v7679_v51  ;;  %731 = vst [vmem:[#allocation2 + $0x72] sm:$0xff] %v7681_v53  ;;  %v599_v62 = vmul.f32 %v583_v47, %v7683_v55  ;;  %v584_v19 = vmul.f32 %v7618_v37, %v568_v7 }
 0x2bd   :  { %v569_v60 = vsub.f32 %v7497_v8, %v7675_v43  ;;  %v573_v8 = vsub.f32 %v7527_v18, %v7675_v43 }
 0x2be   :  { %v538_v61 = vsub.f32 %v534_v58, %v536_v57  ;;  %v615_v11 = vadd.f32 %v599_v62, %v7689_v59  ;;  %v600_v22 = vmul.f32 %v584_v19, %v7700_v13  ;;  %v570_v57 = vsub.f32 %v7502_v10, %v7675_v43 }
 0x2bf   :  { %v7692_v52 = vld [vmem:[#allocation2 + $0x21] sm:$0xff]  ;;  %v7704_v15 = vld [vmem:[#allocation2 + $0x31] sm:$0xff]  ;;  %v571_v58 = vsub.f32 %v7509_v12, %v7675_v43  ;;  %v575_v10 = vsub.f32 %v7536_v27, %v7675_v43 }
 0x2c0   :  { %v840_v4 = vld [vmem:[#allocation2 + $0x23] sm:$0xff]  ;;  %v540_v9 = vmax.f32 %v538_v61, 0.0  ;;  %2426 = vmatprep.mubr.f32.mxu1 %v7692_v52  ;;  %v841_v17 = vld [vmem:[#allocation2 + $0x33] sm:$0xff]  ;;  %vm631_vm6 = vcmp.ge.f32.partialorder %v615_v11, 0.0  ;;  %v647_v46 = vmul.f32 0.01, %v615_v11  ;;  %v616_v25 = vadd.f32 %v600_v22, %v7708_v0 }
 0x2c1   :  { %v7694_v5 = vld [vmem:[#allocation2 + $0x20] sm:$0xff]  ;;  %2571 = vmatprep.mubr.f32.mxu0 %v840_v4  ;;  %v7711_v23 = vld [vmem:[#allocation2 + $0x30] sm:$0xff]  ;;  %v572_v61 = vsub.f32 %v7514_v14, %v7675_v43  ;;  %v574_v4 = vsub.f32 %v7520_v16, %v7675_v43 }
 0x2c2   :  { %2427 = vmatmul.mubr.f32.gmra.mrb[4].mxu1 %v7694_v5  ;;  %2572 = vmatmul.mubr.f32.gmra.mrb[20].mxu0 %v7664_v30  ;;  %v542_v6 = vadd.f32 1e-05, %v540_v9  ;;  %v7715_v24 = vld [vmem:[#allocation2 + $0x41] sm:$0xff]  ;;  %v7717_v21 = vsel %vm631_vm6, %v615_v11, %v647_v46  ;;  %vm632_vm7 = vcmp.ge.f32.partialorder %v616_v25, 0.0  ;;  %v648_v26 = vmul.f32 0.01, %v616_v25 }
 0x2c3   :  { %2431 = vmatprep.mubr.f32.mxu1 %v7704_v15  ;;  %2576 = vmatprep.mubr.f32.mxu0 %v841_v17  ;;  %v842_v37 = vld [vmem:[#allocation2 + $0x43] sm:$0xff]  ;;  %732 = vst [vmem:[#allocation2 + $0x82] sm:$0xff] %v7717_v21  ;;  %v7726_v34 = vld [vmem:[#allocation2 + $0x51] sm:$0xff] }
 0x2c4   :  { %6798 = vrsqrt.f32 %v542_v6  ;;  %v7722_v28 = vld [vmem:[#allocation2 + $0x40] sm:$0xff]  ;;  %v843_v35 = vld [vmem:[#allocation2 + $0x53] sm:$0xff]  ;;  %v664_v36 = vsel %vm632_vm7, %v616_v25, %v648_v26 }
 0x2c5   :  { %733 = vst [vmem:[#allocation2 + $0x92] sm:$0xff] %v664_v36  ;;  %v7729_v42 = vld [vmem:[#allocation2 + $0x50] sm:$0xff]  ;;  %v7735_v45 = vld [vmem:[#allocation2 + $0x61] sm:$0xff] }
 0x2c6   :  { %2432 = vmatmul.mubr.f32.gmra.mrb[6].mxu1 %v7711_v23  ;;  %2577 = vmatmul.mubr.f32.gmra.mrb[22].mxu0 %v7666_v33  ;;  %v844_v47 = vld [vmem:[#allocation2 + $0x63] sm:$0xff]  ;;  %v7763_v16 = vld [vmem:[#allocation2 + $0x71] sm:$0xff] }
 0x2c7   :  { %2436 = vmatprep.mubr.f32.mxu1 %v7715_v24  ;;  %2581 = vmatprep.mubr.f32.mxu0 %v842_v37  ;;  %v7756_v11 = vld [vmem:[#allocation2 + $0x60] sm:$0xff]  ;;  %v845_v27 = vld [vmem:[#allocation2 + $0x73] sm:$0xff] }
 0x2c8   :  { %v846_v36 = vld [vmem:[#allocation2 + $0xc3] sm:$0xff] }
 0x2ca   :  { %2437 = vmatmul.mubr.f32.gmra.mrb[8].mxu1 %v7722_v28  ;;  %2582 = vmatmul.mubr.f32.gmra.mrb[24].mxu0 %v7670_v38 }
 0x2cb   :  { %2441 = vmatprep.mubr.f32.mxu1 %v7726_v34  ;;  %2586 = vmatprep.mubr.f32.mxu0 %v843_v35  ;;  %v782_v35 = vld [vmem:[#allocation2 + $0xc1] sm:$0xff] }
 0x2ce   :  { %2442 = vmatmul.mubr.f32.gmra.mrb[10].mxu1 %v7729_v42  ;;  %2587 = vmatmul.mubr.f32.gmra.mrb[26].mxu0 %v7673_v39  ;;  %v7743_v62 = vpop.eup %6798 }
 0x2cf   :  { %2446 = vmatprep.mubr.f32.mxu1 %v7735_v45  ;;  %2591 = vmatprep.mubr.f32.mxu0 %v844_v47  ;;  %v585_v7 = vmul.f32 %v7743_v62, %v569_v60  ;;  %v586_v12 = vmul.f32 %v7743_v62, %v570_v57  ;;  %v587_v14 = vmul.f32 %v7743_v62, %v571_v58 }
 0x2d0   :  { %v588_v9 = vmul.f32 %v7743_v62, %v572_v61  ;;  %v589_v17 = vmul.f32 %v7743_v62, %v573_v8  ;;  %v590_v18 = vmul.f32 %v7743_v62, %v574_v4  ;;  %v591_v19 = vmul.f32 %v7743_v62, %v575_v10 }
 0x2d1   :  { %v601_v6 = vmul.f32 %v585_v7, %v7608_v32  ;;  %v602_v46 = vmul.f32 %v586_v12, %v7620_v44  ;;  %v603_v22 = vmul.f32 %v587_v14, %v7622_v40  ;;  %v7775_v44 = vld [vmem:[#allocation2 + $0x70] sm:$0xff]  ;;  %v814_v40 = vld [vmem:[#allocation2 + $0xc2] sm:$0xff] }
 0x2d2   :  { %2447 = vmatmul.mubr.f32.gmra.mrb[12].mxu1 %v7756_v11  ;;  %2592 = vmatmul.mubr.f32.gmra.mrb[28].mxu0 %v7679_v51  ;;  %v604_v37 = vmul.f32 %v588_v9, %v7624_v41  ;;  %v605_v25 = vmul.f32 %v589_v17, %v7636_v49  ;;  %v606_v26 = vmul.f32 %v590_v18, %v7638_v50  ;;  %v7802_v14 = vld [vmem:[#allocation2 + $0xd2] sm:$0xff] }
 0x2d3   :  { %2451 = vmatprep.mubr.f32.mxu1 %v7763_v16  ;;  %2596 = vmatprep.mubr.f32.mxu0 %v845_v27  ;;  %v617_v60 = vadd.f32 %v601_v6, %v7630_v48  ;;  %v618_v47 = vadd.f32 %v602_v46, %v7640_v56  ;;  %v619_v32 = vadd.f32 %v603_v22, %v7642_v54 }
 0x2d4   :  { %v620_v57 = vadd.f32 %v604_v37, %v7644_v2  ;;  %v621_v58 = vadd.f32 %v605_v25, %v7652_v63  ;;  %v622_v41 = vadd.f32 %v606_v26, %v7654_v1  ;;  %v607_v49 = vmul.f32 %v591_v19, %v7683_v55  ;;  %v7783_v2 = vld [vmem:[#allocation2 + $0xd1] sm:$0xff] }
 0x2d5   :  { %vm633_vm8 = vcmp.ge.f32.partialorder %v617_v60, 0.0  ;;  %v649_v48 = vmul.f32 0.01, %v617_v60  ;;  %vm634_vm9 = vcmp.ge.f32.partialorder %v618_v47, 0.0  ;;  %v650_v50 = vmul.f32 0.01, %v618_v47 }
 0x2d6   :  { %2452 = vmatmul.mubr.f32.gmra.mrb[14].mxu1 %v7775_v44  ;;  %2597 = vmatmul.mubr.f32.gmra.mrb[30].mxu0 %v7681_v53  ;;  %vm635_vm10 = vcmp.ge.f32.partialorder %v619_v32, 0.0  ;;  %v651_v56 = vmul.f32 0.01, %v619_v32  ;;  %vm636_vm11 = vcmp.ge.f32.partialorder %v620_v57, 0.0  ;;  %v652_v54 = vmul.f32 0.01, %v620_v57 }
 0x2d7   :  { %2456 = vmatprep.mubr.f32.mxu1 %v782_v35  ;;  %2601 = vmatprep.mubr.f32.mxu0 %v846_v36  ;;  %v847_v63 = vld [vmem:[#allocation2 + $0xd3] sm:$0xff]  ;;  %v7785_v1 = vsel %vm633_vm8, %v617_v60, %v649_v48  ;;  %v7787_v55 = vsel %vm634_vm9, %v618_v47, %v650_v50  ;;  %vm637_vm12 = vcmp.ge.f32.partialorder %v621_v58, 0.0  ;;  %v653_v61 = vmul.f32 0.01, %v621_v58 }
 0x2d8   :  { %734 = vst [vmem:[#allocation2 + $0xe2] sm:$0xff] %v7785_v1  ;;  %735 = vst [vmem:[#allocation2 + $0xf2] sm:$0xff] %v7787_v55  ;;  %v7791_v8 = vsel %vm635_vm10, %v619_v32, %v651_v56  ;;  %v7793_v4 = vsel %vm636_vm11, %v620_v57, %v652_v54  ;;  %vm638_vm13 = vcmp.ge.f32.partialorder %v622_v41, 0.0  ;;  %v654_v10 = vmul.f32 0.01, %v622_v41  ;;  %v2091_v50 = vld [vmem:[#allocation13 + $0x490] sm:$0xff] }
 0x2d9   :  { %736 = vst [vmem:[#allocation2 + $0x102] sm:$0xff] %v7791_v8  ;;  %737 = vst [vmem:[#allocation2 + $0x112] sm:$0xff] %v7793_v4  ;;  %v7798_v7 = vsel %vm637_vm12, %v621_v58, %v653_v61  ;;  %v623_v12 = vadd.f32 %v607_v49, %v7689_v59  ;;  %v576_v17 = vsub.f32 %v7532_v20, %v7675_v43  ;;  %v2074_v49 = vld [vmem:[#allocation13 + $0x408] sm:$0xff]  ;;  %v2092_v56 = vld [vmem:[#allocation13 + $0x498] sm:$0xff] }
 0x2da   :  { %2457 = vmatmul.mubr.f32.gmra.mrb[16].mxu1 %v7169_v3  ;;  %2602 = vmatmul.mubr.f32.gmra.mrb[32].mxu0 %v814_v40  ;;  %738 = vst [vmem:[#allocation2 + $0x122] sm:$0xff] %v7798_v7  ;;  %v7805_v9 = vsel %vm638_vm13, %v622_v41, %v654_v10  ;;  %v2073_v41 = vld [vmem:[#allocation13 + $0x400] sm:$0xff] }
 0x2db   :  { %2461 = vmatprep.mubr.f32.mxu1 %v7783_v2  ;;  %2606 = vmatprep.mubr.f32.mxu0 %v847_v63  ;;  %739 = vst [vmem:[#allocation2 + $0x132] sm:$0xff] %v7805_v9  ;;  %vm639_vm14 = vcmp.ge.f32.partialorder %v623_v12, 0.0  ;;  %v655_v18 = vmul.f32 0.01, %v623_v12  ;;  %v592_v19 = vmul.f32 %v7743_v62, %v576_v17  ;;  %v2105_v54 = vld [vmem:[#allocation13 + $0x500] sm:$0xff]  ;;  %v2106_v63 = vld [vmem:[#allocation13 + $0x508] sm:$0xff]  ;;  %v6447_v17 = vpack.c.bf16 %v2092_v56, %v2091_v50 }
 0x2dc   :  { %v7860_v61 = vld [vmem:[#allocation2] sm:$0xff]  ;;  %v2095_v50 = vld [vmem:[#allocation13 + $0x4b0] sm:$0xff] }
 0x2dd   :  { %v7813_v59 = vsel %vm639_vm14, %v623_v12, %v655_v18  ;;  %v608_v27 = vmul.f32 %v592_v19, %v7700_v13  ;;  %v870_v10 = vld [vmem:[#allocation2 + $0x4] sm:$0xff]  ;;  %v6445_v12 = vpack.c.bf16 %v2074_v49, %v2073_v41  ;;  %v2075_v18 = vld [vmem:[#allocation13 + $0x410] sm:$0xff]  ;;  %v2076_v19 = vld [vmem:[#allocation13 + $0x418] sm:$0xff] }
 0x2de   :  { %2462 = vmatmul.mubr.f32.gmra.mrb[18].mxu1 %v7169_v3  ;;  %2607 = vmatmul.mubr.f32.gmra.mrb[34].mxu0 %v7802_v14  ;;  %740 = vst [vmem:[#allocation2 + $0x142] sm:$0xff] %v7813_v59 }
 0x2df   :  { %v7817_v6 = vld [vmem:[#allocation2 + $0xe1] sm:$0xff]  ;;  %v624_v43 = vadd.f32 %v608_v27, %v7708_v0  ;;  %v7825_v3 = vld [vmem:[#allocation2 + $0xf1] sm:$0xff] }
 0x2e0   :  { %v848_v46 = vld [vmem:[#allocation2 + $0xe3] sm:$0xff]  ;;  %2466 = vmatprep.mubr.f32.mxu1 %v7817_v6  ;;  %v849_v62 = vld [vmem:[#allocation2 + $0xf3] sm:$0xff] }
 0x2e1   :  { %v7819_v20 = vld [vmem:[#allocation2 + $0xe0] sm:$0xff]  ;;  %2611 = vmatprep.mubr.f32.mxu0 %v848_v46  ;;  %vm640_vm15 = vcmp.ge.f32.partialorder %v624_v43, 0.0  ;;  %v656_v13 = vmul.f32 0.01, %v624_v43  ;;  %v7828_v22 = vld [vmem:[#allocation2 + $0xf0] sm:$0xff]  ;;  %v6477_v46 = vpack.c.bf16 %v2106_v63, %v2105_v54 }
 0x2e2   :  { %2467 = vmatmul.mubr.f32.gmra.mrb[20].mxu1 %v7819_v20  ;;  %2612 = vmatmul.mubr.f32.gmra.mrb[36].mxu0 %v7785_v1  ;;  %v7832_v0 = vld [vmem:[#allocation2 + $0x101] sm:$0xff]  ;;  %v7839_v35 = vld [vmem:[#allocation2 + $0x111] sm:$0xff] }
 0x2e3   :  { %2471 = vmatprep.mubr.f32.mxu1 %v7825_v3  ;;  %2616 = vmatprep.mubr.f32.mxu0 %v849_v62  ;;  %v672_v37 = vsel %vm640_vm15, %v624_v43, %v656_v13  ;;  %v850_v25 = vld [vmem:[#allocation2 + $0x103] sm:$0xff]  ;;  %v851_v36 = vld [vmem:[#allocation2 + $0x113] sm:$0xff] }
 0x2e4   :  { %741 = vst [vmem:[#allocation2 + $0x152] sm:$0xff] %v672_v37  ;;  %v7835_v26 = vld [vmem:[#allocation2 + $0x100] sm:$0xff]  ;;  %v7842_v60 = vld [vmem:[#allocation2 + $0x110] sm:$0xff] }
 0x2e5   :  { %v7846_v47 = vld [vmem:[#allocation2 + $0x121] sm:$0xff]  ;;  %v7853_v57 = vld [vmem:[#allocation2 + $0x131] sm:$0xff] }
 0x2e6   :  { %2472 = vmatmul.mubr.f32.gmra.mrb[22].mxu1 %v7828_v22  ;;  %2617 = vmatmul.mubr.f32.gmra.mrb[38].mxu0 %v7787_v55  ;;  %v852_v32 = vld [vmem:[#allocation2 + $0x123] sm:$0xff]  ;;  %v853_v58 = vld [vmem:[#allocation2 + $0x133] sm:$0xff] }
 0x2e7   :  { %2476 = vmatprep.mubr.f32.mxu1 %v7832_v0  ;;  %2621 = vmatprep.mubr.f32.mxu0 %v850_v25  ;;  %v7849_v40 = vld [vmem:[#allocation2 + $0x120] sm:$0xff]  ;;  %v7856_v48 = vld [vmem:[#allocation2 + $0x130] sm:$0xff] }
 0x2e8   :  { %v2093_v27 = vld [vmem:[#allocation13 + $0x4a0] sm:$0xff]  ;;  %v2123_v43 = vld [vmem:[#allocation13 + $0x590] sm:$0xff]  ;;  %v2124_v62 = vld [vmem:[#allocation13 + $0x598] sm:$0xff] }
 0x2e9   :  { %v2094_v13 = vld [vmem:[#allocation13 + $0x4a8] sm:$0xff]  ;;  %v2107_v37 = vld [vmem:[#allocation13 + $0x510] sm:$0xff]  ;;  %v2108_v25 = vld [vmem:[#allocation13 + $0x518] sm:$0xff]  ;;  %v6479_v41 = vpack.c.bf16 %v2124_v62, %v2123_v43 }
 0x2ea   :  { %2477 = vmatmul.mubr.f32.gmra.mrb[24].mxu1 %v7835_v26  ;;  %2622 = vmatmul.mubr.f32.gmra.mrb[40].mxu0 %v7791_v8  ;;  %v6451_v49 = vpack.c.bf16 %v2094_v13, %v2093_v27  ;;  %v6481_v56 = vpack.c.bf16 %v2108_v25, %v2107_v37  ;;  %v2126_v54 = vld [vmem:[#allocation13 + $0x5a8] sm:$0xff]  ;;  %v2109_v63 = vld [vmem:[#allocation13 + $0x520] sm:$0xff]  ;;  %v2127_v43 = vld [vmem:[#allocation13 + $0x5b0] sm:$0xff] }
 0x2eb   :  { %2481 = vmatprep.mubr.f32.mxu1 %v7839_v35  ;;  %2626 = vmatprep.mubr.f32.mxu0 %v851_v36  ;;  %v7866_v36 = vld [vmem:[#allocation2 + $0x14] sm:$0xff]  ;;  %v7873_v27 = vld [vmem:[#allocation2 + $0x24] sm:$0xff] }
 0x2ec   :  { %v2128_v62 = vld [vmem:[#allocation13 + $0x5b8] sm:$0xff]  ;;  %v2081_v25 = vld [vmem:[#allocation13 + $0x440] sm:$0xff] }
 0x2ed   :  { %v2112_v13 = vld [vmem:[#allocation13 + $0x538] sm:$0xff] }
 0x2ee   :  { %2482 = vmatmul.mubr.f32.gmra.mrb[26].mxu1 %v7842_v60  ;;  %2627 = vmatmul.mubr.f32.gmra.mrb[42].mxu0 %v7793_v4 }
 0x2ef   :  { %2486 = vmatprep.mubr.f32.mxu1 %v7846_v47  ;;  %2631 = vmatprep.mubr.f32.mxu0 %v852_v32  ;;  %v2077_v32 = vld [vmem:[#allocation13 + $0x420] sm:$0xff] }
 0x2f2   :  { %2487 = vmatmul.mubr.f32.gmra.mrb[28].mxu1 %v7849_v40  ;;  %2632 = vmatmul.mubr.f32.gmra.mrb[44].mxu0 %v7798_v7 }
 0x2f3   :  { %2491 = vmatprep.mubr.f32.mxu1 %v7853_v57  ;;  %2636 = vmatprep.mubr.f32.mxu0 %v853_v58  ;;  %v2078_v58 = vld [vmem:[#allocation13 + $0x428] sm:$0xff] }
 0x2f6   :  { %2492 = vmatmul.mubr.f32.gmra.mrb[30].mxu1 %v7856_v48  ;;  %2637 = vmatmul.mubr.f32.gmra.mrb[46].mxu0 %v7805_v9 }
 0x2f7   :  { %2706 = vmatprep.mubr.f32.mxu1 %v7860_v61  ;;  %2851 = vmatprep.mubr.f32.mxu0 %v7599_v31  ;;  %v6449_v31 = vpack.c.bf16 %v2076_v19, %v2075_v18  ;;  %v2097_v18 = vld [vmem:[#allocation13 + $0x4c0] sm:$0xff] }
 0x2fa   :  { %2707 = vmatmul.mubr.f32.vlgmr.msra.gmra.mrb[32].mxu1 %v870_v10  ;;  %2852 = vmatmul.mubr.f32.vlgmr.msra.gmra.mrb[48].mxu0 %v7595_v29  ;;  %v2125_v29 = vld [vmem:[#allocation13 + $0x5a0] sm:$0xff]  ;;  %v2110_v10 = vld [vmem:[#allocation13 + $0x528] sm:$0xff] }
 0x2fb   :  { %6446 = vmatpush3.bf16.msra.mxu1 %v6445_v12  ;;  %2711 = vmatprep.mubr.f32.mxu1 %v7694_v5  ;;  %v2096_v5 = vld [vmem:[#allocation13 + $0x4b8] sm:$0xff]  ;;  %v2079_v12 = vld [vmem:[#allocation13 + $0x430] sm:$0xff]  ;;  %v6483_v19 = vpack.c.bf16 %v2126_v54, %v2125_v29  ;;  %v2114_v29 = vld [vmem:[#allocation13 + $0x548] sm:$0xff] }
 0x2fc   :  { %2856 = vmatprep.mubr.f32.mxu0 %v7664_v30  ;;  %6448 = vmatprep.subr.bf16.mxu1 %v6447_v17  ;;  %v6453_v30 = vpack.c.bf16 %v2078_v58, %v2077_v32  ;;  %v2080_v17 = vld [vmem:[#allocation13 + $0x438] sm:$0xff]  ;;  %v2099_v32 = vld [vmem:[#allocation13 + $0x4d0] sm:$0xff]  ;;  %v6487_v58 = vpack.c.bf16 %v2128_v62, %v2127_v43  ;;  %v2086_v62 = vld [vmem:[#allocation13 + $0x468] sm:$0xff] }
 0x2fd   :  { %6478 = vmatpush3.bf16.msra.mxu0 %v6477_v46  ;;  %v6455_v46 = vpack.c.bf16 %v2096_v5, %v2095_v50  ;;  %v6457_v37 = vpack.c.bf16 %v2080_v17, %v2079_v12  ;;  %v2129_v50 = vld [vmem:[#allocation13 + $0x5c0] sm:$0xff]  ;;  %v2083_v5 = vld [vmem:[#allocation13 + $0x450] sm:$0xff] }
 0x2fe   :  { %2712 = vmatmul.mubr.f32.gmra.mrb[34].mxu1 %v7866_v36  ;;  %2857 = vmatmul.mubr.f32.gmra.mrb[50].mxu0 %v7692_v52  ;;  %v6485_v52 = vpack.c.bf16 %v2110_v10, %v2109_v63  ;;  %v2084_v63 = vld [vmem:[#allocation13 + $0x458] sm:$0xff]  ;;  %v2101_v10 = vld [vmem:[#allocation13 + $0x4e0] sm:$0xff] }
 0x2ff   :  { %2716 = vmatprep.mubr.f32.mxu1 %v7711_v23  ;;  %2861 = vmatprep.mubr.f32.mxu0 %v7666_v33  ;;  %v2098_v33 = vld [vmem:[#allocation13 + $0x4c8] sm:$0xff]  ;;  %v2111_v23 = vld [vmem:[#allocation13 + $0x530] sm:$0xff]  ;;  %v6465_v43 = vpack.c.bf16 %v2084_v63, %v2083_v5 }
 0x300   :  { %6450 = vmatpush3.bf16.msra.mxu1 %v6449_v31  ;;  %6480 = vmatprep.subr.bf16.mxu0 %v6479_v41  ;;  %v2082_v31 = vld [vmem:[#allocation13 + $0x448] sm:$0xff]  ;;  %v7879_v41 = vld [vmem:[#allocation2 + $0x34] sm:$0xff] }
 0x301   :  { %6452 = vmatprep.subr.bf16.mxu1 %v6451_v49  ;;  %6482 = vmatpush3.bf16.msra.mxu0 %v6481_v56  ;;  %v6459_v49 = vpack.c.bf16 %v2098_v33, %v2097_v18  ;;  %v2130_v56 = vld [vmem:[#allocation13 + $0x5c8] sm:$0xff]  ;;  %v6461_v54 = vpack.c.bf16 %v2082_v31, %v2081_v25  ;;  %v2131_v18 = vld [vmem:[#allocation13 + $0x5d0] sm:$0xff] }
 0x302   :  { %2717 = vmatmul.mubr.f32.gmra.mrb[36].mxu1 %v7873_v27  ;;  %2862 = vmatmul.mubr.f32.gmra.mrb[52].mxu0 %v7704_v15  ;;  %v6489_v15 = vpack.c.bf16 %v2112_v13, %v2111_v23  ;;  %v7885_v12 = vld [vmem:[#allocation2 + $0x44] sm:$0xff]  ;;  %v2103_v23 = vld [vmem:[#allocation13 + $0x4f0] sm:$0xff] }
 0x303   :  { %2721 = vmatprep.mubr.f32.mxu1 %v7722_v28  ;;  %2866 = vmatprep.mubr.f32.mxu0 %v7670_v38  ;;  %v2100_v38 = vld [vmem:[#allocation13 + $0x4d8] sm:$0xff]  ;;  %v2113_v28 = vld [vmem:[#allocation13 + $0x540] sm:$0xff]  ;;  %v2135_v63 = vld [vmem:[#allocation13 + $0x5f0] sm:$0xff] }
 0x304   :  { %6454 = vmatpush3.bf16.msra.mxu1 %v6453_v30  ;;  %6484 = vmatprep.subr.bf16.mxu0 %v6483_v19  ;;  %v6491_v30 = vpack.c.bf16 %v2130_v56, %v2129_v50  ;;  %v6463_v17 = vpack.c.bf16 %v2100_v38, %v2099_v32  ;;  %v2132_v19 = vld [vmem:[#allocation13 + $0x5d8] sm:$0xff]  ;;  %v2133_v13 = vld [vmem:[#allocation13 + $0x5e0] sm:$0xff]  ;;  %v2134_v32 = vld [vmem:[#allocation13 + $0x5e8] sm:$0xff]  ;;  %v5203_v56 = vpop.f32.mrb[16].mxu0 }
 0x305   :  { %6456 = vmatprep.subr.bf16.mxu1 %v6455_v46  ;;  %6486 = vmatpush3.bf16.msra.mxu0 %v6485_v52  ;;  %v2116_v46 = vld [vmem:[#allocation13 + $0x558] sm:$0xff]  ;;  %v2085_v52 = vld [vmem:[#allocation13 + $0x460] sm:$0xff]  ;;  %v6495_v33 = vpack.c.bf16 %v2132_v19, %v2131_v18  ;;  %v6499_v5 = vpack.c.bf16 %v2134_v32, %v2133_v13  ;;  %v2119_v19 = vld [vmem:[#allocation13 + $0x570] sm:$0xff] }
 0x306   :  { %2722 = vmatmul.mubr.f32.gmra.mrb[38].mxu1 %v7879_v41  ;;  %2867 = vmatmul.mubr.f32.gmra.mrb[54].mxu0 %v7715_v24  ;;  %v6493_v24 = vpack.c.bf16 %v2114_v29, %v2113_v28  ;;  %v7891_v25 = vld [vmem:[#allocation2 + $0x54] sm:$0xff]  ;;  %v6469_v38 = vpack.c.bf16 %v2086_v62, %v2085_v52  ;;  %v5204_v29 = vpop.f32.mrb[17].mxu0  ;;  %v2154_v52 = vld [vmem:[#allocation13 + $0x688] sm:$0xff]  ;;  %v7909_v32 = vld [vmem:[#allocation2 + $0x81] sm:$0xff] }
 0x307   :  { %2726 = vmatprep.mubr.f32.mxu1 %v7729_v42  ;;  %2871 = vmatprep.mubr.f32.mxu0 %v7673_v39  ;;  %v2102_v39 = vld [vmem:[#allocation13 + $0x4e8] sm:$0xff]  ;;  %v2115_v42 = vld [vmem:[#allocation13 + $0x550] sm:$0xff] }
 0x308   :  { %6458 = vmatpush3.bf16.msra.mxu1 %v6457_v37  ;;  %6488 = vmatprep.subr.bf16.mxu0 %v6487_v58  ;;  %v5123_v37 = vpop.f32.mrb[0].mxu1  ;;  %v6497_v31 = vpack.c.bf16 %v2116_v46, %v2115_v42  ;;  %v5057_v58 = vld [vmem:[#allocation15] ss:$0 sm:$0xff]  ;;  %v2087_v28 = vld [vmem:[#allocation13 + $0x470] sm:$0xff] }
 0x309   :  { %6460 = vmatprep.subr.bf16.mxu1 %v6459_v49  ;;  %6490 = vmatpush3.bf16.msra.mxu0 %v6489_v15  ;;  %v2117_v49 = vld [vmem:[#allocation13 + $0x560] sm:$0xff]  ;;  %v2118_v15 = vld [vmem:[#allocation13 + $0x568] sm:$0xff] }
 0x30a   :  { %2727 = vmatmul.mubr.f32.gmra.mrb[40].mxu1 %v7885_v12  ;;  %2872 = vmatmul.mubr.f32.gmra.mrb[56].mxu0 %v7726_v34  ;;  %v6467_v34 = vpack.c.bf16 %v2102_v39, %v2101_v10  ;;  %v2136_v10 = vld [vmem:[#allocation13 + $0x5f8] sm:$0xff]  ;;  %v2153_v46 = vld [vmem:[#allocation13 + $0x680] sm:$0xff] }
 0x30b   :  { %2731 = vmatprep.mubr.f32.mxu1 %v7756_v11  ;;  %2876 = vmatprep.mubr.f32.mxu0 %v7679_v51  ;;  %v5124_v11 = vpop.f32.mrb[1].mxu1  ;;  %v2104_v51 = vld [vmem:[#allocation13 + $0x4f8] sm:$0xff] }
 0x30c   :  { %6462 = vmatpush3.bf16.msra.mxu1 %v6461_v54  ;;  %6492 = vmatprep.subr.bf16.mxu0 %v6491_v30  ;;  %v5125_v50 = vadd.f32 %v5124_v11, %v5123_v37  ;;  %v2088_v54 = vld [vmem:[#allocation13 + $0x478] sm:$0xff]  ;;  %v6471_v18 = vpack.c.bf16 %v2104_v51, %v2103_v23  ;;  %v6507_v51 = vpack.c.bf16 %v2154_v52, %v2153_v46  ;;  %v2142_v46 = vld [vmem:[#allocation13 + $0x628] sm:$0xff] }
 0x30d   :  { %6464 = vmatprep.subr.bf16.mxu1 %v6463_v17  ;;  %6494 = vmatpush3.bf16.msra.mxu0 %v6493_v24  ;;  %v5126_v17 = vpop.f32.mrb[2].mxu1  ;;  %v7897_v24 = vld [vmem:[#allocation2 + $0x64] sm:$0xff]  ;;  %v6473_v23 = vpack.c.bf16 %v2088_v54, %v2087_v28  ;;  %v7907_v37 = vld [vmem:[#allocation2 + $0x74] sm:$0xff] }
 0x30e   :  { %2732 = vmatmul.mubr.f32.gmra.mrb[42].mxu1 %v7891_v25  ;;  %2877 = vmatmul.mubr.f32.gmra.mrb[58].mxu0 %v7735_v45  ;;  %v2419_v30 = vadd.f32 %v5125_v50, %v5057_v58  ;;  %v5205_v45 = vadd.f32 %v5204_v29, %v5203_v56  ;;  %v5127_v39 = vpop.f32.mrb[3].mxu1  ;;  %v7901_v42 = vld [vmem:[#allocation2 + $0x80] sm:$0xff]  ;;  %v7920_v56 = vld [vmem:[#allocation2 + $0xd4] sm:$0xff] }
 0x30f   :  { %2736 = vmatprep.mubr.f32.mxu1 %v7775_v44  ;;  %2881 = vmatprep.mubr.f32.mxu0 %v7681_v53  ;;  %v6501_v44 = vpack.c.bf16 %v2118_v15, %v2117_v49  ;;  %v2120_v53 = vld [vmem:[#allocation13 + $0x578] sm:$0xff]  ;;  %v5128_v62 = vadd.f32 %v5127_v39, %v5126_v17  ;;  %v2185_v49 = vld [vmem:[#allocation13 + $0x780] sm:$0xff]  ;;  %v2186_v15 = vld [vmem:[#allocation13 + $0x788] sm:$0xff] }
 0x310   :  { %6466 = vmatpush3.bf16.msra.mxu1 %v6465_v43  ;;  %6496 = vmatprep.subr.bf16.mxu0 %v6495_v33  ;;  %v7903_v43 = vadd.f32 %v5205_v45, %v2419_v30  ;;  %v5206_v33 = vpop.f32.mrb[18].mxu0  ;;  %v6505_v11 = vpack.c.bf16 %v2120_v53, %v2119_v19  ;;  %v6539_v50 = vpack.c.bf16 %v2186_v15, %v2185_v49  ;;  %v2139_v28 = vld [vmem:[#allocation13 + $0x610] sm:$0xff]  ;;  %v2140_v29 = vld [vmem:[#allocation13 + $0x618] sm:$0xff]  ;;  %v2157_v54 = vld [vmem:[#allocation13 + $0x6a0] sm:$0xff] }
 0x311   :  { %6468 = vmatprep.subr.bf16.mxu1 %v6467_v34  ;;  %6498 = vmatpush3.bf16.msra.mxu0 %v6497_v31  ;;  %v5207_v13 = vpop.f32.mrb[19].mxu0  ;;  %v6503_v34 = vpack.c.bf16 %v2136_v10, %v2135_v63  ;;  %v2187_v63 = vld [vmem:[#allocation13 + $0x790] sm:$0xff]  ;;  %v2188_v10 = vld [vmem:[#allocation13 + $0x798] sm:$0xff]  ;;  %v2158_v30 = vld [vmem:[#allocation13 + $0x6a8] sm:$0xff]  ;;  %v6513_v53 = vpack.c.bf16 %v2140_v29, %v2139_v28 }
 0x312   :  { %2737 = vmatmul.mubr.f32.gmra.mrb[44].mxu1 %v7897_v24  ;;  %2882 = vmatmul.mubr.f32.gmra.mrb[60].mxu0 %v7763_v16  ;;  %v2424_v16 = vadd.f32 %v5128_v62, %v5057_v58  ;;  %v5208_v31 = vadd.f32 %v5207_v13, %v5206_v33  ;;  %v878_v58 = vld [vmem:[#allocation2 + $0xc4] sm:$0xff]  ;;  %v2171_v45 = vld [vmem:[#allocation13 + $0x710] sm:$0xff]  ;;  %v2172_v17 = vld [vmem:[#allocation13 + $0x718] sm:$0xff]  ;;  %v6543_v52 = vpack.c.bf16 %v2188_v10, %v2187_v63 }
 0x313   :  { %2741 = vmatprep.mubr.f32.mxu1 %v7901_v42  ;;  %2886 = vmatprep.mubr.f32.mxu0 %v7717_v21  ;;  %v1097_v19 = vld [vmem:[#allocation2 + $0x41] sm:$0xff]  ;;  %v6515_v62 = vpack.c.bf16 %v2158_v30, %v2157_v54  ;;  %v2159_v33 = vld [vmem:[#allocation13 + $0x6b0] sm:$0xff]  ;;  %v2146_v54 = vld [vmem:[#allocation13 + $0x648] sm:$0xff] }
 0x314   :  { %6470 = vmatpush3.bf16.msra.mxu1 %v6469_v38  ;;  %6500 = vmatprep.subr.bf16.mxu0 %v6499_v5  ;;  %v7913_v21 = vadd.f32 %v5208_v31, %v2424_v16  ;;  %v2141_v39 = vld [vmem:[#allocation13 + $0x620] sm:$0xff]  ;;  %v2174_v31 = vld [vmem:[#allocation13 + $0x728] sm:$0xff]  ;;  %v2163_v10 = vld [vmem:[#allocation13 + $0x6d0] sm:$0xff] }
 0x315   :  { %6472 = vmatprep.subr.bf16.mxu1 %v6471_v18  ;;  %6502 = vmatpush3.bf16.msra.mxu0 %v6501_v44  ;;  %v1096_v18 = vld [vmem:[#allocation2 + $0x31] sm:$0xff]  ;;  %v2189_v13 = vld [vmem:[#allocation13 + $0x7a0] sm:$0xff]  ;;  %v6517_v15 = vpack.c.bf16 %v2142_v46, %v2141_v39 }
 0x316   :  { %2742 = vmatmul.mubr.f32.gmra.mrb[46].mxu1 %v7907_v37  ;;  %2887 = vmatmul.mubr.f32.gmra.mrb[62].mxu0 %v7909_v32  ;;  %v7968_v44 = vld [vmem:[#allocation2 + $0x30] sm:$0xff]  ;;  %v2173_v16 = vld [vmem:[#allocation13 + $0x720] sm:$0xff] }
 0x317   :  { %2746 = vmatprep.mubr.f32.mxu1 %v7860_v61  ;;  %2891 = vmatprep.mubr.f32.mxu0 %v7802_v14  ;;  %v7926_v14 = vld [vmem:[#allocation2 + $0xe4] sm:$0xff]  ;;  %v1098_v49 = vld [vmem:[#allocation2 + $0x51] sm:$0xff] }
 0x318   :  { %6474 = vmatpush3.bf16.msra.mxu1 %v6473_v23  ;;  %6504 = vmatprep.subr.bf16.mxu0 %v6503_v34  ;;  %v1063_v61 = vld [vmem:[#allocation2 + $0x20] sm:$0xff]  ;;  %v6545_v23 = vpack.c.bf16 %v2172_v17, %v2171_v45  ;;  %v2190_v34 = vld [vmem:[#allocation13 + $0x7a8] sm:$0xff] }
 0x319   :  { %6506 = vmatpush3.bf16.msra.mxu0 %v6505_v11  ;;  %6508 = vmatprep.subr.bf16.mxu1 %v6507_v51  ;;  %v7973_v11 = vld [vmem:[#allocation2 + $0x33] sm:$0xff]  ;;  %v7975_v51 = vld [vmem:[#allocation2 + $0x40] sm:$0xff]  ;;  %v2194_v17 = vld [vmem:[#allocation13 + $0x7c8] sm:$0xff] }
 0x31a   :  { %2747 = vmatmul.mubr.f32.gmra.mrb[48].mxu1 %v878_v58  ;;  %2892 = vmatmul.mubr.f32.gmra.mrb[64].mxu0 %v7783_v2  ;;  %v7932_v2 = vld [vmem:[#allocation2 + $0xf4] sm:$0xff]  ;;  %v2145_v29 = vld [vmem:[#allocation13 + $0x640] sm:$0xff] }
 0x31b   :  { %2751 = vmatprep.mubr.f32.mxu1 %v7819_v20  ;;  %2896 = vmatprep.mubr.f32.mxu0 %v7785_v1  ;;  %v7938_v1 = vld [vmem:[#allocation2 + $0x104] sm:$0xff]  ;;  %v2155_v20 = vld [vmem:[#allocation13 + $0x690] sm:$0xff] }
 0x31c   :  { %6540 = vmatprep.subr.bf16.mxu0 %v6539_v50  ;;  %v2143_v58 = vld [vmem:[#allocation13 + $0x630] sm:$0xff]  ;;  %v2144_v50 = vld [vmem:[#allocation13 + $0x638] sm:$0xff]  ;;  %v2193_v45 = vld [vmem:[#allocation13 + $0x7c0] sm:$0xff] }
 0x31d   :  { %v6521_v28 = vpack.c.bf16 %v2144_v50, %v2143_v58  ;;  %v7989_v39 = vld [vmem:[#allocation2 + $0x60] sm:$0xff]  ;;  %v1100_v46 = vld [vmem:[#allocation2 + $0x71] sm:$0xff] }
 0x31e   :  { %2752 = vmatmul.mubr.f32.gmra.mrb[50].mxu1 %v7920_v56  ;;  %2897 = vmatmul.mubr.f32.gmra.mrb[66].mxu0 %v7817_v6  ;;  %v2138_v6 = vld [vmem:[#allocation13 + $0x608] sm:$0xff] }
 0x31f   :  { %2756 = vmatprep.mubr.f32.mxu1 %v7828_v22  ;;  %2901 = vmatprep.mubr.f32.mxu0 %v7787_v55  ;;  %v7944_v55 = vld [vmem:[#allocation2 + $0x114] sm:$0xff]  ;;  %v7960_v22 = vld [vmem:[#allocation2 + $0x141] sm:$0xff] }
 0x320   :  { %v7994_v58 = vld [vmem:[#allocation2 + $0x63] sm:$0xff]  ;;  %v7996_v50 = vld [vmem:[#allocation2 + $0x70] sm:$0xff] }
 0x322   :  { %2757 = vmatmul.mubr.f32.gmra.mrb[52].mxu1 %v7926_v14  ;;  %2902 = vmatmul.mubr.f32.gmra.mrb[68].mxu0 %v7825_v3  ;;  %v7958_v3 = vld [vmem:[#allocation2 + $0x134] sm:$0xff] }
 0x323   :  { %2761 = vmatprep.mubr.f32.mxu1 %v7835_v26  ;;  %2906 = vmatprep.mubr.f32.mxu0 %v7791_v8  ;;  %v7950_v8 = vld [vmem:[#allocation2 + $0x124] sm:$0xff] }
 0x324   :  { %v2169_v26 = vld [vmem:[#allocation13 + $0x700] sm:$0xff] }
 0x326   :  { %2762 = vmatmul.mubr.f32.gmra.mrb[54].mxu1 %v7932_v2  ;;  %2907 = vmatmul.mubr.f32.gmra.mrb[70].mxu0 %v7832_v0  ;;  %v1095_v0 = vld [vmem:[#allocation2 + $0x21] sm:$0xff] }
 0x327   :  { %2766 = vmatprep.mubr.f32.mxu1 %v7842_v60  ;;  %2911 = vmatprep.mubr.f32.mxu0 %v7793_v4  ;;  %v7954_v4 = vld [vmem:[#allocation2 + $0x140] sm:$0xff]  ;;  %v999_v60 = vld [vmem:[#allocation2 + $0x13] sm:$0xff] }
 0x32a   :  { %2767 = vmatmul.mubr.f32.gmra.mrb[56].mxu1 %v7938_v1  ;;  %2912 = vmatmul.mubr.f32.gmra.mrb[72].mxu0 %v7839_v35  ;;  %v2170_v35 = vld [vmem:[#allocation13 + $0x708] sm:$0xff] }
 0x32b   :  { %2771 = vmatprep.mubr.f32.mxu1 %v7849_v40  ;;  %2916 = vmatprep.mubr.f32.mxu0 %v7798_v7  ;;  %v2137_v7 = vld [vmem:[#allocation13 + $0x600] sm:$0xff]  ;;  %v6541_v5 = vpack.c.bf16 %v2170_v35, %v2169_v26  ;;  %v2192_v26 = vld [vmem:[#allocation13 + $0x7b8] sm:$0xff]  ;;  %v2175_v35 = vld [vmem:[#allocation13 + $0x730] sm:$0xff] }
 0x32e   :  { %2772 = vmatmul.mubr.f32.gmra.mrb[58].mxu1 %v7944_v55  ;;  %2917 = vmatmul.mubr.f32.gmra.mrb[74].mxu0 %v7846_v47 }
 0x32f   :  { %2776 = vmatprep.mubr.f32.mxu1 %v7856_v48  ;;  %2921 = vmatprep.mubr.f32.mxu0 %v7805_v9  ;;  %v2156_v9 = vld [vmem:[#allocation13 + $0x698] sm:$0xff] }
 0x330   :  { %v6511_v38 = vpack.c.bf16 %v2156_v9, %v2155_v20  ;;  %v2161_v20 = vld [vmem:[#allocation13 + $0x6c0] sm:$0xff]  ;;  %v6549_v9 = vpack.c.bf16 %v2174_v31, %v2173_v16  ;;  %v2195_v16 = vld [vmem:[#allocation13 + $0x7d0] sm:$0xff]  ;;  %v2196_v31 = vld [vmem:[#allocation13 + $0x7d8] sm:$0xff] }
 0x332   :  { %2777 = vmatmul.mubr.f32.gmra.mrb[60].mxu1 %v7950_v8  ;;  %2922 = vmatmul.mubr.f32.gmra.mrb[76].mxu0 %v7853_v57 }
 0x333   :  { %2781 = vmatprep.mubr.f32.mxu1 %v7954_v4  ;;  %2926 = vmatprep.mubr.f32.mxu0 %v7813_v59  ;;  %v6509_v59 = vpack.c.bf16 %v2138_v6, %v2137_v7  ;;  %v6547_v7 = vpack.c.bf16 %v2190_v34, %v2189_v13  ;;  %v2165_v34 = vld [vmem:[#allocation13 + $0x6e0] sm:$0xff] }
 0x336   :  { %2782 = vmatmul.mubr.f32.gmra.mrb[62].mxu1 %v7958_v3  ;;  %2927 = vmatmul.mubr.f32.gmra.mrb[78].mxu0 %v7960_v22 }
 0x337   :  { %3141 = vmatprep.mubr.f32.mxu0 %v1095_v0  ;;  %2996 = vmatprep.mubr.f32.mxu1 %v7866_v36  ;;  %v7966_v36 = vld [vmem:[#allocation2 + $0x23] sm:$0xff]  ;;  %v2191_v0 = vld [vmem:[#allocation13 + $0x7b0] sm:$0xff] }
 0x33a   :  { %2997 = vmatmul.mubr.f32.vlgmr.msra.gmra.mrb[64].mxu1 %v999_v60  ;;  %3142 = vmatmul.mubr.f32.vlgmr.msra.gmra.mrb[80].mxu0 %v1063_v61  ;;  %v2176_v60 = vld [vmem:[#allocation13 + $0x738] sm:$0xff]  ;;  %v7982_v61 = vld [vmem:[#allocation2 + $0x50] sm:$0xff] }
 0x33b   :  { %6510 = vmatpush3.bf16.msra.mxu1 %v6509_v59  ;;  %3001 = vmatprep.mubr.f32.mxu1 %v7873_v27  ;;  %v2160_v27 = vld [vmem:[#allocation13 + $0x6b8] sm:$0xff]  ;;  %v7980_v59 = vld [vmem:[#allocation2 + $0x43] sm:$0xff]  ;;  %v6553_v30 = vpack.c.bf16 %v2176_v60, %v2175_v35 }
 0x33c   :  { %3146 = vmatprep.mubr.f32.mxu0 %v1096_v18  ;;  %6512 = vmatprep.subr.bf16.mxu1 %v6511_v38  ;;  %v6519_v6 = vpack.c.bf16 %v2160_v27, %v2159_v33  ;;  %v1099_v38 = vld [vmem:[#allocation2 + $0x61] sm:$0xff]  ;;  %v2198_v60 = vld [vmem:[#allocation13 + $0x7e8] sm:$0xff] }
 0x33d   :  { %6542 = vmatpush3.bf16.msra.mxu0 %v6541_v5  ;;  %v6551_v5 = vpack.c.bf16 %v2192_v26, %v2191_v0  ;;  %v2177_v18 = vld [vmem:[#allocation13 + $0x740] sm:$0xff]  ;;  %v2148_v33 = vld [vmem:[#allocation13 + $0x658] sm:$0xff] }
 0x33e   :  { %3002 = vmatmul.mubr.f32.gmra.mrb[66].mxu1 %v7966_v36  ;;  %3147 = vmatmul.mubr.f32.gmra.mrb[82].mxu0 %v7968_v44  ;;  %v2197_v35 = vld [vmem:[#allocation13 + $0x7e0] sm:$0xff] }
 0x33f   :  { %3006 = vmatprep.mubr.f32.mxu1 %v7879_v41  ;;  %3151 = vmatprep.mubr.f32.mxu0 %v1097_v19  ;;  %v2162_v41 = vld [vmem:[#allocation13 + $0x6c8] sm:$0xff] }
 0x340   :  { %6514 = vmatpush3.bf16.msra.mxu1 %v6513_v53  ;;  %6544 = vmatprep.subr.bf16.mxu0 %v6543_v52  ;;  %v6523_v63 = vpack.c.bf16 %v2162_v41, %v2161_v20  ;;  %v2178_v19 = vld [vmem:[#allocation13 + $0x748] sm:$0xff]  ;;  %v7987_v53 = vld [vmem:[#allocation2 + $0x53] sm:$0xff]  ;;  %v6525_v52 = vpack.c.bf16 %v2146_v54, %v2145_v29 }
 0x341   :  { %6516 = vmatprep.subr.bf16.mxu1 %v6515_v62  ;;  %6546 = vmatpush3.bf16.msra.mxu0 %v6545_v23  ;;  %v2147_v62 = vld [vmem:[#allocation13 + $0x650] sm:$0xff]  ;;  %v6555_v23 = vpack.c.bf16 %v2194_v17, %v2193_v45  ;;  %v6557_v27 = vpack.c.bf16 %v2178_v19, %v2177_v18  ;;  %v2150_v20 = vld [vmem:[#allocation13 + $0x668] sm:$0xff]  ;;  %v6563_v45 = vpack.c.bf16 %v2198_v60, %v2197_v35  ;;  %v2200_v19 = vld [vmem:[#allocation13 + $0x7f8] sm:$0xff] }
 0x342   :  { %3007 = vmatmul.mubr.f32.gmra.mrb[68].mxu1 %v7973_v11  ;;  %3152 = vmatmul.mubr.f32.gmra.mrb[84].mxu0 %v7975_v51  ;;  %v2167_v41 = vld [vmem:[#allocation13 + $0x6f0] sm:$0xff]  ;;  %v8004_v54 = vld [vmem:[#allocation2 + $0x84] sm:$0xff] }
 0x343   :  { %3011 = vmatprep.mubr.f32.mxu1 %v7885_v12  ;;  %3156 = vmatprep.mubr.f32.mxu0 %v1098_v49  ;;  %v2164_v12 = vld [vmem:[#allocation13 + $0x6d8] sm:$0xff]  ;;  %v2179_v49 = vld [vmem:[#allocation13 + $0x750] sm:$0xff]  ;;  %v2233_v60 = vld [vmem:[#allocation13 + $0x900] sm:$0xff] }
 0x344   :  { %6518 = vmatpush3.bf16.msra.mxu1 %v6517_v15  ;;  %6548 = vmatprep.subr.bf16.mxu0 %v6547_v7  ;;  %v6527_v13 = vpack.c.bf16 %v2164_v12, %v2163_v10  ;;  %v2180_v15 = vld [vmem:[#allocation13 + $0x758] sm:$0xff]  ;;  %v6529_v7 = vpack.c.bf16 %v2148_v33, %v2147_v62  ;;  %v2151_v10 = vld [vmem:[#allocation13 + $0x670] sm:$0xff]  ;;  %v8009_v62 = vld [vmem:[#allocation2 + $0x83] sm:$0xff] }
 0x345   :  { %6520 = vmatprep.subr.bf16.mxu1 %v6519_v6  ;;  %6550 = vmatpush3.bf16.msra.mxu0 %v6549_v9  ;;  %v2149_v6 = vld [vmem:[#allocation13 + $0x660] sm:$0xff]  ;;  %v6559_v9 = vpack.c.bf16 %v2196_v31, %v2195_v16  ;;  %v6561_v26 = vpack.c.bf16 %v2180_v15, %v2179_v49  ;;  %v8002_v29 = vld [vmem:[#allocation2 + $0x73] sm:$0xff] }
 0x346   :  { %3012 = vmatmul.mubr.f32.gmra.mrb[70].mxu1 %v7980_v59  ;;  %3157 = vmatmul.mubr.f32.gmra.mrb[86].mxu0 %v7982_v61  ;;  %v2199_v18 = vld [vmem:[#allocation13 + $0x7f0] sm:$0xff]  ;;  %v2249_v16 = vld [vmem:[#allocation13 + $0x980] sm:$0xff] }
 0x347   :  { %3016 = vmatprep.mubr.f32.mxu1 %v7891_v25  ;;  %3161 = vmatprep.mubr.f32.mxu0 %v1099_v38  ;;  %v2166_v25 = vld [vmem:[#allocation13 + $0x6e8] sm:$0xff]  ;;  %v2181_v38 = vld [vmem:[#allocation13 + $0x760] sm:$0xff] }
 0x348   :  { %6522 = vmatpush3.bf16.msra.mxu1 %v6521_v28  ;;  %6552 = vmatprep.subr.bf16.mxu0 %v6551_v5  ;;  %v6531_v0 = vpack.c.bf16 %v2166_v25, %v2165_v34  ;;  %v2182_v28 = vld [vmem:[#allocation13 + $0x768] sm:$0xff]  ;;  %v1103_v31 = vld [vmem:[#allocation2 + $0xe1] sm:$0xff]  ;;  %v1007_v25 = vld [vmem:[#allocation2 + $0xd3] sm:$0xff] }
 0x349   :  { %6524 = vmatprep.subr.bf16.mxu1 %v6523_v63  ;;  %6554 = vmatpush3.bf16.msra.mxu0 %v6553_v30  ;;  %v1102_v5 = vld [vmem:[#allocation2 + $0x91] sm:$0xff]  ;;  %v6533_v63 = vpack.c.bf16 %v2150_v20, %v2149_v6  ;;  %v2152_v30 = vld [vmem:[#allocation13 + $0x678] sm:$0xff]  ;;  %v6565_v12 = vpack.c.bf16 %v2182_v28, %v2181_v38  ;;  %v8017_v6 = vld [vmem:[#allocation2 + $0xe3] sm:$0xff] }
 0x34a   :  { %3017 = vmatmul.mubr.f32.gmra.mrb[72].mxu1 %v7987_v53  ;;  %3162 = vmatmul.mubr.f32.gmra.mrb[88].mxu0 %v7989_v39  ;;  %v6537_v33 = vpack.c.bf16 %v2152_v30, %v2151_v10  ;;  %v1071_v15 = vld [vmem:[#allocation2 + $0xe0] sm:$0xff]  ;;  %v8019_v20 = vld [vmem:[#allocation2 + $0xf0] sm:$0xff] }
 0x34b   :  { %3021 = vmatprep.mubr.f32.mxu1 %v7897_v24  ;;  %3166 = vmatprep.mubr.f32.mxu0 %v1100_v46  ;;  %v2168_v24 = vld [vmem:[#allocation13 + $0x6f8] sm:$0xff]  ;;  %v2217_v46 = vld [vmem:[#allocation13 + $0x880] sm:$0xff]  ;;  %v8060_v35 = vld [vmem:[#allocation2 + $0x150] sm:$0xff] }
 0x34c   :  { %6526 = vmatpush3.bf16.msra.mxu1 %v6525_v52  ;;  %6556 = vmatprep.subr.bf16.mxu0 %v6555_v23  ;;  %v6535_v17 = vpack.c.bf16 %v2168_v24, %v2167_v41  ;;  %v2218_v52 = vld [vmem:[#allocation13 + $0x888] sm:$0xff]  ;;  %v6567_v23 = vpack.c.bf16 %v2200_v19, %v2199_v18  ;;  %v1127_v24 = vld [vmem:[#allocation2 + $0x22] sm:$0xff]  ;;  %v2204_v10 = vld [vmem:[#allocation13 + $0x818] sm:$0xff] }
 0x34d   :  { %6528 = vmatprep.subr.bf16.mxu1 %v6527_v13  ;;  %6558 = vmatpush3.bf16.msra.mxu0 %v6557_v27  ;;  %v8011_v13 = vld [vmem:[#allocation2 + $0x90] sm:$0xff]  ;;  %v6571_v27 = vpack.c.bf16 %v2218_v52, %v2217_v46  ;;  %v1191_v28 = vld [vmem:[#allocation2 + $0x24] sm:$0xff] }
 0x34e   :  { %3022 = vmatmul.mubr.f32.gmra.mrb[74].mxu1 %v7994_v58  ;;  %3167 = vmatmul.mubr.f32.gmra.mrb[90].mxu0 %v7996_v50  ;;  %v8033_v41 = vld [vmem:[#allocation2 + $0x110] sm:$0xff]  ;;  %v2221_v30 = vld [vmem:[#allocation13 + $0x8a0] sm:$0xff] }
 0x34f   :  { %3026 = vmatprep.mubr.f32.mxu1 %v7907_v37  ;;  %3171 = vmatprep.mubr.f32.mxu0 %v7909_v32  ;;  %v2183_v37 = vld [vmem:[#allocation13 + $0x770] sm:$0xff]  ;;  %v2184_v32 = vld [vmem:[#allocation13 + $0x778] sm:$0xff]  ;;  %v2222_v18 = vld [vmem:[#allocation13 + $0x8a8] sm:$0xff] }
 0x350   :  { %6530 = vmatpush3.bf16.msra.mxu1 %v6529_v7  ;;  %6560 = vmatprep.subr.bf16.mxu0 %v6559_v9  ;;  %v6569_v34 = vpack.c.bf16 %v2184_v32, %v2183_v37  ;;  %v1104_v7 = vld [vmem:[#allocation2 + $0xf1] sm:$0xff]  ;;  %v2236_v37 = vld [vmem:[#allocation13 + $0x918] sm:$0xff]  ;;  %v2205_v46 = vld [vmem:[#allocation13 + $0x820] sm:$0xff] }
 0x351   :  { %6532 = vmatprep.subr.bf16.mxu1 %v6531_v0  ;;  %6562 = vmatpush3.bf16.msra.mxu0 %v6561_v26  ;;  %v8024_v9 = vld [vmem:[#allocation2 + $0xf3] sm:$0xff]  ;;  %v8026_v0 = vld [vmem:[#allocation2 + $0x100] sm:$0xff]  ;;  %v2206_v52 = vld [vmem:[#allocation13 + $0x828] sm:$0xff] }
 0x352   :  { %3027 = vmatmul.mubr.f32.gmra.mrb[76].mxu1 %v8002_v29  ;;  %3172 = vmatmul.mubr.f32.gmra.mrb[92].mxu0 %v7901_v42  ;;  %v2250_v42 = vld [vmem:[#allocation13 + $0x988] sm:$0xff]  ;;  %v2235_v19 = vld [vmem:[#allocation13 + $0x910] sm:$0xff] }
 0x353   :  { %3031 = vmatprep.mubr.f32.mxu1 %v8004_v54  ;;  %3176 = vmatprep.mubr.f32.mxu0 %v1102_v5  ;;  %v6603_v49 = vpack.c.bf16 %v2250_v42, %v2249_v16  ;;  %v8031_v26 = vld [vmem:[#allocation2 + $0x103] sm:$0xff] }
 0x354   :  { %6534 = vmatpush3.bf16.msra.mxu1 %v6533_v63  ;;  %6564 = vmatprep.subr.bf16.mxu0 %v6563_v45  ;;  %v2203_v63 = vld [vmem:[#allocation13 + $0x810] sm:$0xff]  ;;  %v2253_v16 = vld [vmem:[#allocation13 + $0x9a0] sm:$0xff]  ;;  %v2254_v42 = vld [vmem:[#allocation13 + $0x9a8] sm:$0xff] }
 0x355   :  { %6536 = vmatprep.subr.bf16.mxu1 %v6535_v17  ;;  %6566 = vmatpush3.bf16.msra.mxu0 %v6565_v12  ;;  %v2251_v17 = vld [vmem:[#allocation13 + $0x990] sm:$0xff]  ;;  %v2252_v12 = vld [vmem:[#allocation13 + $0x998] sm:$0xff]  ;;  %v6577_v32 = vpack.c.bf16 %v2204_v10, %v2203_v63 }
 0x356   :  { %3032 = vmatmul.mubr.f32.gmra.mrb[78].mxu1 %v8009_v62  ;;  %3177 = vmatmul.mubr.f32.gmra.mrb[94].mxu0 %v8011_v13 }
 0x357   :  { %3181 = vmatprep.mubr.f32.mxu0 %v1103_v31  ;;  %3036 = vmatprep.mubr.f32.mxu1 %v7920_v56  ;;  %v1105_v56 = vld [vmem:[#allocation2 + $0x101] sm:$0xff] }
 0x358   :  { %6538 = vmatpush3.bf16.msra.mxu1 %v6537_v33  ;;  %6568 = vmatprep.subr.bf16.mxu0 %v6567_v23  ;;  %v6607_v33 = vpack.c.bf16 %v2252_v12, %v2251_v17  ;;  %v6579_v23 = vpack.c.bf16 %v2222_v18, %v2221_v30  ;;  %v2237_v31 = vld [vmem:[#allocation13 + $0x920] sm:$0xff]  ;;  %v2227_v30 = vld [vmem:[#allocation13 + $0x8d0] sm:$0xff]  ;;  %v2258_v12 = vld [vmem:[#allocation13 + $0x9c8] sm:$0xff] }
 0x359   :  { %6570 = vmatpush3.bf16.msra.mxu0 %v6569_v34  ;;  %6572 = vmatprep.subr.bf16.mxu1 %v6571_v27  ;;  %v2223_v34 = vld [vmem:[#allocation13 + $0x8b0] sm:$0xff]  ;;  %v6609_v27 = vpack.c.bf16 %v2236_v37, %v2235_v19  ;;  %v2257_v17 = vld [vmem:[#allocation13 + $0x9c0] sm:$0xff]  ;;  %v2242_v18 = vld [vmem:[#allocation13 + $0x948] sm:$0xff] }
 0x35a   :  { %3037 = vmatmul.mubr.f32.gmra.mrb[80].mxu1 %v1007_v25  ;;  %3182 = vmatmul.mubr.f32.gmra.mrb[96].mxu0 %v1071_v15  ;;  %v8076_v25 = vld [vmem:[#allocation2 + $0x42] sm:$0xff]  ;;  %v6581_v15 = vpack.c.bf16 %v2206_v52, %v2205_v46  ;;  %v2211_v52 = vld [vmem:[#allocation13 + $0x850] sm:$0xff] }
 0x35b   :  { %3041 = vmatprep.mubr.f32.mxu1 %v7926_v14  ;;  %3186 = vmatprep.mubr.f32.mxu0 %v1104_v7  ;;  %v1106_v14 = vld [vmem:[#allocation2 + $0x111] sm:$0xff]  ;;  %v8092_v19 = vld [vmem:[#allocation2 + $0x62] sm:$0xff] }
 0x35c   :  { %6604 = vmatprep.subr.bf16.mxu0 %v6603_v49  ;;  %v8078_v49 = vld [vmem:[#allocation2 + $0x44] sm:$0xff]  ;;  %v2207_v7 = vld [vmem:[#allocation13 + $0x830] sm:$0xff] }
 0x35d   :  { %v8094_v37 = vld [vmem:[#allocation2 + $0x64] sm:$0xff] }
 0x35e   :  { %3042 = vmatmul.mubr.f32.gmra.mrb[82].mxu1 %v8017_v6  ;;  %3187 = vmatmul.mubr.f32.gmra.mrb[98].mxu0 %v8019_v20 }
 0x35f   :  { %3046 = vmatprep.mubr.f32.mxu1 %v7932_v2  ;;  %3191 = vmatprep.mubr.f32.mxu0 %v1105_v56  ;;  %v8039_v2 = vld [vmem:[#allocation2 + $0x113] sm:$0xff] }
 0x360   :  { %v2208_v56 = vld [vmem:[#allocation13 + $0x838] sm:$0xff] }
 0x362   :  { %3047 = vmatmul.mubr.f32.gmra.mrb[84].mxu1 %v8024_v9  ;;  %3192 = vmatmul.mubr.f32.gmra.mrb[100].mxu0 %v8026_v0 }
 0x363   :  { %3051 = vmatprep.mubr.f32.mxu1 %v7938_v1  ;;  %3196 = vmatprep.mubr.f32.mxu0 %v1106_v14  ;;  %v8045_v1 = vld [vmem:[#allocation2 + $0x123] sm:$0xff]  ;;  %v6611_v14 = vpack.c.bf16 %v2254_v42, %v2253_v16  ;;  %v2259_v42 = vld [vmem:[#allocation13 + $0x9d0] sm:$0xff] }
 0x366   :  { %3052 = vmatmul.mubr.f32.gmra.mrb[86].mxu1 %v8031_v26  ;;  %3197 = vmatmul.mubr.f32.gmra.mrb[102].mxu0 %v8033_v41 }
 0x367   :  { %3056 = vmatprep.mubr.f32.mxu1 %v7944_v55  ;;  %3201 = vmatprep.mubr.f32.mxu0 %v7846_v47  ;;  %v8051_v47 = vld [vmem:[#allocation2 + $0x133] sm:$0xff] }
 0x368   :  { %v1110_v55 = vld [vmem:[#allocation2 + $0x151] sm:$0xff] }
 0x36a   :  { %3057 = vmatmul.mubr.f32.gmra.mrb[88].mxu1 %v8039_v2  ;;  %3202 = vmatmul.mubr.f32.gmra.mrb[104].mxu0 %v7849_v40  ;;  %v8055_v40 = vld [vmem:[#allocation2 + $0x144] sm:$0xff] }
 0x36b   :  { %3061 = vmatprep.mubr.f32.mxu1 %v7950_v8  ;;  %3206 = vmatprep.mubr.f32.mxu0 %v7853_v57  ;;  %v8058_v57 = vld [vmem:[#allocation2 + $0x143] sm:$0xff] }
 0x36c   :  { %v2201_v8 = vld [vmem:[#allocation13 + $0x800] sm:$0xff] }
 0x36e   :  { %3062 = vmatmul.mubr.f32.gmra.mrb[90].mxu1 %v8045_v1  ;;  %3207 = vmatmul.mubr.f32.gmra.mrb[106].mxu0 %v7856_v48  ;;  %v2202_v48 = vld [vmem:[#allocation13 + $0x808] sm:$0xff] }
 0x36f   :  { %3066 = vmatprep.mubr.f32.mxu1 %v7958_v3  ;;  %3211 = vmatprep.mubr.f32.mxu0 %v7960_v22  ;;  %v2219_v3 = vld [vmem:[#allocation13 + $0x890] sm:$0xff]  ;;  %v2220_v22 = vld [vmem:[#allocation13 + $0x898] sm:$0xff]  ;;  %v6573_v38 = vpack.c.bf16 %v2202_v48, %v2201_v8  ;;  %v2225_v8 = vld [vmem:[#allocation13 + $0x8c0] sm:$0xff] }
 0x370   :  { %v6575_v5 = vpack.c.bf16 %v2220_v22, %v2219_v3  ;;  %v2255_v3 = vld [vmem:[#allocation13 + $0x9b0] sm:$0xff]  ;;  %v2256_v22 = vld [vmem:[#allocation13 + $0x9b8] sm:$0xff] }
 0x371   :  { %v6615_v63 = vpack.c.bf16 %v2256_v22, %v2255_v3  ;;  %v2231_v3 = vld [vmem:[#allocation13 + $0x8f0] sm:$0xff]  ;;  %v2261_v22 = vld [vmem:[#allocation13 + $0x9e0] sm:$0xff] }
 0x372   :  { %3067 = vmatmul.mubr.f32.gmra.mrb[92].mxu1 %v8051_v47  ;;  %3212 = vmatmul.mubr.f32.gmra.mrb[108].mxu0 %v7954_v4  ;;  %v2234_v4 = vld [vmem:[#allocation13 + $0x908] sm:$0xff] }
 0x373   :  { %3071 = vmatprep.mubr.f32.mxu1 %v8055_v40  ;;  %3216 = vmatprep.mubr.f32.mxu0 %v1110_v55  ;;  %v6605_v45 = vpack.c.bf16 %v2234_v4, %v2233_v60  ;;  %v2240_v60 = vld [vmem:[#allocation13 + $0x938] sm:$0xff]  ;;  %v8084_v4 = vld [vmem:[#allocation2 + $0x52] sm:$0xff] }
 0x376   :  { %3072 = vmatmul.mubr.f32.gmra.mrb[94].mxu1 %v8058_v57  ;;  %3217 = vmatmul.mubr.f32.gmra.mrb[110].mxu0 %v8060_v35 }
 0x377   :  { %3286 = vmatprep.mubr.f32.mxu1 %v7966_v36  ;;  %3431 = vmatprep.mubr.f32.mxu0 %v7968_v44  ;;  %v8067_v36 = vld [vmem:[#allocation2 + $0x32] sm:$0xff] }
 0x378   :  { %v8070_v44 = vld [vmem:[#allocation2 + $0x34] sm:$0xff] }
 0x37a   :  { %3287 = vmatmul.mubr.f32.vlgmr.msra.gmra.mrb[96].mxu1 %v1127_v24  ;;  %3432 = vmatmul.mubr.f32.vlgmr.msra.gmra.mrb[112].mxu0 %v1191_v28  ;;  %v8086_v24 = vld [vmem:[#allocation2 + $0x54] sm:$0xff]  ;;  %v2209_v28 = vld [vmem:[#allocation13 + $0x840] sm:$0xff] }
 0x37b   :  { %6574 = vmatpush3.bf16.msra.mxu1 %v6573_v38  ;;  %3291 = vmatprep.mubr.f32.mxu1 %v7973_v11  ;;  %v2224_v11 = vld [vmem:[#allocation13 + $0x8b8] sm:$0xff]  ;;  %v6585_v38 = vpack.c.bf16 %v2208_v56, %v2207_v7  ;;  %v2213_v56 = vld [vmem:[#allocation13 + $0x860] sm:$0xff] }
 0x37c   :  { %3436 = vmatprep.mubr.f32.mxu0 %v7975_v51  ;;  %6576 = vmatprep.subr.bf16.mxu1 %v6575_v5  ;;  %v2238_v51 = vld [vmem:[#allocation13 + $0x928] sm:$0xff]  ;;  %v6583_v55 = vpack.c.bf16 %v2224_v11, %v2223_v34  ;;  %v2243_v11 = vld [vmem:[#allocation13 + $0x950] sm:$0xff] }
 0x37d   :  { %6606 = vmatpush3.bf16.msra.mxu0 %v6605_v45  ;;  %v6613_v48 = vpack.c.bf16 %v2238_v51, %v2237_v31  ;;  %v2210_v5 = vld [vmem:[#allocation13 + $0x848] sm:$0xff]  ;;  %v2244_v31 = vld [vmem:[#allocation13 + $0x958] sm:$0xff]  ;;  %v8099_v51 = vld [vmem:[#allocation2 + $0x72] sm:$0xff] }
 0x37e   :  { %3292 = vmatmul.mubr.f32.gmra.mrb[98].mxu1 %v8067_v36  ;;  %3437 = vmatmul.mubr.f32.gmra.mrb[114].mxu0 %v8070_v44  ;;  %v6589_v46 = vpack.c.bf16 %v2210_v5, %v2209_v28  ;;  %v8109_v28 = vld [vmem:[#allocation2 + $0x93] sm:$0xff] }
 0x37f   :  { %3296 = vmatprep.mubr.f32.mxu1 %v7980_v59  ;;  %3441 = vmatprep.mubr.f32.mxu0 %v7982_v61  ;;  %v2226_v59 = vld [vmem:[#allocation13 + $0x8c8] sm:$0xff]  ;;  %v2239_v61 = vld [vmem:[#allocation13 + $0x930] sm:$0xff] }
 0x380   :  { %6578 = vmatpush3.bf16.msra.mxu1 %v6577_v32  ;;  %6608 = vmatprep.subr.bf16.mxu0 %v6607_v33  ;;  %v6587_v10 = vpack.c.bf16 %v2226_v59, %v2225_v8  ;;  %v6617_v45 = vpack.c.bf16 %v2240_v60, %v2239_v61  ;;  %v1229_v32 = vld [vmem:[#allocation2 + $0x80] sm:$0xff]  ;;  %v2262_v59 = vld [vmem:[#allocation13 + $0x9e8] sm:$0xff] }
 0x381   :  { %6580 = vmatprep.subr.bf16.mxu1 %v6579_v23  ;;  %6610 = vmatpush3.bf16.msra.mxu0 %v6609_v27  ;;  %v2212_v33 = vld [vmem:[#allocation13 + $0x858] sm:$0xff]  ;;  %v6619_v23 = vpack.c.bf16 %v2258_v12, %v2257_v17  ;;  %v2229_v27 = vld [vmem:[#allocation13 + $0x8e0] sm:$0xff]  ;;  %v2246_v60 = vld [vmem:[#allocation13 + $0x968] sm:$0xff] }
 0x382   :  { %3297 = vmatmul.mubr.f32.gmra.mrb[100].mxu1 %v8076_v25  ;;  %3442 = vmatmul.mubr.f32.gmra.mrb[116].mxu0 %v8078_v49  ;;  %v6593_v7 = vpack.c.bf16 %v2212_v33, %v2211_v52  ;;  %v2245_v61 = vld [vmem:[#allocation13 + $0x960] sm:$0xff]  ;;  %v2263_v12 = vld [vmem:[#allocation13 + $0x9f0] sm:$0xff] }
 0x383   :  { %3301 = vmatprep.mubr.f32.mxu1 %v7987_v53  ;;  %3446 = vmatprep.mubr.f32.mxu0 %v7989_v39  ;;  %v2228_v53 = vld [vmem:[#allocation13 + $0x8d8] sm:$0xff]  ;;  %v2241_v39 = vld [vmem:[#allocation13 + $0x940] sm:$0xff]  ;;  %v6629_v17 = vpack.c.bf16 %v2246_v60, %v2245_v61 }
 0x384   :  { %6582 = vmatpush3.bf16.msra.mxu1 %v6581_v15  ;;  %6612 = vmatprep.subr.bf16.mxu0 %v6611_v14  ;;  %v6591_v34 = vpack.c.bf16 %v2228_v53, %v2227_v30  ;;  %v6621_v16 = vpack.c.bf16 %v2242_v18, %v2241_v39  ;;  %v8101_v15 = vld [vmem:[#allocation2 + $0x74] sm:$0xff]  ;;  %v2214_v14 = vld [vmem:[#allocation13 + $0x868] sm:$0xff]  ;;  %v6627_v30 = vpack.c.bf16 %v2262_v59, %v2261_v22 }
 0x385   :  { %6584 = vmatprep.subr.bf16.mxu1 %v6583_v55  ;;  %6614 = vmatpush3.bf16.msra.mxu0 %v6613_v48  ;;  %v6625_v48 = vpack.c.bf16 %v2244_v31, %v2243_v11  ;;  %v6597_v5 = vpack.c.bf16 %v2214_v14, %v2213_v56  ;;  %v2264_v53 = vld [vmem:[#allocation13 + $0x9f8] sm:$0xff]  ;;  %v2247_v39 = vld [vmem:[#allocation13 + $0x970] sm:$0xff]  ;;  %v2282_v18 = vld [vmem:[#allocation13 + $0xa88] sm:$0xff] }
 0x386   :  { %3302 = vmatmul.mubr.f32.gmra.mrb[102].mxu1 %v8084_v4  ;;  %3447 = vmatmul.mubr.f32.gmra.mrb[118].mxu0 %v8086_v24  ;;  %v6631_v52 = vpack.c.bf16 %v2264_v53, %v2263_v12  ;;  %v6810_v11 = vld [vmem:[#allocation2 + $0x92] sm:$0xff]  ;;  %v8122_v14 = vld [vmem:[#allocation15] ss:$0 sm:$0xff]  ;;  %v1199_v22 = vld [vmem:[#allocation2 + $0xe4] sm:$0xff] }
 0x387   :  { %3306 = vmatprep.mubr.f32.mxu1 %v7994_v58  ;;  %3451 = vmatprep.mubr.f32.mxu0 %v7996_v50  ;;  %v2260_v58 = vld [vmem:[#allocation13 + $0x9d8] sm:$0xff]  ;;  %v2230_v50 = vld [vmem:[#allocation13 + $0x8e8] sm:$0xff] }
 0x388   :  { %6586 = vmatpush3.bf16.msra.mxu1 %v6585_v38  ;;  %6616 = vmatprep.subr.bf16.mxu0 %v6615_v63  ;;  %v6623_v55 = vpack.c.bf16 %v2260_v58, %v2259_v42  ;;  %v6595_v8 = vpack.c.bf16 %v2230_v50, %v2229_v27  ;;  %v8107_v38 = vld [vmem:[#allocation2 + $0x82] sm:$0xff]  ;;  %v2215_v63 = vld [vmem:[#allocation13 + $0x870] sm:$0xff]  ;;  %v2314_v42 = vld [vmem:[#allocation13 + $0xb88] sm:$0xff] }
 0x389   :  { %6588 = vmatprep.subr.bf16.mxu1 %v6587_v10  ;;  %6618 = vmatpush3.bf16.msra.mxu0 %v6617_v45  ;;  %v2216_v10 = vld [vmem:[#allocation13 + $0x878] sm:$0xff] }
 0x38a   :  { %3307 = vmatmul.mubr.f32.gmra.mrb[104].mxu1 %v8092_v19  ;;  %3452 = vmatmul.mubr.f32.gmra.mrb[120].mxu0 %v8094_v37 }
 0x38b   :  { %3311 = vmatprep.mubr.f32.mxu1 %v8002_v29  ;;  %3456 = vmatprep.mubr.f32.mxu0 %v1229_v32  ;;  %v2232_v29 = vld [vmem:[#allocation13 + $0x8f8] sm:$0xff] }
 0x38c   :  { %6590 = vmatpush3.bf16.msra.mxu1 %v6589_v46  ;;  %6620 = vmatprep.subr.bf16.mxu0 %v6619_v23  ;;  %v6599_v45 = vpack.c.bf16 %v2232_v29, %v2231_v3  ;;  %v8114_v32 = vld [vmem:[#allocation2] sm:$0xff]  ;;  %v6601_v46 = vpack.c.bf16 %v2216_v10, %v2215_v63  ;;  %v8130_v10 = vld [vmem:[#allocation2 + $0xf2] sm:$0xff] }
 0x38d   :  { %6592 = vmatprep.subr.bf16.mxu1 %v6591_v34  ;;  %6622 = vmatpush3.bf16.msra.mxu0 %v6621_v16  ;;  %v8117_v34 = vld [vmem:[#allocation2 + $0x94] sm:$0xff]  ;;  %v2313_v16 = vld [vmem:[#allocation13 + $0xb80] sm:$0xff] }
 0x38e   :  { %3312 = vmatmul.mubr.f32.gmra.mrb[106].mxu1 %v8099_v51  ;;  %3457 = vmatmul.mubr.f32.gmra.mrb[122].mxu0 %v8101_v15  ;;  %v6667_v56 = vpack.c.bf16 %v2314_v42, %v2313_v16  ;;  %v1135_v3 = vld [vmem:[#allocation2 + $0xe2] sm:$0xff]  ;;  %v8151_v42 = vld [vmem:[#allocation2 + $0x112] sm:$0xff] }
 0x38f   :  { %3316 = vmatprep.mubr.f32.mxu1 %v8009_v62  ;;  %3461 = vmatprep.mubr.f32.mxu0 %v8011_v13  ;;  %v2248_v62 = vld [vmem:[#allocation13 + $0x978] sm:$0xff]  ;;  %v2281_v13 = vld [vmem:[#allocation13 + $0xa80] sm:$0xff] }
 0x390   :  { %6594 = vmatpush3.bf16.msra.mxu1 %v6593_v7  ;;  %6624 = vmatprep.subr.bf16.mxu0 %v6623_v55  ;;  %v6635_v27 = vpack.c.bf16 %v2282_v18, %v2281_v13  ;;  %v8141_v13 = vld [vmem:[#allocation2 + $0x102] sm:$0xff] }
 0x391   :  { %6596 = vmatprep.subr.bf16.mxu1 %v6595_v8  ;;  %6626 = vmatpush3.bf16.msra.mxu0 %v6625_v48  ;;  %v8143_v18 = vld [vmem:[#allocation2 + $0x104] sm:$0xff] }
 0x392   :  { %3317 = vmatmul.mubr.f32.gmra.mrb[108].mxu1 %v8107_v38  ;;  %3462 = vmatmul.mubr.f32.gmra.mrb[124].mxu0 %v8004_v54  ;;  %v6633_v54 = vpack.c.bf16 %v2248_v62, %v2247_v39 }
 0x393   :  { %3321 = vmatprep.mubr.f32.mxu1 %v8109_v28  ;;  %3466 = vmatprep.mubr.f32.mxu0 %v8114_v32 }
 0x394   :  { %6598 = vmatpush3.bf16.msra.mxu1 %v6597_v5  ;;  %6628 = vmatprep.subr.bf16.mxu0 %v6627_v30  ;;  %v8132_v30 = vld [vmem:[#allocation2 + $0xf4] sm:$0xff] }
 0x395   :  { %v5129_v33 = vpop.f32.mrb[4].mxu1  ;;  %v5209_v23 = vpop.f32.mrb[20].mxu0  ;;  %6600 = vmatprep.subr.bf16.mxu1 %v6599_v45  ;;  %6630 = vmatpush3.bf16.msra.mxu0 %v6629_v17 }
 0x396   :  { %v5130_v58 = vpop.f32.mrb[5].mxu1  ;;  %v5210_v50 = vpop.f32.mrb[21].mxu0  ;;  %3322 = vmatmul.mubr.f32.gmra.mrb[110].mxu1 %v6810_v11  ;;  %3467 = vmatmul.mubr.f32.gmra.mrb[126].mxu0 %v8117_v34 }
 0x397   :  { %v5131_v31 = vadd.f32 %v5130_v58, %v5129_v33  ;;  %v5211_v7 = vadd.f32 %v5210_v50, %v5209_v23  ;;  %3326 = vmatprep.mubr.f32.mxu1 %v8017_v6  ;;  %3471 = vmatprep.mubr.f32.mxu0 %v8019_v20  ;;  %v1235_v33 = vld [vmem:[#allocation2 + $0x120] sm:$0xff]  ;;  %v8153_v58 = vld [vmem:[#allocation2 + $0x114] sm:$0xff] }
 0x398   :  { %6602 = vmatpush3.bf16.msra.mxu1 %v6601_v46  ;;  %6632 = vmatprep.subr.bf16.mxu0 %v6631_v52 }
 0x399   :  { %v2429_v55 = vadd.f32 %v8122_v14, %v5131_v31  ;;  %v5132_v8 = vpop.f32.mrb[6].mxu1  ;;  %v5212_v48 = vpop.f32.mrb[22].mxu0  ;;  %6634 = vmatpush3.bf16.msra.mxu0 %v6633_v54  ;;  %6636 = vmatprep.subr.bf16.mxu1 %v6635_v27  ;;  %v1236_v31 = vld [vmem:[#allocation2 + $0x130] sm:$0xff] }
 0x39a   :  { %v5133_v59 = vpop.f32.mrb[7].mxu1  ;;  %v5213_v29 = vpop.f32.mrb[23].mxu0  ;;  %3327 = vmatmul.mubr.f32.gmra.mrb[112].mxu1 %v1135_v3  ;;  %3472 = vmatmul.mubr.f32.gmra.mrb[128].mxu0 %v1199_v22  ;;  %v8161_v3 = vld [vmem:[#allocation2 + $0x122] sm:$0xff] }
 0x39b   :  { %v8125_v6 = vadd.f32 %v5211_v7, %v2429_v55  ;;  %v5134_v20 = vadd.f32 %v5133_v59, %v5132_v8  ;;  %v5214_v61 = vadd.f32 %v5213_v29, %v5212_v48  ;;  %3331 = vmatprep.mubr.f32.mxu1 %v8024_v9  ;;  %3476 = vmatprep.mubr.f32.mxu0 %v8026_v0  ;;  %v8163_v22 = vld [vmem:[#allocation2 + $0x124] sm:$0xff] }
 0x39c   :  { %6668 = vmatprep.subr.bf16.mxu0 %v6667_v56 }
 0x39d   :  { %v2434_v60 = vadd.f32 %v8122_v14, %v5134_v20  ;;  %v5135_v5 = vpop.f32.mrb[8].mxu1  ;;  %v5215_v63 = vpop.f32.mrb[24].mxu0  ;;  %v1237_v20 = vld [vmem:[#allocation2 + $0x140] sm:$0xff] }
 0x39e   :  { %v5136_v45 = vpop.f32.mrb[9].mxu1  ;;  %v5216_v17 = vpop.f32.mrb[25].mxu0  ;;  %3332 = vmatmul.mubr.f32.gmra.mrb[114].mxu1 %v8130_v10  ;;  %3477 = vmatmul.mubr.f32.gmra.mrb[130].mxu0 %v8132_v30 }
 0x39f   :  { %v8136_v12 = vadd.f32 %v5214_v61, %v2434_v60  ;;  %v5137_v9 = vadd.f32 %v5136_v45, %v5135_v5  ;;  %v5217_v53 = vadd.f32 %v5216_v17, %v5215_v63  ;;  %3336 = vmatprep.mubr.f32.mxu1 %v8031_v26  ;;  %3481 = vmatprep.mubr.f32.mxu0 %v8033_v41  ;;  %v8171_v45 = vld [vmem:[#allocation2 + $0x132] sm:$0xff] }
 0x3a0   :  { %v8173_v17 = vld [vmem:[#allocation2 + $0x134] sm:$0xff] }
 0x3a1   :  { %v2439_v0 = vadd.f32 %v8122_v14, %v5137_v9  ;;  %v5138_v39 = vpop.f32.mrb[10].mxu1  ;;  %v5218_v62 = vpop.f32.mrb[26].mxu0 }
 0x3a2   :  { %v5139_v46 = vpop.f32.mrb[11].mxu1  ;;  %v5219_v52 = vpop.f32.mrb[27].mxu0  ;;  %3337 = vmatmul.mubr.f32.gmra.mrb[116].mxu1 %v8141_v13  ;;  %3482 = vmatmul.mubr.f32.gmra.mrb[132].mxu0 %v8143_v18 }
 0x3a3   :  { %v8147_v23 = vadd.f32 %v5217_v53, %v2439_v0  ;;  %v5140_v26 = vadd.f32 %v5139_v46, %v5138_v39  ;;  %v5220_v54 = vadd.f32 %v5219_v52, %v5218_v62  ;;  %3341 = vmatprep.mubr.f32.mxu1 %v8039_v2  ;;  %3486 = vmatprep.mubr.f32.mxu0 %v1235_v33  ;;  %v8182_v33 = vld [vmem:[#allocation2 + $0x142] sm:$0xff] }
 0x3a5   :  { %v2444_v41 = vadd.f32 %v8122_v14, %v5140_v26  ;;  %v5141_v27 = vpop.f32.mrb[12].mxu1  ;;  %v5221_v16 = vpop.f32.mrb[28].mxu0 }
 0x3a6   :  { %v5142_v50 = vpop.f32.mrb[13].mxu1  ;;  %v5222_v11 = vpop.f32.mrb[29].mxu0  ;;  %3342 = vmatmul.mubr.f32.gmra.mrb[118].mxu1 %v8151_v42  ;;  %3487 = vmatmul.mubr.f32.gmra.mrb[134].mxu0 %v8153_v58 }
 0x3a7   :  { %v8157_v7 = vadd.f32 %v5220_v54, %v2444_v41  ;;  %v5143_v56 = vadd.f32 %v5142_v50, %v5141_v27  ;;  %v5223_v2 = vadd.f32 %v5222_v11, %v5221_v16  ;;  %3346 = vmatprep.mubr.f32.mxu1 %v8045_v1  ;;  %3491 = vmatprep.mubr.f32.mxu0 %v1236_v31  ;;  %v8186_v41 = vld [vmem:[#allocation2 + $0x153] sm:$0xff]  ;;  %v2265_v50 = vld [vmem:[#allocation13 + $0xa00] sm:$0xff]  ;;  %v2266_v11 = vld [vmem:[#allocation13 + $0xa08] sm:$0xff] }
 0x3a9   :  { %v2449_v55 = vadd.f32 %v8122_v14, %v5143_v56  ;;  %v5144_v8 = vpop.f32.mrb[14].mxu1  ;;  %v5224_v48 = vpop.f32.mrb[30].mxu0 }
 0x3aa   :  { %v5145_v59 = vpop.f32.mrb[15].mxu1  ;;  %v5225_v29 = vpop.f32.mrb[31].mxu0  ;;  %3347 = vmatmul.mubr.f32.gmra.mrb[120].mxu1 %v8161_v3  ;;  %3492 = vmatmul.mubr.f32.gmra.mrb[136].mxu0 %v8163_v22 }
 0x3ab   :  { %v8167_v61 = vadd.f32 %v5223_v2, %v2449_v55  ;;  %v5146_v60 = vadd.f32 %v5145_v59, %v5144_v8  ;;  %v5226_v1 = vadd.f32 %v5225_v29, %v5224_v48  ;;  %3351 = vmatprep.mubr.f32.mxu1 %v8051_v47  ;;  %3496 = vmatprep.mubr.f32.mxu0 %v1237_v20  ;;  %v8193_v55 = vld [vmem:[#allocation2 + $0x154] sm:$0xff] }
 0x3ac   :  { %v2284_v8 = vld [vmem:[#allocation13 + $0xa98] sm:$0xff]  ;;  %v6812_v29 = vld [vmem:[#allocation2 + $0x152] sm:$0xff]  ;;  %v6637_v20 = vpack.c.bf16 %v2266_v11, %v2265_v50 }
 0x3ad   :  { %v2454_v5 = vadd.f32 %v8122_v14, %v5146_v60  ;;  %v5147_v63 = vpop.f32.mrb[16].mxu1  ;;  %v5227_v9 = vpop.f32.mrb[32].mxu0  ;;  %v2297_v60 = vld [vmem:[#allocation13 + $0xb00] sm:$0xff] }
 0x3ae   :  { %v5148_v53 = vpop.f32.mrb[17].mxu1  ;;  %3352 = vmatmul.mubr.f32.gmra.mrb[122].mxu1 %v8171_v45  ;;  %3497 = vmatmul.mubr.f32.gmra.mrb[138].mxu0 %v8173_v17  ;;  %v5228_v0 = vpop.f32.mrb[33].mxu0 }
 0x3af   :  { %v8177_v39 = vadd.f32 %v5226_v1, %v2454_v5  ;;  %v5149_v62 = vadd.f32 %v5148_v53, %v5147_v63  ;;  %3356 = vmatprep.mubr.f32.mxu1 %v8058_v57  ;;  %3501 = vmatprep.mubr.f32.mxu0 %v8060_v35  ;;  %v5229_v47 = vadd.f32 %v5228_v0, %v5227_v9  ;;  %v2298_v1 = vld [vmem:[#allocation13 + $0xb08] sm:$0xff]  ;;  %v1320_v53 = vld [vmem:[#allocation2 + $0x33] sm:$0xff] }
 0x3b0   :  { %v1256_v9 = vld [vmem:[#allocation2 + $0x31] sm:$0xff] }
 0x3b1   :  { %v2459_v46 = vadd.f32 %v8122_v14, %v5149_v62  ;;  %v5150_v52 = vpop.f32.mrb[18].mxu1  ;;  %v5230_v26 = vpop.f32.mrb[34].mxu0  ;;  %v2267_v62 = vld [vmem:[#allocation13 + $0xa10] sm:$0xff] }
 0x3b2   :  { %v5151_v54 = vpop.f32.mrb[19].mxu1  ;;  %3357 = vmatmul.mubr.f32.gmra.mrb[124].mxu1 %v8182_v33  ;;  %3502 = vmatmul.mubr.f32.gmra.mrb[140].mxu0 %v8055_v40  ;;  %v5231_v27 = vpop.f32.mrb[35].mxu0  ;;  %v2283_v40 = vld [vmem:[#allocation13 + $0xa90] sm:$0xff] }
 0x3b3   :  { %v8188_v16 = vadd.f32 %v5229_v47, %v2459_v46  ;;  %v5152_v57 = vadd.f32 %v5151_v54, %v5150_v52  ;;  %3361 = vmatprep.mubr.f32.mxu1 %v8186_v41  ;;  %v5232_v35 = vadd.f32 %v5231_v27, %v5230_v26  ;;  %3506 = vmatprep.mubr.f32.mxu0 %v8114_v32  ;;  %v2268_v47 = vld [vmem:[#allocation13 + $0xa18] sm:$0xff]  ;;  %v2285_v54 = vld [vmem:[#allocation13 + $0xaa0] sm:$0xff] }
 0x3b4   :  { %v6639_v0 = vpack.c.bf16 %v2284_v8, %v2283_v40  ;;  %v6669_v27 = vpack.c.bf16 %v2298_v1, %v2297_v60  ;;  %v8204_v8 = vld [vmem:[#allocation2 + $0x41] sm:$0xff]  ;;  %v2270_v60 = vld [vmem:[#allocation13 + $0xa28] sm:$0xff] }
 0x3b5   :  { %v2464_v31 = vadd.f32 %v8122_v14, %v5152_v57  ;;  %v5153_v56 = vpop.f32.mrb[20].mxu1  ;;  %v5233_v2 = vpop.f32.mrb[36].mxu0  ;;  %v2315_v57 = vld [vmem:[#allocation13 + $0xb90] sm:$0xff] }
 0x3b6   :  { %v5154_v48 = vpop.f32.mrb[21].mxu1  ;;  %v5234_v59 = vpop.f32.mrb[37].mxu0  ;;  %3362 = vmatmul.mubr.f32.gmra.mrb[126].mxu1 %v6812_v29  ;;  %3507 = vmatmul.mubr.f32.gmra.mrb[142].mxu0 %v8193_v55  ;;  %v2269_v29 = vld [vmem:[#allocation13 + $0xa20] sm:$0xff] }
 0x3b7   :  { %v8196_v32 = vadd.f32 %v5232_v35, %v2464_v31  ;;  %v5155_v5 = vadd.f32 %v5154_v48, %v5153_v56  ;;  %v5235_v63 = vadd.f32 %v5234_v59, %v5233_v2  ;;  %3576 = vmatprep.mubr.f32.mxu1 %v8067_v36  ;;  %3721 = vmatprep.mubr.f32.mxu0 %v8070_v44  ;;  %v2316_v35 = vld [vmem:[#allocation13 + $0xb98] sm:$0xff]  ;;  %v2286_v36 = vld [vmem:[#allocation13 + $0xaa8] sm:$0xff]  ;;  %v2299_v31 = vld [vmem:[#allocation13 + $0xb10] sm:$0xff] }
 0x3b8   :  { %v2300_v44 = vld [vmem:[#allocation13 + $0xb18] sm:$0xff]  ;;  %v8207_v48 = vld [vmem:[#allocation2 + $0x43] sm:$0xff]  ;;  %v6641_v59 = vpack.c.bf16 %v2268_v47, %v2267_v62  ;;  %v6671_v1 = vpack.c.bf16 %v2316_v35, %v2315_v57 }
 0x3b9   :  { %v2469_v46 = vadd.f32 %v8122_v14, %v5155_v5  ;;  %v5156_v52 = vpop.f32.mrb[22].mxu1  ;;  %v5236_v26 = vpop.f32.mrb[38].mxu0  ;;  %v2302_v62 = vld [vmem:[#allocation13 + $0xb28] sm:$0xff] }
 0x3ba   :  { %v5157_v50 = vpop.f32.mrb[23].mxu1  ;;  %v5237_v11 = vpop.f32.mrb[39].mxu0  ;;  %3577 = vmatmul.mubr.f32.vlgmr.msra.gmra.mrb[128].mxu1 %v1256_v9  ;;  %3722 = vmatmul.mubr.f32.vlgmr.msra.gmra.mrb[144].mxu0 %v1320_v53  ;;  %v6643_v53 = vpack.c.bf16 %v2286_v36, %v2285_v54  ;;  %v8216_v54 = vld [vmem:[#allocation2 + $0x51] sm:$0xff] }
 0x3bb   :  { %v8201_v56 = vadd.f32 %v5235_v63, %v2469_v46  ;;  %v5158_v2 = vadd.f32 %v5157_v50, %v5156_v52  ;;  %v5238_v40 = vadd.f32 %v5237_v11, %v5236_v26  ;;  %6638 = vmatpush3.bf16.msra.mxu1 %v6637_v20  ;;  %3581 = vmatprep.mubr.f32.mxu1 %v8076_v25  ;;  %v2287_v46 = vld [vmem:[#allocation13 + $0xab0] sm:$0xff]  ;;  %v2317_v25 = vld [vmem:[#allocation13 + $0xba0] sm:$0xff]  ;;  %v2318_v52 = vld [vmem:[#allocation13 + $0xba8] sm:$0xff] }
 0x3bc   :  { %3726 = vmatprep.mubr.f32.mxu0 %v8078_v49  ;;  %6640 = vmatprep.subr.bf16.mxu1 %v6639_v0  ;;  %v6673_v20 = vpack.c.bf16 %v2300_v44, %v2299_v31  ;;  %v2288_v49 = vld [vmem:[#allocation13 + $0xab8] sm:$0xff]  ;;  %v2301_v0 = vld [vmem:[#allocation13 + $0xb20] sm:$0xff]  ;;  %v6645_v11 = vpack.c.bf16 %v2270_v60, %v2269_v29  ;;  %v2271_v36 = vld [vmem:[#allocation13 + $0xa30] sm:$0xff]  ;;  %v6675_v44 = vpack.c.bf16 %v2318_v52, %v2317_v25 }
 0x3bd   :  { %v2474_v5 = vadd.f32 %v8122_v14, %v5158_v2  ;;  %v5159_v63 = vpop.f32.mrb[24].mxu1  ;;  %v5239_v9 = vpop.f32.mrb[40].mxu0  ;;  %6670 = vmatpush3.bf16.msra.mxu0 %v6669_v27  ;;  %v8218_v27 = vld [vmem:[#allocation2 + $0x53] sm:$0xff] }
 0x3be   :  { %v5160_v26 = vpop.f32.mrb[25].mxu1  ;;  %v5240_v50 = vpop.f32.mrb[41].mxu0  ;;  %3582 = vmatmul.mubr.f32.gmra.mrb[130].mxu1 %v8204_v8  ;;  %3727 = vmatmul.mubr.f32.gmra.mrb[146].mxu0 %v8207_v48  ;;  %v2272_v31 = vld [vmem:[#allocation13 + $0xa38] sm:$0xff]  ;;  %v2303_v29 = vld [vmem:[#allocation13 + $0xb30] sm:$0xff] }
 0x3bf   :  { %v8212_v47 = vadd.f32 %v5238_v40, %v2474_v5  ;;  %v5161_v57 = vadd.f32 %v5160_v26, %v5159_v63  ;;  %v5241_v35 = vadd.f32 %v5240_v50, %v5239_v9  ;;  %3586 = vmatprep.mubr.f32.mxu1 %v8084_v4  ;;  %3731 = vmatprep.mubr.f32.mxu0 %v8086_v24  ;;  %v2289_v9 = vld [vmem:[#allocation13 + $0xac0] sm:$0xff]  ;;  %v2319_v24 = vld [vmem:[#allocation13 + $0xbb0] sm:$0xff]  ;;  %v2320_v26 = vld [vmem:[#allocation13 + $0xbb8] sm:$0xff] }
 0x3c0   :  { %6642 = vmatpush3.bf16.msra.mxu1 %v6641_v59  ;;  %6672 = vmatprep.subr.bf16.mxu0 %v6671_v1  ;;  %v6647_v63 = vpack.c.bf16 %v2288_v49, %v2287_v46  ;;  %v6677_v4 = vpack.c.bf16 %v2302_v62, %v2301_v0  ;;  %v2290_v59 = vld [vmem:[#allocation13 + $0xac8] sm:$0xff]  ;;  %v2304_v60 = vld [vmem:[#allocation13 + $0xb38] sm:$0xff]  ;;  %v2273_v49 = vld [vmem:[#allocation13 + $0xa40] sm:$0xff]  ;;  %v6679_v62 = vpack.c.bf16 %v2320_v26, %v2319_v24 }
 0x3c1   :  { %9035 = vst [vmem:[#allocation34_spill] sm:$0xff] %v8212_v47  ;;  %v2479_v2 = vadd.f32 %v8122_v14, %v5161_v57  ;;  %v5162_v40 = vpop.f32.mrb[26].mxu1  ;;  %v5242_v5 = vpop.f32.mrb[42].mxu0  ;;  %6644 = vmatprep.subr.bf16.mxu1 %v6643_v53  ;;  %6674 = vmatpush3.bf16.msra.mxu0 %v6673_v20  ;;  %v8227_v53 = vld [vmem:[#allocation2 + $0x61] sm:$0xff]  ;;  %v6649_v20 = vpack.c.bf16 %v2272_v31, %v2271_v36  ;;  %v2274_v0 = vld [vmem:[#allocation13 + $0xa48] sm:$0xff] }
 0x3c2   :  { %v5163_v50 = vpop.f32.mrb[27].mxu1  ;;  %v5243_v47 = vpop.f32.mrb[43].mxu0  ;;  %3587 = vmatmul.mubr.f32.gmra.mrb[132].mxu1 %v8216_v54  ;;  %3732 = vmatmul.mubr.f32.gmra.mrb[148].mxu0 %v8218_v27  ;;  %v8229_v46 = vld [vmem:[#allocation2 + $0x63] sm:$0xff] }
 0x3c3   :  { %v8223_v1 = vadd.f32 %v5241_v35, %v2479_v2  ;;  %v5164_v25 = vadd.f32 %v5163_v50, %v5162_v40  ;;  %v5244_v52 = vadd.f32 %v5243_v47, %v5242_v5  ;;  %3591 = vmatprep.mubr.f32.mxu1 %v8092_v19  ;;  %3736 = vmatprep.mubr.f32.mxu0 %v8094_v37  ;;  %v2291_v40 = vld [vmem:[#allocation13 + $0xad0] sm:$0xff]  ;;  %v2321_v37 = vld [vmem:[#allocation13 + $0xbc0] sm:$0xff]  ;;  %v2322_v5 = vld [vmem:[#allocation13 + $0xbc8] sm:$0xff] }
 0x3c4   :  { %9037 = vst [vmem:[#allocation36_spill] sm:$0xff] %v8229_v46  ;;  %6646 = vmatpush3.bf16.msra.mxu1 %v6645_v11  ;;  %6676 = vmatprep.subr.bf16.mxu0 %v6675_v44  ;;  %v6651_v47 = vpack.c.bf16 %v2290_v59, %v2289_v9  ;;  %v6681_v19 = vpack.c.bf16 %v2304_v60, %v2303_v29  ;;  %v2292_v11 = vld [vmem:[#allocation13 + $0xad8] sm:$0xff]  ;;  %v2305_v36 = vld [vmem:[#allocation13 + $0xb40] sm:$0xff]  ;;  %v2306_v31 = vld [vmem:[#allocation13 + $0xb48] sm:$0xff] }
 0x3c5   :  { %9036 = vst [vmem:[#allocation35_spill] sm:$0xff] %v8223_v1  ;;  %v2484_v57 = vadd.f32 %v8122_v14, %v5164_v25  ;;  %v5165_v35 = vpop.f32.mrb[28].mxu1  ;;  %v5245_v2 = vpop.f32.mrb[44].mxu0  ;;  %6648 = vmatprep.subr.bf16.mxu1 %v6647_v63  ;;  %6678 = vmatpush3.bf16.msra.mxu0 %v6677_v4  ;;  %v8238_v63 = vld [vmem:[#allocation2 + $0x71] sm:$0xff]  ;;  %v1357_v4 = vld [vmem:[#allocation2 + $0x84] sm:$0xff]  ;;  %v6653_v59 = vpack.c.bf16 %v2274_v0, %v2273_v49  ;;  %v2276_v60 = vld [vmem:[#allocation13 + $0xa58] sm:$0xff] }
 0x3c6   :  { %v5166_v50 = vpop.f32.mrb[29].mxu1  ;;  %v5246_v1 = vpop.f32.mrb[45].mxu0  ;;  %3592 = vmatmul.mubr.f32.gmra.mrb[134].mxu1 %v8227_v53  ;;  %3737 = vmatmul.mubr.f32.gmra.mrb[150].mxu0 %v8229_v46  ;;  %v8240_v9 = vld [vmem:[#allocation2 + $0x73] sm:$0xff]  ;;  %v6683_v25 = vpack.c.bf16 %v2322_v5, %v2321_v37 }
 0x3c7   :  { %v8234_v44 = vadd.f32 %v5244_v52, %v2484_v57  ;;  %v5167_v24 = vadd.f32 %v5166_v50, %v5165_v35  ;;  %v5247_v26 = vadd.f32 %v5246_v1, %v5245_v2  ;;  %3596 = vmatprep.mubr.f32.mxu1 %v8099_v51  ;;  %3741 = vmatprep.mubr.f32.mxu0 %v8101_v15  ;;  %v2275_v29 = vld [vmem:[#allocation13 + $0xa50] sm:$0xff]  ;;  %v2293_v51 = vld [vmem:[#allocation13 + $0xae0] sm:$0xff]  ;;  %v2324_v50 = vld [vmem:[#allocation13 + $0xbd8] sm:$0xff] }
 0x3c8   :  { %6650 = vmatpush3.bf16.msra.mxu1 %v6649_v20  ;;  %6680 = vmatprep.subr.bf16.mxu0 %v6679_v62  ;;  %v6655_v1 = vpack.c.bf16 %v2292_v11, %v2291_v40  ;;  %v6685_v15 = vpack.c.bf16 %v2306_v31, %v2305_v36  ;;  %v2323_v2 = vld [vmem:[#allocation13 + $0xbd0] sm:$0xff]  ;;  %v2294_v20 = vld [vmem:[#allocation13 + $0xae8] sm:$0xff]  ;;  %v2308_v0 = vld [vmem:[#allocation13 + $0xb58] sm:$0xff]  ;;  %v6657_v11 = vpack.c.bf16 %v2276_v60, %v2275_v29 }
 0x3c9   :  { %9038 = vst [vmem:[#allocation37_spill] sm:$0xff] %v8234_v44  ;;  %v2489_v52 = vadd.f32 %v8122_v14, %v5167_v24  ;;  %v5168_v57 = vpop.f32.mrb[30].mxu1  ;;  %v5248_v35 = vpop.f32.mrb[46].mxu0  ;;  %6652 = vmatprep.subr.bf16.mxu1 %v6651_v47  ;;  %6682 = vmatpush3.bf16.msra.mxu0 %v6681_v19  ;;  %v2307_v49 = vld [vmem:[#allocation13 + $0xb50] sm:$0xff]  ;;  %v8248_v47 = vld [vmem:[#allocation2 + $0x81] sm:$0xff]  ;;  %v2278_v31 = vld [vmem:[#allocation13 + $0xa68] sm:$0xff]  ;;  %v6687_v24 = vpack.c.bf16 %v2324_v50, %v2323_v2 }
 0x3ca   :  { %v5169_v44 = vpop.f32.mrb[31].mxu1  ;;  %v5249_v46 = vpop.f32.mrb[47].mxu0  ;;  %3597 = vmatmul.mubr.f32.gmra.mrb[136].mxu1 %v8238_v63  ;;  %3742 = vmatmul.mubr.f32.gmra.mrb[152].mxu0 %v8240_v9  ;;  %v8250_v40 = vld [vmem:[#allocation2 + $0x83] sm:$0xff]  ;;  %v8252_v19 = vld [vmem:[#allocation2 + $0x92] sm:$0xff]  ;;  %v2296_v29 = vld [vmem:[#allocation13 + $0xaf8] sm:$0xff] }
 0x3cb   :  { %v8245_v62 = vadd.f32 %v5247_v26, %v2489_v52  ;;  %v5170_v37 = vadd.f32 %v5169_v44, %v5168_v57  ;;  %v5250_v5 = vadd.f32 %v5249_v46, %v5248_v35  ;;  %3601 = vmatprep.mubr.f32.mxu1 %v8107_v38  ;;  %3746 = vmatprep.mubr.f32.mxu0 %v1357_v4  ;;  %v2277_v36 = vld [vmem:[#allocation13 + $0xa60] sm:$0xff]  ;;  %v2295_v4 = vld [vmem:[#allocation13 + $0xaf0] sm:$0xff]  ;;  %v2326_v35 = vld [vmem:[#allocation13 + $0xbe8] sm:$0xff] }
 0x3cc   :  { %9040 = vst [vmem:[#allocation39_spill] sm:$0xff] %v8250_v40  ;;  %9041 = vst [vmem:[#allocation40_spill] sm:$0xff] %v8252_v19  ;;  %6654 = vmatpush3.bf16.msra.mxu1 %v6653_v59  ;;  %6684 = vmatprep.subr.bf16.mxu0 %v6683_v25  ;;  %v6659_v46 = vpack.c.bf16 %v2294_v20, %v2293_v51  ;;  %v6689_v38 = vpack.c.bf16 %v2308_v0, %v2307_v49  ;;  %v2325_v57 = vld [vmem:[#allocation13 + $0xbe0] sm:$0xff]  ;;  %v2310_v25 = vld [vmem:[#allocation13 + $0xb68] sm:$0xff] }
 0x3cd   :  { %9039 = vst [vmem:[#allocation38_spill] sm:$0xff] %v8245_v62  ;;  %v2494_v26 = vadd.f32 %v8122_v14, %v5170_v37  ;;  %v5283_v52 = vpop.f32.mrb[32].mxu1  ;;  %v5363_v44 = vpop.f32.mrb[48].mxu0  ;;  %6656 = vmatprep.subr.bf16.mxu1 %v6655_v1  ;;  %6686 = vmatpush3.bf16.msra.mxu0 %v6685_v15  ;;  %v2309_v60 = vld [vmem:[#allocation13 + $0xb60] sm:$0xff]  ;;  %v8261_v51 = vld [vmem:[#allocation2 + $0x91] sm:$0xff]  ;;  %v6661_v20 = vpack.c.bf16 %v2278_v31, %v2277_v36  ;;  %v2280_v0 = vld [vmem:[#allocation13 + $0xa78] sm:$0xff] }
 0x3ce   :  { %v5284_v62 = vpop.f32.mrb[33].mxu1  ;;  %3602 = vmatmul.mubr.f32.gmra.mrb[138].mxu1 %v8248_v47  ;;  %3747 = vmatmul.mubr.f32.gmra.mrb[154].mxu0 %v8250_v40  ;;  %v5364_v59 = vpop.f32.mrb[49].mxu0  ;;  %v8263_v15 = vld [vmem:[#allocation2 + $0xa2] sm:$0xff]  ;;  %v2279_v49 = vld [vmem:[#allocation13 + $0xa70] sm:$0xff]  ;;  %v6691_v37 = vpack.c.bf16 %v2326_v35, %v2325_v57  ;;  %v2330_v31 = vld [vmem:[#allocation13 + $0xc08] sm:$0xff] }
 0x3cf   :  { %v8257_v2 = vadd.f32 %v5250_v5, %v2494_v26  ;;  %v5285_v14 = vadd.f32 %v5284_v62, %v5283_v52  ;;  %3606 = vmatprep.mubr.f32.mxu1 %v8252_v19  ;;  %3751 = vmatprep.mubr.f32.mxu0 %v8117_v34  ;;  %v5365_v1 = vadd.f32 %v5364_v59, %v5363_v44  ;;  %v1359_v50 = vld [vmem:[#allocation2 + $0xa4] sm:$0xff]  ;;  %v2327_v44 = vld [vmem:[#allocation13 + $0xbf0] sm:$0xff]  ;;  %v2328_v59 = vld [vmem:[#allocation13 + $0xbf8] sm:$0xff] }
 0x3d0   :  { %6658 = vmatpush3.bf16.msra.mxu1 %v6657_v11  ;;  %6688 = vmatprep.subr.bf16.mxu0 %v6687_v24  ;;  %v6663_v52 = vpack.c.bf16 %v2296_v29, %v2295_v4  ;;  %v6693_v34 = vpack.c.bf16 %v2310_v25, %v2309_v60  ;;  %v2311_v19 = vld [vmem:[#allocation13 + $0xb70] sm:$0xff]  ;;  %v2312_v11 = vld [vmem:[#allocation13 + $0xb78] sm:$0xff]  ;;  %v2329_v36 = vld [vmem:[#allocation13 + $0xc00] sm:$0xff]  ;;  %v6665_v4 = vpack.c.bf16 %v2280_v0, %v2279_v49 }
 0x3d1   :  { %9042 = vst [vmem:[#allocation41_spill] sm:$0xff] %v8257_v2  ;;  %v2709_v5 = vadd.f32 %v5285_v14, %v7903_v43  ;;  %v5286_v26 = vpop.f32.mrb[34].mxu1  ;;  %v5366_v62 = vpop.f32.mrb[50].mxu0  ;;  %6660 = vmatprep.subr.bf16.mxu1 %v6659_v46  ;;  %6690 = vmatpush3.bf16.msra.mxu0 %v6689_v38  ;;  %v8271_v46 = vld [vmem:[#allocation2 + $0xa1] sm:$0xff]  ;;  %v6695_v35 = vpack.c.bf16 %v2328_v59, %v2327_v44  ;;  %v1264_v0 = vld [vmem:[#allocation2 + $0xf1] sm:$0xff] }
 0x3d2   :  { %v5287_v2 = vpop.f32.mrb[35].mxu1  ;;  %v5367_v40 = vpop.f32.mrb[51].mxu0  ;;  %3607 = vmatmul.mubr.f32.gmra.mrb[140].mxu1 %v8261_v51  ;;  %3752 = vmatmul.mubr.f32.gmra.mrb[156].mxu0 %v8109_v28  ;;  %v8273_v38 = vld [vmem:[#allocation2 + $0xa3] sm:$0xff]  ;;  %v6697_v25 = vpack.c.bf16 %v2312_v11, %v2311_v19 }
 0x3d3   :  { %v8268_v24 = vadd.f32 %v5365_v1, %v2709_v5  ;;  %v5288_v43 = vadd.f32 %v5287_v2, %v5286_v26  ;;  %v5368_v57 = vadd.f32 %v5367_v40, %v5366_v62  ;;  %3611 = vmatprep.mubr.f32.mxu1 %v8263_v15  ;;  %3756 = vmatprep.mubr.f32.mxu0 %v1359_v50  ;;  %v8291_v44 = vld [vmem:[#allocation2 + $0x101] sm:$0xff] }
 0x3d4   :  { %6662 = vmatpush3.bf16.msra.mxu1 %v6661_v20  ;;  %6692 = vmatprep.subr.bf16.mxu0 %v6691_v37  ;;  %v8276_v2 = vpack.c.bf16 %v2330_v31, %v2329_v36  ;;  %v1328_v37 = vld [vmem:[#allocation2 + $0xf3] sm:$0xff]  ;;  %v8293_v59 = vld [vmem:[#allocation2 + $0x103] sm:$0xff] }
 0x3d5   :  { %v2714_v28 = vadd.f32 %v5288_v43, %v7913_v21  ;;  %v5289_v29 = vpop.f32.mrb[36].mxu1  ;;  %v5369_v60 = vpop.f32.mrb[52].mxu0  ;;  %6664 = vmatprep.subr.bf16.mxu1 %v6663_v52  ;;  %6694 = vmatpush3.bf16.msra.mxu0 %v6693_v34 }
 0x3d6   :  { %v5290_v40 = vpop.f32.mrb[37].mxu1  ;;  %v5370_v14 = vpop.f32.mrb[53].mxu0  ;;  %3612 = vmatmul.mubr.f32.gmra.mrb[142].mxu1 %v8271_v46  ;;  %3757 = vmatmul.mubr.f32.gmra.mrb[158].mxu0 %v8273_v38 }
 0x3d7   :  { %v8280_v1 = vadd.f32 %v5368_v57, %v2714_v28  ;;  %v5291_v50 = vadd.f32 %v5290_v40, %v5289_v29  ;;  %v5371_v20 = vadd.f32 %v5370_v14, %v5369_v60  ;;  %3616 = vmatprep.mubr.f32.mxu1 %v8130_v10  ;;  %3761 = vmatprep.mubr.f32.mxu0 %v8132_v30  ;;  %v8313_v14 = vld [vmem:[#allocation2 + $0x121] sm:$0xff] }
 0x3d8   :  { %6666 = vmatpush3.bf16.msra.mxu1 %v6665_v4  ;;  %6696 = vmatprep.subr.bf16.mxu0 %v6695_v35  ;;  %v8302_v4 = vld [vmem:[#allocation2 + $0x111] sm:$0xff] }
 0x3d9   :  { %v2719_v21 = vadd.f32 %v5291_v50, %v8125_v6  ;;  %v5292_v19 = vpop.f32.mrb[38].mxu1  ;;  %v5372_v49 = vpop.f32.mrb[54].mxu0  ;;  %6698 = vmatpush3.bf16.msra.mxu0 %v6697_v25  ;;  %6700 = vmatprep.subr.bf16.mxu1 %v8276_v2  ;;  %v8304_v35 = vld [vmem:[#allocation2 + $0x113] sm:$0xff]  ;;  %v8315_v50 = vld [vmem:[#allocation2 + $0x123] sm:$0xff] }
 0x3da   :  { %v5293_v5 = vpop.f32.mrb[39].mxu1  ;;  %v5373_v26 = vpop.f32.mrb[55].mxu0  ;;  %3617 = vmatmul.mubr.f32.gmra.mrb[144].mxu1 %v1264_v0  ;;  %3762 = vmatmul.mubr.f32.gmra.mrb[160].mxu0 %v1328_v37  ;;  %v8324_v37 = vld [vmem:[#allocation2 + $0x131] sm:$0xff] }
 0x3db   :  { %v8286_v62 = vadd.f32 %v5371_v20, %v2719_v21  ;;  %v5294_v10 = vadd.f32 %v5293_v5, %v5292_v19  ;;  %v5374_v52 = vadd.f32 %v5373_v26, %v5372_v49  ;;  %3621 = vmatprep.mubr.f32.mxu1 %v8141_v13  ;;  %3766 = vmatprep.mubr.f32.mxu0 %v8143_v18  ;;  %v8326_v5 = vld [vmem:[#allocation2 + $0x133] sm:$0xff] }
 0x3dd   :  { %v2724_v6 = vadd.f32 %v5294_v10, %v8136_v12  ;;  %v5295_v30 = vpop.f32.mrb[40].mxu1  ;;  %v5375_v34 = vpop.f32.mrb[56].mxu0 }
 0x3de   :  { %v5296_v11 = vpop.f32.mrb[41].mxu1  ;;  %v5376_v36 = vpop.f32.mrb[57].mxu0  ;;  %3622 = vmatmul.mubr.f32.gmra.mrb[146].mxu1 %v8291_v44  ;;  %3767 = vmatmul.mubr.f32.gmra.mrb[162].mxu0 %v8293_v59 }
 0x3df   :  { %v8297_v31 = vadd.f32 %v5374_v52, %v2724_v6  ;;  %v5297_v43 = vadd.f32 %v5296_v11, %v5295_v30  ;;  %v5377_v13 = vadd.f32 %v5376_v36, %v5375_v34  ;;  %3626 = vmatprep.mubr.f32.mxu1 %v8151_v42  ;;  %3771 = vmatprep.mubr.f32.mxu0 %v8153_v58  ;;  %v8330_v52 = vld [vmem:[#allocation2 + $0x144] sm:$0xff] }
 0x3e0   :  { %v8337_v34 = vld [vmem:[#allocation2 + $0x141] sm:$0xff] }
 0x3e1   :  { %v2729_v12 = vadd.f32 %v5297_v43, %v8147_v23  ;;  %v5298_v18 = vpop.f32.mrb[42].mxu1  ;;  %v5378_v57 = vpop.f32.mrb[58].mxu0  ;;  %v8339_v11 = vld [vmem:[#allocation2 + $0x143] sm:$0xff] }
 0x3e2   :  { %v5299_v28 = vpop.f32.mrb[43].mxu1  ;;  %v5379_v29 = vpop.f32.mrb[59].mxu0  ;;  %3627 = vmatmul.mubr.f32.gmra.mrb[148].mxu1 %v8302_v4  ;;  %3772 = vmatmul.mubr.f32.gmra.mrb[164].mxu0 %v8304_v35 }
 0x3e3   :  { %v8308_v60 = vadd.f32 %v5377_v13, %v2729_v12  ;;  %v5300_v25 = vadd.f32 %v5299_v28, %v5298_v18  ;;  %v5380_v42 = vadd.f32 %v5379_v29, %v5378_v57  ;;  %3631 = vmatprep.mubr.f32.mxu1 %v8161_v3  ;;  %3776 = vmatprep.mubr.f32.mxu0 %v8163_v22  ;;  %v8343_v13 = vld [vmem:[#allocation2 + $0x152] sm:$0xff]  ;;  %v8349_v57 = vld [vmem:[#allocation2 + $0x162] sm:$0xff] }
 0x3e4   :  { %v8351_v28 = vld [vmem:[#allocation2 + $0x164] sm:$0xff] }
 0x3e5   :  { %v2734_v23 = vadd.f32 %v5300_v25, %v8157_v7  ;;  %v5301_v58 = vpop.f32.mrb[44].mxu1  ;;  %v5381_v40 = vpop.f32.mrb[60].mxu0 }
 0x3e6   :  { %v5302_v20 = vpop.f32.mrb[45].mxu1  ;;  %v5382_v21 = vpop.f32.mrb[61].mxu0  ;;  %3632 = vmatmul.mubr.f32.gmra.mrb[150].mxu1 %v8313_v14  ;;  %3777 = vmatmul.mubr.f32.gmra.mrb[166].mxu0 %v8315_v50 }
 0x3e7   :  { %v8319_v19 = vadd.f32 %v5380_v42, %v2734_v23  ;;  %v5303_v49 = vadd.f32 %v5302_v20, %v5301_v58  ;;  %v5383_v3 = vadd.f32 %v5382_v21, %v5381_v40  ;;  %3636 = vmatprep.mubr.f32.mxu1 %v8171_v45  ;;  %3781 = vmatprep.mubr.f32.mxu0 %v8173_v17  ;;  %v8354_v23 = vld [vmem:[#allocation2 + $0x151] sm:$0xff] }
 0x3e9   :  { %v2739_v7 = vadd.f32 %v5303_v49, %v8167_v61  ;;  %v5304_v22 = vpop.f32.mrb[46].mxu1  ;;  %v5384_v0 = vpop.f32.mrb[62].mxu0  ;;  %v8362_v49 = vld [vmem:[#allocation2 + $0x161] sm:$0xff] }
 0x3ea   :  { %v5305_v26 = vpop.f32.mrb[47].mxu1  ;;  %v5385_v10 = vpop.f32.mrb[63].mxu0  ;;  %3637 = vmatmul.mubr.f32.gmra.mrb[152].mxu1 %v8324_v37  ;;  %3782 = vmatmul.mubr.f32.gmra.mrb[168].mxu0 %v8326_v5 }
 0x3eb   :  { %v8332_v6 = vadd.f32 %v5383_v3, %v2739_v7  ;;  %v5306_v45 = vadd.f32 %v5305_v26, %v5304_v22  ;;  %v5386_v17 = vadd.f32 %v5385_v10, %v5384_v0  ;;  %3641 = vmatprep.mubr.f32.mxu1 %v8182_v33  ;;  %3786 = vmatprep.mubr.f32.mxu0 %v8330_v52  ;;  %v2331_v0 = vld [vmem:[#allocation13 + $0xc10] sm:$0xff]  ;;  %v2332_v26 = vld [vmem:[#allocation13 + $0xc18] sm:$0xff] }
 0x3ed   :  { %v2744_v61 = vadd.f32 %v5306_v45, %v8177_v39  ;;  %v5307_v30 = vpop.f32.mrb[48].mxu1  ;;  %v5387_v36 = vpop.f32.mrb[64].mxu0 }
 0x3ee   :  { %v5308_v43 = vpop.f32.mrb[49].mxu1  ;;  %3642 = vmatmul.mubr.f32.gmra.mrb[154].mxu1 %v8337_v34  ;;  %3787 = vmatmul.mubr.f32.gmra.mrb[170].mxu0 %v8339_v11  ;;  %v5388_v12 = vpop.f32.mrb[65].mxu0 }
 0x3ef   :  { %v8345_v18 = vadd.f32 %v5386_v17, %v2744_v61  ;;  %v5309_v33 = vadd.f32 %v5308_v43, %v5307_v30  ;;  %3646 = vmatprep.mubr.f32.mxu1 %v8343_v13  ;;  %3791 = vmatprep.mubr.f32.mxu0 %v8193_v55  ;;  %v5389_v39 = vadd.f32 %v5388_v12, %v5387_v36  ;;  %v1385_v12 = vld [vmem:[#allocation2 + $0x40] sm:$0xff] }
 0x3f0   :  { %v6703_v30 = vpack.c.bf16 %v2332_v26, %v2331_v0 }
 0x3f1   :  { %v2749_v29 = vadd.f32 %v5309_v33, %v8188_v16  ;;  %v5310_v25 = vpop.f32.mrb[50].mxu1  ;;  %v5390_v42 = vpop.f32.mrb[66].mxu0  ;;  %v8364_v16 = vld [vmem:[#allocation2 + $0x163] sm:$0xff] }
 0x3f2   :  { %v5311_v58 = vpop.f32.mrb[51].mxu1  ;;  %v5391_v40 = vpop.f32.mrb[67].mxu0  ;;  %3647 = vmatmul.mubr.f32.gmra.mrb[156].mxu1 %v8354_v23  ;;  %3792 = vmatmul.mubr.f32.gmra.mrb[172].mxu0 %v8186_v41  ;;  %v1449_v33 = vld [vmem:[#allocation2 + $0x42] sm:$0xff] }
 0x3f3   :  { %v8358_v20 = vadd.f32 %v5389_v39, %v2749_v29  ;;  %v5312_v55 = vadd.f32 %v5311_v58, %v5310_v25  ;;  %v5392_v21 = vadd.f32 %v5391_v40, %v5390_v42  ;;  %3651 = vmatprep.mubr.f32.mxu1 %v8349_v57  ;;  %3796 = vmatprep.mubr.f32.mxu0 %v8351_v28  ;;  %v2333_v25 = vld [vmem:[#allocation13 + $0xc20] sm:$0xff]  ;;  %v2334_v42 = vld [vmem:[#allocation13 + $0xc28] sm:$0xff] }
 0x3f5   :  { %v2754_v3 = vadd.f32 %v5312_v55, %v8196_v32  ;;  %v5313_v7 = vpop.f32.mrb[52].mxu1  ;;  %v5393_v22 = vpop.f32.mrb[68].mxu0 }
 0x3f6   :  { %v5314_v10 = vpop.f32.mrb[53].mxu1  ;;  %v5394_v41 = vpop.f32.mrb[69].mxu0  ;;  %3652 = vmatmul.mubr.f32.gmra.mrb[158].mxu1 %v8362_v49  ;;  %3797 = vmatmul.mubr.f32.gmra.mrb[174].mxu0 %v8364_v16 }
 0x3f7   :  { %v8369_v45 = vadd.f32 %v5392_v21, %v2754_v3  ;;  %v5315_v17 = vadd.f32 %v5314_v10, %v5313_v7  ;;  %v5395_v61 = vadd.f32 %v5394_v41, %v5393_v22  ;;  %3866 = vmatprep.mubr.f32.mxu1 %v8204_v8  ;;  %4011 = vmatprep.mubr.f32.mxu0 %v8207_v48  ;;  %v1386_v3 = vld [vmem:[#allocation2 + $0x50] sm:$0xff]  ;;  %v2336_v41 = vld [vmem:[#allocation13 + $0xc38] sm:$0xff] }
 0x3f8   :  { %v1450_v7 = vld [vmem:[#allocation2 + $0x52] sm:$0xff]  ;;  %v6707_v22 = vpack.c.bf16 %v2334_v42, %v2333_v25  ;;  %v2337_v42 = vld [vmem:[#allocation13 + $0xc40] sm:$0xff] }
 0x3f9   :  { %v2759_v32 = vadd.f32 %v5315_v17, %v8201_v56  ;;  %v5316_v36 = vpop.f32.mrb[54].mxu1  ;;  %v5396_v43 = vpop.f32.mrb[70].mxu0  ;;  %v9043_v56 = vld [vmem:[#allocation34_spill] sm:$0xff]  ;;  %v2335_v10 = vld [vmem:[#allocation13 + $0xc30] sm:$0xff] }
 0x3fa   :  { %v5317_v39 = vpop.f32.mrb[55].mxu1  ;;  %v5397_v29 = vpop.f32.mrb[71].mxu0  ;;  %3867 = vmatmul.mubr.f32.vlgmr.msra.gmra.mrb[160].mxu1 %v1385_v12  ;;  %4012 = vmatmul.mubr.f32.vlgmr.msra.gmra.mrb[176].mxu0 %v1449_v33  ;;  %v1387_v12 = vld [vmem:[#allocation2 + $0x60] sm:$0xff] }
 0x3fb   :  { %v8374_v58 = vadd.f32 %v5395_v61, %v2759_v32  ;;  %v5318_v40 = vadd.f32 %v5317_v39, %v5316_v36  ;;  %v5398_v55 = vadd.f32 %v5397_v29, %v5396_v43  ;;  %6702 = vmatpush3.bf16.msra.mxu1 %v8276_v2  ;;  %3871 = vmatprep.mubr.f32.mxu1 %v8216_v54  ;;  %v9045_v61 = vld [vmem:[#allocation35_spill] sm:$0xff]  ;;  %v1451_v33 = vld [vmem:[#allocation2 + $0x62] sm:$0xff] }
 0x3fc   :  { %4016 = vmatprep.mubr.f32.mxu0 %v8218_v27  ;;  %6704 = vmatprep.subr.bf16.mxu1 %v6703_v30  ;;  %v9044_v27 = vld [vmem:[#allocation36_spill] sm:$0xff]  ;;  %v6711_v39 = vpack.c.bf16 %v2336_v41, %v2335_v10 }
 0x3fd   :  { %v2764_v8 = vadd.f32 %v5318_v40, %v9043_v56  ;;  %v5319_v48 = vpop.f32.mrb[56].mxu1  ;;  %v5399_v21 = vpop.f32.mrb[72].mxu0  ;;  %v2338_v40 = vld [vmem:[#allocation13 + $0xc48] sm:$0xff]  ;;  %v2339_v41 = vld [vmem:[#allocation13 + $0xc50] sm:$0xff] }
 0x3fe   :  { %v5320_v0 = vpop.f32.mrb[57].mxu1  ;;  %v5400_v26 = vpop.f32.mrb[73].mxu0  ;;  %3872 = vmatmul.mubr.f32.gmra.mrb[162].mxu1 %v1386_v3  ;;  %4017 = vmatmul.mubr.f32.gmra.mrb[178].mxu0 %v1450_v7  ;;  %v1388_v3 = vld [vmem:[#allocation2 + $0x70] sm:$0xff] }
 0x3ff   :  { %v8380_v17 = vadd.f32 %v5398_v55, %v2764_v8  ;;  %v5321_v2 = vadd.f32 %v5320_v0, %v5319_v48  ;;  %v5401_v54 = vadd.f32 %v5400_v26, %v5399_v21  ;;  %3876 = vmatprep.mubr.f32.mxu1 %v8227_v53  ;;  %4021 = vmatprep.mubr.f32.mxu0 %v9044_v27  ;;  %v1452_v7 = vld [vmem:[#allocation2 + $0x72] sm:$0xff] }
 0x400   :  { %6706 = vmatpush3.bf16.msra.mxu1 %v6703_v30  ;;  %v9046_v30 = vld [vmem:[#allocation37_spill] sm:$0xff]  ;;  %v6715_v0 = vpack.c.bf16 %v2338_v40, %v2337_v42  ;;  %v1486_v42 = vld [vmem:[#allocation2 + $0x93] sm:$0xff] }
 0x401   :  { %v2769_v32 = vadd.f32 %v5321_v2, %v9045_v61  ;;  %v5322_v36 = vpop.f32.mrb[58].mxu1  ;;  %v5402_v43 = vpop.f32.mrb[74].mxu0  ;;  %6708 = vmatprep.subr.bf16.mxu1 %v6707_v22  ;;  %v2340_v2 = vld [vmem:[#allocation13 + $0xc58] sm:$0xff]  ;;  %v2341_v40 = vld [vmem:[#allocation13 + $0xc60] sm:$0xff] }
 0x402   :  { %v5323_v29 = vpop.f32.mrb[59].mxu1  ;;  %v5403_v25 = vpop.f32.mrb[75].mxu0  ;;  %3877 = vmatmul.mubr.f32.gmra.mrb[164].mxu1 %v1387_v12  ;;  %4022 = vmatmul.mubr.f32.gmra.mrb[180].mxu0 %v1451_v33  ;;  %v1453_v12 = vld [vmem:[#allocation2 + $0x82] sm:$0xff]  ;;  %v6719_v33 = vpack.c.bf16 %v2340_v2, %v2339_v41  ;;  %v9050_v41 = vld [vmem:[#allocation40_spill] sm:$0xff] }
 0x403   :  { %v8385_v55 = vadd.f32 %v5401_v54, %v2769_v32  ;;  %v5324_v53 = vadd.f32 %v5323_v29, %v5322_v36  ;;  %v5404_v56 = vadd.f32 %v5403_v25, %v5402_v43  ;;  %3881 = vmatprep.mubr.f32.mxu1 %v8238_v63  ;;  %4026 = vmatprep.mubr.f32.mxu0 %v8240_v9  ;;  %v9047_v9 = vld [vmem:[#allocation39_spill] sm:$0xff]  ;;  %v1389_v43 = vld [vmem:[#allocation2 + $0x80] sm:$0xff] }
 0x404   :  { %6710 = vmatpush3.bf16.msra.mxu1 %v6707_v22  ;;  %v9048_v22 = vld [vmem:[#allocation38_spill] sm:$0xff]  ;;  %v2343_v2 = vld [vmem:[#allocation13 + $0xc70] sm:$0xff] }
 0x405   :  { %v2774_v8 = vadd.f32 %v5324_v53, %v9046_v30  ;;  %v5325_v48 = vpop.f32.mrb[60].mxu1  ;;  %v5405_v21 = vpop.f32.mrb[76].mxu0  ;;  %6712 = vmatprep.subr.bf16.mxu1 %v6711_v39  ;;  %v2342_v53 = vld [vmem:[#allocation13 + $0xc68] sm:$0xff] }
 0x406   :  { %v5326_v26 = vpop.f32.mrb[61].mxu1  ;;  %v5406_v10 = vpop.f32.mrb[77].mxu0  ;;  %3882 = vmatmul.mubr.f32.gmra.mrb[166].mxu1 %v1388_v3  ;;  %4027 = vmatmul.mubr.f32.gmra.mrb[182].mxu0 %v1452_v7  ;;  %v1390_v3 = vld [vmem:[#allocation2 + $0x90] sm:$0xff]  ;;  %v6723_v7 = vpack.c.bf16 %v2342_v53, %v2341_v40 }
 0x407   :  { %v8390_v54 = vadd.f32 %v5404_v56, %v2774_v8  ;;  %v5327_v63 = vadd.f32 %v5326_v26, %v5325_v48  ;;  %v5407_v27 = vadd.f32 %v5406_v10, %v5405_v21  ;;  %3886 = vmatprep.mubr.f32.mxu1 %v8248_v47  ;;  %4031 = vmatprep.mubr.f32.mxu0 %v9047_v9 }
 0x408   :  { %6714 = vmatpush3.bf16.msra.mxu1 %v6711_v39  ;;  %v9049_v39 = vld [vmem:[#allocation41_spill] sm:$0xff] }
 0x409   :  { %v2779_v61 = vadd.f32 %v5327_v63, %v9048_v22  ;;  %v5328_v32 = vpop.f32.mrb[62].mxu1  ;;  %v5408_v36 = vpop.f32.mrb[78].mxu0  ;;  %6716 = vmatprep.subr.bf16.mxu1 %v6715_v0  ;;  %v2344_v63 = vld [vmem:[#allocation13 + $0xc78] sm:$0xff] }
 0x40a   :  { %v5329_v29 = vpop.f32.mrb[63].mxu1  ;;  %v5409_v25 = vpop.f32.mrb[79].mxu0  ;;  %3887 = vmatmul.mubr.f32.gmra.mrb[168].mxu1 %v1389_v43  ;;  %4032 = vmatmul.mubr.f32.gmra.mrb[184].mxu0 %v1453_v12  ;;  %v1488_v22 = vld [vmem:[#allocation2 + $0xb3] sm:$0xff]  ;;  %v6727_v43 = vpack.c.bf16 %v2344_v63, %v2343_v2 }
 0x40b   :  { %v8395_v56 = vadd.f32 %v5407_v27, %v2779_v61  ;;  %v5330_v47 = vadd.f32 %v5329_v29, %v5328_v32  ;;  %v5410_v30 = vadd.f32 %v5409_v25, %v5408_v36  ;;  %3891 = vmatprep.mubr.f32.mxu1 %v8261_v51  ;;  %4036 = vmatprep.mubr.f32.mxu0 %v1486_v42  ;;  %v8405_v25 = vld [vmem:[#allocation2] sm:$0xff] }
 0x40c   :  { %6718 = vmatpush3.bf16.msra.mxu1 %v6715_v0  ;;  %v1424_v0 = vld [vmem:[#allocation2 + $0xb1] sm:$0xff] }
 0x40d   :  { %v2784_v8 = vadd.f32 %v5330_v47, %v9049_v39  ;;  %v5443_v48 = vpop.f32.mrb[64].mxu1  ;;  %v5523_v21 = vpop.f32.mrb[80].mxu0  ;;  %6720 = vmatprep.subr.bf16.mxu1 %v6719_v33 }
 0x40e   :  { %v5444_v26 = vpop.f32.mrb[65].mxu1  ;;  %v5524_v10 = vpop.f32.mrb[81].mxu0  ;;  %3892 = vmatmul.mubr.f32.gmra.mrb[170].mxu1 %v1390_v3  ;;  %4037 = vmatmul.mubr.f32.gmra.mrb[186].mxu0 %v9050_v41  ;;  %v1393_v3 = vld [vmem:[#allocation2 + $0x100] sm:$0xff] }
 0x40f   :  { %v8400_v27 = vadd.f32 %v5410_v30, %v2784_v8  ;;  %v5445_v9 = vadd.f32 %v5444_v26, %v5443_v48  ;;  %v5525_v51 = vadd.f32 %v5524_v10, %v5523_v21  ;;  %3896 = vmatprep.mubr.f32.mxu1 %v8271_v46  ;;  %4041 = vmatprep.mubr.f32.mxu0 %v8273_v38 }
 0x410   :  { %6722 = vmatpush3.bf16.msra.mxu1 %v6719_v33  ;;  %v1456_v33 = vld [vmem:[#allocation2 + $0xb2] sm:$0xff] }
 0x411   :  { %v2999_v61 = vadd.f32 %v5445_v9, %v8268_v24  ;;  %v5446_v32 = vpop.f32.mrb[66].mxu1  ;;  %v5526_v36 = vpop.f32.mrb[82].mxu0  ;;  %6724 = vmatprep.subr.bf16.mxu1 %v6723_v7  ;;  %v1394_v9 = vld [vmem:[#allocation2 + $0x110] sm:$0xff] }
 0x412   :  { %v5447_v12 = vpop.f32.mrb[67].mxu1  ;;  %v5527_v29 = vpop.f32.mrb[83].mxu0  ;;  %3897 = vmatmul.mubr.f32.gmra.mrb[172].mxu1 %v8405_v25  ;;  %4042 = vmatmul.mubr.f32.gmra.mrb[188].mxu0 %v8263_v15 }
 0x413   :  { %v8409_v46 = vadd.f32 %v5525_v51, %v2999_v61  ;;  %v5448_v38 = vadd.f32 %v5447_v12, %v5446_v32  ;;  %v5528_v42 = vadd.f32 %v5527_v29, %v5526_v36  ;;  %3901 = vmatprep.mubr.f32.mxu1 %v1424_v0  ;;  %4046 = vmatprep.mubr.f32.mxu0 %v1488_v22  ;;  %v1458_v51 = vld [vmem:[#allocation2 + $0x112] sm:$0xff]  ;;  %v1459_v12 = vld [vmem:[#allocation2 + $0x122] sm:$0xff] }
 0x414   :  { %6726 = vmatpush3.bf16.msra.mxu1 %v6723_v7  ;;  %v1457_v7 = vld [vmem:[#allocation2 + $0x102] sm:$0xff] }
 0x415   :  { %v3004_v24 = vadd.f32 %v5448_v38, %v8280_v1  ;;  %v5449_v40 = vpop.f32.mrb[68].mxu1  ;;  %v5529_v53 = vpop.f32.mrb[84].mxu0  ;;  %6728 = vmatprep.subr.bf16.mxu1 %v6727_v43 }
 0x416   :  { %v5450_v47 = vpop.f32.mrb[69].mxu1  ;;  %v5530_v30 = vpop.f32.mrb[85].mxu0  ;;  %3902 = vmatmul.mubr.f32.gmra.mrb[174].mxu1 %v8405_v25  ;;  %4047 = vmatmul.mubr.f32.gmra.mrb[190].mxu0 %v1456_v33 }
 0x417   :  { %v8413_v39 = vadd.f32 %v5528_v42, %v3004_v24  ;;  %v5451_v15 = vadd.f32 %v5450_v47, %v5449_v40  ;;  %v5531_v8 = vadd.f32 %v5530_v30, %v5529_v53  ;;  %3906 = vmatprep.mubr.f32.mxu1 %v8291_v44  ;;  %4051 = vmatprep.mubr.f32.mxu0 %v8293_v59  ;;  %v1396_v40 = vld [vmem:[#allocation2 + $0x130] sm:$0xff] }
 0x418   :  { %6730 = vmatpush3.bf16.msra.mxu1 %v6727_v43  ;;  %v1395_v43 = vld [vmem:[#allocation2 + $0x120] sm:$0xff]  ;;  %v1460_v53 = vld [vmem:[#allocation2 + $0x132] sm:$0xff] }
 0x419   :  { %v3009_v48 = vadd.f32 %v5451_v15, %v8286_v62  ;;  %v5452_v1 = vpop.f32.mrb[70].mxu1  ;;  %v5532_v21 = vpop.f32.mrb[86].mxu0 }
 0x41a   :  { %v5453_v26 = vpop.f32.mrb[71].mxu1  ;;  %v5533_v10 = vpop.f32.mrb[87].mxu0  ;;  %3907 = vmatmul.mubr.f32.gmra.mrb[176].mxu1 %v1393_v3  ;;  %4052 = vmatmul.mubr.f32.gmra.mrb[192].mxu0 %v1457_v7 }
 0x41b   :  { %v8418_v41 = vadd.f32 %v5531_v8, %v3009_v48  ;;  %v5454_v2 = vadd.f32 %v5453_v26, %v5452_v1  ;;  %v5534_v63 = vadd.f32 %v5533_v10, %v5532_v21  ;;  %3911 = vmatprep.mubr.f32.mxu1 %v8302_v4  ;;  %4056 = vmatprep.mubr.f32.mxu0 %v8304_v35  ;;  %v1397_v1 = vld [vmem:[#allocation2 + $0x140] sm:$0xff]  ;;  %v1494_v26 = vld [vmem:[#allocation2 + $0x153] sm:$0xff] }
 0x41c   :  { %v1461_v21 = vld [vmem:[#allocation2 + $0x142] sm:$0xff] }
 0x41d   :  { %v3014_v44 = vadd.f32 %v5454_v2, %v8297_v31  ;;  %v5455_v59 = vpop.f32.mrb[72].mxu1  ;;  %v5535_v62 = vpop.f32.mrb[88].mxu0 }
 0x41e   :  { %v5456_v0 = vpop.f32.mrb[73].mxu1  ;;  %v5536_v22 = vpop.f32.mrb[89].mxu0  ;;  %3912 = vmatmul.mubr.f32.gmra.mrb[178].mxu1 %v1394_v9  ;;  %4057 = vmatmul.mubr.f32.gmra.mrb[194].mxu0 %v1458_v51 }
 0x41f   :  { %v8423_v61 = vadd.f32 %v5534_v63, %v3014_v44  ;;  %v5457_v32 = vadd.f32 %v5456_v0, %v5455_v59  ;;  %v5537_v36 = vadd.f32 %v5536_v22, %v5535_v62  ;;  %3916 = vmatprep.mubr.f32.mxu1 %v8313_v14  ;;  %4061 = vmatprep.mubr.f32.mxu0 %v8315_v50  ;;  %v1398_v44 = vld [vmem:[#allocation2 + $0x150] sm:$0xff] }
 0x420   :  { %v1496_v22 = vld [vmem:[#allocation2 + $0x173] sm:$0xff] }
 0x421   :  { %v3019_v4 = vadd.f32 %v5457_v32, %v8308_v60  ;;  %v5458_v35 = vpop.f32.mrb[74].mxu1  ;;  %v5538_v31 = vpop.f32.mrb[90].mxu0 }
 0x422   :  { %v5459_v29 = vpop.f32.mrb[75].mxu1  ;;  %v5539_v38 = vpop.f32.mrb[91].mxu0  ;;  %3917 = vmatmul.mubr.f32.gmra.mrb[180].mxu1 %v1395_v43  ;;  %4062 = vmatmul.mubr.f32.gmra.mrb[196].mxu0 %v1459_v12 }
 0x423   :  { %v8428_v42 = vadd.f32 %v5537_v36, %v3019_v4  ;;  %v5460_v33 = vadd.f32 %v5459_v29, %v5458_v35  ;;  %v5540_v24 = vadd.f32 %v5539_v38, %v5538_v31  ;;  %3921 = vmatprep.mubr.f32.mxu1 %v8324_v37  ;;  %4066 = vmatprep.mubr.f32.mxu0 %v8326_v5 }
 0x425   :  { %v3024_v14 = vadd.f32 %v5460_v33, %v8319_v19  ;;  %v5461_v50 = vpop.f32.mrb[76].mxu1  ;;  %v5541_v60 = vpop.f32.mrb[92].mxu0  ;;  %v1513_v33 = vld [vmem:[#allocation2 + $0x44] sm:$0xff] }
 0x426   :  { %v5462_v47 = vpop.f32.mrb[77].mxu1  ;;  %v5542_v30 = vpop.f32.mrb[93].mxu0  ;;  %3922 = vmatmul.mubr.f32.gmra.mrb[182].mxu1 %v1396_v40  ;;  %4067 = vmatmul.mubr.f32.gmra.mrb[198].mxu0 %v1460_v53  ;;  %v1514_v53 = vld [vmem:[#allocation2 + $0x54] sm:$0xff] }
 0x427   :  { %v8433_v15 = vadd.f32 %v5540_v24, %v3024_v14  ;;  %v5463_v8 = vadd.f32 %v5462_v47, %v5461_v50  ;;  %v5543_v48 = vadd.f32 %v5542_v30, %v5541_v60  ;;  %3926 = vmatprep.mubr.f32.mxu1 %v8337_v34  ;;  %4071 = vmatprep.mubr.f32.mxu0 %v8339_v11  ;;  %v1515_v30 = vld [vmem:[#allocation2 + $0x64] sm:$0xff] }
 0x429   :  { %v3029_v37 = vadd.f32 %v5463_v8, %v8332_v6  ;;  %v5464_v5 = vpop.f32.mrb[78].mxu1  ;;  %v5544_v19 = vpop.f32.mrb[94].mxu0 }
 0x42a   :  { %v5465_v3 = vpop.f32.mrb[79].mxu1  ;;  %v5545_v7 = vpop.f32.mrb[95].mxu0  ;;  %3927 = vmatmul.mubr.f32.gmra.mrb[184].mxu1 %v1397_v1  ;;  %4072 = vmatmul.mubr.f32.gmra.mrb[200].mxu0 %v1461_v21  ;;  %v1516_v1 = vld [vmem:[#allocation2 + $0x74] sm:$0xff] }
 0x42b   :  { %v8438_v10 = vadd.f32 %v5543_v48, %v3029_v37  ;;  %v5466_v2 = vadd.f32 %v5465_v3, %v5464_v5  ;;  %v5546_v63 = vadd.f32 %v5545_v7, %v5544_v19  ;;  %3931 = vmatprep.mubr.f32.mxu1 %v8354_v23  ;;  %4076 = vmatprep.mubr.f32.mxu0 %v1494_v26  ;;  %v1432_v23 = vld [vmem:[#allocation2 + $0x171] sm:$0xff] }
 0x42d   :  { %v3034_v34 = vadd.f32 %v5466_v2, %v8345_v18  ;;  %v5467_v11 = vpop.f32.mrb[80].mxu1  ;;  %v5547_v6 = vpop.f32.mrb[96].mxu0 }
 0x42e   :  { %v5468_v59 = vpop.f32.mrb[81].mxu1  ;;  %v5548_v62 = vpop.f32.mrb[97].mxu0  ;;  %3932 = vmatmul.mubr.f32.gmra.mrb[186].mxu1 %v1398_v44  ;;  %4077 = vmatmul.mubr.f32.gmra.mrb[202].mxu0 %v8343_v13  ;;  %v1518_v44 = vld [vmem:[#allocation2 + $0x94] sm:$0xff] }
 0x42f   :  { %v8443_v9 = vadd.f32 %v5546_v63, %v3034_v34  ;;  %v5469_v51 = vadd.f32 %v5468_v59, %v5467_v11  ;;  %v5549_v0 = vadd.f32 %v5548_v62, %v5547_v6  ;;  %3936 = vmatprep.mubr.f32.mxu1 %v8362_v49  ;;  %4081 = vmatprep.mubr.f32.mxu0 %v8364_v16  ;;  %v1464_v49 = vld [vmem:[#allocation2 + $0x172] sm:$0xff]  ;;  %v1519_v63 = vld [vmem:[#allocation2 + $0xa4] sm:$0xff] }
 0x431   :  { %v3039_v18 = vadd.f32 %v5469_v51, %v8358_v20  ;;  %v5470_v32 = vpop.f32.mrb[82].mxu1  ;;  %v5550_v36 = vpop.f32.mrb[98].mxu0 }
 0x432   :  { %v5471_v4 = vpop.f32.mrb[83].mxu1  ;;  %v5551_v35 = vpop.f32.mrb[99].mxu0  ;;  %3937 = vmatmul.mubr.f32.gmra.mrb[188].mxu1 %v8405_v25  ;;  %4082 = vmatmul.mubr.f32.gmra.mrb[204].mxu0 %v8349_v57 }
 0x433   :  { %v8450_v13 = vadd.f32 %v5549_v0, %v3039_v18  ;;  %v5472_v31 = vadd.f32 %v5471_v4, %v5470_v32  ;;  %v5552_v43 = vadd.f32 %v5551_v35, %v5550_v36  ;;  %3941 = vmatprep.mubr.f32.mxu1 %v1432_v23  ;;  %4086 = vmatprep.mubr.f32.mxu0 %v1496_v22  ;;  %v1520_v23 = vld [vmem:[#allocation2 + $0xb4] sm:$0xff] }
 0x435   :  { %v3044_v16 = vadd.f32 %v5472_v31, %v8369_v45  ;;  %v5473_v12 = vpop.f32.mrb[84].mxu1  ;;  %v5553_v29 = vpop.f32.mrb[100].mxu0 }
 0x436   :  { %v5474_v20 = vpop.f32.mrb[85].mxu1  ;;  %v5554_v38 = vpop.f32.mrb[101].mxu0  ;;  %3942 = vmatmul.mubr.f32.gmra.mrb[190].mxu1 %v8405_v25  ;;  %4087 = vmatmul.mubr.f32.gmra.mrb[206].mxu0 %v1464_v49 }
 0x437   :  { %v8454_v24 = vadd.f32 %v5552_v43, %v3044_v16  ;;  %v5475_v57 = vadd.f32 %v5474_v20, %v5473_v12  ;;  %v5555_v14 = vadd.f32 %v5554_v38, %v5553_v29  ;;  %6203 = vmatprep.mubr.f32.mxu1 %v1513_v33  ;;  %v1522_v29 = vld [vmem:[#allocation2 + $0x114] sm:$0xff] }
 0x439   :  { %v3049_v50 = vadd.f32 %v5475_v57, %v8374_v58  ;;  %v5476_v60 = vpop.f32.mrb[86].mxu1  ;;  %v5556_v40 = vpop.f32.mrb[102].mxu0  ;;  %v1517_v58 = vld [vmem:[#allocation2 + $0x84] sm:$0xff] }
 0x43a   :  { %v5477_v47 = vpop.f32.mrb[87].mxu1  ;;  %v5557_v45 = vpop.f32.mrb[103].mxu0  ;;  %6204 = vmatmul.mubr.f32.vlgmr.msra.gmra.mrb[192].mxu1 %v1514_v53  ;;  %v1524_v53 = vld [vmem:[#allocation2 + $0x134] sm:$0xff] }
 0x43b   :  { %v8457_v8 = vadd.f32 %v5555_v14, %v3049_v50  ;;  %v5478_v48 = vadd.f32 %v5477_v47, %v5476_v60  ;;  %v5558_v25 = vadd.f32 %v5557_v45, %v5556_v40  ;;  %6206 = vmatprep.mubr.f32.mxu1 %v1515_v30 }
 0x43d   :  { %v3054_v37 = vadd.f32 %v5478_v48, %v8380_v17  ;;  %v5479_v5 = vpop.f32.mrb[88].mxu1  ;;  %v5559_v19 = vpop.f32.mrb[104].mxu0 }
 0x43e   :  { %v5480_v21 = vpop.f32.mrb[89].mxu1  ;;  %v5560_v3 = vpop.f32.mrb[105].mxu0  ;;  %6207 = vmatmul.mubr.f32.gmra.mrb[194].mxu1 %v1516_v1 }
 0x43f   :  { %v8460_v7 = vadd.f32 %v5558_v25, %v3054_v37  ;;  %v5481_v26 = vadd.f32 %v5480_v21, %v5479_v5  ;;  %v5561_v2 = vadd.f32 %v5560_v3, %v5559_v19  ;;  %6209 = vmatprep.mubr.f32.mxu1 %v1517_v58  ;;  %v1526_v19 = vld [vmem:[#allocation2 + $0x154] sm:$0xff] }
 0x441   :  { %v3059_v34 = vadd.f32 %v5481_v26, %v8385_v55  ;;  %v5482_v11 = vpop.f32.mrb[90].mxu1  ;;  %v5562_v6 = vpop.f32.mrb[106].mxu0  ;;  %v1521_v55 = vld [vmem:[#allocation2 + $0x104] sm:$0xff]  ;;  %v1528_v26 = vld [vmem:[#allocation2 + $0x174] sm:$0xff] }
 0x442   :  { %v5483_v59 = vpop.f32.mrb[91].mxu1  ;;  %v5563_v17 = vpop.f32.mrb[107].mxu0  ;;  %6210 = vmatmul.mubr.f32.gmra.mrb[196].mxu1 %v1518_v44 }
 0x443   :  { %v8463_v62 = vadd.f32 %v5561_v2, %v3059_v34  ;;  %v5484_v51 = vadd.f32 %v5483_v59, %v5482_v11  ;;  %v5564_v0 = vadd.f32 %v5563_v17, %v5562_v6  ;;  %6212 = vmatprep.mubr.f32.mxu1 %v1519_v63 }
 0x445   :  { %v3064_v22 = vadd.f32 %v5484_v51, %v8390_v54  ;;  %v5485_v18 = vpop.f32.mrb[92].mxu1  ;;  %v5565_v32 = vpop.f32.mrb[108].mxu0  ;;  %v1523_v54 = vld [vmem:[#allocation2 + $0x124] sm:$0xff] }
 0x446   :  { %v5486_v36 = vpop.f32.mrb[93].mxu1  ;;  %v5566_v4 = vpop.f32.mrb[109].mxu0  ;;  %6213 = vmatmul.mubr.f32.gmra.mrb[198].mxu1 %v1520_v23 }
 0x447   :  { %v8466_v35 = vadd.f32 %v5564_v0, %v3064_v22  ;;  %v5487_v31 = vadd.f32 %v5486_v36, %v5485_v18  ;;  %v5567_v43 = vadd.f32 %v5566_v4, %v5565_v32  ;;  %6215 = vmatprep.mubr.f32.mxu1 %v1521_v55 }
 0x449   :  { %v3069_v49 = vadd.f32 %v5487_v31, %v8395_v56  ;;  %v5488_v16 = vpop.f32.mrb[94].mxu1  ;;  %v5568_v12 = vpop.f32.mrb[110].mxu0 }
 0x44a   :  { %v5489_v20 = vpop.f32.mrb[95].mxu1  ;;  %v5569_v38 = vpop.f32.mrb[111].mxu0  ;;  %6216 = vmatmul.mubr.f32.gmra.mrb[200].mxu1 %v1522_v29 }
 0x44b   :  { %v8469_v33 = vadd.f32 %v5567_v43, %v3069_v49  ;;  %v5490_v57 = vadd.f32 %v5489_v20, %v5488_v16  ;;  %v5570_v14 = vadd.f32 %v5569_v38, %v5568_v12  ;;  %6218 = vmatprep.mubr.f32.mxu1 %v1523_v54 }
 0x44d   :  { %v3074_v50 = vadd.f32 %v5490_v57, %v8400_v27  ;;  %v5603_v60 = vpop.f32.mrb[96].mxu1  ;;  %v5683_v40 = vpop.f32.mrb[112].mxu0 }
 0x44e   :  { %v5604_v47 = vpop.f32.mrb[97].mxu1  ;;  %v5684_v45 = vpop.f32.mrb[113].mxu0  ;;  %6219 = vmatmul.mubr.f32.gmra.mrb[202].mxu1 %v1524_v53 }
 0x44f   :  { %v8472_v56 = vadd.f32 %v5570_v14, %v3074_v50  ;;  %v5605_v30 = vadd.f32 %v5604_v47, %v5603_v60  ;;  %v5685_v48 = vadd.f32 %v5684_v45, %v5683_v40  ;;  %6221 = vmatprep.mubr.f32.mxu1 %v8330_v52 }
 0x451   :  { %v3289_v25 = vadd.f32 %v5605_v30, %v8409_v46  ;;  %v5606_v37 = vpop.f32.mrb[98].mxu1  ;;  %v5686_v5 = vpop.f32.mrb[114].mxu0 }
 0x452   :  { %v5607_v1 = vpop.f32.mrb[99].mxu1  ;;  %v5687_v21 = vpop.f32.mrb[115].mxu0  ;;  %6222 = vmatmul.mubr.f32.gmra.mrb[204].mxu1 %v1526_v19 }
 0x453   :  { %v8476_v27 = vadd.f32 %v5685_v48, %v3289_v25  ;;  %v5608_v3 = vadd.f32 %v5607_v1, %v5606_v37  ;;  %v5688_v58 = vadd.f32 %v5687_v21, %v5686_v5  ;;  %6224 = vmatprep.mubr.f32.mxu1 %v8351_v28 }
 0x455   :  { %v3294_v2 = vadd.f32 %v5608_v3, %v8413_v39  ;;  %v5609_v63 = vpop.f32.mrb[100].mxu1  ;;  %v5689_v34 = vpop.f32.mrb[116].mxu0 }
 0x456   :  { %v5610_v52 = vpop.f32.mrb[101].mxu1  ;;  %v5690_v11 = vpop.f32.mrb[117].mxu0  ;;  %6225 = vmatmul.mubr.f32.gmra.mrb[206].mxu1 %v1528_v26 }
 0x457   :  { %v8480_v46 = vadd.f32 %v5688_v58, %v3294_v2  ;;  %v5611_v6 = vadd.f32 %v5610_v52, %v5609_v63  ;;  %v5691_v44 = vadd.f32 %v5690_v11, %v5689_v34 }
 0x459   :  { %v3299_v59 = vadd.f32 %v5611_v6, %v8418_v41  ;;  %v5612_v17 = vpop.f32.mrb[102].mxu1  ;;  %v5692_v51 = vpop.f32.mrb[118].mxu0 }
 0x45a   :  { %v5613_v0 = vpop.f32.mrb[103].mxu1  ;;  %v5693_v23 = vpop.f32.mrb[119].mxu0 }
 0x45b   :  { %v8483_v22 = vadd.f32 %v5691_v44, %v3299_v59  ;;  %v5614_v28 = vadd.f32 %v5613_v0, %v5612_v17  ;;  %v5694_v18 = vadd.f32 %v5693_v23, %v5692_v51 }
 0x45d   :  { %v3304_v39 = vadd.f32 %v5614_v28, %v8423_v61  ;;  %v5615_v32 = vpop.f32.mrb[104].mxu1  ;;  %v5695_v36 = vpop.f32.mrb[120].mxu0 }
 0x45e   :  { %v5616_v4 = vpop.f32.mrb[105].mxu1  ;;  %v5696_v55 = vpop.f32.mrb[121].mxu0 }
 0x45f   :  { %v8486_v31 = vadd.f32 %v5694_v18, %v3304_v39  ;;  %v5617_v43 = vadd.f32 %v5616_v4, %v5615_v32  ;;  %v5697_v49 = vadd.f32 %v5696_v55, %v5695_v36 }
 0x461   :  { %v3309_v41 = vadd.f32 %v5617_v43, %v8428_v42  ;;  %v5618_v16 = vpop.f32.mrb[106].mxu1  ;;  %v5698_v12 = vpop.f32.mrb[122].mxu0 }
 0x462   :  { %v5619_v29 = vpop.f32.mrb[107].mxu1  ;;  %v5699_v20 = vpop.f32.mrb[123].mxu0 }
 0x463   :  { %v8489_v38 = vadd.f32 %v5697_v49, %v3309_v41  ;;  %v5620_v54 = vadd.f32 %v5619_v29, %v5618_v16  ;;  %v5700_v57 = vadd.f32 %v5699_v20, %v5698_v12 }
 0x465   :  { %v3314_v61 = vadd.f32 %v5620_v54, %v8433_v15  ;;  %v5621_v14 = vpop.f32.mrb[108].mxu1  ;;  %v5701_v50 = vpop.f32.mrb[124].mxu0 }
 0x466   :  { %v5622_v60 = vpop.f32.mrb[109].mxu1  ;;  %v5702_v40 = vpop.f32.mrb[125].mxu0 }
 0x467   :  { %v8492_v53 = vadd.f32 %v5700_v57, %v3314_v61  ;;  %v5623_v47 = vadd.f32 %v5622_v60, %v5621_v14  ;;  %v5703_v45 = vadd.f32 %v5702_v40, %v5701_v50 }
 0x469   :  { %v3319_v42 = vadd.f32 %v5623_v47, %v8438_v10  ;;  %v5624_v30 = vpop.f32.mrb[110].mxu1  ;;  %v5704_v48 = vpop.f32.mrb[126].mxu0 }
 0x46a   :  { %v5625_v25 = vpop.f32.mrb[111].mxu1  ;;  %v5705_v37 = vpop.f32.mrb[127].mxu0 }
 0x46b   :  { %v8495_v5 = vadd.f32 %v5703_v45, %v3319_v42  ;;  %v5626_v19 = vadd.f32 %v5625_v25, %v5624_v30  ;;  %v5706_v1 = vadd.f32 %v5705_v37, %v5704_v48 }
 0x46d   :  { %v3324_v15 = vadd.f32 %v5626_v19, %v8443_v9  ;;  %v5627_v21 = vpop.f32.mrb[112].mxu1  ;;  %v5707_v3 = vpop.f32.mrb[128].mxu0 }
 0x46e   :  { %v5628_v58 = vpop.f32.mrb[113].mxu1  ;;  %v5708_v26 = vpop.f32.mrb[129].mxu0 }
 0x46f   :  { %v8498_v2 = vadd.f32 %v5706_v1, %v3324_v15  ;;  %v5629_v63 = vadd.f32 %v5628_v58, %v5627_v21  ;;  %v5709_v34 = vadd.f32 %v5708_v26, %v5707_v3 }
 0x471   :  { %v3329_v10 = vadd.f32 %v5629_v63, %v8450_v13  ;;  %v5630_v52 = vpop.f32.mrb[114].mxu1  ;;  %v5710_v11 = vpop.f32.mrb[130].mxu0 }
 0x472   :  { %v5631_v6 = vpop.f32.mrb[115].mxu1  ;;  %v5711_v44 = vpop.f32.mrb[131].mxu0 }
 0x473   :  { %v8501_v59 = vadd.f32 %v5709_v34, %v3329_v10  ;;  %v5632_v17 = vadd.f32 %v5631_v6, %v5630_v52  ;;  %v5712_v51 = vadd.f32 %v5711_v44, %v5710_v11 }
 0x475   :  { %v3334_v9 = vadd.f32 %v5632_v17, %v8454_v24  ;;  %v5633_v0 = vpop.f32.mrb[116].mxu1  ;;  %v5713_v23 = vpop.f32.mrb[132].mxu0 }
 0x476   :  { %v5634_v28 = vpop.f32.mrb[117].mxu1  ;;  %v5714_v18 = vpop.f32.mrb[133].mxu0 }
 0x477   :  { %v8504_v39 = vadd.f32 %v5712_v51, %v3334_v9  ;;  %v5635_v32 = vadd.f32 %v5634_v28, %v5633_v0  ;;  %v5715_v36 = vadd.f32 %v5714_v18, %v5713_v23 }
 0x479   :  { %v3339_v13 = vadd.f32 %v5635_v32, %v8457_v8  ;;  %v5636_v4 = vpop.f32.mrb[118].mxu1  ;;  %v5716_v55 = vpop.f32.mrb[134].mxu0 }
 0x47a   :  { %v5637_v43 = vpop.f32.mrb[119].mxu1  ;;  %v5717_v49 = vpop.f32.mrb[135].mxu0 }
 0x47b   :  { %v8507_v41 = vadd.f32 %v5715_v36, %v3339_v13  ;;  %v5638_v16 = vadd.f32 %v5637_v43, %v5636_v4  ;;  %v5718_v12 = vadd.f32 %v5717_v49, %v5716_v55 }
 0x47d   :  { %v3344_v24 = vadd.f32 %v5638_v16, %v8460_v7  ;;  %v5639_v29 = vpop.f32.mrb[120].mxu1  ;;  %v5719_v20 = vpop.f32.mrb[136].mxu0 }
 0x47e   :  { %v5640_v54 = vpop.f32.mrb[121].mxu1  ;;  %v5720_v57 = vpop.f32.mrb[137].mxu0 }
 0x47f   :  { %v8510_v61 = vadd.f32 %v5718_v12, %v3344_v24  ;;  %v5641_v14 = vadd.f32 %v5640_v54, %v5639_v29  ;;  %v5721_v50 = vadd.f32 %v5720_v57, %v5719_v20 }
 0x481   :  { %v3349_v8 = vadd.f32 %v5641_v14, %v8463_v62  ;;  %v5642_v60 = vpop.f32.mrb[122].mxu1  ;;  %v5722_v40 = vpop.f32.mrb[138].mxu0 }
 0x482   :  { %v5643_v47 = vpop.f32.mrb[123].mxu1  ;;  %v5723_v45 = vpop.f32.mrb[139].mxu0 }
 0x483   :  { %v8513_v42 = vadd.f32 %v5721_v50, %v3349_v8  ;;  %v5644_v30 = vadd.f32 %v5643_v47, %v5642_v60  ;;  %v5724_v48 = vadd.f32 %v5723_v45, %v5722_v40 }
 0x485   :  { %v3354_v7 = vadd.f32 %v5644_v30, %v8466_v35  ;;  %v5645_v25 = vpop.f32.mrb[124].mxu1  ;;  %v5725_v37 = vpop.f32.mrb[140].mxu0 }
 0x486   :  { %v5646_v19 = vpop.f32.mrb[125].mxu1  ;;  %v5726_v1 = vpop.f32.mrb[141].mxu0 }
 0x487   :  { %v8516_v15 = vadd.f32 %v5724_v48, %v3354_v7  ;;  %v5647_v21 = vadd.f32 %v5646_v19, %v5645_v25  ;;  %v5727_v3 = vadd.f32 %v5726_v1, %v5725_v37 }
 0x489   :  { %v3359_v62 = vadd.f32 %v5647_v21, %v8469_v33  ;;  %v5648_v58 = vpop.f32.mrb[126].mxu1  ;;  %v5728_v26 = vpop.f32.mrb[142].mxu0 }
 0x48a   :  { %v5649_v63 = vpop.f32.mrb[127].mxu1  ;;  %v5729_v34 = vpop.f32.mrb[143].mxu0 }
 0x48b   :  { %v8519_v10 = vadd.f32 %v5727_v3, %v3359_v62  ;;  %v5650_v52 = vadd.f32 %v5649_v63, %v5648_v58  ;;  %v5730_v11 = vadd.f32 %v5729_v34, %v5728_v26 }
 0x48d   :  { %v3364_v35 = vadd.f32 %v5650_v52, %v8472_v56  ;;  %v5763_v6 = vpop.f32.mrb[128].mxu1  ;;  %v5843_v44 = vpop.f32.mrb[144].mxu0 }
 0x48e   :  { %v5764_v17 = vpop.f32.mrb[129].mxu1  ;;  %v5844_v51 = vpop.f32.mrb[145].mxu0 }
 0x48f   :  { %v8522_v9 = vadd.f32 %v5730_v11, %v3364_v35  ;;  %v5765_v0 = vadd.f32 %v5764_v17, %v5763_v6  ;;  %v5845_v23 = vadd.f32 %v5844_v51, %v5843_v44 }
 0x491   :  { %v3579_v33 = vadd.f32 %v5765_v0, %v8476_v27  ;;  %v5766_v28 = vpop.f32.mrb[130].mxu1  ;;  %v5846_v18 = vpop.f32.mrb[146].mxu0 }
 0x492   :  { %v5767_v32 = vpop.f32.mrb[131].mxu1  ;;  %v5847_v36 = vpop.f32.mrb[147].mxu0 }
 0x493   :  { %v8525_v13 = vadd.f32 %v5845_v23, %v3579_v33  ;;  %v5768_v4 = vadd.f32 %v5767_v32, %v5766_v28  ;;  %v5848_v55 = vadd.f32 %v5847_v36, %v5846_v18 }
 0x495   :  { %v3584_v56 = vadd.f32 %v5768_v4, %v8480_v46  ;;  %v5769_v43 = vpop.f32.mrb[132].mxu1  ;;  %v5849_v49 = vpop.f32.mrb[148].mxu0 }
 0x496   :  { %v5770_v16 = vpop.f32.mrb[133].mxu1  ;;  %v5850_v12 = vpop.f32.mrb[149].mxu0 }
 0x497   :  { %v8528_v24 = vadd.f32 %v5848_v55, %v3584_v56  ;;  %v5771_v29 = vadd.f32 %v5770_v16, %v5769_v43  ;;  %v5851_v20 = vadd.f32 %v5850_v12, %v5849_v49 }
 0x499   :  { %v3589_v27 = vadd.f32 %v5771_v29, %v8483_v22  ;;  %v5772_v54 = vpop.f32.mrb[134].mxu1  ;;  %v5852_v57 = vpop.f32.mrb[150].mxu0 }
 0x49a   :  { %v5773_v14 = vpop.f32.mrb[135].mxu1  ;;  %v5853_v50 = vpop.f32.mrb[151].mxu0 }
 0x49b   :  { %v8531_v8 = vadd.f32 %v5851_v20, %v3589_v27  ;;  %v5774_v60 = vadd.f32 %v5773_v14, %v5772_v54  ;;  %v5854_v40 = vadd.f32 %v5853_v50, %v5852_v57 }
 0x49d   :  { %v3594_v46 = vadd.f32 %v5774_v60, %v8486_v31  ;;  %v5775_v47 = vpop.f32.mrb[136].mxu1  ;;  %v5855_v45 = vpop.f32.mrb[152].mxu0 }
 0x49e   :  { %v5776_v30 = vpop.f32.mrb[137].mxu1  ;;  %v5856_v48 = vpop.f32.mrb[153].mxu0 }
 0x49f   :  { %v8534_v7 = vadd.f32 %v5854_v40, %v3594_v46  ;;  %v5777_v25 = vadd.f32 %v5776_v30, %v5775_v47  ;;  %v5857_v37 = vadd.f32 %v5856_v48, %v5855_v45 }
 0x4a1   :  { %v3599_v22 = vadd.f32 %v5777_v25, %v8489_v38  ;;  %v5778_v19 = vpop.f32.mrb[138].mxu1  ;;  %v5858_v1 = vpop.f32.mrb[154].mxu0 }
 0x4a2   :  { %v5779_v21 = vpop.f32.mrb[139].mxu1  ;;  %v5859_v3 = vpop.f32.mrb[155].mxu0 }
 0x4a3   :  { %v8537_v62 = vadd.f32 %v5857_v37, %v3599_v22  ;;  %v5780_v58 = vadd.f32 %v5779_v21, %v5778_v19  ;;  %v5860_v26 = vadd.f32 %v5859_v3, %v5858_v1 }
 0x4a5   :  { %v3604_v31 = vadd.f32 %v5780_v58, %v8492_v53  ;;  %v5781_v63 = vpop.f32.mrb[140].mxu1  ;;  %v5861_v34 = vpop.f32.mrb[156].mxu0 }
 0x4a6   :  { %v5782_v52 = vpop.f32.mrb[141].mxu1  ;;  %v5862_v11 = vpop.f32.mrb[157].mxu0 }
 0x4a7   :  { %v8540_v35 = vadd.f32 %v5860_v26, %v3604_v31  ;;  %v5783_v6 = vadd.f32 %v5782_v52, %v5781_v63  ;;  %v5863_v44 = vadd.f32 %v5862_v11, %v5861_v34 }
 0x4a9   :  { %v3609_v38 = vadd.f32 %v5783_v6, %v8495_v5  ;;  %v5784_v17 = vpop.f32.mrb[142].mxu1  ;;  %v5864_v51 = vpop.f32.mrb[158].mxu0 }
 0x4aa   :  { %v5785_v0 = vpop.f32.mrb[143].mxu1  ;;  %v5865_v23 = vpop.f32.mrb[159].mxu0 }
 0x4ab   :  { %v8543_v33 = vadd.f32 %v5863_v44, %v3609_v38  ;;  %v5786_v28 = vadd.f32 %v5785_v0, %v5784_v17  ;;  %v5866_v18 = vadd.f32 %v5865_v23, %v5864_v51 }
 0x4ad   :  { %v3614_v53 = vadd.f32 %v5786_v28, %v8498_v2  ;;  %v5787_v32 = vpop.f32.mrb[144].mxu1  ;;  %v5867_v36 = vpop.f32.mrb[160].mxu0 }
 0x4ae   :  { %v5788_v4 = vpop.f32.mrb[145].mxu1  ;;  %v5868_v55 = vpop.f32.mrb[161].mxu0 }
 0x4af   :  { %v8546_v56 = vadd.f32 %v5866_v18, %v3614_v53  ;;  %v5789_v43 = vadd.f32 %v5788_v4, %v5787_v32  ;;  %v5869_v49 = vadd.f32 %v5868_v55, %v5867_v36 }
 0x4b1   :  { %v3619_v5 = vadd.f32 %v5789_v43, %v8501_v59  ;;  %v5790_v16 = vpop.f32.mrb[146].mxu1  ;;  %v5870_v12 = vpop.f32.mrb[162].mxu0 }
 0x4b2   :  { %v5791_v29 = vpop.f32.mrb[147].mxu1  ;;  %v5871_v20 = vpop.f32.mrb[163].mxu0 }
 0x4b3   :  { %v8549_v27 = vadd.f32 %v5869_v49, %v3619_v5  ;;  %v5792_v54 = vadd.f32 %v5791_v29, %v5790_v16  ;;  %v5872_v57 = vadd.f32 %v5871_v20, %v5870_v12 }
 0x4b5   :  { %v3624_v2 = vadd.f32 %v5792_v54, %v8504_v39  ;;  %v5793_v14 = vpop.f32.mrb[148].mxu1  ;;  %v5873_v50 = vpop.f32.mrb[164].mxu0 }
 0x4b6   :  { %v5794_v60 = vpop.f32.mrb[149].mxu1  ;;  %v5874_v40 = vpop.f32.mrb[165].mxu0 }
 0x4b7   :  { %v8552_v46 = vadd.f32 %v5872_v57, %v3624_v2  ;;  %v5795_v47 = vadd.f32 %v5794_v60, %v5793_v14  ;;  %v5875_v45 = vadd.f32 %v5874_v40, %v5873_v50 }
 0x4b9   :  { %v3629_v59 = vadd.f32 %v5795_v47, %v8507_v41  ;;  %v5796_v30 = vpop.f32.mrb[150].mxu1  ;;  %v5876_v48 = vpop.f32.mrb[166].mxu0 }
 0x4ba   :  { %v5797_v25 = vpop.f32.mrb[151].mxu1  ;;  %v5877_v37 = vpop.f32.mrb[167].mxu0 }
 0x4bb   :  { %v8555_v22 = vadd.f32 %v5875_v45, %v3629_v59  ;;  %v5798_v19 = vadd.f32 %v5797_v25, %v5796_v30  ;;  %v5878_v1 = vadd.f32 %v5877_v37, %v5876_v48 }
 0x4bd   :  { %v3634_v39 = vadd.f32 %v5798_v19, %v8510_v61  ;;  %v5799_v21 = vpop.f32.mrb[152].mxu1  ;;  %v5879_v3 = vpop.f32.mrb[168].mxu0 }
 0x4be   :  { %v5800_v58 = vpop.f32.mrb[153].mxu1  ;;  %v5880_v26 = vpop.f32.mrb[169].mxu0 }
 0x4bf   :  { %v8558_v31 = vadd.f32 %v5878_v1, %v3634_v39  ;;  %v5801_v63 = vadd.f32 %v5800_v58, %v5799_v21  ;;  %v5881_v34 = vadd.f32 %v5880_v26, %v5879_v3 }
 0x4c1   :  { %v3639_v41 = vadd.f32 %v5801_v63, %v8513_v42  ;;  %v5802_v52 = vpop.f32.mrb[154].mxu1  ;;  %v5882_v11 = vpop.f32.mrb[170].mxu0 }
 0x4c2   :  { %v5803_v6 = vpop.f32.mrb[155].mxu1  ;;  %v5883_v44 = vpop.f32.mrb[171].mxu0 }
 0x4c3   :  { %v8561_v38 = vadd.f32 %v5881_v34, %v3639_v41  ;;  %v5804_v17 = vadd.f32 %v5803_v6, %v5802_v52  ;;  %v5884_v51 = vadd.f32 %v5883_v44, %v5882_v11 }
 0x4c5   :  { %v3644_v61 = vadd.f32 %v5804_v17, %v8516_v15  ;;  %v5805_v0 = vpop.f32.mrb[156].mxu1  ;;  %v5885_v23 = vpop.f32.mrb[172].mxu0 }
 0x4c6   :  { %v5806_v28 = vpop.f32.mrb[157].mxu1  ;;  %v5886_v18 = vpop.f32.mrb[173].mxu0 }
 0x4c7   :  { %v8564_v53 = vadd.f32 %v5884_v51, %v3644_v61  ;;  %v5807_v32 = vadd.f32 %v5806_v28, %v5805_v0  ;;  %v5887_v36 = vadd.f32 %v5886_v18, %v5885_v23 }
 0x4c9   :  { %v3649_v42 = vadd.f32 %v5807_v32, %v8519_v10  ;;  %v5808_v4 = vpop.f32.mrb[158].mxu1  ;;  %v5888_v55 = vpop.f32.mrb[174].mxu0 }
 0x4ca   :  { %v5809_v43 = vpop.f32.mrb[159].mxu1  ;;  %v5889_v49 = vpop.f32.mrb[175].mxu0 }
 0x4cb   :  { %v8567_v5 = vadd.f32 %v5887_v36, %v3649_v42  ;;  %v5810_v16 = vadd.f32 %v5809_v43, %v5808_v4  ;;  %v5890_v12 = vadd.f32 %v5889_v49, %v5888_v55 }
 0x4cd   :  { %v3654_v15 = vadd.f32 %v5810_v16, %v8522_v9  ;;  %v5923_v29 = vpop.f32.mrb[160].mxu1  ;;  %v6003_v20 = vpop.f32.mrb[176].mxu0 }
 0x4ce   :  { %v5924_v54 = vpop.f32.mrb[161].mxu1  ;;  %v6004_v57 = vpop.f32.mrb[177].mxu0 }
 0x4cf   :  { %v8570_v2 = vadd.f32 %v5890_v12, %v3654_v15  ;;  %v5925_v14 = vadd.f32 %v5924_v54, %v5923_v29  ;;  %v6005_v50 = vadd.f32 %v6004_v57, %v6003_v20 }
 0x4d1   :  { %v3869_v10 = vadd.f32 %v5925_v14, %v8525_v13  ;;  %v5926_v60 = vpop.f32.mrb[162].mxu1  ;;  %v6006_v40 = vpop.f32.mrb[178].mxu0 }
 0x4d2   :  { %v5927_v47 = vpop.f32.mrb[163].mxu1  ;;  %v6007_v45 = vpop.f32.mrb[179].mxu0 }
 0x4d3   :  { %v5928_v59 = vadd.f32 %v5927_v47, %v5926_v60  ;;  %v6008_v30 = vadd.f32 %v6007_v45, %v6006_v40  ;;  %v8573_v48 = vadd.f32 %v6005_v50, %v3869_v10 }
 0x4d5   :  { %v3874_v9 = vadd.f32 %v5928_v59, %v8528_v24  ;;  %v5929_v25 = vpop.f32.mrb[164].mxu1  ;;  %v6009_v37 = vpop.f32.mrb[180].mxu0 }
 0x4d6   :  { %v5930_v19 = vpop.f32.mrb[165].mxu1  ;;  %v6010_v1 = vpop.f32.mrb[181].mxu0 }
 0x4d7   :  { %v5931_v39 = vadd.f32 %v5930_v19, %v5929_v25  ;;  %v6011_v21 = vadd.f32 %v6010_v1, %v6009_v37  ;;  %v8576_v3 = vadd.f32 %v6008_v30, %v3874_v9 }
 0x4d9   :  { %v3879_v13 = vadd.f32 %v5931_v39, %v8531_v8  ;;  %v5932_v58 = vpop.f32.mrb[166].mxu1  ;;  %v6012_v26 = vpop.f32.mrb[182].mxu0 }
 0x4da   :  { %v5933_v63 = vpop.f32.mrb[167].mxu1  ;;  %v6013_v34 = vpop.f32.mrb[183].mxu0 }
 0x4db   :  { %v5934_v41 = vadd.f32 %v5933_v63, %v5932_v58  ;;  %v6014_v52 = vadd.f32 %v6013_v34, %v6012_v26  ;;  %v8579_v11 = vadd.f32 %v6011_v21, %v3879_v13 }
 0x4dd   :  { %v3884_v24 = vadd.f32 %v5934_v41, %v8534_v7  ;;  %v5935_v6 = vpop.f32.mrb[168].mxu1  ;;  %v6015_v44 = vpop.f32.mrb[184].mxu0 }
 0x4de   :  { %v5936_v17 = vpop.f32.mrb[169].mxu1  ;;  %v6016_v51 = vpop.f32.mrb[185].mxu0 }
 0x4df   :  { %v5937_v61 = vadd.f32 %v5936_v17, %v5935_v6  ;;  %v6017_v0 = vadd.f32 %v6016_v51, %v6015_v44  ;;  %v8582_v23 = vadd.f32 %v6014_v52, %v3884_v24 }
 0x4e1   :  { %v3889_v8 = vadd.f32 %v5937_v61, %v8537_v62  ;;  %v5938_v28 = vpop.f32.mrb[170].mxu1  ;;  %v6018_v18 = vpop.f32.mrb[186].mxu0 }
 0x4e2   :  { %v5939_v32 = vpop.f32.mrb[171].mxu1  ;;  %v6019_v36 = vpop.f32.mrb[187].mxu0 }
 0x4e3   :  { %v5940_v42 = vadd.f32 %v5939_v32, %v5938_v28  ;;  %v6020_v4 = vadd.f32 %v6019_v36, %v6018_v18  ;;  %v8585_v55 = vadd.f32 %v6017_v0, %v3889_v8 }
 0x4e5   :  { %v3894_v7 = vadd.f32 %v5940_v42, %v8540_v35  ;;  %v5941_v43 = vpop.f32.mrb[172].mxu1  ;;  %v6021_v49 = vpop.f32.mrb[188].mxu0 }
 0x4e6   :  { %v5942_v16 = vpop.f32.mrb[173].mxu1  ;;  %v6022_v12 = vpop.f32.mrb[189].mxu0 }
 0x4e7   :  { %v5943_v15 = vadd.f32 %v5942_v16, %v5941_v43  ;;  %v6023_v29 = vadd.f32 %v6022_v12, %v6021_v49  ;;  %v8588_v20 = vadd.f32 %v6020_v4, %v3894_v7 }
 0x4e9   :  { %v3899_v62 = vadd.f32 %v5943_v15, %v8543_v33  ;;  %v5944_v54 = vpop.f32.mrb[174].mxu1  ;;  %v6024_v57 = vpop.f32.mrb[190].mxu0 }
 0x4ea   :  { %v5945_v14 = vpop.f32.mrb[175].mxu1  ;;  %v6025_v50 = vpop.f32.mrb[191].mxu0 }
 0x4eb   :  { %v5946_v10 = vadd.f32 %v5945_v14, %v5944_v54  ;;  %v6026_v60 = vadd.f32 %v6025_v50, %v6024_v57  ;;  %v8591_v40 = vadd.f32 %v6023_v29, %v3899_v62 }
 0x4ed   :  { %v3904_v35 = vadd.f32 %v5946_v10, %v8546_v56  ;;  %v5947_v47 = vpop.f32.mrb[176].mxu1  ;;  %v6027_v45 = vpop.f32.mrb[192].mxu0 }
 0x4ee   :  { %v5948_v59 = vpop.f32.mrb[177].mxu1  ;;  %v6028_v30 = vpop.f32.mrb[193].mxu0 }
 0x4ef   :  { %v5949_v9 = vadd.f32 %v5948_v59, %v5947_v47  ;;  %v6029_v25 = vadd.f32 %v6028_v30, %v6027_v45  ;;  %v8594_v37 = vadd.f32 %v6026_v60, %v3904_v35 }
 0x4f1   :  { %v3909_v33 = vadd.f32 %v5949_v9, %v8549_v27  ;;  %v5950_v19 = vpop.f32.mrb[178].mxu1  ;;  %v6030_v1 = vpop.f32.mrb[194].mxu0 }
 0x4f2   :  { %v5951_v39 = vpop.f32.mrb[179].mxu1  ;;  %v6031_v21 = vpop.f32.mrb[195].mxu0 }
 0x4f3   :  { %v5952_v13 = vadd.f32 %v5951_v39, %v5950_v19  ;;  %v6032_v58 = vadd.f32 %v6031_v21, %v6030_v1  ;;  %v8597_v26 = vadd.f32 %v6029_v25, %v3909_v33 }
 0x4f5   :  { %v3914_v56 = vadd.f32 %v5952_v13, %v8552_v46  ;;  %v5953_v63 = vpop.f32.mrb[180].mxu1  ;;  %v6033_v34 = vpop.f32.mrb[196].mxu0 }
 0x4f6   :  { %v5954_v41 = vpop.f32.mrb[181].mxu1  ;;  %v6034_v52 = vpop.f32.mrb[197].mxu0 }
 0x4f7   :  { %v5955_v24 = vadd.f32 %v5954_v41, %v5953_v63  ;;  %v6035_v6 = vadd.f32 %v6034_v52, %v6033_v34  ;;  %v8600_v44 = vadd.f32 %v6032_v58, %v3914_v56 }
 0x4f9   :  { %v3919_v27 = vadd.f32 %v5955_v24, %v8555_v22  ;;  %v5956_v17 = vpop.f32.mrb[182].mxu1  ;;  %v6036_v51 = vpop.f32.mrb[198].mxu0 }
 0x4fa   :  { %v5957_v61 = vpop.f32.mrb[183].mxu1  ;;  %v6037_v0 = vpop.f32.mrb[199].mxu0 }
 0x4fb   :  { %v5958_v8 = vadd.f32 %v5957_v61, %v5956_v17  ;;  %v6038_v28 = vadd.f32 %v6037_v0, %v6036_v51  ;;  %v8603_v18 = vadd.f32 %v6035_v6, %v3919_v27 }
 0x4fd   :  { %v3924_v46 = vadd.f32 %v5958_v8, %v8558_v31  ;;  %v5959_v32 = vpop.f32.mrb[184].mxu1  ;;  %v6039_v36 = vpop.f32.mrb[200].mxu0 }
 0x4fe   :  { %v5960_v42 = vpop.f32.mrb[185].mxu1  ;;  %v6040_v4 = vpop.f32.mrb[201].mxu0 }
 0x4ff   :  { %v5961_v7 = vadd.f32 %v5960_v42, %v5959_v32  ;;  %v6041_v43 = vadd.f32 %v6040_v4, %v6039_v36  ;;  %v4069_v49 = vadd.f32 %v6038_v28, %v3924_v46 }
 0x501   :  { %v3929_v16 = vadd.f32 %v5961_v7, %v8561_v38  ;;  %v5962_v22 = vpop.f32.mrb[186].mxu1  ;;  %v6042_v12 = vpop.f32.mrb[202].mxu0 }
 0x502   :  { %v5963_v15 = vpop.f32.mrb[187].mxu1  ;;  %v6043_v29 = vpop.f32.mrb[203].mxu0 }
 0x503   :  { %v5964_v62 = vadd.f32 %v5963_v15, %v5962_v22  ;;  %v6044_v54 = vadd.f32 %v6043_v29, %v6042_v12  ;;  %v4074_v57 = vadd.f32 %v6041_v43, %v3929_v16 }
 0x505   :  { %v3934_v14 = vadd.f32 %v5964_v62, %v8564_v53  ;;  %v5965_v50 = vpop.f32.mrb[188].mxu1  ;;  %v6045_v31 = vpop.f32.mrb[204].mxu0 }
 0x506   :  { %v5966_v10 = vpop.f32.mrb[189].mxu1  ;;  %v6046_v60 = vpop.f32.mrb[205].mxu0 }
 0x507   :  { %v5967_v35 = vadd.f32 %v5966_v10, %v5965_v50  ;;  %v6047_v47 = vadd.f32 %v6046_v60, %v6045_v31  ;;  %v4079_v45 = vadd.f32 %v6044_v54, %v3934_v14  ;;  %v4511_v54 = vld [vmem:[#allocation19] sm:$0xff]  ;;  %v4513_v60 = vld [vmem:[#allocation19 + $0x10] sm:$0xff] }
 0x509   :  { %v3939_v59 = vadd.f32 %v5967_v35, %v8567_v5  ;;  %v5968_v30 = vpop.f32.mrb[190].mxu1  ;;  %v6048_v38 = vpop.f32.mrb[206].mxu0  ;;  %v4514_v35 = vld [vmem:[#allocation19 + $0x18] sm:$0xff] }
 0x50a   :  { %v5969_v9 = vpop.f32.mrb[191].mxu1  ;;  %v6049_v25 = vpop.f32.mrb[207].mxu0 }
 0x50b   :  { %v5970_v33 = vadd.f32 %v5969_v9, %v5968_v30  ;;  %v6050_v19 = vadd.f32 %v6049_v25, %v6048_v38  ;;  %v4084_v1 = vadd.f32 %v6047_v47, %v3939_v59  ;;  %v6735_v47 = vpack.c.bf16 %v4514_v35, %v4513_v60  ;;  %v4515_v59 = vld [vmem:[#allocation19 + $0x20] sm:$0xff]  ;;  %v4516_v30 = vld [vmem:[#allocation19 + $0x28] sm:$0xff]  ;;  %v4517_v9 = vld [vmem:[#allocation19 + $0x30] sm:$0xff] }
 0x50c   :  { %v6739_v38 = vpack.c.bf16 %v4516_v30, %v4515_v59  ;;  %v4518_v25 = vld [vmem:[#allocation19 + $0x38] sm:$0xff] }
 0x50d   :  { %v3944_v39 = vadd.f32 %v5970_v33, %v8570_v2  ;;  %v6205_v21 = vpop.f32.mrb[192].mxu1  ;;  %v6743_v33 = vpack.c.bf16 %v4518_v25, %v4517_v9 }
 0x50e   :  { %v8611_v53 = vadd.f32 %v6205_v21, %v8576_v3  ;;  %v4158_v13 = vpop.f32.mrb[193].mxu1 }
 0x50f   :  { %v8614_v58 = vadd.f32 %v4158_v13, %v8573_v48  ;;  %v4089_v56 = vadd.f32 %v6050_v19, %v3944_v39  ;;  %v4519_v19 = vld [vmem:[#allocation19 + $0x40] sm:$0xff]  ;;  %v4521_v39 = vld [vmem:[#allocation19 + $0x50] sm:$0xff]  ;;  %v4522_v13 = vld [vmem:[#allocation19 + $0x58] sm:$0xff] }
 0x510   :  { %4239 = vadd.xlane.f32.xlu1 %v8611_v53  ;;  %v4296_v2 = vmul.f32 %v8611_v53, %v8611_v53 }
 0x511   :  { %v6208_v5 = vpop.f32.mrb[194].mxu1  ;;  %4237 = vadd.xlane.f32.xlu0 %v8614_v58  ;;  %v4295_v48 = vmul.f32 %v8614_v58, %v8614_v58 }
 0x512   :  { %v8619_v63 = vadd.f32 %v6208_v5, %v8582_v23  ;;  %v4168_v34 = vpop.f32.mrb[195].mxu1  ;;  %v4523_v5 = vld [vmem:[#allocation19 + $0x60] sm:$0xff] }
 0x513   :  { %v8624_v3 = vadd.f32 %v4168_v34, %v8579_v11  ;;  %v4524_v34 = vld [vmem:[#allocation19 + $0x68] sm:$0xff] }
 0x514   :  { %4313 = vadd.xlane.f32.xlu1 %v4296_v2  ;;  %v4298_v0 = vmul.f32 %v8619_v63, %v8619_v63  ;;  %v6755_v2 = vpack.c.bf16 %v4524_v34, %v4523_v5 }
 0x515   :  { %v6211_v41 = vpop.f32.mrb[196].mxu1  ;;  %4311 = vadd.xlane.f32.xlu0 %v4295_v48  ;;  %v4525_v48 = vld [vmem:[#allocation19 + $0x70] sm:$0xff] }
 0x516   :  { %v8629_v52 = vadd.f32 %v6211_v41, %v8588_v20  ;;  %v4178_v24 = vpop.f32.mrb[197].mxu1  ;;  %v4526_v41 = vld [vmem:[#allocation19 + $0x78] sm:$0xff] }
 0x517   :  { %v8632_v23 = vadd.f32 %v4178_v24, %v8585_v55  ;;  %v6759_v24 = vpack.c.bf16 %v4526_v41, %v4525_v48 }
 0x518   :  { %v4300_v16 = vmul.f32 %v8629_v52, %v8629_v52 }
 0x519   :  { %v6214_v6 = vpop.f32.mrb[198].mxu1  ;;  %4243 = vadd.xlane.f32.xlu0 %v8619_v63  ;;  %v4299_v12 = vmul.f32 %v8632_v23, %v8632_v23 }
 0x51a   :  { %v8636_v27 = vadd.f32 %v6214_v6, %v8594_v37  ;;  %v4188_v11 = vpop.f32.mrb[199].mxu1 }
 0x51b   :  { %v8639_v17 = vadd.f32 %v4188_v11, %v8591_v40 }
 0x51c   :  { %v4302_v31 = vmul.f32 %v8636_v27, %v8636_v27 }
 0x51d   :  { %v6217_v51 = vpop.f32.mrb[200].mxu1  ;;  %4241 = vadd.xlane.f32.xlu0 %v8624_v3  ;;  %v4301_v50 = vmul.f32 %v8639_v17, %v8639_v17 }
 0x51e   :  { %v8643_v20 = vadd.f32 %v6217_v51, %v8600_v44  ;;  %v4198_v61 = vpop.f32.mrb[201].mxu1 }
 0x51f   :  { %v8646_v55 = vadd.f32 %v4198_v61, %v8597_v26  ;;  %v4297_v26 = vmul.f32 %v8624_v3, %v8624_v3 }
 0x520   :  { %4255 = vadd.xlane.f32.xlu1 %v8643_v20  ;;  %v4304_v28 = vmul.f32 %v8643_v20, %v8643_v20 }
 0x521   :  { %v6220_v37 = vpop.f32.mrb[202].mxu1  ;;  %4317 = vadd.xlane.f32.xlu0 %v4298_v0  ;;  %v4303_v29 = vmul.f32 %v8646_v55, %v8646_v55 }
 0x522   :  { %v8651_v8 = vadd.f32 %v6220_v37, %v4069_v49  ;;  %v4208_v40 = vpop.f32.mrb[203].mxu1 }
 0x523   :  { %v8656_v44 = vadd.f32 %v4208_v40, %v8603_v18 }
 0x524   :  { %4329 = vadd.xlane.f32.xlu1 %v4304_v28  ;;  %v4306_v49 = vmul.f32 %v8651_v8, %v8651_v8 }
 0x525   :  { %v6223_v46 = vpop.f32.mrb[204].mxu1  ;;  %4315 = vadd.xlane.f32.xlu0 %v4297_v26  ;;  %v4305_v22 = vmul.f32 %v8656_v44, %v8656_v44 }
 0x526   :  { %v8660_v32 = vadd.f32 %v6223_v46, %v4079_v45  ;;  %v4218_v36 = vpop.f32.mrb[205].mxu1 }
 0x527   :  { %v8662_v42 = vadd.f32 %v4218_v36, %v4074_v57  ;;  %v4512_v57 = vld [vmem:[#allocation19 + $0x8] sm:$0xff] }
 0x528   :  { %4259 = vadd.xlane.f32.xlu1 %v8651_v8  ;;  %v4308_v15 = vmul.f32 %v8660_v32, %v8660_v32  ;;  %v6731_v14 = vpack.c.bf16 %v4512_v57, %v4511_v54 }
 0x529   :  { %v6226_v4 = vpop.f32.mrb[206].mxu1  ;;  %4247 = vadd.xlane.f32.xlu0 %v8629_v52  ;;  %v4307_v62 = vmul.f32 %v8662_v42, %v8662_v42 }
 0x52a   :  { %v8666_v7 = vadd.f32 %v6226_v4, %v4089_v56  ;;  %v4228_v18 = vpop.f32.mrb[207].mxu1  ;;  %6732 = vmatprep.subr.bf16.mxu0 %v6731_v14  ;;  %6763 = vmatprep.subr.bf16.mxu1 %v6731_v14  ;;  %v6751_v56 = vpack.c.bf16 %v4522_v13, %v4521_v39 }
 0x52b   :  { %v8668_v43 = vadd.f32 %v4228_v18, %v4084_v1  ;;  %6734 = vmatpush3.bf16.msra.mxu0 %v6731_v14  ;;  %6771 = vmatpush3.bf16.msra.mxu1 %v6731_v14  ;;  %v4520_v1 = vld [vmem:[#allocation19 + $0x48] sm:$0xff] }
 0x52c   :  { %4257 = vadd.xlane.f32.xlu1 %v8656_v44  ;;  %v4310_v45 = vmul.f32 %v8666_v7, %v8666_v7  ;;  %6736 = vmatprep.subr.bf16.mxu0 %v6735_v47  ;;  %v6747_v21 = vpack.c.bf16 %v4520_v1, %v4519_v19 }
 0x52d   :  { %4245 = vadd.xlane.f32.xlu0 %v8632_v23  ;;  %v4309_v10 = vmul.f32 %v8668_v43, %v8668_v43  ;;  %6764 = vmatprep.subr.bf16.mxu1 %v6735_v47 }
 0x52f   :  { %6738 = vmatpush3.bf16.msra.mxu0 %v6735_v47  ;;  %6772 = vmatpush3.bf16.msra.mxu1 %v6735_v47 }
 0x530   :  { %4333 = vadd.xlane.f32.xlu1 %v4306_v49  ;;  %6740 = vmatprep.subr.bf16.mxu0 %v6739_v38 }
 0x531   :  { %4321 = vadd.xlane.f32.xlu0 %v4300_v16  ;;  %6765 = vmatprep.subr.bf16.mxu1 %v6739_v38 }
 0x533   :  { %6742 = vmatpush3.bf16.msra.mxu0 %v6739_v38  ;;  %6773 = vmatpush3.bf16.msra.mxu1 %v6739_v38 }
 0x534   :  { %4331 = vadd.xlane.f32.xlu1 %v4305_v22  ;;  %6744 = vmatprep.subr.bf16.mxu0 %v6743_v33 }
 0x535   :  { %4319 = vadd.xlane.f32.xlu0 %v4299_v12  ;;  %6766 = vmatprep.subr.bf16.mxu1 %v6743_v33 }
 0x537   :  { %6746 = vmatpush3.bf16.msra.mxu0 %v6743_v33  ;;  %6774 = vmatpush3.bf16.msra.mxu1 %v6743_v33 }
 0x538   :  { %4263 = vadd.xlane.f32.xlu1 %v8660_v32  ;;  %6748 = vmatprep.subr.bf16.mxu0 %v6747_v21 }
 0x539   :  { %4249 = vadd.xlane.f32.xlu0 %v8639_v17  ;;  %6767 = vmatprep.subr.bf16.mxu1 %v6747_v21 }
 0x53b   :  { %6750 = vmatpush3.bf16.msra.mxu0 %v6747_v21  ;;  %6775 = vmatpush3.bf16.msra.mxu1 %v6747_v21 }
 0x53c   :  { %4261 = vadd.xlane.f32.xlu1 %v8662_v42  ;;  %6752 = vmatprep.subr.bf16.mxu0 %v6751_v56 }
 0x53d   :  { %4253 = vadd.xlane.f32.xlu0 %v8646_v55  ;;  %6768 = vmatprep.subr.bf16.mxu1 %v6751_v56 }
 0x53f   :  { %6754 = vmatpush3.bf16.msra.mxu0 %v6751_v56  ;;  %6776 = vmatpush3.bf16.msra.mxu1 %v6751_v56 }
 0x540   :  { %4337 = vadd.xlane.f32.xlu1 %v4308_v15  ;;  %6756 = vmatprep.subr.bf16.mxu0 %v6755_v2 }
 0x541   :  { %4327 = vadd.xlane.f32.xlu0 %v4303_v29  ;;  %6769 = vmatprep.subr.bf16.mxu1 %v6755_v2 }
 0x543   :  { %6758 = vmatpush3.bf16.msra.mxu0 %v6755_v2  ;;  %6777 = vmatpush3.bf16.msra.mxu1 %v6755_v2 }
 0x544   :  { %4335 = vadd.xlane.f32.xlu1 %v4307_v62  ;;  %6760 = vmatprep.subr.bf16.mxu0 %v6759_v24 }
 0x545   :  { %4251 = vadd.xlane.f32.xlu0 %v8636_v27  ;;  %6770 = vmatprep.subr.bf16.mxu1 %v6759_v24 }
 0x547   :  { %6762 = vmatpush3.bf16.msra.mxu0 %v6759_v24  ;;  %6778 = vmatpush3.bf16.msra.mxu1 %v6759_v24 }
 0x548   :  { %4267 = vadd.xlane.f32.xlu1 %v8666_v7 }
 0x549   :  { %4323 = vadd.xlane.f32.xlu0 %v4301_v50 }
 0x54c   :  { %4265 = vadd.xlane.f32.xlu1 %v8668_v43 }
 0x54d   :  { %4325 = vadd.xlane.f32.xlu0 %v4302_v31 }
 0x550   :  { %4339 = vadd.xlane.f32.xlu1 %v4309_v10 }
 0x554   :  { %4341 = vadd.xlane.f32.xlu1 %v4310_v45 }
 0x59d   :  { %v4240_v51 = vpop.xlane.xlu1 %4239 }
 0x59e   :  { %v4238_v6 = vpop.xlane.xlu0 %4237 }
 0x59f   :  { %v4269_v29 = vadd.f32 %v4240_v51, %v4238_v6 }
 0x5a1   :  { %v4314_v0 = vpop.xlane.xlu1 %4313 }
 0x5a2   :  { %v4312_v11 = vpop.xlane.xlu0 %4311 }
 0x5a3   :  { %v4343_v10 = vadd.f32 %v4314_v0, %v4312_v11 }
 0x5a6   :  { %v4244_v61 = vpop.xlane.xlu0 %4243 }
 0x5aa   :  { %v4242_v37 = vpop.xlane.xlu0 %4241 }
 0x5ab   :  { %v4270_v62 = vadd.f32 %v4269_v29, %v4242_v37 }
 0x5ad   :  { %v4256_v40 = vpop.xlane.xlu1 %4255  ;;  %v4271_v14 = vadd.f32 %v4270_v62, %v4244_v61 }
 0x5ae   :  { %v4318_v28 = vpop.xlane.xlu0 %4317 }
 0x5b1   :  { %v4330_v26 = vpop.xlane.xlu1 %4329 }
 0x5b2   :  { %v4316_v46 = vpop.xlane.xlu0 %4315 }
 0x5b3   :  { %v4344_v47 = vadd.f32 %v4343_v10, %v4316_v46 }
 0x5b5   :  { %v4260_v36 = vpop.xlane.xlu1 %4259  ;;  %v4345_v33 = vadd.f32 %v4344_v47, %v4318_v28 }
 0x5b6   :  { %v4248_v4 = vpop.xlane.xlu0 %4247 }
 0x5b9   :  { %v4258_v18 = vpop.xlane.xlu1 %4257 }
 0x5ba   :  { %v4246_v49 = vpop.xlane.xlu0 %4245 }
 0x5bb   :  { %v4272_v60 = vadd.f32 %v4271_v14, %v4246_v49 }
 0x5bd   :  { %v4334_v16 = vpop.xlane.xlu1 %4333  ;;  %v4273_v38 = vadd.f32 %v4272_v60, %v4248_v4 }
 0x5be   :  { %v4322_v22 = vpop.xlane.xlu0 %4321 }
 0x5c1   :  { %v4332_v12 = vpop.xlane.xlu1 %4331 }
 0x5c2   :  { %v4320_v15 = vpop.xlane.xlu0 %4319 }
 0x5c3   :  { %v4346_v13 = vadd.f32 %v4345_v33, %v4320_v15 }
 0x5c5   :  { %v4264_v54 = vpop.xlane.xlu1 %4263  ;;  %v4347_v6 = vadd.f32 %v4346_v13, %v4322_v22 }
 0x5c6   :  { %v4250_v57 = vpop.xlane.xlu0 %4249 }
 0x5c7   :  { %v4274_v19 = vadd.f32 %v4273_v38, %v4250_v57 }
 0x5c9   :  { %v4262_v50 = vpop.xlane.xlu1 %4261 }
 0x5ca   :  { %v4254_v31 = vpop.xlane.xlu0 %4253 }
 0x5cb   :  { %v4282_v35 = vadd.f32 %v4256_v40, %v4254_v31 }
 0x5cd   :  { %v4283_v45 = vadd.f32 %v4282_v35, %v4258_v18  ;;  %v4338_v59 = vpop.xlane.xlu1 %4337 }
 0x5ce   :  { %v4328_v30 = vpop.xlane.xlu0 %4327 }
 0x5cf   :  { %v4356_v9 = vadd.f32 %v4330_v26, %v4328_v30  ;;  %v4284_v25 = vadd.f32 %v4283_v45, %v4260_v36 }
 0x5d1   :  { %v4336_v1 = vpop.xlane.xlu1 %4335  ;;  %v4357_v39 = vadd.f32 %v4356_v9, %v4332_v12  ;;  %v4285_v5 = vadd.f32 %v4284_v25, %v4262_v50 }
 0x5d2   :  { %v4252_v21 = vpop.xlane.xlu0 %4251 }
 0x5d3   :  { %v4275_v56 = vadd.f32 %v4274_v19, %v4252_v21  ;;  %v4358_v48 = vadd.f32 %v4357_v39, %v4334_v16  ;;  %v4286_v11 = vadd.f32 %v4285_v5, %v4264_v54 }
 0x5d5   :  { %v4276_v34 = vrot.slane %v4275_v56, 4  ;;  %v4268_v2 = vpop.xlane.xlu1 %4267  ;;  %v4359_v37 = vadd.f32 %v4358_v48, %v4336_v1 }
 0x5d6   :  { %v4324_v41 = vpop.xlane.xlu0 %4323 }
 0x5d7   :  { %v4277_v24 = vadd.f32 %v4276_v34, %v4275_v56  ;;  %v4348_v61 = vadd.f32 %v4347_v6, %v4324_v41  ;;  %v4360_v15 = vadd.f32 %v4359_v37, %v4338_v59 }
 0x5d9   :  { %v4278_v51 = vrot.slane %v4277_v24, 2  ;;  %v4266_v0 = vpop.xlane.xlu1 %4265 }
 0x5da   :  { %v4287_v40 = vadd.f32 %v4286_v11, %v4266_v0  ;;  %v4326_v28 = vpop.xlane.xlu0 %4325 }
 0x5db   :  { %v4279_v26 = vadd.f32 %v4278_v51, %v4277_v24  ;;  %v4349_v46 = vadd.f32 %v4348_v61, %v4326_v28  ;;  %v8713_v28 = vld [vmem:[#allocation16 + $0x8] sm:$0xff] }
 0x5dc   :  { %v4288_v36 = vadd.f32 %v4287_v40, %v4268_v2  ;;  %v8711_v40 = vld [vmem:[#allocation16] sm:$0xff] }
 0x5dd   :  { %v4280_v4 = vrot.slane %v4279_v26, 1  ;;  %v4350_v18 = vrot.slane %v4349_v46, 4  ;;  %v4340_v49 = vpop.xlane.xlu1 %4339 }
 0x5de   :  { %v4289_v12 = vrot.slane %v4288_v36, 4  ;;  %v4361_v62 = vadd.f32 %v4360_v15, %v4340_v49  ;;  %v8737_v15 = vld [vmem:[#allocation16 + $0x20] sm:$0xff] }
 0x5df   :  { %v4351_v29 = vadd.f32 %v4350_v18, %v4349_v46  ;;  %v4281_v57 = vadd.f32 %v4280_v4, %v4279_v26 }
 0x5e0   :  { %v4290_v16 = vadd.f32 %v4289_v12, %v4288_v36  ;;  %v8727_v36 = vld [vmem:[#allocation16 + $0x18] sm:$0xff] }
 0x5e1   :  { %v4352_v22 = vrot.slane %v4351_v29, 2  ;;  %v4342_v54 = vpop.xlane.xlu1 %4341  ;;  %v4369_v35 = vmul.f32 0.00390625, %v4281_v57  ;;  %v8747_v57 = vld [vmem:[#allocation18 + $0x20] sm:$0xff] }
 0x5e2   :  { %v4291_v14 = vrot.slane %v4290_v16, 2  ;;  %v4362_v50 = vadd.f32 %v4361_v62, %v4342_v54  ;;  %v8745_v62 = vld [vmem:[#allocation18 + $0x18] sm:$0xff] }
 0x5e3   :  { %v4353_v31 = vadd.f32 %v4352_v22, %v4351_v29  ;;  %v4373_v33 = vmul.f32 %v4369_v35, %v4369_v35  ;;  %v4399_v6 = vsub.f32 %v8614_v58, %v4369_v35  ;;  %v4400_v11 = vsub.f32 %v8611_v53, %v4369_v35  ;;  %v8739_v29 = vld [vmem:[#allocation16 + $0x28] sm:$0xff] }
 0x5e4   :  { %v4292_v10 = vadd.f32 %v4291_v14, %v4290_v16  ;;  %v4363_v60 = vrot.slane %v4362_v50, 4  ;;  %v4401_v51 = vsub.f32 %v8624_v3, %v4369_v35  ;;  %v4402_v61 = vsub.f32 %v8619_v63, %v4369_v35  ;;  %v8721_v63 = vld [vmem:[#allocation18] sm:$0xff]  ;;  %v8741_v16 = vld [vmem:[#allocation16 + $0x30] sm:$0xff] }
 0x5e5   :  { %v4354_v47 = vrot.slane %v4353_v31, 1  ;;  %v4403_v0 = vsub.f32 %v8632_v23, %v4369_v35  ;;  %v4404_v37 = vsub.f32 %v8629_v52, %v4369_v35  ;;  %v4405_v53 = vsub.f32 %v8639_v17, %v4369_v35  ;;  %v8723_v23 = vld [vmem:[#allocation18 + $0x8] sm:$0xff]  ;;  %v8725_v52 = vld [vmem:[#allocation16 + $0x10] sm:$0xff] }
 0x5e6   :  { %v4293_v45 = vrot.slane %v4292_v10, 1  ;;  %v4364_v30 = vadd.f32 %v4363_v60, %v4362_v50  ;;  %v4406_v3 = vsub.f32 %v8636_v27, %v4369_v35 }
 0x5e7   :  { %v4355_v38 = vadd.f32 %v4354_v47, %v4353_v31  ;;  %v8753_v47 = vld [vmem:[#allocation18 + $0x28] sm:$0xff] }
 0x5e8   :  { %v4294_v9 = vadd.f32 %v4293_v45, %v4292_v10  ;;  %v4365_v25 = vrot.slane %v4364_v30, 2  ;;  %v8755_v45 = vld [vmem:[#allocation18 + $0x30] sm:$0xff] }
 0x5e9   :  { %v4371_v59 = vmul.f32 0.00390625, %v4355_v38 }
 0x5ea   :  { %v4366_v19 = vadd.f32 %v4365_v25, %v4364_v30  ;;  %v8701_v39 = vmul.f32 0.00390625, %v4294_v9  ;;  %v8757_v30 = vld [vmem:[#allocation16 + $0x38] sm:$0xff] }
 0x5eb   :  { %v4375_v1 = vsub.f32 %v4371_v59, %v4373_v33 }
 0x5ec   :  { %v4367_v21 = vrot.slane %v4366_v19, 1  ;;  %v4374_v34 = vmul.f32 %v8701_v39, %v8701_v39  ;;  %v4407_v26 = vsub.f32 %v8646_v55, %v8701_v39  ;;  %v4408_v58 = vsub.f32 %v8643_v20, %v8701_v39 }
 0x5ed   :  { %v4377_v13 = vmax.f32 %v4375_v1, 0.0  ;;  %v4409_v4 = vsub.f32 %v8656_v44, %v8701_v39  ;;  %v4410_v55 = vsub.f32 %v8651_v8, %v8701_v39  ;;  %v4411_v17 = vsub.f32 %v8662_v42, %v8701_v39  ;;  %v8743_v44 = vld [vmem:[#allocation18 + $0x10] sm:$0xff] }
 0x5ee   :  { %v4368_v56 = vadd.f32 %v4367_v21, %v4366_v19  ;;  %v4412_v27 = vsub.f32 %v8660_v32, %v8701_v39  ;;  %v4413_v33 = vsub.f32 %v8668_v43, %v8701_v39 }
 0x5ef   :  { %v4379_v5 = vadd.f32 1e-05, %v4377_v13 }
 0x5f0   :  { %v4372_v2 = vmul.f32 0.00390625, %v4368_v56 }
 0x5f1   :  { %6800 = vrsqrt.f32 %v4379_v5 }
 0x5f2   :  { %v4376_v48 = vsub.f32 %v4372_v2, %v4374_v34  ;;  %v8771_v34 = vld [vmem:[#allocation18 + $0x38] sm:$0xff] }
 0x5f4   :  { %v4378_v41 = vmax.f32 %v4376_v48, 0.0 }
 0x5f6   :  { %v4380_v24 = vadd.f32 1e-05, %v4378_v41 }
 0x5f8   :  { %6802 = vrsqrt.f32 %v4380_v24 }
 0x5fb   :  { %v6801_v46 = vpop.eup %6800 }
 0x5fc   :  { %v4415_v20 = vmul.f32 %v6801_v46, %v4399_v6  ;;  %v4416_v18 = vmul.f32 %v6801_v46, %v4400_v11  ;;  %v4417_v49 = vmul.f32 %v6801_v46, %v4401_v51  ;;  %v4418_v12 = vmul.f32 %v6801_v46, %v4402_v61 }
 0x5fd   :  { %v4419_v22 = vmul.f32 %v6801_v46, %v4403_v0  ;;  %v4420_v54 = vmul.f32 %v6801_v46, %v4404_v37  ;;  %v4421_v14 = vmul.f32 %v6801_v46, %v4405_v53  ;;  %v4422_v50 = vmul.f32 %v6801_v46, %v4406_v3 }
 0x5fe   :  { %v4431_v31 = vmul.f32 %v4415_v20, %v8711_v40  ;;  %v4432_v10 = vmul.f32 %v4416_v18, %v8713_v28  ;;  %v4433_v60 = vmul.f32 %v4417_v49, %v8725_v52  ;;  %v4434_v35 = vmul.f32 %v4418_v12, %v8727_v36 }
 0x5ff   :  { %v4435_v38 = vmul.f32 %v4419_v22, %v8737_v15  ;;  %v4436_v9 = vmul.f32 %v4420_v54, %v8739_v29  ;;  %v4437_v25 = vmul.f32 %v4421_v14, %v8741_v16  ;;  %v4438_v2 = vmul.f32 %v4422_v50, %v8757_v30 }
 0x600   :  { %v4447_v59 = vadd.f32 %v4431_v31, %v8721_v63  ;;  %v4448_v19 = vadd.f32 %v4432_v10, %v8723_v23  ;;  %v4449_v1 = vadd.f32 %v4433_v60, %v8743_v44  ;;  %v4450_v21 = vadd.f32 %v4434_v35, %v8745_v62 }
 0x601   :  { %v4451_v13 = vadd.f32 %v4435_v38, %v8747_v57  ;;  %v4452_v56 = vadd.f32 %v4436_v9, %v8753_v47  ;;  %v4453_v5 = vadd.f32 %v4437_v25, %v8755_v45  ;;  %v4454_v3 = vadd.f32 %v4438_v2, %v8771_v34 }
 0x602   :  { %v8774_v48 = vpop.eup %6802  ;;  %vm4463_vm0 = vcmp.ge.f32.partialorder %v4447_v59, 0.0  ;;  %v4479_v41 = vmul.f32 0.01, %v4447_v59  ;;  %vm4464_vm1 = vcmp.ge.f32.partialorder %v4448_v19, 0.0  ;;  %v4480_v24 = vmul.f32 0.01, %v4448_v19 }
 0x603   :  { %vm4465_vm2 = vcmp.ge.f32.partialorder %v4449_v1, 0.0  ;;  %v4481_v6 = vmul.f32 0.01, %v4449_v1  ;;  %vm4466_vm3 = vcmp.ge.f32.partialorder %v4450_v21, 0.0  ;;  %v4482_v11 = vmul.f32 0.01, %v4450_v21 }
 0x604   :  { %v4495_v51 = vsel %vm4463_vm0, %v4447_v59, %v4479_v41  ;;  %v4496_v61 = vsel %vm4464_vm1, %v4448_v19, %v4480_v24  ;;  %vm4467_vm4 = vcmp.ge.f32.partialorder %v4451_v13, 0.0  ;;  %v4483_v0 = vmul.f32 0.01, %v4451_v13 }
 0x605   :  { %6259 = vmatprep.mubr.f32.mxu0 %v4495_v51  ;;  %v4423_v37 = vmul.f32 %v8774_v48, %v4407_v26  ;;  %v4424_v53 = vmul.f32 %v8774_v48, %v4408_v58  ;;  %v4414_v46 = vsub.f32 %v8666_v7, %v8701_v39  ;;  %v4497_v20 = vsel %vm4465_vm2, %v4449_v1, %v4481_v6 }
 0x606   :  { %6260 = vmatmul.mubr.f32.vlgmr.msra.gmra.mrb[208].mxu0 %v4496_v61  ;;  %vm4468_vm5 = vcmp.ge.f32.partialorder %v4452_v56, 0.0  ;;  %v4484_v18 = vmul.f32 0.01, %v4452_v56  ;;  %v4425_v49 = vmul.f32 %v8774_v48, %v4409_v4  ;;  %v4498_v12 = vsel %vm4466_vm3, %v4450_v21, %v4482_v11 }
 0x607   :  { %6262 = vmatprep.mubr.f32.mxu0 %v4497_v20  ;;  %v4499_v22 = vsel %vm4467_vm4, %v4451_v13, %v4483_v0  ;;  %v4439_v54 = vmul.f32 %v4423_v37, %v8711_v40  ;;  %v4440_v26 = vmul.f32 %v4424_v53, %v8713_v28  ;;  %vm4469_vm6 = vcmp.ge.f32.partialorder %v4453_v5, 0.0 }
 0x608   :  { %v4441_v58 = vmul.f32 %v4425_v49, %v8725_v52  ;;  %v4485_v14 = vmul.f32 0.01, %v4453_v5  ;;  %v4426_v7 = vmul.f32 %v8774_v48, %v4410_v55  ;;  %v4500_v31 = vsel %vm4468_vm5, %v4452_v56, %v4484_v18 }
 0x609   :  { %v4455_v50 = vadd.f32 %v4439_v54, %v8721_v63  ;;  %v4456_v4 = vadd.f32 %v4440_v26, %v8723_v23  ;;  %vm4470_vm7 = vcmp.ge.f32.partialorder %v4454_v3, 0.0  ;;  %v4427_v52 = vmul.f32 %v8774_v48, %v4411_v17 }
 0x60a   :  { %6263 = vmatmul.mubr.f32.gmra.mrb[210].mxu0 %v4498_v12  ;;  %v4457_v40 = vadd.f32 %v4441_v58, %v8743_v44  ;;  %v4442_v28 = vmul.f32 %v4426_v7, %v8727_v36  ;;  %v4428_v8 = vmul.f32 %v8774_v48, %v4412_v27  ;;  %v4486_v36 = vmul.f32 0.01, %v4454_v3 }
 0x60b   :  { %6265 = vmatprep.mubr.f32.mxu0 %v4499_v22  ;;  %vm4471_vm8 = vcmp.ge.f32.partialorder %v4455_v50, 0.0  ;;  %v4487_v63 = vmul.f32 0.01, %v4455_v50  ;;  %vm4472_vm9 = vcmp.ge.f32.partialorder %v4456_v4, 0.0  ;;  %v4488_v23 = vmul.f32 0.01, %v4456_v4 }
 0x60c   :  { %vm4473_vm10 = vcmp.ge.f32.partialorder %v4457_v40, 0.0  ;;  %v4489_v55 = vmul.f32 0.01, %v4457_v40  ;;  %v4458_v44 = vadd.f32 %v4442_v28, %v8745_v62  ;;  %v4443_v42 = vmul.f32 %v4427_v52, %v8737_v15 }
 0x60d   :  { %v4503_v10 = vsel %vm4471_vm8, %v4455_v50, %v4487_v63  ;;  %v4504_v60 = vsel %vm4472_vm9, %v4456_v4, %v4488_v23  ;;  %v4444_v17 = vmul.f32 %v4428_v8, %v8739_v29  ;;  %v4501_v27 = vsel %vm4469_vm6, %v4453_v5, %v4485_v14  ;;  %v8818_v5 = vld [vmem:[#allocation21] ss:$0 sm:$0xff] }
 0x60e   :  { %6271 = vmatprep.mubr.f32.mxu1 %v4503_v10  ;;  %6266 = vmatmul.mubr.f32.gmra.mrb[212].mxu0 %v4500_v31  ;;  %v4505_v32 = vsel %vm4473_vm10, %v4457_v40, %v4489_v55  ;;  %v4490_v35 = vmul.f32 0.01, %v4458_v44  ;;  %v4429_v38 = vmul.f32 %v8774_v48, %v4413_v33  ;;  %vm4474_vm11 = vcmp.ge.f32.partialorder %v4458_v44, 0.0 }
 0x60f   :  { %6272 = vmatmul.mubr.f32.vlgmr.msra.gmra.mrb[208].mxu1 %v4504_v60  ;;  %6268 = vmatprep.mubr.f32.mxu0 %v4501_v27  ;;  %v4459_v62 = vadd.f32 %v4443_v42, %v8747_v57  ;;  %v4460_v15 = vadd.f32 %v4444_v17, %v8753_v47  ;;  %v4430_v29 = vmul.f32 %v8774_v48, %v4414_v46 }
 0x610   :  { %6274 = vmatprep.mubr.f32.mxu1 %v4505_v32  ;;  %v4445_v9 = vmul.f32 %v4429_v38, %v8741_v16  ;;  %v4502_v25 = vsel %vm4470_vm7, %v4454_v3, %v4486_v36  ;;  %v4506_v19 = vsel %vm4474_vm11, %v4458_v44, %v4490_v35 }
 0x611   :  { %vm4475_vm12 = vcmp.ge.f32.partialorder %v4459_v62, 0.0  ;;  %v4491_v59 = vmul.f32 0.01, %v4459_v62  ;;  %v4492_v43 = vmul.f32 0.01, %v4460_v15  ;;  %v4446_v33 = vmul.f32 %v4430_v29, %v8757_v30 }
 0x612   :  { %6269 = vmatmul.mubr.f32.gmra.mrb[214].mxu0 %v4502_v25  ;;  %v4461_v39 = vadd.f32 %v4445_v9, %v8755_v45  ;;  %vm4476_vm13 = vcmp.ge.f32.partialorder %v4460_v15, 0.0 }
 0x613   :  { %6275 = vmatmul.mubr.f32.gmra.mrb[210].mxu1 %v4506_v19  ;;  %v4507_v57 = vsel %vm4475_vm12, %v4459_v62, %v4491_v59  ;;  %v4462_v1 = vadd.f32 %v4446_v33, %v8771_v34  ;;  %v4508_v16 = vsel %vm4476_vm13, %v4460_v15, %v4492_v43 }
 0x614   :  { %6277 = vmatprep.mubr.f32.mxu1 %v4507_v57  ;;  %vm4477_vm14 = vcmp.ge.f32.partialorder %v4461_v39, 0.0  ;;  %v4493_v47 = vmul.f32 0.01, %v4461_v39 }
 0x615   :  { %v4494_v21 = vmul.f32 0.01, %v4462_v1  ;;  %vm4478_vm15 = vcmp.ge.f32.partialorder %v4462_v1, 0.0 }
 0x616   :  { %v4509_v13 = vsel %vm4477_vm14, %v4461_v39, %v4493_v47 }
 0x617   :  { %6278 = vmatmul.mubr.f32.gmra.mrb[212].mxu1 %v4508_v16  ;;  %v4510_v56 = vsel %vm4478_vm15, %v4462_v1, %v4494_v21 }
 0x618   :  { %6280 = vmatprep.mubr.f32.mxu1 %v4509_v13 }
 0x61b   :  { %6281 = vmatmul.mubr.f32.gmra.mrb[214].mxu1 %v4510_v56 }
 0x6d9   :  { %v6261_v45 = vpop.f32.mrb[208].mxu0 }
 0x6da   :  { %v8821_v30 = vadd.f32 %v6261_v45, %v8818_v5  ;;  %v4600_v2 = vpop.f32.mrb[209].mxu0 }
 0x6db   :  { %v8824_v48 = vadd.f32 %v8818_v5, %v4600_v2 }
 0x6dc   :  { %4681 = vadd.xlane.f32.xlu1 %v8821_v30  ;;  %v4738_v24 = vmul.f32 %v8821_v30, %v8821_v30 }
 0x6dd   :  { %v6264_v34 = vpop.f32.mrb[210].mxu0  ;;  %4679 = vadd.xlane.f32.xlu0 %v8824_v48  ;;  %v4737_v6 = vmul.f32 %v8824_v48, %v8824_v48 }
 0x6de   :  { %v4610_v41 = vpop.f32.mrb[211].mxu0  ;;  %v8833_v0 = vadd.f32 %v6264_v34, %v8818_v5 }
 0x6df   :  { %v8841_v18 = vadd.f32 %v8818_v5, %v4610_v41 }
 0x6e0   :  { %4755 = vadd.xlane.f32.xlu1 %v4738_v24  ;;  %v4740_v58 = vmul.f32 %v8833_v0, %v8833_v0 }
 0x6e1   :  { %v6267_v11 = vpop.f32.mrb[212].mxu0  ;;  %4753 = vadd.xlane.f32.xlu0 %v4737_v6  ;;  %v4739_v4 = vmul.f32 %v8841_v18, %v8841_v18 }
 0x6e2   :  { %v6273_v51 = vpop.f32.mrb[208].mxu1  ;;  %v4620_v61 = vpop.f32.mrb[213].mxu0  ;;  %v8859_v31 = vadd.f32 %v6267_v11, %v8818_v5 }
 0x6e3   :  { %v8836_v37 = vadd.f32 %v6273_v51, %v8818_v5  ;;  %v4640_v53 = vpop.f32.mrb[209].mxu1  ;;  %v8865_v28 = vadd.f32 %v8818_v5, %v4620_v61 }
 0x6e4   :  { %v4742_v63 = vmul.f32 %v8859_v31, %v8859_v31  ;;  %v8889_v10 = vadd.f32 %v8818_v5, %v4640_v53 }
 0x6e5   :  { %4697 = vadd.xlane.f32.xlu1 %v8836_v37  ;;  %v6270_v3 = vpop.f32.mrb[214].mxu0  ;;  %4685 = vadd.xlane.f32.xlu0 %v8833_v0  ;;  %v4746_v12 = vmul.f32 %v8836_v37, %v8836_v37  ;;  %v4741_v55 = vmul.f32 %v8865_v28, %v8865_v28 }
 0x6e6   :  { %v6276_v46 = vpop.f32.mrb[210].mxu1  ;;  %v4630_v20 = vpop.f32.mrb[215].mxu0  ;;  %v4745_v17 = vmul.f32 %v8889_v10, %v8889_v10  ;;  %v8901_v32 = vadd.f32 %v6270_v3, %v8818_v5 }
 0x6e7   :  { %v4650_v49 = vpop.f32.mrb[211].mxu1  ;;  %v8847_v54 = vadd.f32 %v6276_v46, %v8818_v5  ;;  %v8883_v44 = vadd.f32 %v8818_v5, %v4630_v20 }
 0x6e8   :  { %v8853_v7 = vadd.f32 %v8818_v5, %v4650_v49  ;;  %v4744_v15 = vmul.f32 %v8901_v32, %v8901_v32 }
 0x6e9   :  { %4771 = vadd.xlane.f32.xlu1 %v4746_v12  ;;  %4683 = vadd.xlane.f32.xlu0 %v8841_v18  ;;  %v4748_v40 = vmul.f32 %v8847_v54, %v8847_v54  ;;  %v4743_v38 = vmul.f32 %v8883_v44, %v8883_v44 }
 0x6ea   :  { %v6279_v22 = vpop.f32.mrb[212].mxu1  ;;  %v4747_v52 = vmul.f32 %v8853_v7, %v8853_v7 }
 0x6eb   :  { %v4660_v26 = vpop.f32.mrb[213].mxu1  ;;  %v8871_v8 = vadd.f32 %v6279_v22, %v8818_v5 }
 0x6ec   :  { %v8877_v23 = vadd.f32 %v8818_v5, %v4660_v26 }
 0x6ed   :  { %4701 = vadd.xlane.f32.xlu1 %v8847_v54  ;;  %4759 = vadd.xlane.f32.xlu0 %v4740_v58  ;;  %v4750_v36 = vmul.f32 %v8871_v8, %v8871_v8 }
 0x6ee   :  { %v6282_v14 = vpop.f32.mrb[214].mxu1  ;;  %v4749_v60 = vmul.f32 %v8877_v23, %v8877_v23 }
 0x6ef   :  { %v4670_v50 = vpop.f32.mrb[215].mxu1  ;;  %v8895_v42 = vadd.f32 %v6282_v14, %v8818_v5 }
 0x6f0   :  { %v8904_v27 = vadd.f32 %v8818_v5, %v4670_v50 }
 0x6f1   :  { %4699 = vadd.xlane.f32.xlu1 %v8853_v7  ;;  %4757 = vadd.xlane.f32.xlu0 %v4739_v4  ;;  %v4752_v62 = vmul.f32 %v8895_v42, %v8895_v42 }
 0x6f2   :  { %v4751_v35 = vmul.f32 %v8904_v27, %v8904_v27 }
 0x6f5   :  { %4775 = vadd.xlane.f32.xlu1 %v4748_v40  ;;  %4689 = vadd.xlane.f32.xlu0 %v8859_v31 }
 0x6f9   :  { %4773 = vadd.xlane.f32.xlu1 %v4747_v52  ;;  %4687 = vadd.xlane.f32.xlu0 %v8865_v28 }
 0x6fd   :  { %4705 = vadd.xlane.f32.xlu1 %v8871_v8  ;;  %4763 = vadd.xlane.f32.xlu0 %v4742_v63 }
 0x701   :  { %4703 = vadd.xlane.f32.xlu1 %v8877_v23  ;;  %4761 = vadd.xlane.f32.xlu0 %v4741_v55 }
 0x705   :  { %4779 = vadd.xlane.f32.xlu1 %v4750_v36  ;;  %4691 = vadd.xlane.f32.xlu0 %v8883_v44 }
 0x709   :  { %4777 = vadd.xlane.f32.xlu1 %v4749_v60  ;;  %4695 = vadd.xlane.f32.xlu0 %v8889_v10 }
 0x70d   :  { %4709 = vadd.xlane.f32.xlu1 %v8895_v42  ;;  %4769 = vadd.xlane.f32.xlu0 %v4745_v17 }
 0x711   :  { %4707 = vadd.xlane.f32.xlu1 %v8904_v27  ;;  %4693 = vadd.xlane.f32.xlu0 %v8901_v32 }
 0x715   :  { %4781 = vadd.xlane.f32.xlu1 %v4751_v35  ;;  %4765 = vadd.xlane.f32.xlu0 %v4743_v38 }
 0x719   :  { %4783 = vadd.xlane.f32.xlu1 %v4752_v62  ;;  %4767 = vadd.xlane.f32.xlu0 %v4744_v15 }
 0x769   :  { %v4682_v29 = vpop.xlane.xlu1 %4681 }
 0x76a   :  { %v4680_v9 = vpop.xlane.xlu0 %4679 }
 0x76b   :  { %v4711_v24 = vadd.f32 %v4682_v29, %v4680_v9 }
 0x76d   :  { %v4756_v25 = vpop.xlane.xlu1 %4755 }
 0x76e   :  { %v4754_v59 = vpop.xlane.xlu0 %4753 }
 0x76f   :  { %v4785_v46 = vadd.f32 %v4756_v25, %v4754_v59 }
 0x772   :  { %v4698_v19 = vpop.xlane.xlu1 %4697  ;;  %v4686_v43 = vpop.xlane.xlu0 %4685 }
 0x776   :  { %v4772_v39 = vpop.xlane.xlu1 %4771  ;;  %v4684_v33 = vpop.xlane.xlu0 %4683 }
 0x777   :  { %v4712_v6 = vadd.f32 %v4711_v24, %v4684_v33 }
 0x779   :  { %v4713_v61 = vadd.f32 %v4712_v6, %v4686_v43 }
 0x77a   :  { %v4702_v57 = vpop.xlane.xlu1 %4701  ;;  %v4760_v47 = vpop.xlane.xlu0 %4759 }
 0x77e   :  { %v4700_v1 = vpop.xlane.xlu1 %4699  ;;  %v4758_v16 = vpop.xlane.xlu0 %4757 }
 0x77f   :  { %v4786_v12 = vadd.f32 %v4785_v46, %v4758_v16 }
 0x781   :  { %v4787_v40 = vadd.f32 %v4786_v12, %v4760_v47 }
 0x782   :  { %v4776_v21 = vpop.xlane.xlu1 %4775  ;;  %v4690_v13 = vpop.xlane.xlu0 %4689 }
 0x786   :  { %v4774_v56 = vpop.xlane.xlu1 %4773  ;;  %v4688_v5 = vpop.xlane.xlu0 %4687 }
 0x787   :  { %v4714_v20 = vadd.f32 %v4713_v61, %v4688_v5 }
 0x789   :  { %v4715_v14 = vadd.f32 %v4714_v20, %v4690_v13 }
 0x78a   :  { %v4706_v45 = vpop.xlane.xlu1 %4705  ;;  %v4764_v2 = vpop.xlane.xlu0 %4763 }
 0x78e   :  { %v4704_v34 = vpop.xlane.xlu1 %4703  ;;  %v4762_v41 = vpop.xlane.xlu0 %4761 }
 0x78f   :  { %v4788_v17 = vadd.f32 %v4787_v40, %v4762_v41 }
 0x792   :  { %v4780_v11 = vpop.xlane.xlu1 %4779  ;;  %v4692_v51 = vpop.xlane.xlu0 %4691 }
 0x793   :  { %v4716_v52 = vadd.f32 %v4715_v14, %v4692_v51 }
 0x796   :  { %v4778_v53 = vpop.xlane.xlu1 %4777  ;;  %v4696_v3 = vpop.xlane.xlu0 %4695 }
 0x797   :  { %v4724_v49 = vadd.f32 %v4698_v19, %v4696_v3 }
 0x799   :  { %v4725_v22 = vadd.f32 %v4724_v49, %v4700_v1 }
 0x79a   :  { %v4710_v26 = vpop.xlane.xlu1 %4709  ;;  %v4770_v58 = vpop.xlane.xlu0 %4769 }
 0x79b   :  { %v4726_v50 = vadd.f32 %v4725_v22, %v4702_v57  ;;  %v4798_v4 = vadd.f32 %v4772_v39, %v4770_v58  ;;  %v4789_v57 = vadd.f32 %v4788_v17, %v4764_v2 }
 0x79d   :  { %v4799_v63 = vadd.f32 %v4798_v4, %v4774_v56  ;;  %v4727_v55 = vadd.f32 %v4726_v50, %v4704_v34 }
 0x79e   :  { %v4708_v36 = vpop.xlane.xlu1 %4707  ;;  %v4694_v60 = vpop.xlane.xlu0 %4693 }
 0x79f   :  { %v4800_v35 = vadd.f32 %v4799_v63, %v4776_v21  ;;  %v4728_v38 = vadd.f32 %v4727_v55, %v4706_v45  ;;  %v4717_v62 = vadd.f32 %v4716_v52, %v4694_v60 }
 0x7a1   :  { %v4729_v15 = vadd.f32 %v4728_v38, %v4708_v36  ;;  %v4718_v29 = vrot.slane %v4717_v62, 4  ;;  %v4801_v9 = vadd.f32 %v4800_v35, %v4778_v53 }
 0x7a2   :  { %v4782_v25 = vpop.xlane.xlu1 %4781  ;;  %v4766_v59 = vpop.xlane.xlu0 %4765 }
 0x7a3   :  { %v4730_v19 = vadd.f32 %v4729_v15, %v4710_v26  ;;  %v4719_v43 = vadd.f32 %v4718_v29, %v4717_v62  ;;  %v4802_v33 = vadd.f32 %v4801_v9, %v4780_v11  ;;  %v4790_v16 = vadd.f32 %v4789_v57, %v4766_v59 }
 0x7a5   :  { %v4731_v39 = vrot.slane %v4730_v19, 4  ;;  %v4720_v47 = vrot.slane %v4719_v43, 2  ;;  %v4803_v1 = vadd.f32 %v4802_v33, %v4782_v25 }
 0x7a6   :  { %v4784_v13 = vpop.xlane.xlu1 %4783  ;;  %v4768_v56 = vpop.xlane.xlu0 %4767 }
 0x7a7   :  { %v4732_v5 = vadd.f32 %v4731_v39, %v4730_v19  ;;  %v4804_v34 = vadd.f32 %v4803_v1, %v4784_v13  ;;  %v4791_v21 = vadd.f32 %v4790_v16, %v4768_v56  ;;  %v4721_v41 = vadd.f32 %v4720_v47, %v4719_v43  ;;  %v4825_v16 = vld [vmem:[#allocation22] sm:$0xff] }
 0x7a9   :  { %v4733_v45 = vrot.slane %v4732_v5, 2  ;;  %v4805_v24 = vrot.slane %v4804_v34, 4  ;;  %v4792_v6 = vrot.slane %v4791_v21, 4  ;;  %v4722_v46 = vrot.slane %v4721_v41, 1 }
 0x7ab   :  { %v4734_v51 = vadd.f32 %v4733_v45, %v4732_v5  ;;  %v4806_v61 = vadd.f32 %v4805_v24, %v4804_v34  ;;  %v4793_v53 = vadd.f32 %v4792_v6, %v4791_v21  ;;  %v4723_v49 = vadd.f32 %v4722_v46, %v4721_v41  ;;  %v4827_v5 = vld [vmem:[#allocation22 + $0x10] sm:$0xff]  ;;  %v4829_v34 = vld [vmem:[#allocation22 + $0x20] sm:$0xff]  ;;  %v4830_v41 = vld [vmem:[#allocation22 + $0x28] sm:$0xff] }
 0x7ac   :  { %v4832_v24 = vld [vmem:[#allocation22 + $0x38] sm:$0xff] }
 0x7ad   :  { %v4735_v3 = vrot.slane %v4734_v51, 1  ;;  %v4807_v11 = vrot.slane %v4806_v61, 2  ;;  %v4794_v2 = vrot.slane %v4793_v53, 2  ;;  %v4811_v58 = vmul.f32 0.0009765625, %v4723_v49 }
 0x7af   :  { %v4736_v20 = vadd.f32 %v4735_v3, %v4734_v51  ;;  %v4808_v12 = vadd.f32 %v4807_v11, %v4806_v61  ;;  %v4795_v22 = vadd.f32 %v4794_v2, %v4793_v53  ;;  %v4815_v36 = vmul.f32 %v4811_v58, %v4811_v58  ;;  %v4833_v11 = vld [vmem:[#allocation24] sm:$0xff]  ;;  %v4834_v2 = vld [vmem:[#allocation24 + $0x8] sm:$0xff] }
 0x7b0   :  { %v4841_v29 = vsub.f32 %v8824_v48, %v4811_v58  ;;  %v4842_v9 = vsub.f32 %v8821_v30, %v4811_v58  ;;  %v4843_v25 = vsub.f32 %v8841_v18, %v4811_v58  ;;  %v4844_v59 = vsub.f32 %v8833_v0, %v4811_v58 }
 0x7b1   :  { %v4812_v26 = vmul.f32 0.0009765625, %v4736_v20  ;;  %v4809_v14 = vrot.slane %v4808_v12, 1  ;;  %v4796_v50 = vrot.slane %v4795_v22, 1  ;;  %v4845_v19 = vsub.f32 %v8865_v28, %v4811_v58 }
 0x7b2   :  { %v4846_v43 = vsub.f32 %v8859_v31, %v4811_v58  ;;  %v4847_v33 = vsub.f32 %v8883_v44, %v4811_v58  ;;  %v4848_v57 = vsub.f32 %v8901_v32, %v4811_v58  ;;  %v4826_v32 = vld [vmem:[#allocation22 + $0x8] sm:$0xff]  ;;  %v4836_v58 = vld [vmem:[#allocation24 + $0x18] sm:$0xff] }
 0x7b3   :  { %v4810_v4 = vadd.f32 %v4809_v14, %v4808_v12  ;;  %v4797_v40 = vadd.f32 %v4796_v50, %v4795_v22  ;;  %v4816_v52 = vmul.f32 %v4812_v26, %v4812_v26  ;;  %v4849_v39 = vsub.f32 %v8889_v10, %v4812_v26  ;;  %v4837_v14 = vld [vmem:[#allocation24 + $0x20] sm:$0xff] }
 0x7b4   :  { %v4850_v47 = vsub.f32 %v8836_v37, %v4812_v26  ;;  %v4851_v48 = vsub.f32 %v8853_v7, %v4812_v26  ;;  %v4852_v30 = vsub.f32 %v8847_v54, %v4812_v26  ;;  %v4853_v18 = vsub.f32 %v8877_v23, %v4812_v26  ;;  %v4828_v7 = vld [vmem:[#allocation22 + $0x18] sm:$0xff] }
 0x7b5   :  { %v4814_v63 = vmul.f32 0.0009765625, %v4810_v4  ;;  %v4813_v55 = vmul.f32 0.0009765625, %v4797_v40  ;;  %v4854_v0 = vsub.f32 %v8871_v8, %v4812_v26  ;;  %v4855_v28 = vsub.f32 %v8904_v27, %v4812_v26  ;;  %v4831_v8 = vld [vmem:[#allocation22 + $0x30] sm:$0xff] }
 0x7b6   :  { %v4856_v31 = vsub.f32 %v8895_v42, %v4812_v26  ;;  %v4835_v26 = vld [vmem:[#allocation24 + $0x10] sm:$0xff] }
 0x7b7   :  { %v4818_v60 = vsub.f32 %v4814_v63, %v4816_v52  ;;  %v4817_v17 = vsub.f32 %v4813_v55, %v4815_v36  ;;  %v4838_v63 = vld [vmem:[#allocation24 + $0x28] sm:$0xff]  ;;  %v4839_v55 = vld [vmem:[#allocation24 + $0x30] sm:$0xff]  ;;  %v4840_v36 = vld [vmem:[#allocation24 + $0x38] sm:$0xff] }
 0x7b9   :  { %v4820_v35 = vmax.f32 %v4818_v60, 0.0  ;;  %v4819_v38 = vmax.f32 %v4817_v17, 0.0 }
 0x7bb   :  { %v4822_v62 = vadd.f32 1e-05, %v4820_v35  ;;  %v4821_v15 = vadd.f32 1e-05, %v4819_v38 }
 0x7bd   :  { %6804 = vrsqrt.f32 %v4822_v62 }
 0x7be   :  { %6806 = vrsqrt.f32 %v4821_v15 }
 0x7c7   :  { %v6805_v1 = vpop.eup %6804 }
 0x7c8   :  { %v6807_v44 = vpop.eup %6806  ;;  %v4865_v13 = vmul.f32 %v6805_v1, %v4849_v39  ;;  %v4866_v10 = vmul.f32 %v6805_v1, %v4850_v47  ;;  %v4867_v56 = vmul.f32 %v6805_v1, %v4851_v48  ;;  %v4868_v37 = vmul.f32 %v6805_v1, %v4852_v30 }
 0x7c9   :  { %v4857_v54 = vmul.f32 %v6807_v44, %v4841_v29  ;;  %v4858_v21 = vmul.f32 %v6807_v44, %v4842_v9  ;;  %v4859_v45 = vmul.f32 %v6807_v44, %v4843_v25  ;;  %v4860_v23 = vmul.f32 %v6807_v44, %v4844_v59 }
 0x7ca   :  { %v4861_v27 = vmul.f32 %v6807_v44, %v4845_v19  ;;  %v4862_v6 = vmul.f32 %v6807_v44, %v4846_v43  ;;  %v4863_v42 = vmul.f32 %v6807_v44, %v4847_v33  ;;  %v4864_v51 = vmul.f32 %v6807_v44, %v4848_v57 }
 0x7cb   :  { %v4869_v61 = vmul.f32 %v6805_v1, %v4853_v18  ;;  %v4870_v53 = vmul.f32 %v6805_v1, %v4854_v0  ;;  %v4871_v3 = vmul.f32 %v6805_v1, %v4855_v28  ;;  %v4872_v46 = vmul.f32 %v6805_v1, %v4856_v31 }
 0x7cc   :  { %v4873_v20 = vmul.f32 %v4857_v54, %v4825_v16  ;;  %v4874_v49 = vmul.f32 %v4858_v21, %v4826_v32  ;;  %v4875_v12 = vmul.f32 %v4859_v45, %v4827_v5  ;;  %v4876_v22 = vmul.f32 %v4860_v23, %v4828_v7 }
 0x7cd   :  { %v4877_v50 = vmul.f32 %v4861_v27, %v4829_v34  ;;  %v4878_v4 = vmul.f32 %v4862_v6, %v4830_v41  ;;  %v4879_v40 = vmul.f32 %v4863_v42, %v4831_v8  ;;  %v4880_v52 = vmul.f32 %v4864_v51, %v4832_v24 }
 0x7ce   :  { %v4881_v60 = vmul.f32 %v4865_v13, %v4825_v16  ;;  %v4882_v17 = vmul.f32 %v4866_v10, %v4826_v32  ;;  %v4883_v35 = vmul.f32 %v4867_v56, %v4827_v5  ;;  %v4884_v38 = vmul.f32 %v4868_v37, %v4828_v7 }
 0x7cf   :  { %v4885_v62 = vmul.f32 %v4869_v61, %v4829_v34  ;;  %v4886_v15 = vmul.f32 %v4870_v53, %v4830_v41  ;;  %v4887_v29 = vmul.f32 %v4871_v3, %v4831_v8  ;;  %v4888_v9 = vmul.f32 %v4872_v46, %v4832_v24 }
 0x7d0   :  { %v4889_v25 = vadd.f32 %v4873_v20, %v4833_v11  ;;  %v4890_v59 = vadd.f32 %v4874_v49, %v4834_v2  ;;  %v4891_v19 = vadd.f32 %v4875_v12, %v4835_v26  ;;  %v4892_v43 = vadd.f32 %v4876_v22, %v4836_v58 }
 0x7d1   :  { %v4893_v33 = vadd.f32 %v4877_v50, %v4837_v14  ;;  %v4894_v57 = vadd.f32 %v4878_v4, %v4838_v63  ;;  %v4895_v39 = vadd.f32 %v4879_v40, %v4839_v55  ;;  %v4896_v47 = vadd.f32 %v4880_v52, %v4840_v36  ;;  %v6815_v4 = vld [vmem:[#allocation4 + $0x8] sm:$0xff]  ;;  %v6816_v52 = vld [vmem:[#allocation4 + $0x10] sm:$0xff] }
 0x7d2   :  { %v4897_v48 = vadd.f32 %v4881_v60, %v4833_v11  ;;  %v4898_v30 = vadd.f32 %v4882_v17, %v4834_v2  ;;  %v4899_v1 = vadd.f32 %v4883_v35, %v4835_v26  ;;  %v4900_v18 = vadd.f32 %v4884_v38, %v4836_v58  ;;  %v6818_v60 = vld [vmem:[#allocation4 + $0x20] sm:$0xff]  ;;  %v6819_v35 = vld [vmem:[#allocation4 + $0x28] sm:$0xff] }
 0x7d3   :  { %v4901_v0 = vadd.f32 %v4885_v62, %v4837_v14  ;;  %v4902_v28 = vadd.f32 %v4886_v15, %v4838_v63  ;;  %v4903_v31 = vadd.f32 %v4887_v29, %v4839_v55  ;;  %v4904_v44 = vadd.f32 %v4888_v9, %v4840_v36  ;;  %v6814_v14 = vld [vmem:[#allocation4] sm:$0xff]  ;;  %v6817_v55 = vld [vmem:[#allocation4 + $0x18] sm:$0xff]  ;;  %v6820_v62 = vld [vmem:[#allocation4 + $0x30] sm:$0xff] }
 0x7d4   :  { %vm4905_vm0 = vcmp.ge.f32.partialorder %v4889_v25, 0.0  ;;  %vm4906_vm1 = vcmp.ge.f32.partialorder %v4890_v59, 0.0  ;;  %vm4907_vm2 = vcmp.ge.f32.partialorder %v4891_v19, 0.0  ;;  %vm4908_vm3 = vcmp.ge.f32.partialorder %v4892_v43, 0.0  ;;  %v6821_v29 = vld [vmem:[#allocation4 + $0x38] sm:$0xff] }
 0x7d5   :  { %vm4909_vm4 = vcmp.ge.f32.partialorder %v4893_v33, 0.0  ;;  %vm4910_vm5 = vcmp.ge.f32.partialorder %v4894_v57, 0.0  ;;  %vm4911_vm6 = vcmp.ge.f32.partialorder %v4895_v39, 0.0  ;;  %vm4912_vm7 = vcmp.ge.f32.partialorder %v4896_v47, 0.0 }
 0x7d6   :  { %vm4913_vm8 = vcmp.ge.f32.partialorder %v4897_v48, 0.0  ;;  %vm4914_vm9 = vcmp.ge.f32.partialorder %v4898_v30, 0.0  ;;  %vm4915_vm10 = vcmp.ge.f32.partialorder %v4899_v1, 0.0  ;;  %vm4916_vm11 = vcmp.ge.f32.partialorder %v4900_v18, 0.0 }
 0x7d7   :  { %vm4917_vm12 = vcmp.ge.f32.partialorder %v4901_v0, 0.0  ;;  %vm4918_vm13 = vcmp.ge.f32.partialorder %v4902_v28, 0.0  ;;  %vm4919_vm14 = vcmp.ge.f32.partialorder %v4903_v31, 0.0  ;;  %vm4920_vm15 = vcmp.ge.f32.partialorder %v4904_v44, 0.0 }
 0x7d8   :  { %v4921_v16 = vmul.f32 0.01, %v4889_v25  ;;  %v4922_v32 = vmul.f32 0.01, %v4890_v59  ;;  %v4923_v13 = vmul.f32 0.01, %v4891_v19 }
 0x7d9   :  { %v4924_v10 = vmul.f32 0.01, %v4892_v43  ;;  %v4925_v56 = vmul.f32 0.01, %v4893_v33  ;;  %v4926_v37 = vmul.f32 0.01, %v4894_v57 }
 0x7da   :  { %v4927_v5 = vmul.f32 0.01, %v4895_v39  ;;  %v4928_v7 = vmul.f32 0.01, %v4896_v47  ;;  %v4929_v34 = vmul.f32 0.01, %v4897_v48  ;;  %v4937_v54 = vsel %vm4905_vm0, %v4889_v25, %v4921_v16 }
 0x7db   :  { %v4930_v21 = vmul.f32 0.01, %v4898_v30  ;;  %v4931_v45 = vmul.f32 0.01, %v4899_v1  ;;  %v4932_v23 = vmul.f32 0.01, %v4900_v18  ;;  %v4938_v41 = vsel %vm4906_vm1, %v4890_v59, %v4922_v32 }
 0x7dc   :  { %v4933_v8 = vmul.f32 0.01, %v4901_v0  ;;  %v4934_v24 = vmul.f32 0.01, %v4902_v28  ;;  %v4935_v27 = vmul.f32 0.01, %v4903_v31  ;;  %v4939_v6 = vsel %vm4907_vm2, %v4891_v19, %v4923_v13 }
 0x7dd   :  { %v4936_v42 = vmul.f32 0.01, %v4904_v44  ;;  %v4940_v51 = vsel %vm4908_vm3, %v4892_v43, %v4924_v10  ;;  %v4941_v61 = vsel %vm4909_vm4, %v4893_v33, %v4925_v56  ;;  %v4942_v53 = vsel %vm4910_vm5, %v4894_v57, %v4926_v37  ;;  %v6822_v25 = vld [vmem:[#allocation4 + $0x40] sm:$0xff]  ;;  %v6823_v19 = vld [vmem:[#allocation4 + $0x48] sm:$0xff]  ;;  %v6824_v33 = vld [vmem:[#allocation4 + $0x50] sm:$0xff] }
 0x7de   :  { %v4943_v3 = vsel %vm4911_vm6, %v4895_v39, %v4927_v5  ;;  %v4944_v46 = vsel %vm4912_vm7, %v4896_v47, %v4928_v7  ;;  %v4945_v11 = vsel %vm4913_vm8, %v4897_v48, %v4929_v34  ;;  %v4946_v2 = vsel %vm4914_vm9, %v4898_v30, %v4930_v21  ;;  %v6825_v39 = vld [vmem:[#allocation4 + $0x58] sm:$0xff]  ;;  %v6826_v48 = vld [vmem:[#allocation4 + $0x60] sm:$0xff] }
 0x7df   :  { %v4947_v20 = vsel %vm4915_vm10, %v4899_v1, %v4931_v45  ;;  %v4948_v49 = vsel %vm4916_vm11, %v4900_v18, %v4932_v23  ;;  %v4949_v12 = vsel %vm4917_vm12, %v4901_v0, %v4933_v8  ;;  %v4950_v22 = vsel %vm4918_vm13, %v4902_v28, %v4934_v24  ;;  %v6827_v1 = vld [vmem:[#allocation4 + $0x68] sm:$0xff]  ;;  %v6828_v0 = vld [vmem:[#allocation4 + $0x70] sm:$0xff] }
 0x7e0   :  { %v4951_v26 = vsel %vm4919_vm14, %v4903_v31, %v4935_v27  ;;  %v4952_v58 = vsel %vm4920_vm15, %v4904_v44, %v4936_v42  ;;  %v4953_v50 = vadd.f32 %v6814_v14, %v4937_v54  ;;  %v4954_v40 = vadd.f32 %v6815_v4, %v4938_v41  ;;  %v6829_v31 = vld [vmem:[#allocation4 + $0x78] sm:$0xff] }
 0x7e1   :  { %v8948_v63 = vadd.f32 %v6816_v52, %v4939_v6  ;;  %v8950_v36 = vadd.f32 %v6817_v55, %v4940_v51  ;;  %v8952_v17 = vadd.f32 %v6818_v60, %v4941_v61  ;;  %v8954_v38 = vadd.f32 %v6819_v35, %v4942_v53 }
 0x7e2   :  { %v8956_v15 = vadd.f32 %v6820_v62, %v4943_v3  ;;  %v4960_v9 = vadd.f32 %v6821_v29, %v4944_v46  ;;  %v4961_v59 = vadd.f32 %v6822_v25, %v4945_v11  ;;  %v4962_v43 = vadd.f32 %v6823_v19, %v4946_v2 }
 0x7e3   :  { %v4963_v57 = vadd.f32 %v6824_v33, %v4947_v20  ;;  %v4964_v47 = vadd.f32 %v6825_v39, %v4948_v49  ;;  %v4965_v30 = vadd.f32 %v6826_v48, %v4949_v12  ;;  %v8958_v18 = vadd.f32 %v6827_v1, %v4950_v22 }
 0x7e4   :  { %v4967_v28 = vadd.f32 %v6828_v0, %v4951_v26  ;;  %v4968_v44 = vadd.f32 %v6829_v31, %v4952_v58  ;;  %vm4969_vm0 = vcmp.ge.f32.partialorder %v4953_v50, 0.0  ;;  %vm4970_vm1 = vcmp.ge.f32.partialorder %v4954_v40, 0.0 }
 0x7e5   :  { %vm4971_vm2 = vcmp.ge.f32.partialorder %v8948_v63, 0.0  ;;  %vm4972_vm3 = vcmp.ge.f32.partialorder %v8950_v36, 0.0  ;;  %vm4973_vm4 = vcmp.ge.f32.partialorder %v8952_v17, 0.0  ;;  %vm4974_vm5 = vcmp.ge.f32.partialorder %v8954_v38, 0.0 }
 0x7e6   :  { %vm4975_vm6 = vcmp.ge.f32.partialorder %v8956_v15, 0.0  ;;  %vm4976_vm7 = vcmp.ge.f32.partialorder %v4960_v9, 0.0  ;;  %vm4977_vm8 = vcmp.ge.f32.partialorder %v4961_v59, 0.0  ;;  %vm4978_vm9 = vcmp.ge.f32.partialorder %v4962_v43, 0.0 }
 0x7e7   :  { %vm4979_vm10 = vcmp.ge.f32.partialorder %v4963_v57, 0.0  ;;  %vm4980_vm11 = vcmp.ge.f32.partialorder %v4964_v47, 0.0  ;;  %vm4981_vm12 = vcmp.ge.f32.partialorder %v4965_v30, 0.0  ;;  %vm4982_vm13 = vcmp.ge.f32.partialorder %v8958_v18, 0.0 }
 0x7e8   :  { %vm4983_vm14 = vcmp.ge.f32.partialorder %v4967_v28, 0.0  ;;  %vm4984_vm15 = vcmp.ge.f32.partialorder %v4968_v44, 0.0  ;;  %v4985_v16 = vmul.f32 0.01, %v4953_v50  ;;  %v4986_v32 = vmul.f32 0.01, %v4954_v40 }
 0x7e9   :  { %v4987_v13 = vmul.f32 0.01, %v8948_v63  ;;  %v4988_v10 = vmul.f32 0.01, %v8950_v36  ;;  %v4989_v56 = vmul.f32 0.01, %v8952_v17 }
 0x7ea   :  { %v4990_v37 = vmul.f32 0.01, %v8954_v38  ;;  %v4991_v5 = vmul.f32 0.01, %v8956_v15  ;;  %v4992_v7 = vmul.f32 0.01, %v4960_v9  ;;  %v5001_v34 = vsel %vm4969_vm0, %v4953_v50, %v4985_v16 }
 0x7eb   :  { %v4993_v54 = vmul.f32 0.01, %v4961_v59  ;;  %v4994_v21 = vmul.f32 0.01, %v4962_v43  ;;  %v4995_v45 = vmul.f32 0.01, %v4963_v57  ;;  %v5002_v23 = vsel %vm4970_vm1, %v4954_v40, %v4986_v32 }
 0x7ec   :  { %5017 = vst [vmem:[#allocation25] sm:$0xff] %v5001_v34  ;;  %v4996_v41 = vmul.f32 0.01, %v4964_v47  ;;  %v4997_v8 = vmul.f32 0.01, %v4965_v30  ;;  %v5003_v27 = vsel %vm4971_vm2, %v8948_v63, %v4987_v13  ;;  %5018 = vst [vmem:[#allocation25 + $0x8] sm:$0xff] %v5002_v23  ;;  %v5004_v51 = vsel %vm4972_vm3, %v8950_v36, %v4988_v10 }
 0x7ed   :  { %v4998_v24 = vmul.f32 0.01, %v8958_v18  ;;  %v4999_v6 = vmul.f32 0.01, %v4967_v28  ;;  %v5000_v42 = vmul.f32 0.01, %v4968_v44  ;;  %v5005_v61 = vsel %vm4973_vm4, %v8952_v17, %v4989_v56 }
 0x7ee   :  { %5019 = vst [vmem:[#allocation25 + $0x10] sm:$0xff] %v5003_v27  ;;  %v5006_v53 = vsel %vm4974_vm5, %v8954_v38, %v4990_v37  ;;  %v5007_v3 = vsel %vm4975_vm6, %v8956_v15, %v4991_v5  ;;  %v5008_v46 = vsel %vm4976_vm7, %v4960_v9, %v4992_v7  ;;  %v5009_v11 = vsel %vm4977_vm8, %v4961_v59, %v4993_v54 }
 0x7ef   :  { %5020 = vst [vmem:[#allocation25 + $0x18] sm:$0xff] %v5004_v51  ;;  %5021 = vst [vmem:[#allocation25 + $0x20] sm:$0xff] %v5005_v61  ;;  %v5010_v2 = vsel %vm4978_vm9, %v4962_v43, %v4994_v21  ;;  %v5011_v20 = vsel %vm4979_vm10, %v4963_v57, %v4995_v45  ;;  %v5012_v49 = vsel %vm4980_vm11, %v4964_v47, %v4996_v41 }
 0x7f0   :  { %v5013_v12 = vsel %vm4981_vm12, %v4965_v30, %v4997_v8  ;;  %5022 = vst [vmem:[#allocation25 + $0x28] sm:$0xff] %v5006_v53  ;;  %5023 = vst [vmem:[#allocation25 + $0x30] sm:$0xff] %v5007_v3  ;;  %v5014_v22 = vsel %vm4982_vm13, %v8958_v18, %v4998_v24  ;;  %v5015_v26 = vsel %vm4983_vm14, %v4967_v28, %v4999_v6 }
 0x7f1   :  { %5024 = vst [vmem:[#allocation25 + $0x38] sm:$0xff] %v5008_v46  ;;  %5025 = vst [vmem:[#allocation25 + $0x40] sm:$0xff] %v5009_v11  ;;  %v5016_v58 = vsel %vm4984_vm15, %v4968_v44, %v5000_v42 }
 0x7f2   :  { %5026 = vst [vmem:[#allocation25 + $0x48] sm:$0xff] %v5010_v2  ;;  %5027 = vst [vmem:[#allocation25 + $0x50] sm:$0xff] %v5011_v20 }
 0x7f3   :  { %5028 = vst [vmem:[#allocation25 + $0x58] sm:$0xff] %v5012_v49  ;;  %5029 = vst [vmem:[#allocation25 + $0x60] sm:$0xff] %v5013_v12 }
 0x7f4   :  { %5030 = vst [vmem:[#allocation25 + $0x68] sm:$0xff] %v5014_v22  ;;  %5031 = vst [vmem:[#allocation25 + $0x70] sm:$0xff] %v5015_v26 }
 0x7f5   :  { %5032 = vst [vmem:[#allocation25 + $0x78] sm:$0xff] %v5016_v58 }
 0x7f6   :  { %7127 = shalt.err (!%p7124_p10)
}
 0x7f7   :  { %s7128_s27 = scalar_lea.hbm %s9031_s13, 2048 }
 0x7f8   :  { %p7129_p11 = scmp.ne.s32.totalorder %s9031_s13, %s7128_s27  ;;  %p7132_p12 = scmp.lt.u32.totalorder %s7128_s27, %s9031_s13 }
 0x7fa   :  { %p7134_p13 = pnand %p7132_p12, %p7129_p11 }
 0x7fc   :  { %7137 = shalt.err (!%p7134_p13)
}
 0x7fd   :  { %5044 = dma.vmem_to_hbm [thread:$0]  %s5039_s1, 2048, %s9031_s13, [#allocation6], %s7156_s20, %s7156_s20, %s7157_s21  }
 0x7fe   :  { %7152 = dma.done.wait [#allocation6], 2048  }
 0x7ff   :  { %7153 = vsyncadd [#allocation6], 4294965248 }
 0x800   :  { %5048 = vsyncpa [#allocation5], 1 }
 0x801   :  { %5049 = vsyncpa [#allocation8], 1 }
 0x802   :  { %5050 = vsyncpa [#allocation11], 1 }
 0x803   :  { %5051 = vsyncpa [#allocation14], 1 }
 0x804   :  { %5052 = vsyncpa [#allocation17], 1 }
 0x805   :  { %5053 = vsyncpa [#allocation20], 1 }
 0x806   :  { %5054 = vsyncpa [#allocation23], 1 }
 0x807   :  { %5055 = vsyncpa [#allocation6], 1 }

</bundles_post_ra>
